<compile_context>
chip_gen: v6e
topology: v6e:2x2x1
jax: 0.10.0
libtpu: 0.0.40
codegen_flags: <defaults>
</compile_context>

<pallas_src>
import math

import jax
import jax.numpy as jnp
from jax import lax
from jax.experimental import pallas as pl
from jax.experimental.pallas import tpu as pltpu

LANE = 128
_ROW_CAP = 1024                 # 512-1024 row tiles sit near the HBM roofline
_VMEM_FLOOR = 32 * 1024 * 1024
_VMEM_CAP = 48 * 1024 * 1024    # < 64 MiB physical VMEM on v7x, fine on v5e/v6e


# ---------------- small helpers ----------------

def _rup(n, m):
    return -(-n // m) * m


def _row_tile(rows, batch, cap=_ROW_CAP):
    """Row tile: multiple of 8 dividing rows, <= cap, and >= 2 grid steps when possible."""
    if rows % 8 != 0:
        # Full-row block: always legal (block dim == array dim).
        # TODO(synk): explicitly pad rows if a huge non-8-divisible H*W ever appears.
        return rows
    if rows <= cap:
        t = rows
    else:
        t = cap - cap % 8
        while rows % t:
            t -= 8
    # Ensure >= 2 grid steps so v7x's second TensorCore has work (no-op on v5e/v6e).
    while batch * (rows // t) < 2 and t % 16 == 0 and rows % (t // 2) == 0:
        t //= 2
    return t


def _pad_last(t, target):
    pad = target - t.shape[-1]
    if pad == 0:
        return t
    cfg = [(0, 0)] * (t.ndim - 1) + [(0, pad)]
    return jnp.pad(t, cfg)


def _wpad(w, rows, cols):
    r, c = w.shape
    return jnp.pad(w, ((0, rows - r), (0, cols - c))).astype(jnp.bfloat16)


def _cvec(v):
    return v.astype(jnp.float32).reshape(1, 1, -1)


def _vmem_params(sems, blocks):
    """Compiler params with a VMEM limit derived from the per-step block footprint."""
    est = sum(int(math.prod(s)) * jnp.dtype(d).itemsize for s, d in blocks)
    limit = int(min(_VMEM_CAP, max(_VMEM_FLOOR, 4 * est + (4 << 20))))
    return pltpu.CompilerParams(dimension_semantics=tuple(sems),
                                vmem_limit_bytes=limit)


# ---------------- Pallas kernels ----------------

def _bn_relu_conv_kernel(x_ref, s_ref, b_ref, w_ref, o_ref):
    # BN(folded) -> ReLU in f32; 1x1 conv on MXU with bf16 operands / f32 accumulate.
    h = jnp.maximum(x_ref[0].astype(jnp.float32) * s_ref[0] + b_ref[0], 0.0)
    o_ref[0] = jnp.dot(h.astype(w_ref.dtype), w_ref[...],
                       preferred_element_type=jnp.float32).astype(o_ref.dtype)


def _bn_relu_conv_stats_kernel(x_ref, s_ref, b_ref, w_ref, o_ref, sum_ref, sq_ref):
    # Same as above, plus per-batch channel sum / sum-of-squares of the f32 conv output,
    # accumulated in the resident stat blocks across the row-tile grid axis.
    t = pl.program_id(1)

    @pl.when(t == 0)
    def _():
        sum_ref[...] = jnp.zeros_like(sum_ref)
        sq_ref[...] = jnp.zeros_like(sq_ref)

    h = jnp.maximum(x_ref[0].astype(jnp.float32) * s_ref[0] + b_ref[0], 0.0)
    acc = jnp.dot(h.astype(w_ref.dtype), w_ref[...], preferred_element_type=jnp.float32)
    o_ref[0] = acc.astype(o_ref.dtype)
    sum_ref[0] = sum_ref[0] + jnp.sum(acc, axis=0, keepdims=True)
    sq_ref[0] = sq_ref[0] + jnp.sum(acc * acc, axis=0, keepdims=True)


def _make_branch_stats_kernel(flags):
    # One pass over x_ and every branch activation: per-branch sum(u), sum(u^2), sum(u*x_)
    # per batch.  'resize' branches rebuild u = K @ y (bilinear kron) per row tile.
    n_br = sum(1 if d else 2 for d in flags)

    def kernel(*refs):
        f32 = jnp.float32
        x_ref = refs[0]
        br = refs[1:1 + n_br]
        stat_refs = refs[1 + n_br:]
        t = pl.program_id(1)

        @pl.when(t == 0)
        def _():
            for r in stat_refs:
                r[...] = jnp.zeros_like(r)

        xv = x_ref[0].astype(f32)
        idx, j = 0, 0
        for direct in flags:
            if direct:
                u = br[idx][0].astype(f32)
                idx += 1
            else:
                u = jnp.dot(br[idx + 1][...], br[idx][0].astype(f32),
                            preferred_element_type=f32)
                idx += 2
            stat_refs[j][0] = stat_refs[j][0] + jnp.sum(u, axis=0, keepdims=True)
            stat_refs[j + 1][0] = stat_refs[j + 1][0] + jnp.sum(u * u, axis=0, keepdims=True)
            stat_refs[j + 2][0] = stat_refs[j + 2][0] + jnp.sum(u * xv, axis=0, keepdims=True)
            j += 3

    return kernel


def _make_integration_kernel(flags):
    # out = sum_i dot(relu(bn_i(u_i + x_)), W_i) + dot(relu(bn_gap(g[b] + x_)), W_gap)
    # with the bilinear upsample folded in (u_i = K_i @ y_i) and the per-batch channel
    # sum of the output emitted for the attention GAP MLP.
    n = len(flags)
    n_br = sum(1 if d else 2 for d in flags)

    def kernel(*refs):
        f32 = jnp.float32
        x_ref, g_ref = refs[0], refs[1]
        br = refs[2:2 + n_br]
        s_ref, b_ref, w_ref = refs[2 + n_br:5 + n_br]
        o_ref, sum_ref = refs[5 + n_br], refs[6 + n_br]
        t = pl.program_id(1)

        @pl.when(t == 0)
        def _():
            sum_ref[...] = jnp.zeros_like(sum_ref)

        xv = x_ref[0].astype(f32)
        acc = None
        idx = 0
        for i, direct in enumerate(flags):
            if direct:
                u = br[idx][0].astype(f32)
                idx += 1
            else:
                u = jnp.dot(br[idx + 1][...], br[idx][0].astype(f32),
                            preferred_element_type=f32)
                idx += 2
            h = jnp.maximum((u + xv) * s_ref[i] + b_ref[i], 0.0)
            d = jnp.dot(h.astype(w_ref.dtype), w_ref[i], preferred_element_type=f32)
            acc = d if acc is None else acc + d
        hg = jnp.maximum((g_ref[0].astype(f32) + xv) * s_ref[n] + b_ref[n], 0.0)
        acc = acc + jnp.dot(hg.astype(w_ref.dtype), w_ref[n], preferred_element_type=f32)
        o_ref[0] = acc.astype(o_ref.dtype)
        sum_ref[0] = sum_ref[0] + jnp.sum(acc, axis=0, keepdims=True)

    return kernel


def _attention_kernel(so_ref, kloc_ref, g_ref, wp1_ref, wp2_ref, wl1_ref, wl2_ref,
                      o_ref, sum_ref, sq_ref):
    # Fully-fused channel attention: point-wise MLP, 3x3 local avg-pool (banded kron matmul)
    # + local MLP, per-batch GAP MLP term, sigmoid gate, residual; emits so_att stats.
    f32 = jnp.float32
    so = so_ref[0]                                                     # (HW, C) bf16
    h = jnp.maximum(jnp.dot(so, wp1_ref[...], preferred_element_type=f32), 0.0)
    att = jnp.dot(h.astype(wp2_ref.dtype), wp2_ref[...], preferred_element_type=f32)
    loc = jnp.dot(kloc_ref[...], so.astype(f32), preferred_element_type=f32)
    h2 = jnp.maximum(jnp.dot(loc.astype(wl1_ref.dtype), wl1_ref[...],
                             preferred_element_type=f32), 0.0)
    att = att + jnp.dot(h2.astype(wl2_ref.dtype), wl2_ref[...], preferred_element_type=f32)
    att = att + g_ref[0].astype(f32)
    sig = pl.reciprocal(1.0 + jnp.exp(-att), approx=True)             # sigmoid via EUP
    so_att = so.astype(f32) * (sig + 1.0)                             # shortcut is identity
    o_ref[0] = so_att.astype(o_ref.dtype)
    sum_ref[0] = jnp.sum(so_att, axis=0, keepdims=True)
    sq_ref[0] = jnp.sum(so_att * so_att, axis=0, keepdims=True)


def _make_compress_kernel(transpose_out):
    # compression on the (so_att | x_) channel split + shortcut(x) residual, fused; the
    # NHWC->NCHW transpose of the output is folded into the epilogue when possible.
    def kernel(sa_ref, xb_ref, x_ref, s1, b1, s2, b2, s3, b3, w1, w2, w3, o_ref):
        f32 = jnp.float32
        h = jnp.maximum(sa_ref[0].astype(f32) * s1[0] + b1[0], 0.0)
        acc = jnp.dot(h.astype(w1.dtype), w1[...], preferred_element_type=f32)
        h = jnp.maximum(xb_ref[0].astype(f32) * s2[0] + b2[0], 0.0)
        acc = acc + jnp.dot(h.astype(w2.dtype), w2[...], preferred_element_type=f32)
        h = jnp.maximum(x_ref[0].astype(f32) * s3[0] + b3[0], 0.0)
        acc = acc + jnp.dot(h.astype(w3.dtype), w3[...], preferred_element_type=f32)
        if transpose_out:
            o_ref[0] = acc.T
        else:
            o_ref[0] = acc

    return kernel


# ---------------- Pallas wrappers ----------------

def bn_relu_conv(x3, scale, shift, w, out_dtype=jnp.bfloat16):
    B, R, Cin = x3.shape
    Cout = w.shape[1]
    TM = _row_tile(R, B)
    grid = (B, R // TM)
    tile = pl.BlockSpec((1, TM, Cin), lambda b, t: (b, t, 0))
    vec = pl.BlockSpec((1, 1, Cin), lambda b, t: (0, 0, 0))
    return pl.pallas_call(
        _bn_relu_conv_kernel,
        out_shape=jax.ShapeDtypeStruct((B, R, Cout), out_dtype),
        grid=grid,
        in_specs=[tile, vec, vec, pl.BlockSpec((Cin, Cout), lambda b, t: (0, 0))],
        out_specs=pl.BlockSpec((1, TM, Cout), lambda b, t: (b, t, 0)),
        compiler_params=_vmem_params(
            ("parallel", "parallel"),
            [((TM, Cin), x3.dtype), ((Cin, Cout), w.dtype), ((TM, Cout), out_dtype)]),
    )(x3, scale, shift, w)


def bn_relu_conv_stats(x3, scale, shift, w, out_dtype=jnp.bfloat16):
    B, R, Cin = x3.shape
    Cout = w.shape[1]
    TM = _row_tile(R, B)
    grid = (B, R // TM)
    tile = pl.BlockSpec((1, TM, Cin), lambda b, t: (b, t, 0))
    vec = pl.BlockSpec((1, 1, Cin), lambda b, t: (0, 0, 0))
    svec = pl.BlockSpec((1, 1, Cout), lambda b, t: (b, 0, 0))
    return pl.pallas_call(
        _bn_relu_conv_stats_kernel,
        out_shape=(jax.ShapeDtypeStruct((B, R, Cout), out_dtype),
                   jax.ShapeDtypeStruct((B, 1, Cout), jnp.float32),
                   jax.ShapeDtypeStruct((B, 1, Cout), jnp.float32)),
        grid=grid,
        in_specs=[tile, vec, vec, pl.BlockSpec((Cin, Cout), lambda b, t: (0, 0))],
        out_specs=(pl.BlockSpec((1, TM, Cout), lambda b, t: (b, t, 0)), svec, svec),
        compiler_params=_vmem_params(
            ("parallel", "arbitrary"),
            [((TM, Cin), x3.dtype), ((Cin, Cout), w.dtype),
             ((TM, Cout), out_dtype), ((TM, Cout), jnp.float32)]),
    )(x3, scale, shift, w)


def branch_stats(x_, branches):
    """One fused pass: per-branch (sum u, sum u^2, sum u*x_) per batch."""
    B, R, C = x_.shape
    TM = _row_tile(R, B)
    grid = (B, R // TM)
    n = len(branches)
    tile = pl.BlockSpec((1, TM, C), lambda b, t: (b, t, 0))
    in_specs, args, flags = [tile], [x_], []
    est = [((TM, C), x_.dtype)]
    for br in branches:
        if br[0] == 'direct':
            flags.append(True)
            in_specs.append(tile)
            args.append(br[1])
            est.append(((TM, C), br[1].dtype))
        else:
            flags.append(False)
            y, K = br[1], br[2]
            Rp = y.shape[1]
            in_specs.append(pl.BlockSpec((1, Rp, C), lambda b, t: (b, 0, 0)))
            in_specs.append(pl.BlockSpec((TM, Rp), lambda b, t: (t, 0)))
            args.extend([y, K])
            est.extend([((Rp, C), y.dtype), ((TM, Rp), K.dtype)])
    svec = pl.BlockSpec((1, 1, C), lambda b, t: (b, 0, 0))
    return pl.pallas_call(
        _make_branch_stats_kernel(tuple(flags)),
        out_shape=tuple(jax.ShapeDtypeStruct((B, 1, C), jnp.float32)
                        for _ in range(3 * n)),
        grid=grid,
        in_specs=in_specs,
        out_specs=tuple(svec for _ in range(3 * n)),
        compiler_params=_vmem_params(("parallel", "arbitrary"), est),
    )(*args)


def integration(x_, g3, branches, sc, sh, w_split):
    B, R, C = x_.shape
    nb = w_split.shape[0]
    TM = _row_tile(R, B)
    grid = (B, R // TM)
    tile = pl.BlockSpec((1, TM, C), lambda b, t: (b, t, 0))
    in_specs = [tile, pl.BlockSpec((1, 1, C), lambda b, t: (b, 0, 0))]
    args, flags = [x_, g3], []
    est = [((TM, C), x_.dtype), ((nb, C, C), w_split.dtype), ((TM, C), jnp.bfloat16)]
    for br in branches:
        if br[0] == 'direct':
            flags.append(True)
            in_specs.append(tile)
            args.append(br[1])
            est.append(((TM, C), br[1].dtype))
        else:
            flags.append(False)
            y, K = br[1], br[2]
            Rp = y.shape[1]
            in_specs.append(pl.BlockSpec((1, Rp, C), lambda b, t: (b, 0, 0)))
            in_specs.append(pl.BlockSpec((TM, Rp), lambda b, t: (t, 0)))
            args.extend([y, K])
            est.extend([((Rp, C), y.dtype), ((TM, Rp), K.dtype)])
    in_specs += [pl.BlockSpec((nb, C), lambda b, t: (0, 0)),
                 pl.BlockSpec((nb, C), lambda b, t: (0, 0)),
                 pl.BlockSpec((nb, C, C), lambda b, t: (0, 0, 0))]
    args += [sc, sh, w_split]
    return pl.pallas_call(
        _make_integration_kernel(tuple(flags)),
        out_shape=(jax.ShapeDtypeStruct((B, R, C), jnp.bfloat16),
                   jax.ShapeDtypeStruct((B, 1, C), jnp.float32)),
        grid=grid,
        in_specs=in_specs,
        out_specs=(tile, pl.BlockSpec((1, 1, C), lambda b, t: (b, 0, 0))),
        compiler_params=_vmem_params(("parallel", "arbitrary"), est),
    )(*args)


def attention_fused(so, kloc, a_gap3, wp1, wp2, wl1, wl2):
    B, R, C = so.shape
    Cm = wp1.shape[1]
    grid = (B,)
    img = pl.BlockSpec((1, R, C), lambda b: (b, 0, 0))
    svec = pl.BlockSpec((1, 1, C), lambda b: (b, 0, 0))
    return pl.pallas_call(
        _attention_kernel,
        out_shape=(jax.ShapeDtypeStruct((B, R, C), jnp.bfloat16),
                   jax.ShapeDtypeStruct((B, 1, C), jnp.float32),
                   jax.ShapeDtypeStruct((B, 1, C), jnp.float32)),
        grid=grid,
        in_specs=[img,
                  pl.BlockSpec((R, R), lambda b: (0, 0)),
                  pl.BlockSpec((1, 1, C), lambda b: (b, 0, 0)),
                  pl.BlockSpec((C, Cm), lambda b: (0, 0)),
                  pl.BlockSpec((Cm, C), lambda b: (0, 0)),
                  pl.BlockSpec((C, Cm), lambda b: (0, 0)),
                  pl.BlockSpec((Cm, C), lambda b: (0, 0))],
        out_specs=(img, svec, svec),
        compiler_params=_vmem_params(
            ("parallel",),
            [((R, C), so.dtype), ((R, R), kloc.dtype), ((R, C), jnp.float32),
             ((R, C), jnp.bfloat16), ((C, Cm), wp1.dtype)]),
    )(so, kloc, a_gap3, wp1, wp2, wl1, wl2)


def compress_shortcut(so_att, x_, x3, s1, b1, s2, b2, s3, b3, w1, w2, w3):
    B, R, C1 = so_att.shape
    C2 = x3.shape[2]
    Co = w1.shape[1]
    TM = _row_tile(R, B)
    grid = (B, R // TM)
    transpose_out = (TM % 128 == 0) and (Co % 128 == 0)
    t1 = pl.BlockSpec((1, TM, C1), lambda b, t: (b, t, 0))
    t2 = pl.BlockSpec((1, TM, C2), lambda b, t: (b, t, 0))
    v1 = pl.BlockSpec((1, 1, C1), lambda b, t: (0, 0, 0))
    v2 = pl.BlockSpec((1, 1, C2), lambda b, t: (0, 0, 0))
    if transpose_out:
        out_shape = jax.ShapeDtypeStruct((B, Co, R), jnp.float32)
        out_spec = pl.BlockSpec((1, Co, TM), lambda b, t: (b, 0, t))
    else:
        out_shape = jax.ShapeDtypeStruct((B, R, Co), jnp.float32)
        out_spec = pl.BlockSpec((1, TM, Co), lambda b, t: (b, t, 0))
    out = pl.pallas_call(
        _make_compress_kernel(transpose_out),
        out_shape=out_shape,
        grid=grid,
        in_specs=[t1, t1, t2, v1, v1, v1, v1, v2, v2,
                  pl.BlockSpec((C1, Co), lambda b, t: (0, 0)),
                  pl.BlockSpec((C1, Co), lambda b, t: (0, 0)),
                  pl.BlockSpec((C2, Co), lambda b, t: (0, 0))],
        out_specs=out_spec,
        compiler_params=_vmem_params(
            ("parallel", "parallel"),
            [((TM, C1), so_att.dtype), ((TM, C1), x_.dtype), ((TM, C2), x3.dtype),
             ((TM, Co), jnp.float32), ((2 * C1 + C2, Co), jnp.bfloat16)]),
    )(so_att, x_, x3, s1, b1, s2, b2, s3, b3, w1, w2, w3)
    return out, transpose_out


# ---------------- plain-JAX glue (input stats, pooling, interp matrices) ----------------

def _stats(t):
    """One-pass per-channel batch statistics: (mean, mean-of-square)."""
    tf = t.astype(jnp.float32).reshape(-1, t.shape[-1])
    return jnp.mean(tf, axis=0), jnp.mean(tf * tf, axis=0)


def _fold(mean, ex2, gamma, beta, eps=1e-5):
    # Train-mode BN (biased batch variance) folded to scale/shift.
    var = jnp.maximum(ex2 - mean * mean, 0.0)
    scale = gamma * lax.rsqrt(var + eps)
    shift = beta - mean * scale
    return scale, shift


def avg_pool_nhwc(x, k, s, p):
    # PyTorch AvgPool2d defaults: count_include_pad=True, ceil_mode=False.
    # TODO(synk): the n_pool pyramid pools still read x separately in f32; batch them.
    out = lax.reduce_window(x, 0.0, lax.add, (1, k, k, 1), (1, s, s, 1),
                            [(0, 0), (p, p), (p, p), (0, 0)])
    return out * (1.0 / float(k * k))


def _interp_matrix(out_size, in_size):
    # bilinear, align_corners=True
    if in_size == 1:
        return jnp.ones((out_size, 1), jnp.float32)
    if out_size == 1:
        return jax.nn.one_hot(jnp.array([0]), in_size, dtype=jnp.float32)
    pos = jnp.arange(out_size, dtype=jnp.float32) * (in_size - 1) / (out_size - 1)
    low = jnp.clip(jnp.floor(pos).astype(jnp.int32), 0, in_size - 2)
    frac = pos - low.astype(jnp.float32)
    return (jax.nn.one_hot(low, in_size, dtype=jnp.float32) * (1.0 - frac)[:, None]
            + jax.nn.one_hot(low + 1, in_size, dtype=jnp.float32) * frac[:, None])


def _bilinear_kron(H, W, Hp, Wp):
    # (HW, Hp*Wp): flattened-raster bilinear upsample operator (align_corners=True).
    return jnp.kron(_interp_matrix(H, Hp), _interp_matrix(W, Wp)).astype(jnp.float32)


def _band(n):
    idx = jnp.arange(n)
    return (jnp.abs(idx[:, None] - idx[None, :]) <= 1).astype(jnp.float32)


def _avgpool3_kron(H, W):
    # (HW, HW): 3x3 avg pool, stride 1, pad 1, count_include_pad=True (divide by 9 always).
    return jnp.kron(_band(H), _band(W)) * (1.0 / 9.0)


# ---------------- PAPPM forward ----------------

def pappm_forward(x, p, scales):
    f32, bf16 = jnp.float32, jnp.bfloat16
    B, Cin, H, W = x.shape
    HW = H * W
    bp = p['scale0_w'].shape[1]
    outp = p['short_w'].shape[1]
    mid = p['att_pw_w1'].shape[1]
    Cin_p, bp_p, outp_p, mid_p = (_rup(c, LANE) for c in (Cin, bp, outp, mid))

    # single NCHW -> NHWC transpose; everything below is pixel-major
    x_nhwc = jnp.transpose(x, (0, 2, 3, 1))                        # (B,H,W,Cin) f32
    x3 = _pad_last(x_nhwc.reshape(B, HW, Cin), Cin_p).astype(bf16)

    # input-x stats feed the scale0 and shortcut BNs
    mu_x, ex2_x = _stats(x_nhwc)
    sc0, sh0 = _fold(mu_x, ex2_x, p['scale0_bn_g'], p['scale0_bn_b'])

    # ---- scale0: BN -> ReLU -> 1x1 conv, with in-kernel x_ statistics ----
    x_, xsum_b, xsq_b = bn_relu_conv_stats(
        x3, _cvec(_pad_last(sc0, Cin_p)), _cvec(_pad_last(sh0, Cin_p)),
        _wpad(p['scale0_w'], Cin_p, bp_p))                         # (B,HW,bp_p) bf16
    cnt = float(B * HW)
    mu_x_ = jnp.sum(xsum_b[:, 0, :], axis=0) / cnt
    ex2_x_ = jnp.sum(xsq_b[:, 0, :], axis=0) / cnt
    xmean_b = xsum_b[:, 0, :] / float(HW)                          # (B, bp_p)

    # ---- pyramid pooling branches (small pooled conv; upsample folded into kernels) ----
    branches = []
    for i in range(scales):
        k, st, pd = 3 + 4 * i, 1 + 2 * i, 1 + 2 * i
        pooled = avg_pool_nhwc(x_nhwc, k, st, pd)                  # (B,Hp,Wp,Cin) f32
        Hp, Wp = pooled.shape[1], pooled.shape[2]
        mu, ex2 = _stats(pooled)
        sc, sh = _fold(mu, ex2, p[f'pool{i}_bn_g'], p[f'pool{i}_bn_b'])
        p3 = _pad_last(pooled.reshape(B, Hp * Wp, Cin), Cin_p).astype(bf16)
        y = bn_relu_conv(p3, _cvec(_pad_last(sc, Cin_p)), _cvec(_pad_last(sh, Cin_p)),
                         _wpad(p[f'pool{i}_w'], Cin_p, bp_p))      # (B,Hp*Wp,bp_p) bf16
        if (Hp, Wp) == (H, W):
            branches.append(('direct', y))                         # interp == identity
        else:
            branches.append(('resize', y, _bilinear_kron(H, W, Hp, Wp)))

    # ---- GAP branch (AdaptiveMaxPool2d(1,1) per the reference -> BN -> ReLU -> conv) ----
    gmax = jnp.max(x_nhwc, axis=(1, 2))                            # (B, Cin)
    mu_g, ex2_g = _stats(gmax)
    scg, shg = _fold(mu_g, ex2_g, p['gap_bn_g'], p['gap_bn_b'])
    g2 = jnp.maximum(gmax * scg + shg, 0.0) @ p['gap_w']           # (B, bp)
    g2p = _pad_last(g2, bp_p)                                      # (B, bp_p) f32

    # ---- fused integration-BN statistics: one bf16 pass over x_ and all branches ----
    stat_outs = branch_stats(x_, branches)
    int_sc, int_sh = [], []
    for i in range(scales):
        s_u = jnp.sum(stat_outs[3 * i][:, 0, :], axis=0) / cnt
        s_uu = jnp.sum(stat_outs[3 * i + 1][:, 0, :], axis=0) / cnt
        s_ux = jnp.sum(stat_outs[3 * i + 2][:, 0, :], axis=0) / cnt
        sc_i, sh_i = _fold(s_u + mu_x_, s_uu + 2.0 * s_ux + ex2_x_,
                           _pad_last(p['int_bn_g'][i * bp:(i + 1) * bp], bp_p),
                           _pad_last(p['int_bn_b'][i * bp:(i + 1) * bp], bp_p))
        int_sc.append(sc_i)
        int_sh.append(sh_i)
    mu_gb = jnp.mean(g2p, axis=0)
    ex2_gb = jnp.mean(g2p * g2p, axis=0)
    cross_g = jnp.mean(g2p * xmean_b, axis=0)
    sc_i, sh_i = _fold(mu_gb + mu_x_, ex2_gb + 2.0 * cross_g + ex2_x_,
                       _pad_last(p['int_bn_g'][scales * bp:], bp_p),
                       _pad_last(p['int_bn_b'][scales * bp:], bp_p))
    int_sc.append(sc_i)
    int_sh.append(sh_i)

    # ---- fused integration (upsample + '+x_' + BN/ReLU + per-branch conv, no concat) ----
    # TODO(synk): merge the per-branch K=128 dots into one K=(nb*128) dot on v6e/v7x.
    w_split = jnp.stack([_wpad(p['int_w'][i * bp:(i + 1) * bp, :], bp_p, bp_p)
                         for i in range(scales + 1)], axis=0)      # (nb, bp_p, bp_p)
    so, so_sum = integration(x_, g2p.reshape(B, 1, bp_p).astype(f32), branches,
                             jnp.stack(int_sc, 0), jnp.stack(int_sh, 0), w_split)

    # ---- fused channel attention (local 3x3 pool done in-kernel) ----
    gavg = so_sum[:, 0, :] / float(HW)                             # (B, bp_p)
    a_gap = jnp.maximum(gavg[:, :bp] @ p['att_gap_w1'], 0.0) @ p['att_gap_w2']
    a_gap3 = _pad_last(a_gap, bp_p).reshape(B, 1, bp_p).astype(f32)
    kloc = _avgpool3_kron(H, W)                                    # (HW, HW) f32
    # F.interpolate(local, (H,W), align_corners=True) is the identity here (same size).
    so_att, ssum, ssq = attention_fused(so, kloc, a_gap3,
                                        _wpad(p['att_pw_w1'], bp_p, mid_p),
                                        _wpad(p['att_pw_w2'], mid_p, bp_p),
                                        _wpad(p['att_loc_w1'], bp_p, mid_p),
                                        _wpad(p['att_loc_w2'], mid_p, bp_p))

    # ---- fused compression + shortcut, NHWC->NCHW folded into the kernel epilogue ----
    mu_a = jnp.sum(ssum[:, 0, :], axis=0) / cnt
    ex2_a = jnp.sum(ssq[:, 0, :], axis=0) / cnt
    sca, sha = _fold(mu_a, ex2_a, _pad_last(p['comp_bn_g'][:bp], bp_p),
                     _pad_last(p['comp_bn_b'][:bp], bp_p))
    scb, shb = _fold(mu_x_, ex2_x_, _pad_last(p['comp_bn_g'][bp:], bp_p),
                     _pad_last(p['comp_bn_b'][bp:], bp_p))
    scs, shs = _fold(mu_x, ex2_x, p['short_bn_g'], p['short_bn_b'])
    out_raw, transposed = compress_shortcut(
        so_att, x_, x3,
        _cvec(sca), _cvec(sha), _cvec(scb), _cvec(shb),
        _cvec(_pad_last(scs, Cin_p)), _cvec(_pad_last(shs, Cin_p)),
        _wpad(p['comp_w'][:bp], bp_p, outp_p),
        _wpad(p['comp_w'][bp:], bp_p, outp_p),
        _wpad(p['short_w'], Cin_p, outp_p))

    if transposed:                                                 # (B, outp_p, HW) f32
        out = out_raw[:, :outp, :].reshape(B, outp, H, W)
    else:                                                          # (B, HW, outp_p) f32
        out = jnp.transpose(out_raw[..., :outp].reshape(B, H, W, outp), (0, 3, 1, 2))
    return out


# ---------------- deterministic parameter init ----------------

def init_params(key, inplanes, bp, outp, scales):
    p = {}
    k = [key]

    def take():
        k[0], sub = jax.random.split(k[0])
        return sub

    def bn(name, c):
        p[name + '_g'] = 1.0 + 0.1 * jax.random.normal(take(), (c,), jnp.float32)
        p[name + '_b'] = 0.1 * jax.random.normal(take(), (c,), jnp.float32)

    def conv(name, cin, cout):
        p[name] = 0.1 * jax.random.normal(take(), (cin, cout), jnp.float32)

    bn('scale0_bn', inplanes); conv('scale0_w', inplanes, bp)
    for i in range(scales):
        bn(f'pool{i}_bn', inplanes); conv(f'pool{i}_w', inplanes, bp)
    bn('gap_bn', inplanes); conv('gap_w', inplanes, bp)
    bn('int_bn', bp * (scales + 1)); conv('int_w', bp * (scales + 1), bp)
    bn('comp_bn', 2 * bp); conv('comp_w', 2 * bp, outp)
    bn('short_bn', inplanes); conv('short_w', inplanes, outp)
    mid = bp // 4
    conv('att_gap_w1', bp, mid); conv('att_gap_w2', mid, bp)
    conv('att_pw_w1', bp, mid); conv('att_pw_w2', mid, bp)
    conv('att_loc_w1', bp, mid); conv('att_loc_w2', mid, bp)
    return p


if __name__ == "__main__":
    B, inplanes, H, W = 2, 16, 16, 16
    branch_planes, outplanes, scales = 16, 16, 2

    key = jax.random.PRNGKey(0)
    kx, kp = jax.random.split(key)
    x = jax.random.normal(kx, (B, inplanes, H, W), jnp.float32)
    params = init_params(kp, inplanes, branch_planes, outplanes, scales)

    fwd = jax.jit(lambda xx: pappm_forward(xx, params, scales))
    out = fwd(x)
    jax.block_until_ready(out)
    assert out.shape == (B, outplanes, H, W)
    assert bool(jnp.all(jnp.isfinite(out)))
    print("KERNEL_OK")
</pallas_src>

<mosaic_0001>
module attributes {stable_mosaic.version = 11 : i64} {
  func.func @_bn_relu_conv_kernel(%arg0: i32, %arg1: i32, %arg2: memref<1x36x128xbf16, #tpu.memory_space<vmem>>, %arg3: memref<1x1x128xf32, #tpu.memory_space<vmem>>, %arg4: memref<1x1x128xf32, #tpu.memory_space<vmem>>, %arg5: memref<128x128xbf16, #tpu.memory_space<vmem>>, %arg6: memref<1x36x128xbf16, #tpu.memory_space<vmem>>) attributes {dimension_semantics = [#tpu.dimension_semantics<parallel>, #tpu.dimension_semantics<parallel>], iteration_bounds = array<i64: 2, 1>, scalar_prefetch = 0 : i64, scratch_operands = 0 : i64, tpu.core_type = #tpu.core_type<tc>, window_params = [{transform_indices = @transform_0, window_bounds = array<i64: 1, 36, 128>}, {pipeline_mode = #tpu.pipeline_mode<synchronous>, transform_indices = @transform_1, window_bounds = array<i64: 1, 1, 128>}, {pipeline_mode = #tpu.pipeline_mode<synchronous>, transform_indices = @transform_2, window_bounds = array<i64: 1, 1, 128>}, {pipeline_mode = #tpu.pipeline_mode<synchronous>, transform_indices = @transform_3, window_bounds = array<i64: 128, 128>}, {transform_indices = @transform_4, window_bounds = array<i64: 1, 36, 128>}]} {
    %c0 = arith.constant 0 : index
    %c0_0 = arith.constant 0 : index
    %c0_1 = arith.constant 0 : index
    %0 = vector.load %arg2[%c0, %c0_0, %c0_1] : memref<1x36x128xbf16, #tpu.memory_space<vmem>>, vector<1x36x128xbf16>
    %1 = vector.shape_cast %0 : vector<1x36x128xbf16> to vector<36x128xbf16>
    %2 = arith.extf %1 : vector<36x128xbf16> to vector<36x128xf32>
    %c0_2 = arith.constant 0 : index
    %c0_3 = arith.constant 0 : index
    %c0_4 = arith.constant 0 : index
    %3 = vector.load %arg3[%c0_2, %c0_3, %c0_4] : memref<1x1x128xf32, #tpu.memory_space<vmem>>, vector<1x1x128xf32>
    %4 = vector.shape_cast %3 : vector<1x1x128xf32> to vector<1x128xf32>
    %5 = vector.broadcast %4 : vector<1x128xf32> to vector<36x128xf32>
    %6 = arith.mulf %2, %5 : vector<36x128xf32>
    %c0_5 = arith.constant 0 : index
    %c0_6 = arith.constant 0 : index
    %c0_7 = arith.constant 0 : index
    %7 = vector.load %arg4[%c0_5, %c0_6, %c0_7] : memref<1x1x128xf32, #tpu.memory_space<vmem>>, vector<1x1x128xf32>
    %8 = vector.shape_cast %7 : vector<1x1x128xf32> to vector<1x128xf32>
    %9 = vector.broadcast %8 : vector<1x128xf32> to vector<36x128xf32>
    %10 = arith.addf %6, %9 : vector<36x128xf32>
    %cst = arith.constant 0.000000e+00 : f32
    %11 = vector.broadcast %cst : f32 to vector<36x128xf32>
    %12 = arith.maximumf %10, %11 : vector<36x128xf32>
    %13 = arith.truncf %12 : vector<36x128xf32> to vector<36x128xbf16>
    %c0_8 = arith.constant 0 : index
    %c0_9 = arith.constant 0 : index
    %14 = vector.load %arg5[%c0_8, %c0_9] : memref<128x128xbf16, #tpu.memory_space<vmem>>, vector<128x128xbf16>
    %cst_10 = arith.constant dense<0.000000e+00> : vector<36x128xf32>
    %15 = tpu.matmul %13, %14, %cst_10 {dimension_numbers = #tpu.dot_dimension_numbers<[1], [0], [0], [1], [0, 0, 1, 1], [], []>} : vector<36x128xbf16>, vector<128x128xbf16>, vector<36x128xf32> -> vector<36x128xf32>
    %16 = arith.truncf %15 : vector<36x128xf32> to vector<36x128xbf16>
    %c0_11 = arith.constant 0 : index
    %c0_12 = arith.constant 0 : index
    %c0_13 = arith.constant 0 : index
    %17 = vector.load %arg6[%c0_11, %c0_12, %c0_13] : memref<1x36x128xbf16, #tpu.memory_space<vmem>>, vector<1x36x128xbf16>
    %18 = vector.shape_cast %17 : vector<1x36x128xbf16> to vector<36x128xbf16>
    %19 = vector.shape_cast %16 : vector<36x128xbf16> to vector<1x36x128xbf16>
    tpu.vector_store %arg6[%c0_11, %c0_12, %c0_13], %19 {strides = array<i32>} : memref<1x36x128xbf16, #tpu.memory_space<vmem>>, vector<1x36x128xbf16>,
    return
  }
  func.func @transform_0(%arg0: i32, %arg1: i32) -> (i32, i32, i32) {
    %c0_i32 = arith.constant 0 : i32
    %c0_i32_0 = arith.constant 0 : i32
    return %arg0, %arg1, %c0_i32 : i32, i32, i32
  }
  func.func @transform_1(%arg0: i32, %arg1: i32) -> (i32, i32, i32) {
    %c0_i32 = arith.constant 0 : i32
    %c0_i32_0 = arith.constant 0 : i32
    %c0_i32_1 = arith.constant 0 : i32
    %c0_i32_2 = arith.constant 0 : i32
    return %c0_i32, %c0_i32_0, %c0_i32_1 : i32, i32, i32
  }
  func.func @transform_2(%arg0: i32, %arg1: i32) -> (i32, i32, i32) {
    %c0_i32 = arith.constant 0 : i32
    %c0_i32_0 = arith.constant 0 : i32
    %c0_i32_1 = arith.constant 0 : i32
    %c0_i32_2 = arith.constant 0 : i32
    return %c0_i32, %c0_i32_0, %c0_i32_1 : i32, i32, i32
  }
  func.func @transform_3(%arg0: i32, %arg1: i32) -> (i32, i32) {
    %c0_i32 = arith.constant 0 : i32
    %c0_i32_0 = arith.constant 0 : i32
    %c0_i32_1 = arith.constant 0 : i32
    return %c0_i32, %c0_i32_0 : i32, i32
  }
  func.func @transform_4(%arg0: i32, %arg1: i32) -> (i32, i32, i32) {
    %c0_i32 = arith.constant 0 : i32
    %c0_i32_0 = arith.constant 0 : i32
    return %arg0, %arg1, %c0_i32 : i32, i32, i32
  }
}

module attributes {stable_mosaic.version = 11 : i64} {
  func.func @_bn_relu_conv_stats_kernel(%arg0: i32, %arg1: i32, %arg2: memref<1x256x128xbf16, #tpu.memory_space<vmem>>, %arg3: memref<1x1x128xf32, #tpu.memory_space<vmem>>, %arg4: memref<1x1x128xf32, #tpu.memory_space<vmem>>, %arg5: memref<128x128xbf16, #tpu.memory_space<vmem>>, %arg6: memref<1x256x128xbf16, #tpu.memory_space<vmem>>, %arg7: memref<1x1x128xf32, #tpu.memory_space<vmem>>, %arg8: memref<1x1x128xf32, #tpu.memory_space<vmem>>) attributes {dimension_semantics = [#tpu.dimension_semantics<parallel>, #tpu.dimension_semantics<arbitrary>], iteration_bounds = array<i64: 2, 1>, scalar_prefetch = 0 : i64, scratch_operands = 0 : i64, tpu.core_type = #tpu.core_type<tc>, window_params = [{transform_indices = @transform_0, window_bounds = array<i64: 1, 256, 128>}, {pipeline_mode = #tpu.pipeline_mode<synchronous>, transform_indices = @transform_1, window_bounds = array<i64: 1, 1, 128>}, {pipeline_mode = #tpu.pipeline_mode<synchronous>, transform_indices = @transform_2, window_bounds = array<i64: 1, 1, 128>}, {pipeline_mode = #tpu.pipeline_mode<synchronous>, transform_indices = @transform_3, window_bounds = array<i64: 128, 128>}, {transform_indices = @transform_4, window_bounds = array<i64: 1, 256, 128>}, {transform_indices = @transform_5, window_bounds = array<i64: 1, 1, 128>}, {transform_indices = @transform_6, window_bounds = array<i64: 1, 1, 128>}]} {
    %c0_i32 = arith.constant 0 : i32
    %0 = arith.cmpi eq, %arg1, %c0_i32 : i32
    %1 = arith.extui %0 : i1 to i32
    %c0_i32_0 = arith.constant 0 : i32
    %2 = arith.cmpi ne, %1, %c0_i32_0 : i32
    scf.if %2 {
      %cst_29 = arith.constant 0.000000e+00 : f32
      %40 = vector.broadcast %cst_29 : f32 to vector<1x1x128xf32>
      %c0_30 = arith.constant 0 : index
      %c0_31 = arith.constant 0 : index
      %c0_32 = arith.constant 0 : index
      %41 = vector.load %arg7[%c0_30, %c0_31, %c0_32] : memref<1x1x128xf32, #tpu.memory_space<vmem>>, vector<1x1x128xf32>
      tpu.vector_store %arg7[%c0_30, %c0_31, %c0_32], %40 {strides = array<i32>} : memref<1x1x128xf32, #tpu.memory_space<vmem>>, vector<1x1x128xf32>,
      %cst_33 = arith.constant 0.000000e+00 : f32
      %42 = vector.broadcast %cst_33 : f32 to vector<1x1x128xf32>
      %c0_34 = arith.constant 0 : index
      %c0_35 = arith.constant 0 : index
      %c0_36 = arith.constant 0 : index
      %43 = vector.load %arg8[%c0_34, %c0_35, %c0_36] : memref<1x1x128xf32, #tpu.memory_space<vmem>>, vector<1x1x128xf32>
      tpu.vector_store %arg8[%c0_34, %c0_35, %c0_36], %42 {strides = array<i32>} : memref<1x1x128xf32, #tpu.memory_space<vmem>>, vector<1x1x128xf32>,
    } else {
    }
    %c0 = arith.constant 0 : index
    %c0_1 = arith.constant 0 : index
    %c0_2 = arith.constant 0 : index
    %3 = vector.load %arg2[%c0, %c0_1, %c0_2] : memref<1x256x128xbf16, #tpu.memory_space<vmem>>, vector<1x256x128xbf16>
    %4 = vector.shape_cast %3 : vector<1x256x128xbf16> to vector<256x128xbf16>
    %5 = arith.extf %4 : vector<256x128xbf16> to vector<256x128xf32>
    %c0_3 = arith.constant 0 : index
    %c0_4 = arith.constant 0 : index
    %c0_5 = arith.constant 0 : index
    %6 = vector.load %arg3[%c0_3, %c0_4, %c0_5] : memref<1x1x128xf32, #tpu.memory_space<vmem>>, vector<1x1x128xf32>
    %7 = vector.shape_cast %6 : vector<1x1x128xf32> to vector<1x128xf32>
    %8 = vector.broadcast %7 : vector<1x128xf32> to vector<256x128xf32>
    %9 = arith.mulf %5, %8 : vector<256x128xf32>
    %c0_6 = arith.constant 0 : index
    %c0_7 = arith.constant 0 : index
    %c0_8 = arith.constant 0 : index
    %10 = vector.load %arg4[%c0_6, %c0_7, %c0_8] : memref<1x1x128xf32, #tpu.memory_space<vmem>>, vector<1x1x128xf32>
    %11 = vector.shape_cast %10 : vector<1x1x128xf32> to vector<1x128xf32>
    %12 = vector.broadcast %11 : vector<1x128xf32> to vector<256x128xf32>
    %13 = arith.addf %9, %12 : vector<256x128xf32>
    %cst = arith.constant 0.000000e+00 : f32
    %14 = vector.broadcast %cst : f32 to vector<256x128xf32>
    %15 = arith.maximumf %13, %14 : vector<256x128xf32>
    %16 = arith.truncf %15 : vector<256x128xf32> to vector<256x128xbf16>
    %c0_9 = arith.constant 0 : index
    %c0_10 = arith.constant 0 : index
    %17 = vector.load %arg5[%c0_9, %c0_10] : memref<128x128xbf16, #tpu.memory_space<vmem>>, vector<128x128xbf16>
    %cst_11 = arith.constant dense<0.000000e+00> : vector<256x128xf32>
    %18 = tpu.matmul %16, %17, %cst_11 {dimension_numbers = #tpu.dot_dimension_numbers<[1], [0], [0], [1], [0, 0, 1, 1], [], []>} : vector<256x128xbf16>, vector<128x128xbf16>, vector<256x128xf32> -> vector<256x128xf32>
    %19 = arith.truncf %18 : vector<256x128xf32> to vector<256x128xbf16>
    %c0_12 = arith.constant 0 : index
    %c0_13 = arith.constant 0 : index
    %c0_14 = arith.constant 0 : index
    %20 = vector.load %arg6[%c0_12, %c0_13, %c0_14] : memref<1x256x128xbf16, #tpu.memory_space<vmem>>, vector<1x256x128xbf16>
    %21 = vector.shape_cast %20 : vector<1x256x128xbf16> to vector<256x128xbf16>
    %22 = vector.shape_cast %19 : vector<256x128xbf16> to vector<1x256x128xbf16>
    tpu.vector_store %arg6[%c0_12, %c0_13, %c0_14], %22 {strides = array<i32>} : memref<1x256x128xbf16, #tpu.memory_space<vmem>>, vector<1x256x128xbf16>,
    %c0_15 = arith.constant 0 : index
    %c0_16 = arith.constant 0 : index
    %c0_17 = arith.constant 0 : index
    %23 = vector.load %arg7[%c0_15, %c0_16, %c0_17] : memref<1x1x128xf32, #tpu.memory_space<vmem>>, vector<1x1x128xf32>
    %24 = vector.shape_cast %23 : vector<1x1x128xf32> to vector<1x128xf32>
    %cst_18 = arith.constant dense<0.000000e+00> : vector<128xf32>
    %25 = vector.multi_reduction <add>, %18, %cst_18 [0] : vector<256x128xf32> to vector<128xf32>
    %26 = vector.shape_cast %25 : vector<128xf32> to vector<1x128xf32>
    %27 = arith.addf %24, %26 : vector<1x128xf32>
    %c0_19 = arith.constant 0 : index
    %c0_20 = arith.constant 0 : index
    %c0_21 = arith.constant 0 : index
    %28 = vector.load %arg7[%c0_19, %c0_20, %c0_21] : memref<1x1x128xf32, #tpu.memory_space<vmem>>, vector<1x1x128xf32>
    %29 = vector.shape_cast %28 : vector<1x1x128xf32> to vector<1x128xf32>
    %30 = vector.shape_cast %27 : vector<1x128xf32> to vector<1x1x128xf32>
    tpu.vector_store %arg7[%c0_19, %c0_20, %c0_21], %30 {strides = array<i32>} : memref<1x1x128xf32, #tpu.memory_space<vmem>>, vector<1x1x128xf32>,
    %c0_22 = arith.constant 0 : index
    %c0_23 = arith.constant 0 : index
    %c0_24 = arith.constant 0 : index
    %31 = vector.load %arg8[%c0_22, %c0_23, %c0_24] : memref<1x1x128xf32, #tpu.memory_space<vmem>>, vector<1x1x128xf32>
    %32 = vector.shape_cast %31 : vector<1x1x128xf32> to vector<1x128xf32>
    %33 = arith.mulf %18, %18 : vector<256x128xf32>
    %cst_25 = arith.constant dense<0.000000e+00> : vector<128xf32>
    %34 = vector.multi_reduction <add>, %33, %cst_25 [0] : vector<256x128xf32> to vector<128xf32>
    %35 = vector.shape_cast %34 : vector<128xf32> to vector<1x128xf32>
    %36 = arith.addf %32, %35 : vector<1x128xf32>
    %c0_26 = arith.constant 0 : index
    %c0_27 = arith.constant 0 : index
    %c0_28 = arith.constant 0 : index
    %37 = vector.load %arg8[%c0_26, %c0_27, %c0_28] : memref<1x1x128xf32, #tpu.memory_space<vmem>>, vector<1x1x128xf32>
    %38 = vector.shape_cast %37 : vector<1x1x128xf32> to vector<1x128xf32>
    %39 = vector.shape_cast %36 : vector<1x128xf32> to vector<1x1x128xf32>
    tpu.vector_store %arg8[%c0_26, %c0_27, %c0_28], %39 {strides = array<i32>} : memref<1x1x128xf32, #tpu.memory_space<vmem>>, vector<1x1x128xf32>,
    return
  }
  func.func @transform_0(%arg0: i32, %arg1: i32) -> (i32, i32, i32) {
    %c0_i32 = arith.constant 0 : i32
    %c0_i32_0 = arith.constant 0 : i32
    return %arg0, %arg1, %c0_i32 : i32, i32, i32
  }
  func.func @transform_1(%arg0: i32, %arg1: i32) -> (i32, i32, i32) {
    %c0_i32 = arith.constant 0 : i32
    %c0_i32_0 = arith.constant 0 : i32
    %c0_i32_1 = arith.constant 0 : i32
    %c0_i32_2 = arith.constant 0 : i32
    return %c0_i32, %c0_i32_0, %c0_i32_1 : i32, i32, i32
  }
  func.func @transform_2(%arg0: i32, %arg1: i32) -> (i32, i32, i32) {
    %c0_i32 = arith.constant 0 : i32
    %c0_i32_0 = arith.constant 0 : i32
    %c0_i32_1 = arith.constant 0 : i32
    %c0_i32_2 = arith.constant 0 : i32
    return %c0_i32, %c0_i32_0, %c0_i32_1 : i32, i32, i32
  }
  func.func @transform_3(%arg0: i32, %arg1: i32) -> (i32, i32) {
    %c0_i32 = arith.constant 0 : i32
    %c0_i32_0 = arith.constant 0 : i32
    %c0_i32_1 = arith.constant 0 : i32
    return %c0_i32, %c0_i32_0 : i32, i32
  }
  func.func @transform_4(%arg0: i32, %arg1: i32) -> (i32, i32, i32) {
    %c0_i32 = arith.constant 0 : i32
    %c0_i32_0 = arith.constant 0 : i32
    return %arg0, %arg1, %c0_i32 : i32, i32, i32
  }
  func.func @transform_5(%arg0: i32, %arg1: i32) -> (i32, i32, i32) {
    %c0_i32 = arith.constant 0 : i32
    %c0_i32_0 = arith.constant 0 : i32
    %c0_i32_1 = arith.constant 0 : i32
    return %arg0, %c0_i32, %c0_i32_0 : i32, i32, i32
  }
  func.func @transform_6(%arg0: i32, %arg1: i32) -> (i32, i32, i32) {
    %c0_i32 = arith.constant 0 : i32
    %c0_i32_0 = arith.constant 0 : i32
    %c0_i32_1 = arith.constant 0 : i32
    return %arg0, %c0_i32, %c0_i32_0 : i32, i32, i32
  }
}

module attributes {stable_mosaic.version = 11 : i64} {
  func.func @_bn_relu_conv_kernel(%arg0: i32, %arg1: i32, %arg2: memref<1x256x128xbf16, #tpu.memory_space<vmem>>, %arg3: memref<1x1x128xf32, #tpu.memory_space<vmem>>, %arg4: memref<1x1x128xf32, #tpu.memory_space<vmem>>, %arg5: memref<128x128xbf16, #tpu.memory_space<vmem>>, %arg6: memref<1x256x128xbf16, #tpu.memory_space<vmem>>) attributes {dimension_semantics = [#tpu.dimension_semantics<parallel>, #tpu.dimension_semantics<parallel>], iteration_bounds = array<i64: 2, 1>, scalar_prefetch = 0 : i64, scratch_operands = 0 : i64, tpu.core_type = #tpu.core_type<tc>, window_params = [{transform_indices = @transform_0, window_bounds = array<i64: 1, 256, 128>}, {pipeline_mode = #tpu.pipeline_mode<synchronous>, transform_indices = @transform_1, window_bounds = array<i64: 1, 1, 128>}, {pipeline_mode = #tpu.pipeline_mode<synchronous>, transform_indices = @transform_2, window_bounds = array<i64: 1, 1, 128>}, {pipeline_mode = #tpu.pipeline_mode<synchronous>, transform_indices = @transform_3, window_bounds = array<i64: 128, 128>}, {transform_indices = @transform_4, window_bounds = array<i64: 1, 256, 128>}]} {
    %c0 = arith.constant 0 : index
    %c0_0 = arith.constant 0 : index
    %c0_1 = arith.constant 0 : index
    %0 = vector.load %arg2[%c0, %c0_0, %c0_1] : memref<1x256x128xbf16, #tpu.memory_space<vmem>>, vector<1x256x128xbf16>
    %1 = vector.shape_cast %0 : vector<1x256x128xbf16> to vector<256x128xbf16>
    %2 = arith.extf %1 : vector<256x128xbf16> to vector<256x128xf32>
    %c0_2 = arith.constant 0 : index
    %c0_3 = arith.constant 0 : index
    %c0_4 = arith.constant 0 : index
    %3 = vector.load %arg3[%c0_2, %c0_3, %c0_4] : memref<1x1x128xf32, #tpu.memory_space<vmem>>, vector<1x1x128xf32>
    %4 = vector.shape_cast %3 : vector<1x1x128xf32> to vector<1x128xf32>
    %5 = vector.broadcast %4 : vector<1x128xf32> to vector<256x128xf32>
    %6 = arith.mulf %2, %5 : vector<256x128xf32>
    %c0_5 = arith.constant 0 : index
    %c0_6 = arith.constant 0 : index
    %c0_7 = arith.constant 0 : index
    %7 = vector.load %arg4[%c0_5, %c0_6, %c0_7] : memref<1x1x128xf32, #tpu.memory_space<vmem>>, vector<1x1x128xf32>
    %8 = vector.shape_cast %7 : vector<1x1x128xf32> to vector<1x128xf32>
    %9 = vector.broadcast %8 : vector<1x128xf32> to vector<256x128xf32>
    %10 = arith.addf %6, %9 : vector<256x128xf32>
    %cst = arith.constant 0.000000e+00 : f32
    %11 = vector.broadcast %cst : f32 to vector<256x128xf32>
    %12 = arith.maximumf %10, %11 : vector<256x128xf32>
    %13 = arith.truncf %12 : vector<256x128xf32> to vector<256x128xbf16>
    %c0_8 = arith.constant 0 : index
    %c0_9 = arith.constant 0 : index
    %14 = vector.load %arg5[%c0_8, %c0_9] : memref<128x128xbf16, #tpu.memory_space<vmem>>, vector<128x128xbf16>
    %cst_10 = arith.constant dense<0.000000e+00> : vector<256x128xf32>
    %15 = tpu.matmul %13, %14, %cst_10 {dimension_numbers = #tpu.dot_dimension_numbers<[1], [0], [0], [1], [0, 0, 1, 1], [], []>} : vector<256x128xbf16>, vector<128x128xbf16>, vector<256x128xf32> -> vector<256x128xf32>
    %16 = arith.truncf %15 : vector<256x128xf32> to vector<256x128xbf16>
    %c0_11 = arith.constant 0 : index
    %c0_12 = arith.constant 0 : index
    %c0_13 = arith.constant 0 : index
    %17 = vector.load %arg6[%c0_11, %c0_12, %c0_13] : memref<1x256x128xbf16, #tpu.memory_space<vmem>>, vector<1x256x128xbf16>
    %18 = vector.shape_cast %17 : vector<1x256x128xbf16> to vector<256x128xbf16>
    %19 = vector.shape_cast %16 : vector<256x128xbf16> to vector<1x256x128xbf16>
    tpu.vector_store %arg6[%c0_11, %c0_12, %c0_13], %19 {strides = array<i32>} : memref<1x256x128xbf16, #tpu.memory_space<vmem>>, vector<1x256x128xbf16>,
    return
  }
  func.func @transform_0(%arg0: i32, %arg1: i32) -> (i32, i32, i32) {
    %c0_i32 = arith.constant 0 : i32
    %c0_i32_0 = arith.constant 0 : i32
    return %arg0, %arg1, %c0_i32 : i32, i32, i32
  }
  func.func @transform_1(%arg0: i32, %arg1: i32) -> (i32, i32, i32) {
    %c0_i32 = arith.constant 0 : i32
    %c0_i32_0 = arith.constant 0 : i32
    %c0_i32_1 = arith.constant 0 : i32
    %c0_i32_2 = arith.constant 0 : i32
    return %c0_i32, %c0_i32_0, %c0_i32_1 : i32, i32, i32
  }
  func.func @transform_2(%arg0: i32, %arg1: i32) -> (i32, i32, i32) {
    %c0_i32 = arith.constant 0 : i32
    %c0_i32_0 = arith.constant 0 : i32
    %c0_i32_1 = arith.constant 0 : i32
    %c0_i32_2 = arith.constant 0 : i32
    return %c0_i32, %c0_i32_0, %c0_i32_1 : i32, i32, i32
  }
  func.func @transform_3(%arg0: i32, %arg1: i32) -> (i32, i32) {
    %c0_i32 = arith.constant 0 : i32
    %c0_i32_0 = arith.constant 0 : i32
    %c0_i32_1 = arith.constant 0 : i32
    return %c0_i32, %c0_i32_0 : i32, i32
  }
  func.func @transform_4(%arg0: i32, %arg1: i32) -> (i32, i32, i32) {
    %c0_i32 = arith.constant 0 : i32
    %c0_i32_0 = arith.constant 0 : i32
    return %arg0, %arg1, %c0_i32 : i32, i32, i32
  }
}

module attributes {stable_mosaic.version = 11 : i64} {
  func.func @kernel(%arg0: i32, %arg1: i32, %arg2: memref<1x256x128xbf16, #tpu.memory_space<vmem>>, %arg3: memref<1x1x128xf32, #tpu.memory_space<vmem>>, %arg4: memref<1x256x128xbf16, #tpu.memory_space<vmem>>, %arg5: memref<1x36x128xbf16, #tpu.memory_space<vmem>>, %arg6: memref<256x36xf32, #tpu.memory_space<vmem>>, %arg7: memref<3x128xf32, #tpu.memory_space<vmem>>, %arg8: memref<3x128xf32, #tpu.memory_space<vmem>>, %arg9: memref<3x128x128xbf16, #tpu.memory_space<vmem>>, %arg10: memref<1x256x128xbf16, #tpu.memory_space<vmem>>, %arg11: memref<1x1x128xf32, #tpu.memory_space<vmem>>) attributes {dimension_semantics = [#tpu.dimension_semantics<parallel>, #tpu.dimension_semantics<arbitrary>], iteration_bounds = array<i64: 2, 1>, scalar_prefetch = 0 : i64, scratch_operands = 0 : i64, tpu.core_type = #tpu.core_type<tc>, window_params = [{transform_indices = @transform_0, window_bounds = array<i64: 1, 256, 128>}, {transform_indices = @transform_1, window_bounds = array<i64: 1, 1, 128>}, {transform_indices = @transform_2, window_bounds = array<i64: 1, 256, 128>}, {transform_indices = @transform_3, window_bounds = array<i64: 1, 36, 128>}, {transform_indices = @transform_4, window_bounds = array<i64: 256, 36>}, {pipeline_mode = #tpu.pipeline_mode<synchronous>, transform_indices = @transform_5, window_bounds = array<i64: 3, 128>}, {pipeline_mode = #tpu.pipeline_mode<synchronous>, transform_indices = @transform_6, window_bounds = array<i64: 3, 128>}, {pipeline_mode = #tpu.pipeline_mode<synchronous>, transform_indices = @transform_7, window_bounds = array<i64: 3, 128, 128>}, {transform_indices = @transform_8, window_bounds = array<i64: 1, 256, 128>}, {transform_indices = @transform_9, window_bounds = array<i64: 1, 1, 128>}]} {
    %c0_i32 = arith.constant 0 : i32
    %0 = arith.cmpi eq, %arg1, %c0_i32 : i32
    %1 = arith.extui %0 : i1 to i32
    %c0_i32_0 = arith.constant 0 : i32
    %2 = arith.cmpi ne, %1, %c0_i32_0 : i32
    scf.if %2 {
      %cst_49 = arith.constant 0.000000e+00 : f32
      %82 = vector.broadcast %cst_49 : f32 to vector<1x1x128xf32>
      %c0_50 = arith.constant 0 : index
      %c0_51 = arith.constant 0 : index
      %c0_52 = arith.constant 0 : index
      %83 = vector.load %arg11[%c0_50, %c0_51, %c0_52] : memref<1x1x128xf32, #tpu.memory_space<vmem>>, vector<1x1x128xf32>
      tpu.vector_store %arg11[%c0_50, %c0_51, %c0_52], %82 {strides = array<i32>} : memref<1x1x128xf32, #tpu.memory_space<vmem>>, vector<1x1x128xf32>,
    } else {
    }
    %c0 = arith.constant 0 : index
    %c0_1 = arith.constant 0 : index
    %c0_2 = arith.constant 0 : index
    %3 = vector.load %arg2[%c0, %c0_1, %c0_2] : memref<1x256x128xbf16, #tpu.memory_space<vmem>>, vector<1x256x128xbf16>
    %4 = vector.shape_cast %3 : vector<1x256x128xbf16> to vector<256x128xbf16>
    %5 = arith.extf %4 : vector<256x128xbf16> to vector<256x128xf32>
    %c0_3 = arith.constant 0 : index
    %c0_4 = arith.constant 0 : index
    %c0_5 = arith.constant 0 : index
    %6 = vector.load %arg4[%c0_3, %c0_4, %c0_5] : memref<1x256x128xbf16, #tpu.memory_space<vmem>>, vector<1x256x128xbf16>
    %7 = vector.shape_cast %6 : vector<1x256x128xbf16> to vector<256x128xbf16>
    %8 = arith.extf %7 : vector<256x128xbf16> to vector<256x128xf32>
    %9 = arith.addf %8, %5 : vector<256x128xf32>
    %c0_6 = arith.constant 0 : index
    %c0_7 = arith.constant 0 : index
    %10 = vector.load %arg7[%c0_6, %c0_7] : memref<3x128xf32, #tpu.memory_space<vmem>>, vector<1x128xf32>
    %11 = vector.shape_cast %10 : vector<1x128xf32> to vector<128xf32>
    %12 = vector.shape_cast %11 : vector<128xf32> to vector<1x128xf32>
    %13 = vector.broadcast %12 : vector<1x128xf32> to vector<256x128xf32>
    %14 = arith.mulf %9, %13 : vector<256x128xf32>
    %c0_8 = arith.constant 0 : index
    %c0_9 = arith.constant 0 : index
    %15 = vector.load %arg8[%c0_8, %c0_9] : memref<3x128xf32, #tpu.memory_space<vmem>>, vector<1x128xf32>
    %16 = vector.shape_cast %15 : vector<1x128xf32> to vector<128xf32>
    %17 = vector.shape_cast %16 : vector<128xf32> to vector<1x128xf32>
    %18 = vector.broadcast %17 : vector<1x128xf32> to vector<256x128xf32>
    %19 = arith.addf %14, %18 : vector<256x128xf32>
    %cst = arith.constant 0.000000e+00 : f32
    %20 = vector.broadcast %cst : f32 to vector<256x128xf32>
    %21 = arith.maximumf %19, %20 : vector<256x128xf32>
    %22 = arith.truncf %21 : vector<256x128xf32> to vector<256x128xbf16>
    %c0_10 = arith.constant 0 : index
    %c0_11 = arith.constant 0 : index
    %c0_12 = arith.constant 0 : index
    %23 = vector.load %arg9[%c0_10, %c0_11, %c0_12] : memref<3x128x128xbf16, #tpu.memory_space<vmem>>, vector<1x128x128xbf16>
    %24 = vector.shape_cast %23 : vector<1x128x128xbf16> to vector<128x128xbf16>
    %cst_13 = arith.constant dense<0.000000e+00> : vector<256x128xf32>
    %25 = tpu.matmul %22, %24, %cst_13 {dimension_numbers = #tpu.dot_dimension_numbers<[1], [0], [0], [1], [0, 0, 1, 1], [], []>} : vector<256x128xbf16>, vector<128x128xbf16>, vector<256x128xf32> -> vector<256x128xf32>
    %c0_14 = arith.constant 0 : index
    %c0_15 = arith.constant 0 : index
    %26 = vector.load %arg6[%c0_14, %c0_15] : memref<256x36xf32, #tpu.memory_space<vmem>>, vector<256x36xf32>
    %c0_16 = arith.constant 0 : index
    %c0_17 = arith.constant 0 : index
    %c0_18 = arith.constant 0 : index
    %27 = vector.load %arg5[%c0_16, %c0_17, %c0_18] : memref<1x36x128xbf16, #tpu.memory_space<vmem>>, vector<1x36x128xbf16>
    %28 = vector.shape_cast %27 : vector<1x36x128xbf16> to vector<36x128xbf16>
    %29 = arith.extf %28 : vector<36x128xbf16> to vector<36x128xf32>
    %cst_19 = arith.constant dense<0.000000e+00> : vector<256x128xf32>
    %30 = tpu.matmul %26, %29, %cst_19 {dimension_numbers = #tpu.dot_dimension_numbers<[1], [0], [0], [1], [0, 0, 1, 1], [], []>} : vector<256x36xf32>, vector<36x128xf32>, vector<256x128xf32> -> vector<256x128xf32>
    %31 = arith.addf %30, %5 : vector<256x128xf32>
    %c1 = arith.constant 1 : index
    %c0_20 = arith.constant 0 : index
    %32 = vector.load %arg7[%c1, %c0_20] : memref<3x128xf32, #tpu.memory_space<vmem>>, vector<1x128xf32>
    %33 = vector.shape_cast %32 : vector<1x128xf32> to vector<128xf32>
    %34 = vector.shape_cast %33 : vector<128xf32> to vector<1x128xf32>
    %35 = vector.broadcast %34 : vector<1x128xf32> to vector<256x128xf32>
    %36 = arith.mulf %31, %35 : vector<256x128xf32>
    %c1_21 = arith.constant 1 : index
    %c0_22 = arith.constant 0 : index
    %37 = vector.load %arg8[%c1_21, %c0_22] : memref<3x128xf32, #tpu.memory_space<vmem>>, vector<1x128xf32>
    %38 = vector.shape_cast %37 : vector<1x128xf32> to vector<128xf32>
    %39 = vector.shape_cast %38 : vector<128xf32> to vector<1x128xf32>
    %40 = vector.broadcast %39 : vector<1x128xf32> to vector<256x128xf32>
    %41 = arith.addf %36, %40 : vector<256x128xf32>
    %cst_23 = arith.constant 0.000000e+00 : f32
    %42 = vector.broadcast %cst_23 : f32 to vector<256x128xf32>
    %43 = arith.maximumf %41, %42 : vector<256x128xf32>
    %44 = arith.truncf %43 : vector<256x128xf32> to vector<256x128xbf16>
    %c1_24 = arith.constant 1 : index
    %c0_25 = arith.constant 0 : index
    %c0_26 = arith.constant 0 : index
    %45 = vector.load %arg9[%c1_24, %c0_25, %c0_26] : memref<3x128x128xbf16, #tpu.memory_space<vmem>>, vector<1x128x128xbf16>
    %46 = vector.shape_cast %45 : vector<1x128x128xbf16> to vector<128x128xbf16>
    %cst_27 = arith.constant dense<0.000000e+00> : vector<256x128xf32>
    %47 = tpu.matmul %44, %46, %cst_27 {dimension_numbers = #tpu.dot_dimension_numbers<[1], [0], [0], [1], [0, 0, 1, 1], [], []>} : vector<256x128xbf16>, vector<128x128xbf16>, vector<256x128xf32> -> vector<256x128xf32>
    %48 = arith.addf %25, %47 : vector<256x128xf32>
    %c0_28 = arith.constant 0 : index
    %c0_29 = arith.constant 0 : index
    %c0_30 = arith.constant 0 : index
    %49 = vector.load %arg3[%c0_28, %c0_29, %c0_30] : memref<1x1x128xf32, #tpu.memory_space<vmem>>, vector<1x1x128xf32>
    %50 = vector.shape_cast %49 : vector<1x1x128xf32> to vector<1x128xf32>
    %51 = vector.broadcast %50 : vector<1x128xf32> to vector<256x128xf32>
    %52 = arith.addf %51, %5 : vector<256x128xf32>
    %c2 = arith.constant 2 : index
    %c0_31 = arith.constant 0 : index
    %53 = vector.load %arg7[%c2, %c0_31] : memref<3x128xf32, #tpu.memory_space<vmem>>, vector<1x128xf32>
    %54 = vector.shape_cast %53 : vector<1x128xf32> to vector<128xf32>
    %55 = vector.shape_cast %54 : vector<128xf32> to vector<1x128xf32>
    %56 = vector.broadcast %55 : vector<1x128xf32> to vector<256x128xf32>
    %57 = arith.mulf %52, %56 : vector<256x128xf32>
    %c2_32 = arith.constant 2 : index
    %c0_33 = arith.constant 0 : index
    %58 = vector.load %arg8[%c2_32, %c0_33] : memref<3x128xf32, #tpu.memory_space<vmem>>, vector<1x128xf32>
    %59 = vector.shape_cast %58 : vector<1x128xf32> to vector<128xf32>
    %60 = vector.shape_cast %59 : vector<128xf32> to vector<1x128xf32>
    %61 = vector.broadcast %60 : vector<1x128xf32> to vector<256x128xf32>
    %62 = arith.addf %57, %61 : vector<256x128xf32>
    %cst_34 = arith.constant 0.000000e+00 : f32
    %63 = vector.broadcast %cst_34 : f32 to vector<256x128xf32>
    %64 = arith.maximumf %62, %63 : vector<256x128xf32>
    %65 = arith.truncf %64 : vector<256x128xf32> to vector<256x128xbf16>
    %c2_35 = arith.constant 2 : index
    %c0_36 = arith.constant 0 : index
    %c0_37 = arith.constant 0 : index
    %66 = vector.load %arg9[%c2_35, %c0_36, %c0_37] : memref<3x128x128xbf16, #tpu.memory_space<vmem>>, vector<1x128x128xbf16>
    %67 = vector.shape_cast %66 : vector<1x128x128xbf16> to vector<128x128xbf16>
    %cst_38 = arith.constant dense<0.000000e+00> : vector<256x128xf32>
    %68 = tpu.matmul %65, %67, %cst_38 {dimension_numbers = #tpu.dot_dimension_numbers<[1], [0], [0], [1], [0, 0, 1, 1], [], []>} : vector<256x128xbf16>, vector<128x128xbf16>, vector<256x128xf32> -> vector<256x128xf32>
    %69 = arith.addf %48, %68 : vector<256x128xf32>
    %70 = arith.truncf %69 : vector<256x128xf32> to vector<256x128xbf16>
    %c0_39 = arith.constant 0 : index
    %c0_40 = arith.constant 0 : index
    %c0_41 = arith.constant 0 : index
    %71 = vector.load %arg10[%c0_39, %c0_40, %c0_41] : memref<1x256x128xbf16, #tpu.memory_space<vmem>>, vector<1x256x128xbf16>
    %72 = vector.shape_cast %71 : vector<1x256x128xbf16> to vector<256x128xbf16>
    %73 = vector.shape_cast %70 : vector<256x128xbf16> to vector<1x256x128xbf16>
    tpu.vector_store %arg10[%c0_39, %c0_40, %c0_41], %73 {strides = array<i32>} : memref<1x256x128xbf16, #tpu.memory_space<vmem>>, vector<1x256x128xbf16>,
    %c0_42 = arith.constant 0 : index
    %c0_43 = arith.constant 0 : index
    %c0_44 = arith.constant 0 : index
    %74 = vector.load %arg11[%c0_42, %c0_43, %c0_44] : memref<1x1x128xf32, #tpu.memory_space<vmem>>, vector<1x1x128xf32>
    %75 = vector.shape_cast %74 : vector<1x1x128xf32> to vector<1x128xf32>
    %cst_45 = arith.constant dense<0.000000e+00> : vector<128xf32>
    %76 = vector.multi_reduction <add>, %69, %cst_45 [0] : vector<256x128xf32> to vector<128xf32>
    %77 = vector.shape_cast %76 : vector<128xf32> to vector<1x128xf32>
    %78 = arith.addf %75, %77 : vector<1x128xf32>
    %c0_46 = arith.constant 0 : index
    %c0_47 = arith.constant 0 : index
    %c0_48 = arith.constant 0 : index
    %79 = vector.load %arg11[%c0_46, %c0_47, %c0_48] : memref<1x1x128xf32, #tpu.memory_space<vmem>>, vector<1x1x128xf32>
    %80 = vector.shape_cast %79 : vector<1x1x128xf32> to vector<1x128xf32>
    %81 = vector.shape_cast %78 : vector<1x128xf32> to vector<1x1x128xf32>
    tpu.vector_store %arg11[%c0_46, %c0_47, %c0_48], %81 {strides = array<i32>} : memref<1x1x128xf32, #tpu.memory_space<vmem>>, vector<1x1x128xf32>,
    return
  }
  func.func @transform_0(%arg0: i32, %arg1: i32) -> (i32, i32, i32) {
    %c0_i32 = arith.constant 0 : i32
    %c0_i32_0 = arith.constant 0 : i32
    return %arg0, %arg1, %c0_i32 : i32, i32, i32
  }
  func.func @transform_1(%arg0: i32, %arg1: i32) -> (i32, i32, i32) {
    %c0_i32 = arith.constant 0 : i32
    %c0_i32_0 = arith.constant 0 : i32
    %c0_i32_1 = arith.constant 0 : i32
    return %arg0, %c0_i32, %c0_i32_0 : i32, i32, i32
  }
  func.func @transform_2(%arg0: i32, %arg1: i32) -> (i32, i32, i32) {
    %c0_i32 = arith.constant 0 : i32
    %c0_i32_0 = arith.constant 0 : i32
    return %arg0, %arg1, %c0_i32 : i32, i32, i32
  }
  func.func @transform_3(%arg0: i32, %arg1: i32) -> (i32, i32, i32) {
    %c0_i32 = arith.constant 0 : i32
    %c0_i32_0 = arith.constant 0 : i32
    %c0_i32_1 = arith.constant 0 : i32
    return %arg0, %c0_i32, %c0_i32_0 : i32, i32, i32
  }
  func.func @transform_4(%arg0: i32, %arg1: i32) -> (i32, i32) {
    %c0_i32 = arith.constant 0 : i32
    %c0_i32_0 = arith.constant 0 : i32
    return %arg1, %c0_i32 : i32, i32
  }
  func.func @transform_5(%arg0: i32, %arg1: i32) -> (i32, i32) {
    %c0_i32 = arith.constant 0 : i32
    %c0_i32_0 = arith.constant 0 : i32
    %c0_i32_1 = arith.constant 0 : i32
    return %c0_i32, %c0_i32_0 : i32, i32
  }
  func.func @transform_6(%arg0: i32, %arg1: i32) -> (i32, i32) {
    %c0_i32 = arith.constant 0 : i32
    %c0_i32_0 = arith.constant 0 : i32
    %c0_i32_1 = arith.constant 0 : i32
    return %c0_i32, %c0_i32_0 : i32, i32
  }
  func.func @transform_7(%arg0: i32, %arg1: i32) -> (i32, i32, i32) {
    %c0_i32 = arith.constant 0 : i32
    %c0_i32_0 = arith.constant 0 : i32
    %c0_i32_1 = arith.constant 0 : i32
    %c0_i32_2 = arith.constant 0 : i32
    return %c0_i32, %c0_i32_0, %c0_i32_1 : i32, i32, i32
  }
  func.func @transform_8(%arg0: i32, %arg1: i32) -> (i32, i32, i32) {
    %c0_i32 = arith.constant 0 : i32
    %c0_i32_0 = arith.constant 0 : i32
    return %arg0, %arg1, %c0_i32 : i32, i32, i32
  }
  func.func @transform_9(%arg0: i32, %arg1: i32) -> (i32, i32, i32) {
    %c0_i32 = arith.constant 0 : i32
    %c0_i32_0 = arith.constant 0 : i32
    %c0_i32_1 = arith.constant 0 : i32
    return %arg0, %c0_i32, %c0_i32_0 : i32, i32, i32
  }
}

module attributes {stable_mosaic.version = 11 : i64} {
  func.func @kernel(%arg0: i32, %arg1: i32, %arg2: memref<1x256x128xbf16, #tpu.memory_space<vmem>>, %arg3: memref<1x256x128xbf16, #tpu.memory_space<vmem>>, %arg4: memref<1x36x128xbf16, #tpu.memory_space<vmem>>, %arg5: memref<256x36xf32, #tpu.memory_space<vmem>>, %arg6: memref<1x1x128xf32, #tpu.memory_space<vmem>>, %arg7: memref<1x1x128xf32, #tpu.memory_space<vmem>>, %arg8: memref<1x1x128xf32, #tpu.memory_space<vmem>>, %arg9: memref<1x1x128xf32, #tpu.memory_space<vmem>>, %arg10: memref<1x1x128xf32, #tpu.memory_space<vmem>>, %arg11: memref<1x1x128xf32, #tpu.memory_space<vmem>>) attributes {dimension_semantics = [#tpu.dimension_semantics<parallel>, #tpu.dimension_semantics<arbitrary>], iteration_bounds = array<i64: 2, 1>, scalar_prefetch = 0 : i64, scratch_operands = 0 : i64, tpu.core_type = #tpu.core_type<tc>, window_params = [{transform_indices = @transform_0, window_bounds = array<i64: 1, 256, 128>}, {transform_indices = @transform_1, window_bounds = array<i64: 1, 256, 128>}, {transform_indices = @transform_2, window_bounds = array<i64: 1, 36, 128>}, {transform_indices = @transform_3, window_bounds = array<i64: 256, 36>}, {transform_indices = @transform_4, window_bounds = array<i64: 1, 1, 128>}, {transform_indices = @transform_5, window_bounds = array<i64: 1, 1, 128>}, {transform_indices = @transform_6, window_bounds = array<i64: 1, 1, 128>}, {transform_indices = @transform_7, window_bounds = array<i64: 1, 1, 128>}, {transform_indices = @transform_8, window_bounds = array<i64: 1, 1, 128>}, {transform_indices = @transform_9, window_bounds = array<i64: 1, 1, 128>}]} {
    %c0_i32 = arith.constant 0 : i32
    %0 = arith.cmpi eq, %arg1, %c0_i32 : i32
    %1 = arith.extui %0 : i1 to i32
    %c0_i32_0 = arith.constant 0 : i32
    %2 = arith.cmpi ne, %1, %c0_i32_0 : i32
    scf.if %2 {
      %cst_53 = arith.constant 0.000000e+00 : f32
      %66 = vector.broadcast %cst_53 : f32 to vector<1x1x128xf32>
      %c0_54 = arith.constant 0 : index
      %c0_55 = arith.constant 0 : index
      %c0_56 = arith.constant 0 : index
      %67 = vector.load %arg6[%c0_54, %c0_55, %c0_56] : memref<1x1x128xf32, #tpu.memory_space<vmem>>, vector<1x1x128xf32>
      tpu.vector_store %arg6[%c0_54, %c0_55, %c0_56], %66 {strides = array<i32>} : memref<1x1x128xf32, #tpu.memory_space<vmem>>, vector<1x1x128xf32>,
      %cst_57 = arith.constant 0.000000e+00 : f32
      %68 = vector.broadcast %cst_57 : f32 to vector<1x1x128xf32>
      %c0_58 = arith.constant 0 : index
      %c0_59 = arith.constant 0 : index
      %c0_60 = arith.constant 0 : index
      %69 = vector.load %arg7[%c0_58, %c0_59, %c0_60] : memref<1x1x128xf32, #tpu.memory_space<vmem>>, vector<1x1x128xf32>
      tpu.vector_store %arg7[%c0_58, %c0_59, %c0_60], %68 {strides = array<i32>} : memref<1x1x128xf32, #tpu.memory_space<vmem>>, vector<1x1x128xf32>,
      %cst_61 = arith.constant 0.000000e+00 : f32
      %70 = vector.broadcast %cst_61 : f32 to vector<1x1x128xf32>
      %c0_62 = arith.constant 0 : index
      %c0_63 = arith.constant 0 : index
      %c0_64 = arith.constant 0 : index
      %71 = vector.load %arg8[%c0_62, %c0_63, %c0_64] : memref<1x1x128xf32, #tpu.memory_space<vmem>>, vector<1x1x128xf32>
      tpu.vector_store %arg8[%c0_62, %c0_63, %c0_64], %70 {strides = array<i32>} : memref<1x1x128xf32, #tpu.memory_space<vmem>>, vector<1x1x128xf32>,
      %cst_65 = arith.constant 0.000000e+00 : f32
      %72 = vector.broadcast %cst_65 : f32 to vector<1x1x128xf32>
      %c0_66 = arith.constant 0 : index
      %c0_67 = arith.constant 0 : index
      %c0_68 = arith.constant 0 : index
      %73 = vector.load %arg9[%c0_66, %c0_67, %c0_68] : memref<1x1x128xf32, #tpu.memory_space<vmem>>, vector<1x1x128xf32>
      tpu.vector_store %arg9[%c0_66, %c0_67, %c0_68], %72 {strides = array<i32>} : memref<1x1x128xf32, #tpu.memory_space<vmem>>, vector<1x1x128xf32>,
      %cst_69 = arith.constant 0.000000e+00 : f32
      %74 = vector.broadcast %cst_69 : f32 to vector<1x1x128xf32>
      %c0_70 = arith.constant 0 : index
      %c0_71 = arith.constant 0 : index
      %c0_72 = arith.constant 0 : index
      %75 = vector.load %arg10[%c0_70, %c0_71, %c0_72] : memref<1x1x128xf32, #tpu.memory_space<vmem>>, vector<1x1x128xf32>
      tpu.vector_store %arg10[%c0_70, %c0_71, %c0_72], %74 {strides = array<i32>} : memref<1x1x128xf32, #tpu.memory_space<vmem>>, vector<1x1x128xf32>,
      %cst_73 = arith.constant 0.000000e+00 : f32
      %76 = vector.broadcast %cst_73 : f32 to vector<1x1x128xf32>
      %c0_74 = arith.constant 0 : index
      %c0_75 = arith.constant 0 : index
      %c0_76 = arith.constant 0 : index
      %77 = vector.load %arg11[%c0_74, %c0_75, %c0_76] : memref<1x1x128xf32, #tpu.memory_space<vmem>>, vector<1x1x128xf32>
      tpu.vector_store %arg11[%c0_74, %c0_75, %c0_76], %76 {strides = array<i32>} : memref<1x1x128xf32, #tpu.memory_space<vmem>>, vector<1x1x128xf32>,
    } else {
    }
    %c0 = arith.constant 0 : index
    %c0_1 = arith.constant 0 : index
    %c0_2 = arith.constant 0 : index
    %3 = vector.load %arg2[%c0, %c0_1, %c0_2] : memref<1x256x128xbf16, #tpu.memory_space<vmem>>, vector<1x256x128xbf16>
    %4 = vector.shape_cast %3 : vector<1x256x128xbf16> to vector<256x128xbf16>
    %5 = arith.extf %4 : vector<256x128xbf16> to vector<256x128xf32>
    %c0_3 = arith.constant 0 : index
    %c0_4 = arith.constant 0 : index
    %c0_5 = arith.constant 0 : index
    %6 = vector.load %arg3[%c0_3, %c0_4, %c0_5] : memref<1x256x128xbf16, #tpu.memory_space<vmem>>, vector<1x256x128xbf16>
    %7 = vector.shape_cast %6 : vector<1x256x128xbf16> to vector<256x128xbf16>
    %8 = arith.extf %7 : vector<256x128xbf16> to vector<256x128xf32>
    %c0_6 = arith.constant 0 : index
    %c0_7 = arith.constant 0 : index
    %c0_8 = arith.constant 0 : index
    %9 = vector.load %arg6[%c0_6, %c0_7, %c0_8] : memref<1x1x128xf32, #tpu.memory_space<vmem>>, vector<1x1x128xf32>
    %10 = vector.shape_cast %9 : vector<1x1x128xf32> to vector<1x128xf32>
    %cst = arith.constant dense<0.000000e+00> : vector<128xf32>
    %11 = vector.multi_reduction <add>, %8, %cst [0] : vector<256x128xf32> to vector<128xf32>
    %12 = vector.shape_cast %11 : vector<128xf32> to vector<1x128xf32>
    %13 = arith.addf %10, %12 : vector<1x128xf32>
    %c0_9 = arith.constant 0 : index
    %c0_10 = arith.constant 0 : index
    %c0_11 = arith.constant 0 : index
    %14 = vector.load %arg6[%c0_9, %c0_10, %c0_11] : memref<1x1x128xf32, #tpu.memory_space<vmem>>, vector<1x1x128xf32>
    %15 = vector.shape_cast %14 : vector<1x1x128xf32> to vector<1x128xf32>
    %16 = vector.shape_cast %13 : vector<1x128xf32> to vector<1x1x128xf32>
    tpu.vector_store %arg6[%c0_9, %c0_10, %c0_11], %16 {strides = array<i32>} : memref<1x1x128xf32, #tpu.memory_space<vmem>>, vector<1x1x128xf32>,
    %c0_12 = arith.constant 0 : index
    %c0_13 = arith.constant 0 : index
    %c0_14 = arith.constant 0 : index
    %17 = vector.load %arg7[%c0_12, %c0_13, %c0_14] : memref<1x1x128xf32, #tpu.memory_space<vmem>>, vector<1x1x128xf32>
    %18 = vector.shape_cast %17 : vector<1x1x128xf32> to vector<1x128xf32>
    %19 = arith.mulf %8, %8 : vector<256x128xf32>
    %cst_15 = arith.constant dense<0.000000e+00> : vector<128xf32>
    %20 = vector.multi_reduction <add>, %19, %cst_15 [0] : vector<256x128xf32> to vector<128xf32>
    %21 = vector.shape_cast %20 : vector<128xf32> to vector<1x128xf32>
    %22 = arith.addf %18, %21 : vector<1x128xf32>
    %c0_16 = arith.constant 0 : index
    %c0_17 = arith.constant 0 : index
    %c0_18 = arith.constant 0 : index
    %23 = vector.load %arg7[%c0_16, %c0_17, %c0_18] : memref<1x1x128xf32, #tpu.memory_space<vmem>>, vector<1x1x128xf32>
    %24 = vector.shape_cast %23 : vector<1x1x128xf32> to vector<1x128xf32>
    %25 = vector.shape_cast %22 : vector<1x128xf32> to vector<1x1x128xf32>
    tpu.vector_store %arg7[%c0_16, %c0_17, %c0_18], %25 {strides = array<i32>} : memref<1x1x128xf32, #tpu.memory_space<vmem>>, vector<1x1x128xf32>,
    %c0_19 = arith.constant 0 : index
    %c0_20 = arith.constant 0 : index
    %c0_21 = arith.constant 0 : index
    %26 = vector.load %arg8[%c0_19, %c0_20, %c0_21] : memref<1x1x128xf32, #tpu.memory_space<vmem>>, vector<1x1x128xf32>
    %27 = vector.shape_cast %26 : vector<1x1x128xf32> to vector<1x128xf32>
    %28 = arith.mulf %8, %5 : vector<256x128xf32>
    %cst_22 = arith.constant dense<0.000000e+00> : vector<128xf32>
    %29 = vector.multi_reduction <add>, %28, %cst_22 [0] : vector<256x128xf32> to vector<128xf32>
    %30 = vector.shape_cast %29 : vector<128xf32> to vector<1x128xf32>
    %31 = arith.addf %27, %30 : vector<1x128xf32>
    %c0_23 = arith.constant 0 : index
    %c0_24 = arith.constant 0 : index
    %c0_25 = arith.constant 0 : index
    %32 = vector.load %arg8[%c0_23, %c0_24, %c0_25] : memref<1x1x128xf32, #tpu.memory_space<vmem>>, vector<1x1x128xf32>
    %33 = vector.shape_cast %32 : vector<1x1x128xf32> to vector<1x128xf32>
    %34 = vector.shape_cast %31 : vector<1x128xf32> to vector<1x1x128xf32>
    tpu.vector_store %arg8[%c0_23, %c0_24, %c0_25], %34 {strides = array<i32>} : memref<1x1x128xf32, #tpu.memory_space<vmem>>, vector<1x1x128xf32>,
    %c0_26 = arith.constant 0 : index
    %c0_27 = arith.constant 0 : index
    %35 = vector.load %arg5[%c0_26, %c0_27] : memref<256x36xf32, #tpu.memory_space<vmem>>, vector<256x36xf32>
    %c0_28 = arith.constant 0 : index
    %c0_29 = arith.constant 0 : index
    %c0_30 = arith.constant 0 : index
    %36 = vector.load %arg4[%c0_28, %c0_29, %c0_30] : memref<1x36x128xbf16, #tpu.memory_space<vmem>>, vector<1x36x128xbf16>
    %37 = vector.shape_cast %36 : vector<1x36x128xbf16> to vector<36x128xbf16>
    %38 = arith.extf %37 : vector<36x128xbf16> to vector<36x128xf32>
    %cst_31 = arith.constant dense<0.000000e+00> : vector<256x128xf32>
    %39 = tpu.matmul %35, %38, %cst_31 {dimension_numbers = #tpu.dot_dimension_numbers<[1], [0], [0], [1], [0, 0, 1, 1], [], []>} : vector<256x36xf32>, vector<36x128xf32>, vector<256x128xf32> -> vector<256x128xf32>
    %c0_32 = arith.constant 0 : index
    %c0_33 = arith.constant 0 : index
    %c0_34 = arith.constant 0 : index
    %40 = vector.load %arg9[%c0_32, %c0_33, %c0_34] : memref<1x1x128xf32, #tpu.memory_space<vmem>>, vector<1x1x128xf32>
    %41 = vector.shape_cast %40 : vector<1x1x128xf32> to vector<1x128xf32>
    %cst_35 = arith.constant dense<0.000000e+00> : vector<128xf32>
    %42 = vector.multi_reduction <add>, %39, %cst_35 [0] : vector<256x128xf32> to vector<128xf32>
    %43 = vector.shape_cast %42 : vector<128xf32> to vector<1x128xf32>
    %44 = arith.addf %41, %43 : vector<1x128xf32>
    %c0_36 = arith.constant 0 : index
    %c0_37 = arith.constant 0 : index
    %c0_38 = arith.constant 0 : index
    %45 = vector.load %arg9[%c0_36, %c0_37, %c0_38] : memref<1x1x128xf32, #tpu.memory_space<vmem>>, vector<1x1x128xf32>
    %46 = vector.shape_cast %45 : vector<1x1x128xf32> to vector<1x128xf32>
    %47 = vector.shape_cast %44 : vector<1x128xf32> to vector<1x1x128xf32>
    tpu.vector_store %arg9[%c0_36, %c0_37, %c0_38], %47 {strides = array<i32>} : memref<1x1x128xf32, #tpu.memory_space<vmem>>, vector<1x1x128xf32>,
    %c0_39 = arith.constant 0 : index
    %c0_40 = arith.constant 0 : index
    %c0_41 = arith.constant 0 : index
    %48 = vector.load %arg10[%c0_39, %c0_40, %c0_41] : memref<1x1x128xf32, #tpu.memory_space<vmem>>, vector<1x1x128xf32>
    %49 = vector.shape_cast %48 : vector<1x1x128xf32> to vector<1x128xf32>
    %50 = arith.mulf %39, %39 : vector<256x128xf32>
    %cst_42 = arith.constant dense<0.000000e+00> : vector<128xf32>
    %51 = vector.multi_reduction <add>, %50, %cst_42 [0] : vector<256x128xf32> to vector<128xf32>
    %52 = vector.shape_cast %51 : vector<128xf32> to vector<1x128xf32>
    %53 = arith.addf %49, %52 : vector<1x128xf32>
    %c0_43 = arith.constant 0 : index
    %c0_44 = arith.constant 0 : index
    %c0_45 = arith.constant 0 : index
    %54 = vector.load %arg10[%c0_43, %c0_44, %c0_45] : memref<1x1x128xf32, #tpu.memory_space<vmem>>, vector<1x1x128xf32>
    %55 = vector.shape_cast %54 : vector<1x1x128xf32> to vector<1x128xf32>
    %56 = vector.shape_cast %53 : vector<1x128xf32> to vector<1x1x128xf32>
    tpu.vector_store %arg10[%c0_43, %c0_44, %c0_45], %56 {strides = array<i32>} : memref<1x1x128xf32, #tpu.memory_space<vmem>>, vector<1x1x128xf32>,
    %c0_46 = arith.constant 0 : index
    %c0_47 = arith.constant 0 : index
    %c0_48 = arith.constant 0 : index
    %57 = vector.load %arg11[%c0_46, %c0_47, %c0_48] : memref<1x1x128xf32, #tpu.memory_space<vmem>>, vector<1x1x128xf32>
    %58 = vector.shape_cast %57 : vector<1x1x128xf32> to vector<1x128xf32>
    %59 = arith.mulf %39, %5 : vector<256x128xf32>
    %cst_49 = arith.constant dense<0.000000e+00> : vector<128xf32>
    %60 = vector.multi_reduction <add>, %59, %cst_49 [0] : vector<256x128xf32> to vector<128xf32>
    %61 = vector.shape_cast %60 : vector<128xf32> to vector<1x128xf32>
    %62 = arith.addf %58, %61 : vector<1x128xf32>
    %c0_50 = arith.constant 0 : index
    %c0_51 = arith.constant 0 : index
    %c0_52 = arith.constant 0 : index
    %63 = vector.load %arg11[%c0_50, %c0_51, %c0_52] : memref<1x1x128xf32, #tpu.memory_space<vmem>>, vector<1x1x128xf32>
    %64 = vector.shape_cast %63 : vector<1x1x128xf32> to vector<1x128xf32>
    %65 = vector.shape_cast %62 : vector<1x128xf32> to vector<1x1x128xf32>
    tpu.vector_store %arg11[%c0_50, %c0_51, %c0_52], %65 {strides = array<i32>} : memref<1x1x128xf32, #tpu.memory_space<vmem>>, vector<1x1x128xf32>,
    return
  }
  func.func @transform_0(%arg0: i32, %arg1: i32) -> (i32, i32, i32) {
    %c0_i32 = arith.constant 0 : i32
    %c0_i32_0 = arith.constant 0 : i32
    return %arg0, %arg1, %c0_i32 : i32, i32, i32
  }
  func.func @transform_1(%arg0: i32, %arg1: i32) -> (i32, i32, i32) {
    %c0_i32 = arith.constant 0 : i32
    %c0_i32_0 = arith.constant 0 : i32
    return %arg0, %arg1, %c0_i32 : i32, i32, i32
  }
  func.func @transform_2(%arg0: i32, %arg1: i32) -> (i32, i32, i32) {
    %c0_i32 = arith.constant 0 : i32
    %c0_i32_0 = arith.constant 0 : i32
    %c0_i32_1 = arith.constant 0 : i32
    return %arg0, %c0_i32, %c0_i32_0 : i32, i32, i32
  }
  func.func @transform_3(%arg0: i32, %arg1: i32) -> (i32, i32) {
    %c0_i32 = arith.constant 0 : i32
    %c0_i32_0 = arith.constant 0 : i32
    return %arg1, %c0_i32 : i32, i32
  }
  func.func @transform_4(%arg0: i32, %arg1: i32) -> (i32, i32, i32) {
    %c0_i32 = arith.constant 0 : i32
    %c0_i32_0 = arith.constant 0 : i32
    %c0_i32_1 = arith.constant 0 : i32
    return %arg0, %c0_i32, %c0_i32_0 : i32, i32, i32
  }
  func.func @transform_5(%arg0: i32, %arg1: i32) -> (i32, i32, i32) {
    %c0_i32 = arith.constant 0 : i32
    %c0_i32_0 = arith.constant 0 : i32
    %c0_i32_1 = arith.constant 0 : i32
    return %arg0, %c0_i32, %c0_i32_0 : i32, i32, i32
  }
  func.func @transform_6(%arg0: i32, %arg1: i32) -> (i32, i32, i32) {
    %c0_i32 = arith.constant 0 : i32
    %c0_i32_0 = arith.constant 0 : i32
    %c0_i32_1 = arith.constant 0 : i32
    return %arg0, %c0_i32, %c0_i32_0 : i32, i32, i32
  }
  func.func @transform_7(%arg0: i32, %arg1: i32) -> (i32, i32, i32) {
    %c0_i32 = arith.constant 0 : i32
    %c0_i32_0 = arith.constant 0 : i32
    %c0_i32_1 = arith.constant 0 : i32
    return %arg0, %c0_i32, %c0_i32_0 : i32, i32, i32
  }
  func.func @transform_8(%arg0: i32, %arg1: i32) -> (i32, i32, i32) {
    %c0_i32 = arith.constant 0 : i32
    %c0_i32_0 = arith.constant 0 : i32
    %c0_i32_1 = arith.constant 0 : i32
    return %arg0, %c0_i32, %c0_i32_0 : i32, i32, i32
  }
  func.func @transform_9(%arg0: i32, %arg1: i32) -> (i32, i32, i32) {
    %c0_i32 = arith.constant 0 : i32
    %c0_i32_0 = arith.constant 0 : i32
    %c0_i32_1 = arith.constant 0 : i32
    return %arg0, %c0_i32, %c0_i32_0 : i32, i32, i32
  }
}

module attributes {stable_mosaic.version = 11 : i64} {
  func.func @_attention_kernel(%arg0: i32, %arg1: memref<1x256x128xbf16, #tpu.memory_space<vmem>>, %arg2: memref<256x256xf32, #tpu.memory_space<vmem>>, %arg3: memref<1x1x128xf32, #tpu.memory_space<vmem>>, %arg4: memref<128x128xbf16, #tpu.memory_space<vmem>>, %arg5: memref<128x128xbf16, #tpu.memory_space<vmem>>, %arg6: memref<128x128xbf16, #tpu.memory_space<vmem>>, %arg7: memref<128x128xbf16, #tpu.memory_space<vmem>>, %arg8: memref<1x256x128xbf16, #tpu.memory_space<vmem>>, %arg9: memref<1x1x128xf32, #tpu.memory_space<vmem>>, %arg10: memref<1x1x128xf32, #tpu.memory_space<vmem>>) attributes {dimension_semantics = [#tpu.dimension_semantics<parallel>], iteration_bounds = array<i64: 2>, scalar_prefetch = 0 : i64, scratch_operands = 0 : i64, tpu.core_type = #tpu.core_type<tc>, window_params = [{transform_indices = @transform_0, window_bounds = array<i64: 1, 256, 128>}, {pipeline_mode = #tpu.pipeline_mode<synchronous>, transform_indices = @transform_1, window_bounds = array<i64: 256, 256>}, {transform_indices = @transform_2, window_bounds = array<i64: 1, 1, 128>}, {pipeline_mode = #tpu.pipeline_mode<synchronous>, transform_indices = @transform_3, window_bounds = array<i64: 128, 128>}, {pipeline_mode = #tpu.pipeline_mode<synchronous>, transform_indices = @transform_4, window_bounds = array<i64: 128, 128>}, {pipeline_mode = #tpu.pipeline_mode<synchronous>, transform_indices = @transform_5, window_bounds = array<i64: 128, 128>}, {pipeline_mode = #tpu.pipeline_mode<synchronous>, transform_indices = @transform_6, window_bounds = array<i64: 128, 128>}, {transform_indices = @transform_7, window_bounds = array<i64: 1, 256, 128>}, {transform_indices = @transform_8, window_bounds = array<i64: 1, 1, 128>}, {transform_indices = @transform_9, window_bounds = array<i64: 1, 1, 128>}]} {
    %c0 = arith.constant 0 : index
    %c0_0 = arith.constant 0 : index
    %c0_1 = arith.constant 0 : index
    %0 = vector.load %arg1[%c0, %c0_0, %c0_1] : memref<1x256x128xbf16, #tpu.memory_space<vmem>>, vector<1x256x128xbf16>
    %1 = vector.shape_cast %0 : vector<1x256x128xbf16> to vector<256x128xbf16>
    %c0_2 = arith.constant 0 : index
    %c0_3 = arith.constant 0 : index
    %2 = vector.load %arg4[%c0_2, %c0_3] : memref<128x128xbf16, #tpu.memory_space<vmem>>, vector<128x128xbf16>
    %cst = arith.constant dense<0.000000e+00> : vector<256x128xf32>
    %3 = tpu.matmul %1, %2, %cst {dimension_numbers = #tpu.dot_dimension_numbers<[1], [0], [0], [1], [0, 0, 1, 1], [], []>} : vector<256x128xbf16>, vector<128x128xbf16>, vector<256x128xf32> -> vector<256x128xf32>
    %cst_4 = arith.constant 0.000000e+00 : f32
    %4 = vector.broadcast %cst_4 : f32 to vector<256x128xf32>
    %5 = arith.maximumf %3, %4 : vector<256x128xf32>
    %6 = arith.truncf %5 : vector<256x128xf32> to vector<256x128xbf16>
    %c0_5 = arith.constant 0 : index
    %c0_6 = arith.constant 0 : index
    %7 = vector.load %arg5[%c0_5, %c0_6] : memref<128x128xbf16, #tpu.memory_space<vmem>>, vector<128x128xbf16>
    %cst_7 = arith.constant dense<0.000000e+00> : vector<256x128xf32>
    %8 = tpu.matmul %6, %7, %cst_7 {dimension_numbers = #tpu.dot_dimension_numbers<[1], [0], [0], [1], [0, 0, 1, 1], [], []>} : vector<256x128xbf16>, vector<128x128xbf16>, vector<256x128xf32> -> vector<256x128xf32>
    %c0_8 = arith.constant 0 : index
    %c0_9 = arith.constant 0 : index
    %9 = vector.load %arg2[%c0_8, %c0_9] : memref<256x256xf32, #tpu.memory_space<vmem>>, vector<256x256xf32>
    %10 = arith.extf %1 : vector<256x128xbf16> to vector<256x128xf32>
    %cst_10 = arith.constant dense<0.000000e+00> : vector<256x128xf32>
    %11 = tpu.matmul %9, %10, %cst_10 {dimension_numbers = #tpu.dot_dimension_numbers<[1], [0], [0], [1], [0, 0, 1, 1], [], []>} : vector<256x256xf32>, vector<256x128xf32>, vector<256x128xf32> -> vector<256x128xf32>
    %12 = arith.truncf %11 : vector<256x128xf32> to vector<256x128xbf16>
    %c0_11 = arith.constant 0 : index
    %c0_12 = arith.constant 0 : index
    %13 = vector.load %arg6[%c0_11, %c0_12] : memref<128x128xbf16, #tpu.memory_space<vmem>>, vector<128x128xbf16>
    %cst_13 = arith.constant dense<0.000000e+00> : vector<256x128xf32>
    %14 = tpu.matmul %12, %13, %cst_13 {dimension_numbers = #tpu.dot_dimension_numbers<[1], [0], [0], [1], [0, 0, 1, 1], [], []>} : vector<256x128xbf16>, vector<128x128xbf16>, vector<256x128xf32> -> vector<256x128xf32>
    %cst_14 = arith.constant 0.000000e+00 : f32
    %15 = vector.broadcast %cst_14 : f32 to vector<256x128xf32>
    %16 = arith.maximumf %14, %15 : vector<256x128xf32>
    %17 = arith.truncf %16 : vector<256x128xf32> to vector<256x128xbf16>
    %c0_15 = arith.constant 0 : index
    %c0_16 = arith.constant 0 : index
    %18 = vector.load %arg7[%c0_15, %c0_16] : memref<128x128xbf16, #tpu.memory_space<vmem>>, vector<128x128xbf16>
    %cst_17 = arith.constant dense<0.000000e+00> : vector<256x128xf32>
    %19 = tpu.matmul %17, %18, %cst_17 {dimension_numbers = #tpu.dot_dimension_numbers<[1], [0], [0], [1], [0, 0, 1, 1], [], []>} : vector<256x128xbf16>, vector<128x128xbf16>, vector<256x128xf32> -> vector<256x128xf32>
    %20 = arith.addf %8, %19 : vector<256x128xf32>
    %c0_18 = arith.constant 0 : index
    %c0_19 = arith.constant 0 : index
    %c0_20 = arith.constant 0 : index
    %21 = vector.load %arg3[%c0_18, %c0_19, %c0_20] : memref<1x1x128xf32, #tpu.memory_space<vmem>>, vector<1x1x128xf32>
    %22 = vector.shape_cast %21 : vector<1x1x128xf32> to vector<1x128xf32>
    %23 = vector.broadcast %22 : vector<1x128xf32> to vector<256x128xf32>
    %24 = arith.addf %20, %23 : vector<256x128xf32>
    %cst_21 = arith.constant 0.000000e+00 : f32
    %25 = vector.broadcast %cst_21 : f32 to vector<256x128xf32>
    %26 = arith.subf %25, %24 : vector<256x128xf32>
    %27 = math.exp %26 : vector<256x128xf32>
    %cst_22 = arith.constant 1.000000e+00 : f32
    %28 = vector.broadcast %cst_22 : f32 to vector<256x128xf32>
    %29 = arith.addf %28, %27 : vector<256x128xf32>
    %30 = tpu.reciprocal %29 {approx = true} : vector<256x128xf32> -> vector<256x128xf32>
    %31 = arith.extf %1 : vector<256x128xbf16> to vector<256x128xf32>
    %cst_23 = arith.constant 1.000000e+00 : f32
    %32 = vector.broadcast %cst_23 : f32 to vector<256x128xf32>
    %33 = arith.addf %30, %32 : vector<256x128xf32>
    %34 = arith.mulf %31, %33 : vector<256x128xf32>
    %35 = arith.truncf %34 : vector<256x128xf32> to vector<256x128xbf16>
    %c0_24 = arith.constant 0 : index
    %c0_25 = arith.constant 0 : index
    %c0_26 = arith.constant 0 : index
    %36 = vector.load %arg8[%c0_24, %c0_25, %c0_26] : memref<1x256x128xbf16, #tpu.memory_space<vmem>>, vector<1x256x128xbf16>
    %37 = vector.shape_cast %36 : vector<1x256x128xbf16> to vector<256x128xbf16>
    %38 = vector.shape_cast %35 : vector<256x128xbf16> to vector<1x256x128xbf16>
    tpu.vector_store %arg8[%c0_24, %c0_25, %c0_26], %38 {strides = array<i32>} : memref<1x256x128xbf16, #tpu.memory_space<vmem>>, vector<1x256x128xbf16>,
    %cst_27 = arith.constant dense<0.000000e+00> : vector<128xf32>
    %39 = vector.multi_reduction <add>, %34, %cst_27 [0] : vector<256x128xf32> to vector<128xf32>
    %40 = vector.shape_cast %39 : vector<128xf32> to vector<1x128xf32>
    %c0_28 = arith.constant 0 : index
    %c0_29 = arith.constant 0 : index
    %c0_30 = arith.constant 0 : index
    %41 = vector.load %arg9[%c0_28, %c0_29, %c0_30] : memref<1x1x128xf32, #tpu.memory_space<vmem>>, vector<1x1x128xf32>
    %42 = vector.shape_cast %41 : vector<1x1x128xf32> to vector<1x128xf32>
    %43 = vector.shape_cast %40 : vector<1x128xf32> to vector<1x1x128xf32>
    tpu.vector_store %arg9[%c0_28, %c0_29, %c0_30], %43 {strides = array<i32>} : memref<1x1x128xf32, #tpu.memory_space<vmem>>, vector<1x1x128xf32>,
    %44 = arith.mulf %34, %34 : vector<256x128xf32>
    %cst_31 = arith.constant dense<0.000000e+00> : vector<128xf32>
    %45 = vector.multi_reduction <add>, %44, %cst_31 [0] : vector<256x128xf32> to vector<128xf32>
    %46 = vector.shape_cast %45 : vector<128xf32> to vector<1x128xf32>
    %c0_32 = arith.constant 0 : index
    %c0_33 = arith.constant 0 : index
    %c0_34 = arith.constant 0 : index
    %47 = vector.load %arg10[%c0_32, %c0_33, %c0_34] : memref<1x1x128xf32, #tpu.memory_space<vmem>>, vector<1x1x128xf32>
    %48 = vector.shape_cast %47 : vector<1x1x128xf32> to vector<1x128xf32>
    %49 = vector.shape_cast %46 : vector<1x128xf32> to vector<1x1x128xf32>
    tpu.vector_store %arg10[%c0_32, %c0_33, %c0_34], %49 {strides = array<i32>} : memref<1x1x128xf32, #tpu.memory_space<vmem>>, vector<1x1x128xf32>,
    return
  }
  func.func @transform_0(%arg0: i32) -> (i32, i32, i32) {
    %c0_i32 = arith.constant 0 : i32
    %c0_i32_0 = arith.constant 0 : i32
    %c0_i32_1 = arith.constant 0 : i32
    return %arg0, %c0_i32, %c0_i32_0 : i32, i32, i32
  }
  func.func @transform_1(%arg0: i32) -> (i32, i32) {
    %c0_i32 = arith.constant 0 : i32
    %c0_i32_0 = arith.constant 0 : i32
    %c0_i32_1 = arith.constant 0 : i32
    return %c0_i32, %c0_i32_0 : i32, i32
  }
  func.func @transform_2(%arg0: i32) -> (i32, i32, i32) {
    %c0_i32 = arith.constant 0 : i32
    %c0_i32_0 = arith.constant 0 : i32
    %c0_i32_1 = arith.constant 0 : i32
    return %arg0, %c0_i32, %c0_i32_0 : i32, i32, i32
  }
  func.func @transform_3(%arg0: i32) -> (i32, i32) {
    %c0_i32 = arith.constant 0 : i32
    %c0_i32_0 = arith.constant 0 : i32
    %c0_i32_1 = arith.constant 0 : i32
    return %c0_i32, %c0_i32_0 : i32, i32
  }
  func.func @transform_4(%arg0: i32) -> (i32, i32) {
    %c0_i32 = arith.constant 0 : i32
    %c0_i32_0 = arith.constant 0 : i32
    %c0_i32_1 = arith.constant 0 : i32
    return %c0_i32, %c0_i32_0 : i32, i32
  }
  func.func @transform_5(%arg0: i32) -> (i32, i32) {
    %c0_i32 = arith.constant 0 : i32
    %c0_i32_0 = arith.constant 0 : i32
    %c0_i32_1 = arith.constant 0 : i32
    return %c0_i32, %c0_i32_0 : i32, i32
  }
  func.func @transform_6(%arg0: i32) -> (i32, i32) {
    %c0_i32 = arith.constant 0 : i32
    %c0_i32_0 = arith.constant 0 : i32
    %c0_i32_1 = arith.constant 0 : i32
    return %c0_i32, %c0_i32_0 : i32, i32
  }
  func.func @transform_7(%arg0: i32) -> (i32, i32, i32) {
    %c0_i32 = arith.constant 0 : i32
    %c0_i32_0 = arith.constant 0 : i32
    %c0_i32_1 = arith.constant 0 : i32
    return %arg0, %c0_i32, %c0_i32_0 : i32, i32, i32
  }
  func.func @transform_8(%arg0: i32) -> (i32, i32, i32) {
    %c0_i32 = arith.constant 0 : i32
    %c0_i32_0 = arith.constant 0 : i32
    %c0_i32_1 = arith.constant 0 : i32
    return %arg0, %c0_i32, %c0_i32_0 : i32, i32, i32
  }
  func.func @transform_9(%arg0: i32) -> (i32, i32, i32) {
    %c0_i32 = arith.constant 0 : i32
    %c0_i32_0 = arith.constant 0 : i32
    %c0_i32_1 = arith.constant 0 : i32
    return %arg0, %c0_i32, %c0_i32_0 : i32, i32, i32
  }
}

module attributes {stable_mosaic.version = 11 : i64} {
  func.func @kernel(%arg0: i32, %arg1: i32, %arg2: memref<1x256x128xbf16, #tpu.memory_space<vmem>>, %arg3: memref<1x256x128xbf16, #tpu.memory_space<vmem>>, %arg4: memref<1x256x128xbf16, #tpu.memory_space<vmem>>, %arg5: memref<1x1x128xf32, #tpu.memory_space<vmem>>, %arg6: memref<1x1x128xf32, #tpu.memory_space<vmem>>, %arg7: memref<1x1x128xf32, #tpu.memory_space<vmem>>, %arg8: memref<1x1x128xf32, #tpu.memory_space<vmem>>, %arg9: memref<1x1x128xf32, #tpu.memory_space<vmem>>, %arg10: memref<1x1x128xf32, #tpu.memory_space<vmem>>, %arg11: memref<128x128xbf16, #tpu.memory_space<vmem>>, %arg12: memref<128x128xbf16, #tpu.memory_space<vmem>>, %arg13: memref<128x128xbf16, #tpu.memory_space<vmem>>, %arg14: memref<1x128x256xf32, #tpu.memory_space<vmem>>) attributes {dimension_semantics = [#tpu.dimension_semantics<parallel>, #tpu.dimension_semantics<parallel>], iteration_bounds = array<i64: 2, 1>, scalar_prefetch = 0 : i64, scratch_operands = 0 : i64, tpu.core_type = #tpu.core_type<tc>, window_params = [{transform_indices = @transform_0, window_bounds = array<i64: 1, 256, 128>}, {transform_indices = @transform_1, window_bounds = array<i64: 1, 256, 128>}, {transform_indices = @transform_2, window_bounds = array<i64: 1, 256, 128>}, {pipeline_mode = #tpu.pipeline_mode<synchronous>, transform_indices = @transform_3, window_bounds = array<i64: 1, 1, 128>}, {pipeline_mode = #tpu.pipeline_mode<synchronous>, transform_indices = @transform_4, window_bounds = array<i64: 1, 1, 128>}, {pipeline_mode = #tpu.pipeline_mode<synchronous>, transform_indices = @transform_5, window_bounds = array<i64: 1, 1, 128>}, {pipeline_mode = #tpu.pipeline_mode<synchronous>, transform_indices = @transform_6, window_bounds = array<i64: 1, 1, 128>}, {pipeline_mode = #tpu.pipeline_mode<synchronous>, transform_indices = @transform_7, window_bounds = array<i64: 1, 1, 128>}, {pipeline_mode = #tpu.pipeline_mode<synchronous>, transform_indices = @transform_8, window_bounds = array<i64: 1, 1, 128>}, {pipeline_mode = #tpu.pipeline_mode<synchronous>, transform_indices = @transform_9, window_bounds = array<i64: 128, 128>}, {pipeline_mode = #tpu.pipeline_mode<synchronous>, transform_indices = @transform_10, window_bounds = array<i64: 128, 128>}, {pipeline_mode = #tpu.pipeline_mode<synchronous>, transform_indices = @transform_11, window_bounds = array<i64: 128, 128>}, {transform_indices = @transform_12, window_bounds = array<i64: 1, 128, 256>}]} {
    %c0 = arith.constant 0 : index
    %c0_0 = arith.constant 0 : index
    %c0_1 = arith.constant 0 : index
    %0 = vector.load %arg2[%c0, %c0_0, %c0_1] : memref<1x256x128xbf16, #tpu.memory_space<vmem>>, vector<1x256x128xbf16>
    %1 = vector.shape_cast %0 : vector<1x256x128xbf16> to vector<256x128xbf16>
    %2 = arith.extf %1 : vector<256x128xbf16> to vector<256x128xf32>
    %c0_2 = arith.constant 0 : index
    %c0_3 = arith.constant 0 : index
    %c0_4 = arith.constant 0 : index
    %3 = vector.load %arg5[%c0_2, %c0_3, %c0_4] : memref<1x1x128xf32, #tpu.memory_space<vmem>>, vector<1x1x128xf32>
    %4 = vector.shape_cast %3 : vector<1x1x128xf32> to vector<1x128xf32>
    %5 = vector.broadcast %4 : vector<1x128xf32> to vector<256x128xf32>
    %6 = arith.mulf %2, %5 : vector<256x128xf32>
    %c0_5 = arith.constant 0 : index
    %c0_6 = arith.constant 0 : index
    %c0_7 = arith.constant 0 : index
    %7 = vector.load %arg6[%c0_5, %c0_6, %c0_7] : memref<1x1x128xf32, #tpu.memory_space<vmem>>, vector<1x1x128xf32>
    %8 = vector.shape_cast %7 : vector<1x1x128xf32> to vector<1x128xf32>
    %9 = vector.broadcast %8 : vector<1x128xf32> to vector<256x128xf32>
    %10 = arith.addf %6, %9 : vector<256x128xf32>
    %cst = arith.constant 0.000000e+00 : f32
    %11 = vector.broadcast %cst : f32 to vector<256x128xf32>
    %12 = arith.maximumf %10, %11 : vector<256x128xf32>
    %13 = arith.truncf %12 : vector<256x128xf32> to vector<256x128xbf16>
    %c0_8 = arith.constant 0 : index
    %c0_9 = arith.constant 0 : index
    %14 = vector.load %arg11[%c0_8, %c0_9] : memref<128x128xbf16, #tpu.memory_space<vmem>>, vector<128x128xbf16>
    %cst_10 = arith.constant dense<0.000000e+00> : vector<256x128xf32>
    %15 = tpu.matmul %13, %14, %cst_10 {dimension_numbers = #tpu.dot_dimension_numbers<[1], [0], [0], [1], [0, 0, 1, 1], [], []>} : vector<256x128xbf16>, vector<128x128xbf16>, vector<256x128xf32> -> vector<256x128xf32>
    %c0_11 = arith.constant 0 : index
    %c0_12 = arith.constant 0 : index
    %c0_13 = arith.constant 0 : index
    %16 = vector.load %arg3[%c0_11, %c0_12, %c0_13] : memref<1x256x128xbf16, #tpu.memory_space<vmem>>, vector<1x256x128xbf16>
    %17 = vector.shape_cast %16 : vector<1x256x128xbf16> to vector<256x128xbf16>
    %18 = arith.extf %17 : vector<256x128xbf16> to vector<256x128xf32>
    %c0_14 = arith.constant 0 : index
    %c0_15 = arith.constant 0 : index
    %c0_16 = arith.constant 0 : index
    %19 = vector.load %arg7[%c0_14, %c0_15, %c0_16] : memref<1x1x128xf32, #tpu.memory_space<vmem>>, vector<1x1x128xf32>
    %20 = vector.shape_cast %19 : vector<1x1x128xf32> to vector<1x128xf32>
    %21 = vector.broadcast %20 : vector<1x128xf32> to vector<256x128xf32>
    %22 = arith.mulf %18, %21 : vector<256x128xf32>
    %c0_17 = arith.constant 0 : index
    %c0_18 = arith.constant 0 : index
    %c0_19 = arith.constant 0 : index
    %23 = vector.load %arg8[%c0_17, %c0_18, %c0_19] : memref<1x1x128xf32, #tpu.memory_space<vmem>>, vector<1x1x128xf32>
    %24 = vector.shape_cast %23 : vector<1x1x128xf32> to vector<1x128xf32>
    %25 = vector.broadcast %24 : vector<1x128xf32> to vector<256x128xf32>
    %26 = arith.addf %22, %25 : vector<256x128xf32>
    %cst_20 = arith.constant 0.000000e+00 : f32
    %27 = vector.broadcast %cst_20 : f32 to vector<256x128xf32>
    %28 = arith.maximumf %26, %27 : vector<256x128xf32>
    %29 = arith.truncf %28 : vector<256x128xf32> to vector<256x128xbf16>
    %c0_21 = arith.constant 0 : index
    %c0_22 = arith.constant 0 : index
    %30 = vector.load %arg12[%c0_21, %c0_22] : memref<128x128xbf16, #tpu.memory_space<vmem>>, vector<128x128xbf16>
    %cst_23 = arith.constant dense<0.000000e+00> : vector<256x128xf32>
    %31 = tpu.matmul %29, %30, %cst_23 {dimension_numbers = #tpu.dot_dimension_numbers<[1], [0], [0], [1], [0, 0, 1, 1], [], []>} : vector<256x128xbf16>, vector<128x128xbf16>, vector<256x128xf32> -> vector<256x128xf32>
    %32 = arith.addf %15, %31 : vector<256x128xf32>
    %c0_24 = arith.constant 0 : index
    %c0_25 = arith.constant 0 : index
    %c0_26 = arith.constant 0 : index
    %33 = vector.load %arg4[%c0_24, %c0_25, %c0_26] : memref<1x256x128xbf16, #tpu.memory_space<vmem>>, vector<1x256x128xbf16>
    %34 = vector.shape_cast %33 : vector<1x256x128xbf16> to vector<256x128xbf16>
    %35 = arith.extf %34 : vector<256x128xbf16> to vector<256x128xf32>
    %c0_27 = arith.constant 0 : index
    %c0_28 = arith.constant 0 : index
    %c0_29 = arith.constant 0 : index
    %36 = vector.load %arg9[%c0_27, %c0_28, %c0_29] : memref<1x1x128xf32, #tpu.memory_space<vmem>>, vector<1x1x128xf32>
    %37 = vector.shape_cast %36 : vector<1x1x128xf32> to vector<1x128xf32>
    %38 = vector.broadcast %37 : vector<1x128xf32> to vector<256x128xf32>
    %39 = arith.mulf %35, %38 : vector<256x128xf32>
    %c0_30 = arith.constant 0 : index
    %c0_31 = arith.constant 0 : index
    %c0_32 = arith.constant 0 : index
    %40 = vector.load %arg10[%c0_30, %c0_31, %c0_32] : memref<1x1x128xf32, #tpu.memory_space<vmem>>, vector<1x1x128xf32>
    %41 = vector.shape_cast %40 : vector<1x1x128xf32> to vector<1x128xf32>
    %42 = vector.broadcast %41 : vector<1x128xf32> to vector<256x128xf32>
    %43 = arith.addf %39, %42 : vector<256x128xf32>
    %cst_33 = arith.constant 0.000000e+00 : f32
    %44 = vector.broadcast %cst_33 : f32 to vector<256x128xf32>
    %45 = arith.maximumf %43, %44 : vector<256x128xf32>
    %46 = arith.truncf %45 : vector<256x128xf32> to vector<256x128xbf16>
    %c0_34 = arith.constant 0 : index
    %c0_35 = arith.constant 0 : index
    %47 = vector.load %arg13[%c0_34, %c0_35] : memref<128x128xbf16, #tpu.memory_space<vmem>>, vector<128x128xbf16>
    %cst_36 = arith.constant dense<0.000000e+00> : vector<256x128xf32>
    %48 = tpu.matmul %46, %47, %cst_36 {dimension_numbers = #tpu.dot_dimension_numbers<[1], [0], [0], [1], [0, 0, 1, 1], [], []>} : vector<256x128xbf16>, vector<128x128xbf16>, vector<256x128xf32> -> vector<256x128xf32>
    %49 = arith.addf %32, %48 : vector<256x128xf32>
    %50 = tpu.transpose %49, [1, 0] : vector<256x128xf32> -> vector<128x256xf32>
    %c0_37 = arith.constant 0 : index
    %c0_38 = arith.constant 0 : index
    %c0_39 = arith.constant 0 : index
    %51 = vector.load %arg14[%c0_37, %c0_38, %c0_39] : memref<1x128x256xf32, #tpu.memory_space<vmem>>, vector<1x128x256xf32>
    %52 = vector.shape_cast %51 : vector<1x128x256xf32> to vector<128x256xf32>
    %53 = vector.shape_cast %50 : vector<128x256xf32> to vector<1x128x256xf32>
    tpu.vector_store %arg14[%c0_37, %c0_38, %c0_39], %53 {strides = array<i32>} : memref<1x128x256xf32, #tpu.memory_space<vmem>>, vector<1x128x256xf32>,
    return
  }
  func.func @transform_0(%arg0: i32, %arg1: i32) -> (i32, i32, i32) {
    %c0_i32 = arith.constant 0 : i32
    %c0_i32_0 = arith.constant 0 : i32
    return %arg0, %arg1, %c0_i32 : i32, i32, i32
  }
  func.func @transform_1(%arg0: i32, %arg1: i32) -> (i32, i32, i32) {
    %c0_i32 = arith.constant 0 : i32
    %c0_i32_0 = arith.constant 0 : i32
    return %arg0, %arg1, %c0_i32 : i32, i32, i32
  }
  func.func @transform_2(%arg0: i32, %arg1: i32) -> (i32, i32, i32) {
    %c0_i32 = arith.constant 0 : i32
    %c0_i32_0 = arith.constant 0 : i32
    return %arg0, %arg1, %c0_i32 : i32, i32, i32
  }
  func.func @transform_3(%arg0: i32, %arg1: i32) -> (i32, i32, i32) {
    %c0_i32 = arith.constant 0 : i32
    %c0_i32_0 = arith.constant 0 : i32
    %c0_i32_1 = arith.constant 0 : i32
    %c0_i32_2 = arith.constant 0 : i32
    return %c0_i32, %c0_i32_0, %c0_i32_1 : i32, i32, i32
  }
  func.func @transform_4(%arg0: i32, %arg1: i32) -> (i32, i32, i32) {
    %c0_i32 = arith.constant 0 : i32
    %c0_i32_0 = arith.constant 0 : i32
    %c0_i32_1 = arith.constant 0 : i32
    %c0_i32_2 = arith.constant 0 : i32
    return %c0_i32, %c0_i32_0, %c0_i32_1 : i32, i32, i32
  }
  func.func @transform_5(%arg0: i32, %arg1: i32) -> (i32, i32, i32) {
    %c0_i32 = arith.constant 0 : i32
    %c0_i32_0 = arith.constant 0 : i32
    %c0_i32_1 = arith.constant 0 : i32
    %c0_i32_2 = arith.constant 0 : i32
    return %c0_i32, %c0_i32_0, %c0_i32_1 : i32, i32, i32
  }
  func.func @transform_6(%arg0: i32, %arg1: i32) -> (i32, i32, i32) {
    %c0_i32 = arith.constant 0 : i32
    %c0_i32_0 = arith.constant 0 : i32
    %c0_i32_1 = arith.constant 0 : i32
    %c0_i32_2 = arith.constant 0 : i32
    return %c0_i32, %c0_i32_0, %c0_i32_1 : i32, i32, i32
  }
  func.func @transform_7(%arg0: i32, %arg1: i32) -> (i32, i32, i32) {
    %c0_i32 = arith.constant 0 : i32
    %c0_i32_0 = arith.constant 0 : i32
    %c0_i32_1 = arith.constant 0 : i32
    %c0_i32_2 = arith.constant 0 : i32
    return %c0_i32, %c0_i32_0, %c0_i32_1 : i32, i32, i32
  }
  func.func @transform_8(%arg0: i32, %arg1: i32) -> (i32, i32, i32) {
    %c0_i32 = arith.constant 0 : i32
    %c0_i32_0 = arith.constant 0 : i32
    %c0_i32_1 = arith.constant 0 : i32
    %c0_i32_2 = arith.constant 0 : i32
    return %c0_i32, %c0_i32_0, %c0_i32_1 : i32, i32, i32
  }
  func.func @transform_9(%arg0: i32, %arg1: i32) -> (i32, i32) {
    %c0_i32 = arith.constant 0 : i32
    %c0_i32_0 = arith.constant 0 : i32
    %c0_i32_1 = arith.constant 0 : i32
    return %c0_i32, %c0_i32_0 : i32, i32
  }
  func.func @transform_10(%arg0: i32, %arg1: i32) -> (i32, i32) {
    %c0_i32 = arith.constant 0 : i32
    %c0_i32_0 = arith.constant 0 : i32
    %c0_i32_1 = arith.constant 0 : i32
    return %c0_i32, %c0_i32_0 : i32, i32
  }
  func.func @transform_11(%arg0: i32, %arg1: i32) -> (i32, i32) {
    %c0_i32 = arith.constant 0 : i32
    %c0_i32_0 = arith.constant 0 : i32
    %c0_i32_1 = arith.constant 0 : i32
    return %c0_i32, %c0_i32_0 : i32, i32
  }
  func.func @transform_12(%arg0: i32, %arg1: i32) -> (i32, i32, i32) {
    %c0_i32 = arith.constant 0 : i32
    %c0_i32_0 = arith.constant 0 : i32
    return %arg0, %c0_i32, %arg1 : i32, i32, i32
  }
}

</mosaic_0001>

<bundles_post_ra>
// kernel: _lambda_.9
= control target key start
LH: loop header
LB: loop body
LE: loop exit
PB: predicated region body
PF: predicated region fallthrough
CT: control target
= control target key end

     0   :  { %9 = vsyncpa [#allocation3], 0  ;;  %s778_s15 = smov 0   ;;  %s780_s16 = smov 0   ;;  %s872_s0 = inlined_call_operand.vmem [shape: bf16[2,36,128], index: 0, kind: input, shape index: {}]   ;;  %s873_s1 = inlined_call_operand.vmem [shape: f32[1,1,128], index: 1, kind: input, shape index: {}]   ;;  %s874_s2 = inlined_call_operand.vmem [shape: f32[1,1,128], index: 2, kind: input, shape index: {}]   ;;  %s875_s3 = inlined_call_operand.hbm [shape: bf16[128,128], index: 3, kind: input, shape index: {}]   ;;  %s876_s4 = inlined_call_operand.vmem [shape: bf16[2,36,128], index: 4, kind: output, shape index: {}]  }
   0x1   :  { %s782_s17 = smov 0  }
   0x2 LB: > { %s540_s18 = sadd.s32 4294967295, %s746_s17   ;;  %s27_s19 = sadd.s32 1, %s742_s16  ;;  %s746_s17 = sphi %s782_s17, %s15_s17   ;;  %s742_s16 = sphi %s780_s16, %s880_s16   ;;  %s738_s15 = sphi %s778_s15, %s879_s15  }
   0x3   : > { %p29_p0 = scmp.ge.s32.totalorder %s27_s19, 2  ;;  %p542_p1 = scmp.ge.s32.totalorder %s746_s17, 1 }
   0x4   : > { %p151_p2 = scmp.lt.s32.totalorder %s746_s17, 3  ;;  %p803_p4 = scmp.eq.s32.totalorder %s540_s18, 0 }
   0x5   : > { %s882_s19 = smov (%p29_p0, %s27_s19), 0  ;;  %s748_s22 = smov [#allocation2]  }
   0x6   : > { %p799_p3 = pnand %p542_p1, %p151_p2  ;;  %s169_s23 = sshll.u32 %s748_s22, 4  ;;  %s170_s23 = int_to_ptr.vmem [resolvable:$true] %s169_s23 }
   0x7   : > { %s705_s24 = scalar_lea.vmem %s170_s23, 1024  ;;  %p713_p11 = scmp.lt.s32.totalorder %s170_s23, %s170_s23 }
   0x8   : > { %p651_p5 = pneg %p799_p3  ;;  %p706_p8 = scmp.ne.s32.totalorder %s170_s23, %s705_s24 }
   0x9   : > { %p714_p12 = scmp.lt.s32.totalorder %s705_s24, %s705_s24 }
   0xa   : > { %p652_p6 = pnand %p803_p4, %p651_p5 }
   0xb   : > { %p715_p13 = por %p714_p12, %p713_p11 }
   0xc   : > { %p696_p7 = pneg %p652_p6 }
   0xe   : > { %p708_p9 = pnand %p706_p8, %p696_p7 }
  0x10   : > { %p709_p10 = pneg %p708_p9 }
  0x12   : > { %p716_p0 = pnand %p715_p13, %p709_p10 }
  0x14   : > { %719 = shalt.err (!%p716_p0)
}
  0x15   : > { %s749_s25 = smov 64   ;;  %s750_s26 = smov 4  }
  0x16   : > { %654 = dma.hbm_to_vmem [thread:$0]  (!%p652_p6), %s875_s3, 1024, %s170_s23, [#allocation3], %s749_s25, %s749_s25, %s750_s26  }
  0x17   : > { %198 = sbr.rel (%p799_p3) target bundleno = 270 (0x10e), region = 36 }
  0x1c   : > { %733 = dma.done.wait (%p803_p4), [#allocation3], 1024  }
  0x1d   : > { %735 = vsyncadd (%p803_p4), [#allocation3], 4294966272  ;;  %v751_v0 = vmov 0.0   ;;  %vm752_vm0 = vmmov 0   ;;  %p233_p1 = scmp.lt.s32.totalorder %s738_s15, 1  ;;  %v686_v1 = vld [vmem:[#allocation2 + $0x38] sm:$0xff]  }
  0x1e   : > { %630 = vmatprep.subr.bf16.mxu1 %v751_v0  ;;  %602 = vmatprep.subr.bf16.mxu0 %v751_v0  ;;  %v687_v2 = vld [vmem:[#allocation2 + $0x30] sm:$0xff]   ;;  %v688_v3 = vld [vmem:[#allocation2 + $0x28] sm:$0xff]   ;;  %v689_v4 = vld [vmem:[#allocation2 + $0x20] sm:$0xff]  }
  0x1f   : > { %622 = vmatprep.mubr.msk.bf16.mxu1 %vm752_vm0, %v751_v0  ;;  %618 = vmatprep.mubr.msk.bf16.mxu0 %vm752_vm0, %v751_v0  ;;  %s884_s15 = smov (!%p233_p1, %s738_s15), 1  ;;  %v690_v11 = vld [vmem:[#allocation2 + $0x18] sm:$0xff]   ;;  %v549_v12 = vld [vmem:[%s873_s1] ss:$0 sm:$0xff]  ;;  %v691_v18 = vld [vmem:[#allocation2 + $0x10] sm:$0xff]  }
  0x20   : > { %638 = vmatpush3.bf16.msra.mxu1 %v686_v1  ;;  %603 = vmatpush3.bf16.msra.mxu0 %v686_v1  ;;  %s646_s29 = smul.u32 20, %s884_s15  ;;  %v550_v19 = vld [vmem:[%s874_s2] ss:$0 sm:$0xff]  ;;  %v692_v25 = vld [vmem:[#allocation2 + $0x8] sm:$0xff]  }
  0x21   : > { %631 = vmatprep.subr.bf16.mxu1 %v751_v0  ;;  %604 = vmatprep.subr.bf16.mxu0 %v751_v0  ;;  %v693_v31 = vld [vmem:[#allocation2] sm:$0xff]  }
  0x22   : > { %s240_s6 = scalar_lea.vmem %s872_s0, %s646_s29  ;;  %s250_s13 = scalar_lea.vmem %s876_s4, %s646_s29 }
  0x23   : > { %v589_v5 = vld [vmem:[%s240_s6 + $0x8] sm:$0xff]   ;;  %v572_v6 = vld [vmem:[%s240_s6] sm:$0xff]   ;;  %v257_v17 = vld [vmem:[%s240_s6 + $0x10] sm:$0x3] }
  0x24   : > { %639 = vmatpush3.bf16.msra.mxu1 %v687_v2  ;;  %605 = vmatpush3.bf16.msra.mxu0 %v687_v2  ;;  %v577_v7 = vunpack.c.l.bf16 %v589_v5  ;;  %v578_v8 = vunpack.c.h.bf16 %v589_v5  ;;  %v573_v9 = vunpack.c.l.bf16 %v572_v6  ;;  %v574_v10 = vunpack.c.h.bf16 %v572_v6 }
  0x25   : > { %632 = vmatprep.subr.bf16.mxu1 %v751_v0  ;;  %606 = vmatprep.subr.bf16.mxu0 %v751_v0  ;;  %v262_v20 = vunpack.c.l.bf16 %v257_v17 }
  0x26   : > { %v272_v13 = vmul.f32 %v577_v7, %v549_v12  ;;  %v273_v14 = vmul.f32 %v578_v8, %v549_v12  ;;  %v270_v15 = vmul.f32 %v573_v9, %v549_v12  ;;  %v271_v16 = vmul.f32 %v574_v10, %v549_v12 }
  0x27   : > { %v274_v26 = vmul.f32 %v549_v12, %v262_v20 }
  0x28   : > { %640 = vmatpush3.bf16.msra.mxu1 %v688_v3  ;;  %607 = vmatpush3.bf16.msra.mxu0 %v688_v3  ;;  %v284_v21 = vadd.f32 %v550_v19, %v272_v13  ;;  %v285_v22 = vadd.f32 %v550_v19, %v273_v14  ;;  %v282_v23 = vadd.f32 %v550_v19, %v270_v15 }
  0x29   : > { %633 = vmatprep.subr.bf16.mxu1 %v751_v0  ;;  %608 = vmatprep.subr.bf16.mxu0 %v751_v0  ;;  %v283_v24 = vadd.f32 %v550_v19, %v271_v16  ;;  %v286_v34 = vadd.f32 %v550_v19, %v274_v26 }
  0x2a   : > { %v289_v27 = vmax.f32 %v284_v21, 0.0  ;;  %v290_v28 = vmax.f32 %v285_v22, 0.0  ;;  %v287_v29 = vmax.f32 %v282_v23, 0.0 }
  0x2b   : > { %v288_v30 = vmax.f32 %v283_v24, 0.0  ;;  %v291_v35 = vmax.f32 %v286_v34, 0.0 }
  0x2c   : > { %641 = vmatpush3.bf16.msra.mxu1 %v689_v4  ;;  %609 = vmatpush3.bf16.msra.mxu0 %v689_v4  ;;  %v293_v32 = vpack.c.bf16 %v290_v28, %v289_v27 }
  0x2d   : > { %634 = vmatprep.subr.bf16.mxu1 %v751_v0  ;;  %610 = vmatprep.subr.bf16.mxu0 %v751_v0  ;;  %v292_v33 = vpack.c.bf16 %v288_v30, %v287_v29  ;;  %v294_v36 = vpack.c.bf16 %v291_v35, %v291_v35 }
  0x30   : > { %642 = vmatpush3.bf16.msra.mxu1 %v690_v11  ;;  %611 = vmatpush3.bf16.msra.mxu0 %v690_v11 }
  0x31   : > { %635 = vmatprep.subr.bf16.mxu1 %v751_v0  ;;  %612 = vmatprep.subr.bf16.mxu0 %v751_v0 }
  0x34   : > { %643 = vmatpush3.bf16.msra.mxu1 %v691_v18  ;;  %613 = vmatpush3.bf16.msra.mxu0 %v691_v18 }
  0x35   : > { %636 = vmatprep.subr.bf16.mxu1 %v751_v0  ;;  %614 = vmatprep.subr.bf16.mxu0 %v751_v0 }
  0x38   : > { %644 = vmatpush3.bf16.msra.mxu1 %v692_v25  ;;  %615 = vmatpush3.bf16.msra.mxu0 %v692_v25 }
  0x39   : > { %637 = vmatprep.subr.bf16.mxu1 %v751_v0  ;;  %616 = vmatprep.subr.bf16.mxu0 %v751_v0 }
  0x3c   : > { %645 = vmatpush3.bf16.msra.mxu1 %v693_v31  ;;  %617 = vmatpush3.bf16.msra.mxu0 %v693_v31 }
  0x3f   : > { %623 = vmatmul.mubr.bf16.vlgmr.msra.gmra.mxu1 %v293_v32  ;;  %619 = vmatmul.mubr.bf16.vlgmr.msra.gmra.mxu0 %v292_v33 }
  0x40   : > { %626 = vmatprep.mubr.msk.bf16.mxu1 %vm752_vm0, %v751_v0 }
  0x47   : > { %627 = vmatmul.mubr.bf16.gmra.mxu1 %v294_v36 }
  0xff   : > { %v401_v37 = vpop.f32.mrf.mxu1  ;;  %v393_v38 = vpop.f32.mrf.mxu0 }
 0x101   : > { %v624_v39 = vpop.f32.mrf.mxu1  ;;  %v620_v40 = vpop.f32.mrf.mxu0 }
 0x103   : > { %v404_v41 = vpop.f32.mrf.mxu1  ;;  %v396_v42 = vpop.f32.mrf.mxu0 }
 0x104   : > { %v587_v43 = vpack.c.bf16 %v404_v41, %v401_v37  ;;  %v582_v44 = vpack.c.bf16 %v396_v42, %v393_v38 }
 0x105   : > { %v625_v45 = vpop.f32.mrf.mxu1  ;;  %v621_v46 = vpop.f32.mrf.mxu0 }
 0x106   : > { %590 = vst [vmem:[%s250_s13 + $0x8] sm:$0xff] %v587_v43   ;;  %583 = vst [vmem:[%s250_s13] sm:$0xff] %v582_v44  }
 0x107   : > { %v409_v47 = vpop.f32.mrf.mxu1 }
 0x108   : > { %v570_v48 = vpack.c.bf16 %v409_v47, %v409_v47 }
 0x109   : > { %v628_v49 = vpop.f32.mrf.mxu1 }
 0x10a   : > { %440 = vst [vmem:[%s250_s13 + $0x10] sm:$0x3] %v570_v48 }
 0x10b   : > { %v412_v50 = vpop.f32.mrf.mxu1 }
 0x10d   : > { %v629_v51 = vpop.f32.mrf.mxu1 }
 0x10e PF: > { %s15_s17 = sadd.s32 1, %s746_s17   ;;  %s879_s15 = smov %s742_s16 }
 0x10f   : > { %p12_p2 = scmp.ge.s32.totalorder %s15_s17, 4   ;;  %s880_s16 = smov %s882_s19 }
 0x111   :  { %14 = sbr.rel (!%p12_p2) target bundleno = 2 (0x2), region = 71 }
 0x116   :  { %471 = vsyncpa [#allocation3], 1 }
 0x117   :  { %473 = vsyncpa [#allocation3 + $0x1], 1 }

// kernel: _lambda_.7
= control target key start
LH: loop header
LB: loop body
LE: loop exit
PB: predicated region body
PF: predicated region fallthrough
CT: control target
= control target key end

     0   :  { %s1581_s21 = smov 0   ;;  %s1583_s22 = smov 0   ;;  %s1881_s0 = inlined_call_operand.vmem [shape: bf16[2,256,128], index: 0, kind: input, shape index: {}]   ;;  %s1882_s1 = inlined_call_operand.vmem [shape: f32[1,1,128], index: 1, kind: input, shape index: {}]   ;;  %s1883_s2 = inlined_call_operand.vmem [shape: f32[1,1,128], index: 2, kind: input, shape index: {}]   ;;  %s1884_s3 = inlined_call_operand.vmem [shape: bf16[128,128], index: 3, kind: input, shape index: {}]   ;;  %s1885_s4 = inlined_call_operand.vmem [shape: bf16[2,256,128], index: 4, kind: output, shape index: {0}]   ;;  %s1886_s5 = inlined_call_operand.vmem [shape: f32[2,1,128], index: 5, kind: output, shape index: {1}]   ;;  %s1887_s6 = inlined_call_operand.vmem [shape: f32[2,1,128], index: 6, kind: output, shape index: {2}]  }
   0x1   :  { %s1585_s23 = smov 0  }
   0x2 LB: > { %s29_s24 = sadd.s32 1, %s1539_s22  ;;  %p1143_p0 = scmp.ge.s32.totalorder %s1543_s23, 1  ;;  %s1543_s23 = sphi %s1585_s23, %s17_s23   ;;  %s1539_s22 = sphi %s1583_s22, %s1889_s22   ;;  %s1535_s21 = sphi %s1581_s21, %s1888_s21  }
   0x3   : > { %p31_p1 = scmp.ge.s32.totalorder %s29_s24, 2  ;;  %p238_p2 = scmp.lt.s32.totalorder %s1543_s23, 3 }
   0x5   : > { %s1891_s24 = smov (%p31_p1, %s29_s24), 0  ;;  %p239_p3 = pnand %p1143_p0, %p238_p2 }
   0x6   : > { %p283_p4 = scmp.lt.s32.totalorder (!%p239_p3), %s1535_s21, 1 }
   0x7   : > { %242 = sbr.rel (%p239_p3) target bundleno = 323 (0x143), region = 36 }
   0xc   : > { %v1513_v0 = vld [vmem:[%s1884_s3 + $0x38] sm:$0xff]   ;;  %v1514_v1 = vld [vmem:[%s1884_s3 + $0x30] sm:$0xff]   ;;  %s1893_s21 = smov (!%p283_p4, %s1535_s21), 1  ;;  %v1515_v2 = vld [vmem:[%s1884_s3 + $0x28] sm:$0xff]  }
   0xd   : > { %1424 = vmatprep.subr.bf16.mxu0 %v1513_v0  ;;  %1472 = vmatprep.subr.bf16.mxu1 %v1513_v0  ;;  %s1192_s7 = sshll.u32 %s1893_s21, 7  ;;  %v1516_v3 = vld [vmem:[%s1884_s3 + $0x20] sm:$0xff]   ;;  %v1517_v21 = vld [vmem:[%s1884_s3 + $0x18] sm:$0xff]   ;;  %v1518_v35 = vld [vmem:[%s1884_s3 + $0x10] sm:$0xff]   ;;  %s1763_s8 = scalar_lea.vmem %s1886_s5, %s1893_s21 }
   0xe   : > { %1425 = vmatpush3.bf16.msra.mxu0 %v1513_v0  ;;  %1480 = vmatpush3.bf16.msra.mxu1 %v1513_v0  ;;  %s1616_s10 = scalar_lea.vmem %s1881_s0, %s1192_s7  ;;  %v1625_v5 = vld [vmem:[%s1882_s1] ss:$0 sm:$0xff]  ;;  %v1519_v50 = vld [vmem:[%s1884_s3 + $0x8] sm:$0xff]   ;;  %s1769_s11 = scalar_lea.vmem %s1887_s6, %s1893_s21 }
   0xf   : > { %1426 = vmatprep.subr.bf16.mxu0 %v1514_v1  ;;  %1473 = vmatprep.subr.bf16.mxu1 %v1514_v1  ;;  %v1227_v4 = vld [vmem:[%s1616_s10] sm:$0xff]   ;;  %v1370_v8 = vld [vmem:[%s1616_s10 + $0x8] sm:$0xff]   ;;  %v1371_v9 = vld [vmem:[%s1616_s10 + $0x10] sm:$0xff]   ;;  %s1780_s14 = scalar_lea.vmem %s1885_s4, %s1192_s7 }
  0x10   : > { %v1228_v6 = vunpack.c.l.bf16 %v1227_v4  ;;  %v1229_v7 = vunpack.c.h.bf16 %v1227_v4  ;;  %v1372_v10 = vld [vmem:[%s1616_s10 + $0x18] sm:$0xff]   ;;  %v1633_v11 = vld [vmem:[%s1883_s2] ss:$0 sm:$0xff]  ;;  %v1232_v12 = vunpack.c.l.bf16 %v1370_v8  ;;  %v1233_v13 = vunpack.c.h.bf16 %v1370_v8  ;;  %v1374_v34 = vld [vmem:[%s1616_s10 + $0x28] sm:$0xff]  }
  0x11   : > { %v1236_v14 = vunpack.c.l.bf16 %v1371_v9  ;;  %v1237_v15 = vunpack.c.h.bf16 %v1371_v9  ;;  %v1240_v18 = vunpack.c.l.bf16 %v1372_v10  ;;  %v1241_v19 = vunpack.c.h.bf16 %v1372_v10  ;;  %v1373_v20 = vld [vmem:[%s1616_s10 + $0x20] sm:$0xff]   ;;  %v1375_v39 = vld [vmem:[%s1616_s10 + $0x30] sm:$0xff]   ;;  %v1670_v59 = vld [vmem:[%s1616_s10 + $0x38] sm:$0xff]  }
  0x12   : > { %1427 = vmatpush3.bf16.msra.mxu0 %v1514_v1  ;;  %1481 = vmatpush3.bf16.msra.mxu1 %v1514_v1  ;;  %v386_v16 = vmul.f32 %v1228_v6, %v1625_v5  ;;  %v387_v17 = vmul.f32 %v1229_v7, %v1625_v5  ;;  %v388_v22 = vmul.f32 %v1232_v12, %v1625_v5  ;;  %v1244_v30 = vunpack.c.l.bf16 %v1373_v20  ;;  %v1377_v60 = vld [vmem:[%s1616_s10 + $0x40] sm:$0xff]   ;;  %v1378_v6 = vld [vmem:[%s1616_s10 + $0x48] sm:$0xff]  }
  0x13   : > { %1428 = vmatprep.subr.bf16.mxu0 %v1515_v2  ;;  %1474 = vmatprep.subr.bf16.mxu1 %v1515_v2  ;;  %v389_v23 = vmul.f32 %v1233_v13, %v1625_v5  ;;  %v390_v24 = vmul.f32 %v1236_v14, %v1625_v5  ;;  %v391_v27 = vmul.f32 %v1237_v15, %v1625_v5  ;;  %v1245_v43 = vunpack.c.h.bf16 %v1373_v20  ;;  %v1520_v0 = vld [vmem:[%s1884_s3] sm:$0xff]  }
  0x14   : > { %v425_v25 = vadd.f32 %v1633_v11, %v386_v16  ;;  %v426_v26 = vadd.f32 %v1633_v11, %v387_v17  ;;  %v392_v28 = vmul.f32 %v1240_v18, %v1625_v5  ;;  %v393_v29 = vmul.f32 %v1241_v19, %v1625_v5  ;;  %v1379_v16 = vld [vmem:[%s1616_s10 + $0x50] sm:$0xff]  }
  0x15   : > { %v427_v33 = vadd.f32 %v1633_v11, %v388_v22  ;;  %v428_v36 = vadd.f32 %v1633_v11, %v389_v23  ;;  %v429_v37 = vadd.f32 %v1633_v11, %v390_v24  ;;  %v430_v38 = vadd.f32 %v1633_v11, %v391_v27 }
  0x16   : > { %1429 = vmatpush3.bf16.msra.mxu0 %v1515_v2  ;;  %1482 = vmatpush3.bf16.msra.mxu1 %v1515_v2  ;;  %v457_v31 = vmax.f32 %v425_v25, 0.0  ;;  %v458_v32 = vmax.f32 %v426_v26, 0.0  ;;  %v431_v41 = vadd.f32 %v1633_v11, %v392_v28  ;;  %v432_v42 = vadd.f32 %v1633_v11, %v393_v29 }
  0x17   : > { %1430 = vmatprep.subr.bf16.mxu0 %v1516_v3  ;;  %1475 = vmatprep.subr.bf16.mxu1 %v1516_v3  ;;  %v394_v44 = vmul.f32 %v1244_v30, %v1625_v5  ;;  %v1248_v45 = vunpack.c.l.bf16 %v1374_v34  ;;  %v459_v46 = vmax.f32 %v427_v33, 0.0  ;;  %v395_v47 = vmul.f32 %v1245_v43, %v1625_v5  ;;  %v1381_v30 = vld [vmem:[%s1616_s10 + $0x60] sm:$0xff]  }
  0x18   : > { %v489_v40 = vpack.c.bf16 %v458_v32, %v457_v31  ;;  %v1249_v48 = vunpack.c.h.bf16 %v1374_v34  ;;  %v1252_v49 = vunpack.c.l.bf16 %v1375_v39  ;;  %v460_v51 = vmax.f32 %v428_v36, 0.0 }
  0x19   : > { %v461_v52 = vmax.f32 %v429_v37, 0.0  ;;  %v462_v53 = vmax.f32 %v430_v38, 0.0  ;;  %v396_v54 = vmul.f32 %v1248_v45, %v1625_v5  ;;  %v463_v55 = vmax.f32 %v431_v41, 0.0 }
  0x1a   : > { %1431 = vmatpush3.bf16.msra.mxu0 %v1516_v3  ;;  %1483 = vmatpush3.bf16.msra.mxu1 %v1516_v3  ;;  %v464_v56 = vmax.f32 %v432_v42, 0.0  ;;  %v1667_v57 = vadd.f32 %v1633_v11, %v394_v44  ;;  %v1253_v58 = vunpack.c.h.bf16 %v1375_v39  ;;  %v1674_v61 = vadd.f32 %v1633_v11, %v395_v47  ;;  %v1382_v47 = vld [vmem:[%s1616_s10 + $0x68] sm:$0xff]  }
  0x1b   : > { %1432 = vmatprep.subr.bf16.mxu0 %v1517_v21  ;;  %1476 = vmatprep.subr.bf16.mxu1 %v1517_v21  ;;  %v397_v62 = vmul.f32 %v1249_v48, %v1625_v5  ;;  %v398_v63 = vmul.f32 %v1252_v49, %v1625_v5  ;;  %v490_v1 = vpack.c.bf16 %v460_v51, %v459_v46  ;;  %v1256_v3 = vunpack.c.l.bf16 %v1670_v59 }
  0x1c   : > { %1440 = vmatprep.mubr.bf16.mxu0 %v489_v40  ;;  %v1682_v2 = vadd.f32 %v1633_v11, %v396_v54  ;;  %v1260_v4 = vunpack.c.l.bf16 %v1377_v60  ;;  %v491_v7 = vpack.c.bf16 %v462_v53, %v461_v52  ;;  %v1686_v8 = vpack.c.bf16 %v464_v56, %v463_v55  ;;  %v1383_v52 = vld [vmem:[%s1616_s10 + $0x70] sm:$0xff]  }
  0x1d   : > { %v465_v9 = vmax.f32 %v1667_v57, 0.0  ;;  %v399_v10 = vmul.f32 %v1253_v58, %v1625_v5  ;;  %v466_v12 = vmax.f32 %v1674_v61, 0.0  ;;  %v1257_v13 = vunpack.c.h.bf16 %v1670_v59 }
  0x1e   : > { %1433 = vmatpush3.bf16.msra.mxu0 %v1517_v21  ;;  %1484 = vmatpush3.bf16.msra.mxu1 %v1517_v21  ;;  %v1261_v14 = vunpack.c.h.bf16 %v1377_v60  ;;  %v402_v15 = vmul.f32 %v1260_v4, %v1625_v5  ;;  %v1695_v17 = vadd.f32 %v1633_v11, %v397_v62  ;;  %v1698_v18 = vadd.f32 %v1633_v11, %v398_v63  ;;  %v1380_v21 = vld [vmem:[%s1616_s10 + $0x58] sm:$0xff]  }
  0x1f   : > { %1434 = vmatprep.subr.bf16.mxu0 %v1518_v35  ;;  %1477 = vmatprep.subr.bf16.mxu1 %v1518_v35  ;;  %v1264_v19 = vunpack.c.l.bf16 %v1378_v6  ;;  %v1265_v20 = vunpack.c.h.bf16 %v1378_v6  ;;  %v467_v22 = vmax.f32 %v1682_v2, 0.0  ;;  %v1703_v23 = vmul.f32 %v1256_v3, %v1625_v5  ;;  %v1384_v6 = vld [vmem:[%s1616_s10 + $0x78] sm:$0xff]  }
  0x20   : > { %v403_v24 = vmul.f32 %v1261_v14, %v1625_v5  ;;  %v441_v25 = vadd.f32 %v1633_v11, %v402_v15  ;;  %v1268_v28 = vunpack.c.l.bf16 %v1379_v16  ;;  %v1269_v29 = vunpack.c.h.bf16 %v1379_v16 }
  0x21   : > { %v404_v26 = vmul.f32 %v1264_v19, %v1625_v5  ;;  %v405_v27 = vmul.f32 %v1265_v20, %v1625_v5  ;;  %v1711_v31 = vadd.f32 %v1633_v11, %v399_v10  ;;  %v1272_v34 = vunpack.c.l.bf16 %v1380_v21 }
  0x22   : > { %1435 = vmatpush3.bf16.msra.mxu0 %v1518_v35  ;;  %1485 = vmatpush3.bf16.msra.mxu1 %v1518_v35  ;;  %v442_v32 = vadd.f32 %v1633_v11, %v403_v24  ;;  %v473_v33 = vmax.f32 %v441_v25, 0.0  ;;  %v406_v37 = vmul.f32 %v1268_v28, %v1625_v5  ;;  %v407_v38 = vmul.f32 %v1269_v29, %v1625_v5 }
  0x23   : > { %1436 = vmatprep.subr.bf16.mxu0 %v1519_v50  ;;  %1478 = vmatprep.subr.bf16.mxu1 %v1519_v50  ;;  %v443_v35 = vadd.f32 %v1633_v11, %v404_v26  ;;  %v444_v36 = vadd.f32 %v1633_v11, %v405_v27  ;;  %v1273_v40 = vunpack.c.h.bf16 %v1380_v21  ;;  %v408_v41 = vmul.f32 %v1272_v34, %v1625_v5 }
  0x24   : > { %v474_v39 = vmax.f32 %v442_v32, 0.0  ;;  %v1276_v42 = vunpack.c.l.bf16 %v1381_v30  ;;  %v445_v45 = vadd.f32 %v1633_v11, %v406_v37  ;;  %v446_v46 = vadd.f32 %v1633_v11, %v407_v38 }
  0x25   : > { %v475_v43 = vmax.f32 %v443_v35, 0.0  ;;  %v476_v44 = vmax.f32 %v444_v36, 0.0  ;;  %v409_v49 = vmul.f32 %v1273_v40, %v1625_v5  ;;  %v1277_v51 = vunpack.c.h.bf16 %v1381_v30 }
  0x26   : > { %1437 = vmatpush3.bf16.msra.mxu0 %v1519_v50  ;;  %1486 = vmatpush3.bf16.msra.mxu1 %v1519_v50  ;;  %v497_v48 = vpack.c.bf16 %v474_v39, %v473_v33  ;;  %v447_v50 = vadd.f32 %v1633_v11, %v408_v41  ;;  %v477_v54 = vmax.f32 %v445_v45, 0.0  ;;  %v478_v55 = vmax.f32 %v446_v46, 0.0 }
  0x27   : > { %1438 = vmatprep.subr.bf16.mxu0 %v1520_v0  ;;  %1479 = vmatprep.subr.bf16.mxu1 %v1520_v0  ;;  %v498_v53 = vpack.c.bf16 %v476_v44, %v475_v43  ;;  %v410_v56 = vmul.f32 %v1276_v42, %v1625_v5  ;;  %v448_v58 = vadd.f32 %v1633_v11, %v409_v49  ;;  %v1280_v63 = vunpack.c.l.bf16 %v1382_v47 }
  0x28   : > { %1456 = vmatprep.mubr.bf16.mxu1 %v497_v48  ;;  %v479_v60 = vmax.f32 %v447_v50, 0.0  ;;  %v411_v62 = vmul.f32 %v1277_v51, %v1625_v5  ;;  %v1281_v3 = vunpack.c.h.bf16 %v1382_v47  ;;  %v1284_v4 = vunpack.c.l.bf16 %v1383_v52 }
  0x29   : > { %v412_v14 = vmul.f32 %v1280_v63, %v1625_v5  ;;  %v1285_v15 = vunpack.c.h.bf16 %v1383_v52  ;;  %v493_v16 = vpack.c.bf16 %v466_v12, %v465_v9  ;;  %v401_v24 = vmul.f32 %v1257_v13, %v1625_v5 }
  0x2a   : > { %1439 = vmatpush3.bf16.msra.mxu0 %v1520_v0  ;;  %1487 = vmatpush3.bf16.msra.mxu1 %v1520_v0  ;;  %v499_v0 = vpack.c.bf16 %v478_v55, %v477_v54  ;;  %v450_v10 = vadd.f32 %v1633_v11, %v411_v62  ;;  %v413_v20 = vmul.f32 %v1281_v3, %v1625_v5  ;;  %v1288_v27 = vunpack.c.l.bf16 %v1384_v6 }
  0x2b   : > { %v414_v21 = vmul.f32 %v1284_v4, %v1625_v5  ;;  %v415_v26 = vmul.f32 %v1285_v15, %v1625_v5  ;;  %v451_v57 = vadd.f32 %v1633_v11, %v412_v14  ;;  %v1289_v9 = vunpack.c.h.bf16 %v1384_v6 }
  0x2c   : > { %v482_v25 = vmax.f32 %v450_v10, 0.0  ;;  %v452_v61 = vadd.f32 %v1633_v11, %v413_v20  ;;  %v468_v12 = vmax.f32 %v1695_v17, 0.0  ;;  %v469_v13 = vmax.f32 %v1698_v18, 0.0 }
  0x2d   : > { %1441 = vmatmul.mubr.bf16.vlgmr.msra.gmra.mxu0 %v490_v1  ;;  %1457 = vmatmul.mubr.bf16.vlgmr.msra.gmra.mxu1 %v498_v53  ;;  %v449_v1 = vadd.f32 %v1633_v11, %v410_v56  ;;  %v453_v30 = vadd.f32 %v1633_v11, %v414_v21  ;;  %v454_v59 = vadd.f32 %v1633_v11, %v415_v26  ;;  %v470_v32 = vmax.f32 %v1711_v31, 0.0 }
  0x2e   : > { %1444 = vmatprep.mubr.bf16.mxu0 %v491_v7  ;;  %v480_v7 = vmax.f32 %v448_v58, 0.0  ;;  %1460 = vmatprep.mubr.bf16.mxu1 %v499_v0  ;;  %v439_v33 = vadd.f32 %v1633_v11, %v1703_v23  ;;  %v483_v34 = vmax.f32 %v451_v57, 0.0  ;;  %v484_v35 = vmax.f32 %v452_v61, 0.0 }
  0x2f   : > { %v481_v19 = vmax.f32 %v449_v1, 0.0  ;;  %v417_v17 = vmul.f32 %v1289_v9, %v1625_v5  ;;  %v494_v36 = vpack.c.bf16 %v468_v12, %v467_v22  ;;  %v440_v37 = vadd.f32 %v1633_v11, %v401_v24 }
  0x30   : > { %v500_v28 = vpack.c.bf16 %v480_v7, %v479_v60  ;;  %v485_v38 = vmax.f32 %v453_v30, 0.0  ;;  %v486_v18 = vmax.f32 %v454_v59, 0.0  ;;  %v495_v39 = vpack.c.bf16 %v470_v32, %v469_v13 }
  0x31   : > { %v501_v29 = vpack.c.bf16 %v482_v25, %v481_v19  ;;  %v502_v31 = vpack.c.bf16 %v484_v35, %v483_v34  ;;  %v456_v40 = vadd.f32 %v1633_v11, %v417_v17  ;;  %v471_v41 = vmax.f32 %v439_v33, 0.0 }
  0x32   : > { %v472_v42 = vmax.f32 %v440_v37, 0.0 }
  0x33   : > { %v488_v22 = vmax.f32 %v456_v40, 0.0 }
  0x34   : > { %v496_v43 = vpack.c.bf16 %v472_v42, %v471_v41 }
  0x35   : > { %1445 = vmatmul.mubr.bf16.gmra.mxu0 %v1686_v8  ;;  %1461 = vmatmul.mubr.bf16.gmra.mxu1 %v500_v28  ;;  %v416_v8 = vmul.f32 %v1288_v27, %v1625_v5  ;;  %v503_v5 = vpack.c.bf16 %v486_v18, %v485_v38 }
  0x36   : > { %1448 = vmatprep.mubr.bf16.mxu0 %v493_v16  ;;  %1464 = vmatprep.mubr.bf16.mxu1 %v501_v29 }
  0x37   : > { %v455_v23 = vadd.f32 %v1633_v11, %v416_v8  ;;  %v1545_v11 = vmov 0.0  }
  0x38   : > { %313 = vst [vmem:[%s1763_s8] sm:$0x1] %v1545_v11  ;;  %314 = vst [vmem:[%s1769_s11] sm:$0x1] %v1545_v11 }
  0x39   : > { %v487_v2 = vmax.f32 %v455_v23, 0.0 }
  0x3b   : > { %v504_v44 = vpack.c.bf16 %v488_v22, %v487_v2 }
  0x3d   : > { %1449 = vmatmul.mubr.bf16.gmra.mxu0 %v494_v36  ;;  %1465 = vmatmul.mubr.bf16.gmra.mxu1 %v502_v31 }
  0x3e   : > { %1452 = vmatprep.mubr.bf16.mxu0 %v495_v39  ;;  %1468 = vmatprep.mubr.bf16.mxu1 %v503_v5 }
  0x45   : > { %1453 = vmatmul.mubr.bf16.gmra.mxu0 %v496_v43  ;;  %1469 = vmatmul.mubr.bf16.gmra.mxu1 %v504_v44 }
  0xed   : > { %v1442_v45 = vpop.f32.mrf.mxu0  ;;  %v1773_v47 = vpop.f32.mrf.mxu1 }
  0xee   : > { %v933_v62 = vmul.f32 %v1442_v45, %v1442_v45 }
  0xef   : > { %v603_v46 = vpop.f32.mrf.mxu0  ;;  %v1782_v50 = vpop.f32.mrf.mxu1 }
  0xf0   : > { %v931_v52 = vmul.f32 %v603_v46, %v603_v46 }
  0xf1   : > { %v1443_v48 = vpop.f32.mrf.mxu0  ;;  %v1785_v56 = vpop.f32.mrf.mxu1 }
  0xf2   : > { %v1298_v49 = vpack.c.bf16 %v1443_v48, %v1442_v45  ;;  %v1338_v60 = vpack.c.bf16 %v1785_v56, %v1773_v47  ;;  %v934_v6 = vmul.f32 %v1443_v48, %v1443_v48 }
  0xf3   : > { %v606_v51 = vpop.f32.mrf.mxu0  ;;  %v1790_v1 = vpop.f32.mrf.mxu1 }
  0xf4   : > { %1385 = vst [vmem:[%s1780_s14 + $0x8] sm:$0xff] %v1298_v49   ;;  %v1293_v53 = vpack.c.bf16 %v606_v51, %v603_v46  ;;  %v891_v54 = vadd.f32 %v606_v51, %v603_v46  ;;  %v932_v55 = vmul.f32 %v606_v51, %v606_v51  ;;  %1393 = vst [vmem:[%s1780_s14 + $0x48] sm:$0xff] %v1338_v60  }
  0xf5   : > { %v1446_v58 = vpop.f32.mrf.mxu0  ;;  %v1333_v4 = vpack.c.bf16 %v1790_v1, %v1782_v50  ;;  %v1795_v14 = vpop.f32.mrf.mxu1 }
  0xf6   : > { %1294 = vst [vmem:[%s1780_s14] sm:$0xff] %v1293_v53   ;;  %v892_v63 = vadd.f32 %v1442_v45, %v891_v54  ;;  %v963_v0 = vadd.f32 %v932_v55, %v931_v52  ;;  %v937_v29 = vmul.f32 %v1446_v58, %v1446_v58 }
  0xf7   : > { %v619_v3 = vpop.f32.mrf.mxu0  ;;  %1392 = vst [vmem:[%s1780_s14 + $0x40] sm:$0xff] %v1333_v4   ;;  %v1798_v24 = vpop.f32.mrf.mxu1 }
  0xf8   : > { %v964_v7 = vadd.f32 %v963_v0, %v933_v62  ;;  %v893_v10 = vadd.f32 %v1443_v48, %v892_v63  ;;  %v935_v19 = vmul.f32 %v619_v3, %v619_v3 }
  0xf9   : > { %v1447_v15 = vpop.f32.mrf.mxu0  ;;  %v1801_v61 = vpop.f32.mrf.mxu1 }
  0xfa   : > { %v894_v16 = vadd.f32 %v893_v10, %v619_v3  ;;  %v965_v20 = vadd.f32 %v964_v7, %v934_v6  ;;  %v1308_v21 = vpack.c.bf16 %v1447_v15, %v1446_v58  ;;  %v1348_v12 = vpack.c.bf16 %v1801_v61, %v1795_v14 }
  0xfb   : > { %v622_v25 = vpop.f32.mrf.mxu0  ;;  %v1806_v13 = vpop.f32.mrf.mxu1  ;;  %v938_v34 = vmul.f32 %v1447_v15, %v1447_v15 }
  0xfc   : > { %v966_v26 = vadd.f32 %v965_v20, %v935_v19  ;;  %1387 = vst [vmem:[%s1780_s14 + $0x18] sm:$0xff] %v1308_v21   ;;  %v1303_v27 = vpack.c.bf16 %v622_v25, %v619_v3  ;;  %v895_v28 = vadd.f32 %v894_v16, %v622_v25  ;;  %v936_v57 = vmul.f32 %v622_v25, %v622_v25 }
  0xfd   : > { %v1450_v9 = vpop.f32.mrf.mxu0  ;;  %1395 = vst [vmem:[%s1780_s14 + $0x58] sm:$0xff] %v1348_v12   ;;  %v1343_v33 = vpack.c.bf16 %v1806_v13, %v1798_v24  ;;  %v1811_v17 = vpop.f32.mrf.mxu1 }
  0xfe   : > { %1386 = vst [vmem:[%s1780_s14 + $0x10] sm:$0xff] %v1303_v27   ;;  %v896_v30 = vadd.f32 %v1446_v58, %v895_v28  ;;  %v967_v59 = vadd.f32 %v966_v26, %v936_v57  ;;  %v941_v44 = vmul.f32 %v1450_v9, %v1450_v9 }
  0xff   : > { %v635_v32 = vpop.f32.mrf.mxu0  ;;  %1394 = vst [vmem:[%s1780_s14 + $0x50] sm:$0xff] %v1343_v33   ;;  %v1814_v31 = vpop.f32.mrf.mxu1  ;;  %v949_v33 = vmul.f32 %v1773_v47, %v1773_v47 }
 0x100   : > { %v968_v35 = vadd.f32 %v967_v59, %v937_v29  ;;  %v897_v8 = vadd.f32 %v1447_v15, %v896_v30  ;;  %v939_v38 = vmul.f32 %v635_v32, %v635_v32  ;;  %v948_v59 = vmul.f32 %v1790_v1, %v1790_v1 }
 0x101   : > { %v1451_v36 = vpop.f32.mrf.mxu0  ;;  %v1817_v2 = vpop.f32.mrf.mxu1 }
 0x102   : > { %v898_v37 = vadd.f32 %v897_v8, %v635_v32  ;;  %v969_v18 = vadd.f32 %v968_v35, %v938_v34  ;;  %v1318_v39 = vpack.c.bf16 %v1451_v36, %v1450_v9  ;;  %v1358_v43 = vpack.c.bf16 %v1817_v2, %v1811_v17 }
 0x103   : > { %v638_v23 = vpop.f32.mrf.mxu0  ;;  %v702_v46 = vpop.f32.mrf.mxu1  ;;  %v942_v51 = vmul.f32 %v1451_v36, %v1451_v36  ;;  %v950_v8 = vmul.f32 %v1785_v56, %v1785_v56 }
 0x104   : > { %v970_v40 = vadd.f32 %v969_v18, %v939_v38  ;;  %1389 = vst [vmem:[%s1780_s14 + $0x28] sm:$0xff] %v1318_v39   ;;  %v1313_v41 = vpack.c.bf16 %v638_v23, %v635_v32  ;;  %v899_v42 = vadd.f32 %v898_v37, %v638_v23  ;;  %v940_v5 = vmul.f32 %v638_v23, %v638_v23 }
 0x105   : > { %v1454_v22 = vpop.f32.mrf.mxu0  ;;  %1397 = vst [vmem:[%s1780_s14 + $0x68] sm:$0xff] %v1358_v43   ;;  %v1353_v49 = vpack.c.bf16 %v702_v46, %v1814_v31  ;;  %v1824_v54 = vpop.f32.mrf.mxu1  ;;  %v951_v38 = vmul.f32 %v1798_v24, %v1798_v24  ;;  %v952_v23 = vmul.f32 %v1806_v13, %v1806_v13 }
 0x106   : > { %1388 = vst [vmem:[%s1780_s14 + $0x20] sm:$0xff] %v1313_v41   ;;  %v900_v11 = vadd.f32 %v1450_v9, %v899_v42  ;;  %v971_v45 = vadd.f32 %v970_v40, %v940_v5  ;;  %v945_v19 = vmul.f32 %v1454_v22, %v1454_v22  ;;  %v947_v9 = vmul.f32 %v1782_v50, %v1782_v50 }
 0x107   : > { %v651_v48 = vpop.f32.mrf.mxu0  ;;  %1396 = vst [vmem:[%s1780_s14 + $0x60] sm:$0xff] %v1353_v49   ;;  %v715_v0 = vpop.f32.mrf.mxu1  ;;  %v958_v49 = vmul.f32 %v1817_v2, %v1817_v2 }
 0x108   : > { %v972_v52 = vadd.f32 %v971_v45, %v941_v44  ;;  %v901_v53 = vadd.f32 %v1451_v36, %v900_v11  ;;  %v943_v60 = vmul.f32 %v651_v48, %v651_v48  ;;  %v956_v11 = vmul.f32 %v702_v46, %v702_v46 }
 0x109   : > { %v1455_v55 = vpop.f32.mrf.mxu0  ;;  %v1471_v15 = vpop.f32.mrf.mxu1  ;;  %v957_v45 = vmul.f32 %v1811_v17, %v1811_v17 }
 0x10a   : > { %v902_v58 = vadd.f32 %v901_v53, %v651_v48  ;;  %v973_v62 = vadd.f32 %v972_v52, %v942_v51  ;;  %v1328_v63 = vpack.c.bf16 %v1455_v55, %v1454_v22  ;;  %v1368_v16 = vpack.c.bf16 %v1471_v15, %v1824_v54 }
 0x10b   : > { %v654_v3 = vpop.f32.mrf.mxu0  ;;  %v718_v25 = vpop.f32.mrf.mxu1  ;;  %v946_v27 = vmul.f32 %v1455_v55, %v1455_v55  ;;  %v959_v53 = vmul.f32 %v715_v0, %v715_v0 }
 0x10c   : > { %v974_v4 = vadd.f32 %v973_v62, %v943_v60  ;;  %1391 = vst [vmem:[%s1780_s14 + $0x38] sm:$0xff] %v1328_v63   ;;  %v1323_v6 = vpack.c.bf16 %v654_v3, %v651_v48  ;;  %v903_v7 = vadd.f32 %v902_v58, %v654_v3  ;;  %v944_v10 = vmul.f32 %v654_v3, %v654_v3 }
 0x10d   : > { %1399 = vst [vmem:[%s1780_s14 + $0x78] sm:$0xff] %v1368_v16   ;;  %v1363_v26 = vpack.c.bf16 %v718_v25, %v715_v0  ;;  %v960_v60 = vmul.f32 %v718_v25, %v718_v25  ;;  %v962_v63 = vmul.f32 %v1471_v15, %v1471_v15 }
 0x10e   : > { %1390 = vst [vmem:[%s1780_s14 + $0x30] sm:$0xff] %v1323_v6   ;;  %v904_v20 = vadd.f32 %v1454_v22, %v903_v7  ;;  %v975_v21 = vadd.f32 %v974_v4, %v944_v10  ;;  %v955_v22 = vmul.f32 %v1814_v31, %v1814_v31 }
 0x10f   : > { %1398 = vst [vmem:[%s1780_s14 + $0x70] sm:$0xff] %v1363_v26   ;;  %v890_v26 = vld [vmem:[%s1763_s8] sm:$0x1] }
 0x110   : > { %v905_v28 = vadd.f32 %v1455_v55, %v904_v20  ;;  %v976_v57 = vadd.f32 %v975_v21, %v945_v19 }
 0x112   : > { %v977_v12 = vadd.f32 %v976_v57, %v946_v27  ;;  %v906_v29 = vadd.f32 %v905_v28, %v1782_v50  ;;  %v930_v28 = vld [vmem:[%s1769_s11] sm:$0x1] }
 0x114   : > { %v907_v30 = vadd.f32 %v906_v29, %v1790_v1  ;;  %v978_v32 = vadd.f32 %v977_v12, %v947_v9 }
 0x116   : > { %v908_v34 = vadd.f32 %v1773_v47, %v907_v30  ;;  %v979_v35 = vadd.f32 %v978_v32, %v948_v59  ;;  %v953_v47 = vmul.f32 %v1795_v14, %v1795_v14 }
 0x118   : > { %v980_v36 = vadd.f32 %v979_v35, %v949_v33  ;;  %v909_v37 = vadd.f32 %v1785_v56, %v908_v34  ;;  %v954_v56 = vmul.f32 %v1801_v61, %v1801_v61 }
 0x11a   : > { %v910_v50 = vadd.f32 %v909_v37, %v1798_v24  ;;  %v981_v18 = vadd.f32 %v980_v36, %v950_v8 }
 0x11c   : > { %v982_v1 = vadd.f32 %v981_v18, %v951_v38  ;;  %v911_v39 = vadd.f32 %v910_v50, %v1806_v13 }
 0x11e   : > { %v912_v40 = vadd.f32 %v1795_v14, %v911_v39  ;;  %v983_v41 = vadd.f32 %v982_v1, %v952_v23 }
 0x120   : > { %v984_v42 = vadd.f32 %v983_v41, %v953_v47  ;;  %v913_v5 = vadd.f32 %v1801_v61, %v912_v40 }
 0x122   : > { %v914_v24 = vadd.f32 %v913_v5, %v1814_v31  ;;  %v985_v43 = vadd.f32 %v984_v42, %v954_v56 }
 0x124   : > { %v986_v44 = vadd.f32 %v985_v43, %v955_v22  ;;  %v915_v13 = vadd.f32 %v914_v24, %v702_v46  ;;  %v961_v46 = vmul.f32 %v1824_v54, %v1824_v54 }
 0x126   : > { %v916_v14 = vadd.f32 %v1811_v17, %v915_v13  ;;  %v987_v48 = vadd.f32 %v986_v44, %v956_v11 }
 0x128   : > { %v988_v51 = vadd.f32 %v987_v48, %v957_v45  ;;  %v917_v61 = vadd.f32 %v1817_v2, %v916_v14 }
 0x12a   : > { %v918_v52 = vadd.f32 %v917_v61, %v715_v0  ;;  %v989_v55 = vadd.f32 %v988_v51, %v958_v49 }
 0x12c   : > { %v990_v31 = vadd.f32 %v989_v55, %v959_v53  ;;  %v919_v58 = vadd.f32 %v918_v52, %v718_v25 }
 0x12e   : > { %v920_v62 = vadd.f32 %v1824_v54, %v919_v58  ;;  %v991_v17 = vadd.f32 %v990_v31, %v960_v60 }
 0x130   : > { %v921_v3 = vadd.f32 %v1471_v15, %v920_v62  ;;  %v992_v4 = vadd.f32 %v991_v17, %v961_v46 }
 0x132   : > { %v922_v6 = vrot.slane %v921_v3, 4  ;;  %v993_v2 = vadd.f32 %v992_v4, %v962_v63 }
 0x134   : > { %v923_v7 = vadd.f32 %v922_v6, %v921_v3  ;;  %v994_v0 = vrot.slane %v993_v2, 4 }
 0x136   : > { %v924_v10 = vrot.slane %v923_v7, 2  ;;  %v995_v16 = vadd.f32 %v994_v0, %v993_v2 }
 0x138   : > { %v925_v19 = vadd.f32 %v924_v10, %v923_v7  ;;  %v996_v20 = vrot.slane %v995_v16, 2 }
 0x13a   : > { %v926_v21 = vrot.slane %v925_v19, 1  ;;  %v997_v25 = vadd.f32 %v996_v20, %v995_v16 }
 0x13c   : > { %v927_v27 = vadd.f32 %v926_v21, %v925_v19  ;;  %v998_v54 = vrot.slane %v997_v25, 1 }
 0x13e   : > { %v928_v57 = vadd.f32 %v927_v27, %v890_v26  ;;  %v999_v9 = vadd.f32 %v998_v54, %v997_v25 }
 0x140   : > { %929 = vst [vmem:[%s1763_s8] sm:$0x1] %v928_v57  ;;  %v1000_v15 = vadd.f32 %v999_v9, %v930_v28 }
 0x142   : > { %1001 = vst [vmem:[%s1769_s11] sm:$0x1] %v1000_v15 }
 0x143 PF: > { %s17_s23 = sadd.s32 1, %s1543_s23   ;;  %s1888_s21 = smov %s1539_s22 }
 0x144   : > { %p14_p5 = scmp.ge.s32.totalorder %s17_s23, 4   ;;  %s1889_s22 = smov %s1891_s24 }
 0x146   :  { %16 = sbr.rel (!%p14_p5) target bundleno = 2 (0x2), region = 94 }

// kernel: _lambda_.8
= control target key start
LH: loop header
LB: loop body
LE: loop exit
PB: predicated region body
PF: predicated region fallthrough
CT: control target
= control target key end

     0   :  { %s1330_s15 = smov 0   ;;  %s1332_s16 = smov 0   ;;  %s1504_s0 = inlined_call_operand.vmem [shape: bf16[2,256,128], index: 0, kind: input, shape index: {}]   ;;  %s1505_s1 = inlined_call_operand.vmem [shape: f32[1,1,128], index: 1, kind: input, shape index: {}]   ;;  %s1506_s2 = inlined_call_operand.vmem [shape: f32[1,1,128], index: 2, kind: input, shape index: {}]   ;;  %s1507_s3 = inlined_call_operand.vmem [shape: bf16[128,128], index: 3, kind: input, shape index: {}]   ;;  %s1508_s4 = inlined_call_operand.vmem [shape: bf16[2,256,128], index: 4, kind: output, shape index: {}]  }
   0x1   :  { %s1334_s17 = smov 0  }
   0x2 LB: > { %s26_s18 = sadd.s32 1, %s1299_s16  ;;  %p904_p0 = scmp.ge.s32.totalorder %s1303_s17, 1  ;;  %s1303_s17 = sphi %s1334_s17, %s14_s17   ;;  %s1299_s16 = sphi %s1332_s16, %s1510_s16   ;;  %s1295_s15 = sphi %s1330_s15, %s1509_s15  }
   0x3   : > { %p28_p1 = scmp.ge.s32.totalorder %s26_s18, 2  ;;  %p183_p2 = scmp.lt.s32.totalorder %s1303_s17, 3 }
   0x5   : > { %s1512_s18 = smov (%p28_p1, %s26_s18), 0  ;;  %p184_p3 = pnand %p904_p0, %p183_p2 }
   0x6   : > { %p218_p4 = scmp.lt.s32.totalorder (!%p184_p3), %s1295_s15, 1 }
   0x7   : > { %187 = sbr.rel (%p184_p3) target bundleno = 271 (0x10f), region = 36 }
   0xc   : > { %v1273_v0 = vld [vmem:[%s1507_s3 + $0x38] sm:$0xff]   ;;  %v1274_v1 = vld [vmem:[%s1507_s3 + $0x30] sm:$0xff]   ;;  %s1514_s15 = smov (!%p218_p4, %s1295_s15), 1  ;;  %v1275_v2 = vld [vmem:[%s1507_s3 + $0x28] sm:$0xff]  }
   0xd   : > { %1185 = vmatprep.subr.bf16.mxu0 %v1273_v0  ;;  %1233 = vmatprep.subr.bf16.mxu1 %v1273_v0  ;;  %s953_s25 = sshll.u32 %s1514_s15, 7  ;;  %v1276_v3 = vld [vmem:[%s1507_s3 + $0x20] sm:$0xff]   ;;  %v1277_v21 = vld [vmem:[%s1507_s3 + $0x18] sm:$0xff]   ;;  %v1278_v37 = vld [vmem:[%s1507_s3 + $0x10] sm:$0xff]  }
   0xe   : > { %1186 = vmatpush3.bf16.msra.mxu0 %v1273_v0  ;;  %1241 = vmatpush3.bf16.msra.mxu1 %v1273_v0  ;;  %s1365_s28 = scalar_lea.vmem %s1504_s0, %s953_s25  ;;  %v1374_v5 = vld [vmem:[%s1505_s1] ss:$0 sm:$0xff]  ;;  %v1279_v54 = vld [vmem:[%s1507_s3 + $0x8] sm:$0xff]   ;;  %s1477_s23 = scalar_lea.vmem %s1508_s4, %s953_s25 }
   0xf   : > { %1187 = vmatprep.subr.bf16.mxu0 %v1274_v1  ;;  %1234 = vmatprep.subr.bf16.mxu1 %v1274_v1  ;;  %v988_v4 = vld [vmem:[%s1365_s28] sm:$0xff]   ;;  %v1131_v9 = vld [vmem:[%s1365_s28 + $0x8] sm:$0xff]   ;;  %v1132_v20 = vld [vmem:[%s1365_s28 + $0x10] sm:$0xff]  }
  0x10   : > { %v989_v6 = vunpack.c.l.bf16 %v988_v4  ;;  %v990_v7 = vunpack.c.h.bf16 %v988_v4  ;;  %v1138_v8 = vld [vmem:[%s1365_s28 + $0x40] sm:$0xff]   ;;  %v1139_v10 = vld [vmem:[%s1365_s28 + $0x48] sm:$0xff]   ;;  %v993_v14 = vunpack.c.l.bf16 %v1131_v9  ;;  %v994_v15 = vunpack.c.h.bf16 %v1131_v9  ;;  %v1140_v36 = vld [vmem:[%s1365_s28 + $0x50] sm:$0xff]  }
  0x11   : > { %v1382_v11 = vld [vmem:[%s1506_s2] ss:$0 sm:$0xff]  ;;  %v1021_v12 = vunpack.c.l.bf16 %v1138_v8  ;;  %v1022_v13 = vunpack.c.h.bf16 %v1138_v8  ;;  %v1025_v18 = vunpack.c.l.bf16 %v1139_v10  ;;  %v1026_v19 = vunpack.c.h.bf16 %v1139_v10  ;;  %v1133_v41 = vld [vmem:[%s1365_s28 + $0x18] sm:$0xff]  }
  0x12   : > { %1188 = vmatpush3.bf16.msra.mxu0 %v1274_v1  ;;  %1242 = vmatpush3.bf16.msra.mxu1 %v1274_v1  ;;  %v309_v16 = vmul.f32 %v989_v6, %v1374_v5  ;;  %v310_v17 = vmul.f32 %v990_v7, %v1374_v5  ;;  %v311_v24 = vmul.f32 %v993_v14, %v1374_v5  ;;  %v997_v32 = vunpack.c.l.bf16 %v1132_v20  ;;  %v1141_v49 = vld [vmem:[%s1365_s28 + $0x58] sm:$0xff]   ;;  %v1134_v63 = vld [vmem:[%s1365_s28 + $0x20] sm:$0xff]  }
  0x13   : > { %1189 = vmatprep.subr.bf16.mxu0 %v1275_v2  ;;  %1235 = vmatprep.subr.bf16.mxu1 %v1275_v2  ;;  %v325_v22 = vmul.f32 %v1021_v12, %v1374_v5  ;;  %v326_v23 = vmul.f32 %v1022_v13, %v1374_v5  ;;  %v312_v27 = vmul.f32 %v994_v15, %v1374_v5  ;;  %v998_v44 = vunpack.c.h.bf16 %v1132_v20  ;;  %v1280_v9 = vld [vmem:[%s1507_s3] sm:$0xff]  }
  0x14   : > { %v348_v25 = vadd.f32 %v1382_v11, %v309_v16  ;;  %v349_v26 = vadd.f32 %v1382_v11, %v310_v17  ;;  %v327_v28 = vmul.f32 %v1025_v18, %v1374_v5  ;;  %v350_v31 = vadd.f32 %v1382_v11, %v311_v24  ;;  %v1142_v15 = vld [vmem:[%s1365_s28 + $0x60] sm:$0xff]  }
  0x15   : > { %v364_v29 = vadd.f32 %v1382_v11, %v325_v22  ;;  %v365_v30 = vadd.f32 %v1382_v11, %v326_v23  ;;  %v328_v35 = vmul.f32 %v1026_v19, %v1374_v5  ;;  %v351_v40 = vadd.f32 %v1382_v11, %v312_v27  ;;  %v1135_v22 = vld [vmem:[%s1365_s28 + $0x28] sm:$0xff]  }
  0x16   : > { %1190 = vmatpush3.bf16.msra.mxu0 %v1275_v2  ;;  %1243 = vmatpush3.bf16.msra.mxu1 %v1275_v2  ;;  %v380_v33 = vmax.f32 %v348_v25, 0.0  ;;  %v381_v34 = vmax.f32 %v349_v26, 0.0  ;;  %v366_v43 = vadd.f32 %v1382_v11, %v327_v28  ;;  %v382_v46 = vmax.f32 %v350_v31, 0.0  ;;  %v1143_v27 = vld [vmem:[%s1365_s28 + $0x68] sm:$0xff]  }
  0x17   : > { %1191 = vmatprep.subr.bf16.mxu0 %v1276_v3  ;;  %1236 = vmatprep.subr.bf16.mxu1 %v1276_v3  ;;  %v396_v38 = vmax.f32 %v364_v29, 0.0  ;;  %v397_v39 = vmax.f32 %v365_v30, 0.0  ;;  %v313_v47 = vmul.f32 %v997_v32, %v1374_v5  ;;  %v1029_v48 = vunpack.c.l.bf16 %v1140_v36 }
  0x18   : > { %v412_v42 = vpack.c.bf16 %v381_v34, %v380_v33  ;;  %v367_v50 = vadd.f32 %v1382_v11, %v328_v35  ;;  %v314_v51 = vmul.f32 %v998_v44, %v1374_v5  ;;  %v1030_v52 = vunpack.c.h.bf16 %v1140_v36  ;;  %v1136_v36 = vld [vmem:[%s1365_s28 + $0x30] sm:$0xff]  }
  0x19   : > { %v420_v45 = vpack.c.bf16 %v397_v39, %v396_v38  ;;  %v1001_v53 = vunpack.c.l.bf16 %v1133_v41  ;;  %v383_v55 = vmax.f32 %v351_v40, 0.0  ;;  %v352_v56 = vadd.f32 %v1382_v11, %v313_v47 }
  0x1a   : > { %1192 = vmatpush3.bf16.msra.mxu0 %v1276_v3  ;;  %1244 = vmatpush3.bf16.msra.mxu1 %v1276_v3  ;;  %v329_v57 = vmul.f32 %v1029_v48, %v1374_v5  ;;  %v1002_v58 = vunpack.c.h.bf16 %v1133_v41  ;;  %v353_v59 = vadd.f32 %v1382_v11, %v314_v51  ;;  %v330_v60 = vmul.f32 %v1030_v52, %v1374_v5  ;;  %v1144_v52 = vld [vmem:[%s1365_s28 + $0x70] sm:$0xff]  }
  0x1b   : > { %1193 = vmatprep.subr.bf16.mxu0 %v1277_v21  ;;  %1237 = vmatprep.subr.bf16.mxu1 %v1277_v21  ;;  %v315_v61 = vmul.f32 %v1001_v53, %v1374_v5  ;;  %v1033_v62 = vunpack.c.l.bf16 %v1141_v49  ;;  %v398_v0 = vmax.f32 %v366_v43, 0.0  ;;  %v1034_v3 = vunpack.c.h.bf16 %v1141_v49 }
  0x1c   : > { %1201 = vmatprep.mubr.bf16.mxu0 %v412_v42  ;;  %1217 = vmatprep.mubr.bf16.mxu1 %v420_v45  ;;  %v368_v1 = vadd.f32 %v1382_v11, %v329_v57  ;;  %v316_v2 = vmul.f32 %v1002_v58, %v1374_v5  ;;  %v399_v4 = vmax.f32 %v367_v50, 0.0  ;;  %v384_v6 = vmax.f32 %v352_v56, 0.0 }
  0x1d   : > { %v385_v7 = vmax.f32 %v353_v59, 0.0  ;;  %v369_v8 = vadd.f32 %v1382_v11, %v330_v60  ;;  %v354_v10 = vadd.f32 %v1382_v11, %v315_v61  ;;  %v331_v12 = vmul.f32 %v1033_v62, %v1374_v5  ;;  %v1137_v60 = vld [vmem:[%s1365_s28 + $0x38] sm:$0xff]  }
  0x1e   : > { %1194 = vmatpush3.bf16.msra.mxu0 %v1277_v21  ;;  %1245 = vmatpush3.bf16.msra.mxu1 %v1277_v21  ;;  %v332_v13 = vmul.f32 %v1034_v3, %v1374_v5  ;;  %v1005_v14 = vunpack.c.l.bf16 %v1134_v63  ;;  %v413_v16 = vpack.c.bf16 %v383_v55, %v382_v46  ;;  %v400_v17 = vmax.f32 %v368_v1, 0.0 }
  0x1f   : > { %1195 = vmatprep.subr.bf16.mxu0 %v1278_v37  ;;  %1238 = vmatprep.subr.bf16.mxu1 %v1278_v37  ;;  %v401_v18 = vmax.f32 %v369_v8, 0.0  ;;  %v355_v19 = vadd.f32 %v1382_v11, %v316_v2  ;;  %v1006_v20 = vunpack.c.h.bf16 %v1134_v63  ;;  %v421_v23 = vpack.c.bf16 %v399_v4, %v398_v0 }
  0x20   : > { %v317_v21 = vmul.f32 %v1005_v14, %v1374_v5  ;;  %v414_v24 = vpack.c.bf16 %v385_v7, %v384_v6  ;;  %v1037_v25 = vunpack.c.l.bf16 %v1142_v15  ;;  %v1038_v26 = vunpack.c.h.bf16 %v1142_v15  ;;  %v1145_v6 = vld [vmem:[%s1365_s28 + $0x78] sm:$0xff]  }
  0x21   : > { %v386_v28 = vmax.f32 %v354_v10, 0.0  ;;  %v370_v29 = vadd.f32 %v1382_v11, %v331_v12  ;;  %v371_v30 = vadd.f32 %v1382_v11, %v332_v13  ;;  %v318_v31 = vmul.f32 %v1006_v20, %v1374_v5 }
  0x22   : > { %1196 = vmatpush3.bf16.msra.mxu0 %v1278_v37  ;;  %1246 = vmatpush3.bf16.msra.mxu1 %v1278_v37  ;;  %v333_v32 = vmul.f32 %v1037_v25, %v1374_v5  ;;  %v334_v33 = vmul.f32 %v1038_v26, %v1374_v5  ;;  %v1009_v34 = vunpack.c.l.bf16 %v1135_v22  ;;  %v1010_v35 = vunpack.c.h.bf16 %v1135_v22 }
  0x23   : > { %1197 = vmatprep.subr.bf16.mxu0 %v1279_v54  ;;  %1239 = vmatprep.subr.bf16.mxu1 %v1279_v54  ;;  %v422_v37 = vpack.c.bf16 %v401_v18, %v400_v17  ;;  %v387_v38 = vmax.f32 %v355_v19, 0.0  ;;  %v356_v39 = vadd.f32 %v1382_v11, %v317_v21  ;;  %v1041_v40 = vunpack.c.l.bf16 %v1143_v27 }
  0x24   : > { %v357_v41 = vadd.f32 %v1382_v11, %v318_v31  ;;  %v372_v42 = vadd.f32 %v1382_v11, %v333_v32  ;;  %v373_v43 = vadd.f32 %v1382_v11, %v334_v33  ;;  %v1042_v44 = vunpack.c.h.bf16 %v1143_v27 }
  0x25   : > { %v319_v45 = vmul.f32 %v1009_v34, %v1374_v5  ;;  %v320_v46 = vmul.f32 %v1010_v35, %v1374_v5  ;;  %v1013_v47 = vunpack.c.l.bf16 %v1136_v36  ;;  %v402_v48 = vmax.f32 %v370_v29, 0.0 }
  0x26   : > { %1198 = vmatpush3.bf16.msra.mxu0 %v1279_v54  ;;  %1247 = vmatpush3.bf16.msra.mxu1 %v1279_v54  ;;  %v403_v49 = vmax.f32 %v371_v30, 0.0  ;;  %v335_v50 = vmul.f32 %v1041_v40, %v1374_v5  ;;  %v336_v51 = vmul.f32 %v1042_v44, %v1374_v5  ;;  %v415_v53 = vpack.c.bf16 %v387_v38, %v386_v28 }
  0x27   : > { %1199 = vmatprep.subr.bf16.mxu0 %v1280_v9  ;;  %1240 = vmatprep.subr.bf16.mxu1 %v1280_v9  ;;  %v388_v54 = vmax.f32 %v356_v39, 0.0  ;;  %v1014_v55 = vunpack.c.h.bf16 %v1136_v36  ;;  %v389_v56 = vmax.f32 %v357_v41, 0.0  ;;  %v404_v57 = vmax.f32 %v372_v42, 0.0 }
  0x28   : > { %v405_v58 = vmax.f32 %v373_v43, 0.0  ;;  %v321_v59 = vmul.f32 %v1013_v47, %v1374_v5  ;;  %v358_v61 = vadd.f32 %v1382_v11, %v319_v45  ;;  %v359_v62 = vadd.f32 %v1382_v11, %v320_v46 }
  0x29   : > { %v322_v63 = vmul.f32 %v1014_v55, %v1374_v5  ;;  %v1045_v0 = vunpack.c.l.bf16 %v1144_v52  ;;  %v423_v1 = vpack.c.bf16 %v403_v49, %v402_v48  ;;  %v374_v2 = vadd.f32 %v1382_v11, %v335_v50 }
  0x2a   : > { %1200 = vmatpush3.bf16.msra.mxu0 %v1280_v9  ;;  %1248 = vmatpush3.bf16.msra.mxu1 %v1280_v9  ;;  %v375_v3 = vadd.f32 %v1382_v11, %v336_v51  ;;  %v1046_v4 = vunpack.c.h.bf16 %v1144_v52  ;;  %v360_v7 = vadd.f32 %v1382_v11, %v321_v59  ;;  %v1017_v9 = vunpack.c.l.bf16 %v1137_v60 }
  0x2b   : > { %v337_v8 = vmul.f32 %v1045_v0, %v1374_v5  ;;  %v1018_v10 = vunpack.c.h.bf16 %v1137_v60  ;;  %v416_v12 = vpack.c.bf16 %v389_v56, %v388_v54  ;;  %v424_v13 = vpack.c.bf16 %v405_v58, %v404_v57 }
  0x2c   : > { %v361_v14 = vadd.f32 %v1382_v11, %v322_v63  ;;  %v338_v15 = vmul.f32 %v1046_v4, %v1374_v5  ;;  %v391_v17 = vmax.f32 %v359_v62, 0.0  ;;  %v1049_v19 = vunpack.c.l.bf16 %v1145_v6 }
  0x2d   : > { %1202 = vmatmul.mubr.bf16.vlgmr.msra.gmra.mxu0 %v413_v16  ;;  %1218 = vmatmul.mubr.bf16.vlgmr.msra.gmra.mxu1 %v421_v23  ;;  %v390_v16 = vmax.f32 %v358_v61, 0.0  ;;  %v376_v18 = vadd.f32 %v1382_v11, %v337_v8  ;;  %v406_v20 = vmax.f32 %v374_v2, 0.0  ;;  %v407_v21 = vmax.f32 %v375_v3, 0.0 }
  0x2e   : > { %1205 = vmatprep.mubr.bf16.mxu0 %v414_v24  ;;  %1221 = vmatprep.mubr.bf16.mxu1 %v422_v37  ;;  %v377_v22 = vadd.f32 %v1382_v11, %v338_v15  ;;  %v1050_v23 = vunpack.c.h.bf16 %v1145_v6  ;;  %v392_v24 = vmax.f32 %v360_v7, 0.0  ;;  %v323_v25 = vmul.f32 %v1017_v9, %v1374_v5 }
  0x2f   : > { %v324_v26 = vmul.f32 %v1018_v10, %v1374_v5  ;;  %v339_v27 = vmul.f32 %v1049_v19, %v1374_v5  ;;  %v393_v28 = vmax.f32 %v361_v14, 0.0  ;;  %v408_v29 = vmax.f32 %v376_v18, 0.0 }
  0x30   : > { %v409_v30 = vmax.f32 %v377_v22, 0.0  ;;  %v340_v31 = vmul.f32 %v1050_v23, %v1374_v5  ;;  %v417_v32 = vpack.c.bf16 %v391_v17, %v390_v16  ;;  %v425_v33 = vpack.c.bf16 %v407_v21, %v406_v20 }
  0x31   : > { %v362_v34 = vadd.f32 %v1382_v11, %v323_v25  ;;  %v363_v35 = vadd.f32 %v1382_v11, %v324_v26  ;;  %v378_v36 = vadd.f32 %v1382_v11, %v339_v27  ;;  %v418_v38 = vpack.c.bf16 %v393_v28, %v392_v24 }
  0x32   : > { %v379_v37 = vadd.f32 %v1382_v11, %v340_v31  ;;  %v426_v39 = vpack.c.bf16 %v409_v30, %v408_v29 }
  0x33   : > { %v394_v40 = vmax.f32 %v362_v34, 0.0  ;;  %v395_v41 = vmax.f32 %v363_v35, 0.0  ;;  %v410_v42 = vmax.f32 %v378_v36, 0.0 }
  0x34   : > { %v411_v43 = vmax.f32 %v379_v37, 0.0 }
  0x35   : > { %1206 = vmatmul.mubr.bf16.gmra.mxu0 %v415_v53  ;;  %1222 = vmatmul.mubr.bf16.gmra.mxu1 %v423_v1  ;;  %v419_v5 = vpack.c.bf16 %v395_v41, %v394_v40 }
  0x36   : > { %1209 = vmatprep.mubr.bf16.mxu0 %v416_v12  ;;  %1225 = vmatprep.mubr.bf16.mxu1 %v424_v13  ;;  %v427_v44 = vpack.c.bf16 %v411_v43, %v410_v42 }
  0x3d   : > { %1210 = vmatmul.mubr.bf16.gmra.mxu0 %v417_v32  ;;  %1226 = vmatmul.mubr.bf16.gmra.mxu1 %v425_v33 }
  0x3e   : > { %1213 = vmatprep.mubr.bf16.mxu0 %v418_v38  ;;  %1229 = vmatprep.mubr.bf16.mxu1 %v426_v39 }
  0x45   : > { %1214 = vmatmul.mubr.bf16.gmra.mxu0 %v419_v5  ;;  %1230 = vmatmul.mubr.bf16.gmra.mxu1 %v427_v44 }
  0xed   : > { %v1203_v45 = vpop.f32.mrf.mxu0  ;;  %v1219_v46 = vpop.f32.mrf.mxu1 }
  0xef   : > { %v526_v47 = vpop.f32.mrf.mxu0  ;;  %v590_v48 = vpop.f32.mrf.mxu1 }
  0xf1   : > { %v1204_v11 = vpop.f32.mrf.mxu0  ;;  %v1220_v49 = vpop.f32.mrf.mxu1 }
  0xf2   : > { %v1059_v50 = vpack.c.bf16 %v1204_v11, %v1203_v45  ;;  %v1099_v51 = vpack.c.bf16 %v1220_v49, %v1219_v46 }
  0xf3   : > { %v529_v52 = vpop.f32.mrf.mxu0  ;;  %v593_v53 = vpop.f32.mrf.mxu1 }
  0xf4   : > { %1146 = vst [vmem:[%s1477_s23 + $0x8] sm:$0xff] %v1059_v50   ;;  %1154 = vst [vmem:[%s1477_s23 + $0x48] sm:$0xff] %v1099_v51   ;;  %v1054_v54 = vpack.c.bf16 %v529_v52, %v526_v47  ;;  %v1094_v55 = vpack.c.bf16 %v593_v53, %v590_v48 }
  0xf5   : > { %v1207_v56 = vpop.f32.mrf.mxu0  ;;  %v1223_v57 = vpop.f32.mrf.mxu1 }
  0xf6   : > { %1055 = vst [vmem:[%s1477_s23] sm:$0xff] %v1054_v54   ;;  %1153 = vst [vmem:[%s1477_s23 + $0x40] sm:$0xff] %v1094_v55  }
  0xf7   : > { %v542_v58 = vpop.f32.mrf.mxu0  ;;  %v606_v59 = vpop.f32.mrf.mxu1 }
  0xf9   : > { %v1208_v60 = vpop.f32.mrf.mxu0  ;;  %v1224_v61 = vpop.f32.mrf.mxu1 }
  0xfa   : > { %v1069_v62 = vpack.c.bf16 %v1208_v60, %v1207_v56  ;;  %v1109_v63 = vpack.c.bf16 %v1224_v61, %v1223_v57 }
  0xfb   : > { %v545_v0 = vpop.f32.mrf.mxu0  ;;  %v609_v1 = vpop.f32.mrf.mxu1 }
  0xfc   : > { %1148 = vst [vmem:[%s1477_s23 + $0x18] sm:$0xff] %v1069_v62   ;;  %1156 = vst [vmem:[%s1477_s23 + $0x58] sm:$0xff] %v1109_v63   ;;  %v1064_v2 = vpack.c.bf16 %v545_v0, %v542_v58  ;;  %v1104_v3 = vpack.c.bf16 %v609_v1, %v606_v59 }
  0xfd   : > { %v1211_v4 = vpop.f32.mrf.mxu0  ;;  %v1227_v6 = vpop.f32.mrf.mxu1 }
  0xfe   : > { %1147 = vst [vmem:[%s1477_s23 + $0x10] sm:$0xff] %v1064_v2   ;;  %1155 = vst [vmem:[%s1477_s23 + $0x50] sm:$0xff] %v1104_v3  }
  0xff   : > { %v558_v7 = vpop.f32.mrf.mxu0  ;;  %v622_v8 = vpop.f32.mrf.mxu1 }
 0x101   : > { %v1212_v9 = vpop.f32.mrf.mxu0  ;;  %v1228_v10 = vpop.f32.mrf.mxu1 }
 0x102   : > { %v1079_v12 = vpack.c.bf16 %v1212_v9, %v1211_v4  ;;  %v1119_v13 = vpack.c.bf16 %v1228_v10, %v1227_v6 }
 0x103   : > { %v561_v14 = vpop.f32.mrf.mxu0  ;;  %v625_v15 = vpop.f32.mrf.mxu1 }
 0x104   : > { %1150 = vst [vmem:[%s1477_s23 + $0x28] sm:$0xff] %v1079_v12   ;;  %1158 = vst [vmem:[%s1477_s23 + $0x68] sm:$0xff] %v1119_v13   ;;  %v1074_v16 = vpack.c.bf16 %v561_v14, %v558_v7  ;;  %v1114_v17 = vpack.c.bf16 %v625_v15, %v622_v8 }
 0x105   : > { %v1215_v18 = vpop.f32.mrf.mxu0  ;;  %v1231_v19 = vpop.f32.mrf.mxu1 }
 0x106   : > { %1149 = vst [vmem:[%s1477_s23 + $0x20] sm:$0xff] %v1074_v16   ;;  %1157 = vst [vmem:[%s1477_s23 + $0x60] sm:$0xff] %v1114_v17  }
 0x107   : > { %v574_v20 = vpop.f32.mrf.mxu0  ;;  %v638_v21 = vpop.f32.mrf.mxu1 }
 0x109   : > { %v1216_v22 = vpop.f32.mrf.mxu0  ;;  %v1232_v23 = vpop.f32.mrf.mxu1 }
 0x10a   : > { %v1089_v24 = vpack.c.bf16 %v1216_v22, %v1215_v18  ;;  %v1129_v25 = vpack.c.bf16 %v1232_v23, %v1231_v19 }
 0x10b   : > { %v577_v26 = vpop.f32.mrf.mxu0  ;;  %v641_v27 = vpop.f32.mrf.mxu1 }
 0x10c   : > { %1152 = vst [vmem:[%s1477_s23 + $0x38] sm:$0xff] %v1089_v24   ;;  %1160 = vst [vmem:[%s1477_s23 + $0x78] sm:$0xff] %v1129_v25   ;;  %v1084_v28 = vpack.c.bf16 %v577_v26, %v574_v20  ;;  %v1124_v29 = vpack.c.bf16 %v641_v27, %v638_v21 }
 0x10e   : > { %1151 = vst [vmem:[%s1477_s23 + $0x30] sm:$0xff] %v1084_v28   ;;  %1159 = vst [vmem:[%s1477_s23 + $0x70] sm:$0xff] %v1124_v29  }
 0x10f PF: > { %s14_s17 = sadd.s32 1, %s1303_s17   ;;  %s1509_s15 = smov %s1299_s16 }
 0x110   : > { %p11_p5 = scmp.ge.s32.totalorder %s14_s17, 4   ;;  %s1510_s16 = smov %s1512_s18 }
 0x112   :  { %13 = sbr.rel (!%p11_p5) target bundleno = 2 (0x2), region = 66 }

// kernel: _lambda_.10
= control target key start
LH: loop header
LB: loop body
LE: loop exit
PB: predicated region body
PF: predicated region fallthrough
CT: control target
= control target key end

     0   :  { %s2003_s30 = smov 0   ;;  %s2005_s10 = smov 0   ;;  %s2495_s0 = inlined_call_operand.vmem [shape: bf16[2,256,128], index: 0, kind: input, shape index: {}]   ;;  %s2496_s1 = inlined_call_operand.vmem [shape: bf16[2,256,128], index: 1, kind: input, shape index: {}]   ;;  %s2497_s2 = inlined_call_operand.vmem [shape: bf16[2,36,128], index: 2, kind: input, shape index: {}]   ;;  %s2498_s3 = inlined_call_operand.vmem [shape: f32[256,36], index: 3, kind: input, shape index: {}]   ;;  %s2499_s4 = inlined_call_operand.vmem [shape: f32[2,1,128], index: 4, kind: output, shape index: {0}]   ;;  %s2500_s5 = inlined_call_operand.vmem [shape: f32[2,1,128], index: 5, kind: output, shape index: {1}]   ;;  %s2501_s6 = inlined_call_operand.vmem [shape: f32[2,1,128], index: 6, kind: output, shape index: {2}]   ;;  %s2502_s7 = inlined_call_operand.vmem [shape: f32[2,1,128], index: 7, kind: output, shape index: {3}]   ;;  %s2503_s8 = inlined_call_operand.vmem [shape: f32[2,1,128], index: 8, kind: output, shape index: {4}]   ;;  %s2504_s9 = inlined_call_operand.vmem [shape: f32[2,1,128], index: 9, kind: output, shape index: {5}]  }
   0x1   :  { %s2007_s11 = smov 0  }
   0x2 LB: > { %s32_s12 = sadd.s32 1, %s1946_s10  ;;  %p1587_p0 = scmp.ge.s32.totalorder %s1950_s11, 1  ;;  %s1950_s11 = sphi %s2007_s11, %s20_s11   ;;  %s1946_s10 = sphi %s2005_s10, %s2524_s10   ;;  %s1942_s30 = sphi %s2003_s30, %s2523_s30  }
   0x3   : > { %p34_p1 = scmp.ge.s32.totalorder %s32_s12, 2  ;;  %p355_p2 = scmp.lt.s32.totalorder %s1950_s11, 3 }
   0x5   : > { %s2526_s12 = smov (%p34_p1, %s32_s12), 0  ;;  %p356_p3 = pnand %p1587_p0, %p355_p2 }
   0x6   : > { %p428_p4 = scmp.lt.s32.totalorder (!%p356_p3), %s1942_s30, 1 }
   0x7   : > { %359 = sbr.rel (%p356_p3) target bundleno = 305 (0x131), region = 36 }
   0xc   : > { %v798_v0 = vld [vmem:[%s2498_s3] sm:$0xff]  ;;  %vm840_vm0 = vcmask 293888   ;;  %s2528_s30 = smov (!%p428_p4, %s1942_s30), 1  ;;  %vm937_vm1 = vcmask 1043456   ;;  %v799_v10 = vld [vmem:[%s2498_s3 + $0x8] sm:$0xff]  ;;  %v800_v12 = vld [vmem:[%s2498_s3 + $0x10] sm:$0xff] }
   0xd   : > { %1844 = vmatprep.mubr.msk.f32.mxu0 %vm840_vm0, %v798_v0  ;;  %s1902_s15 = smul.u32 20, %s2528_s30  ;;  %v814_v1 = vld [vmem:[%s2498_s3 + $0x80] sm:$0xff]  ;;  %v815_v11 = vld [vmem:[%s2498_s3 + $0x88] sm:$0xff]  ;;  %v816_v13 = vld [vmem:[%s2498_s3 + $0x90] sm:$0xff]  ;;  %s1628_s13 = sshll.u32 %s2528_s30, 7 }
   0xe   : > { %1868 = vmatprep.mubr.msk.f32.mxu1 %vm840_vm0, %v814_v1  ;;  %v801_v14 = vld [vmem:[%s2498_s3 + $0x18] sm:$0xff]  ;;  %v802_v16 = vld [vmem:[%s2498_s3 + $0x20] sm:$0xff]  ;;  %v803_v18 = vld [vmem:[%s2498_s3 + $0x28] sm:$0xff]  ;;  %s2159_s16 = scalar_lea.vmem %s2496_s1, %s1628_s13  ;;  %s2164_s19 = scalar_lea.vmem %s2495_s0, %s1628_s13 }
   0xf   : > { %s451_s20 = scalar_lea.vmem %s2497_s2, %s1902_s15  ;;  %v817_v15 = vld [vmem:[%s2498_s3 + $0x98] sm:$0xff]  ;;  %v818_v17 = vld [vmem:[%s2498_s3 + $0xa0] sm:$0xff]  ;;  %v819_v19 = vld [vmem:[%s2498_s3 + $0xa8] sm:$0xff]  ;;  %s2324_s22 = scalar_lea.vmem %s2499_s4, %s2528_s30 }
  0x10   : > { %v834_v2 = vld [vmem:[%s451_s20 + $0x10] sm:$0x3]  ;;  %v1796_v3 = vld [vmem:[%s451_s20 + $0x8] sm:$0xff]   ;;  %v1759_v6 = vld [vmem:[%s451_s20] sm:$0xff]   ;;  %s2330_s25 = scalar_lea.vmem %s2500_s5, %s2528_s30  ;;  %s2337_s28 = scalar_lea.vmem %s2501_s6, %s2528_s30 }
  0x11   : > { %v839_v4 = vunpack.c.l.bf16 %v834_v2  ;;  %v1765_v5 = vunpack.c.h.bf16 %v1796_v3  ;;  %v1764_v7 = vunpack.c.l.bf16 %v1796_v3  ;;  %v1761_v8 = vunpack.c.h.bf16 %v1759_v6  ;;  %v804_v20 = vld [vmem:[%s2498_s3 + $0x30] sm:$0xff]  ;;  %v805_v22 = vld [vmem:[%s2498_s3 + $0x38] sm:$0xff]  ;;  %v806_v24 = vld [vmem:[%s2498_s3 + $0x40] sm:$0xff]  ;;  %s2343_s14 = scalar_lea.vmem %s2502_s7, %s2528_s30  ;;  %s2349_s17 = scalar_lea.vmem %s2503_s8, %s2528_s30 }
  0x12   : > { %v1760_v9 = vunpack.c.l.bf16 %v1759_v6  ;;  %v820_v21 = vld [vmem:[%s2498_s3 + $0xb0] sm:$0xff]  ;;  %v821_v23 = vld [vmem:[%s2498_s3 + $0xb8] sm:$0xff]  ;;  %v822_v25 = vld [vmem:[%s2498_s3 + $0xc0] sm:$0xff]  ;;  %s2355_s20 = scalar_lea.vmem %s2504_s9, %s2528_s30 }
  0x13   : > { %1834 = vmatprep.subr.msk.mxu0 %vm937_vm1, %v839_v4  ;;  %1892 = vmatprep.subr.msk.mxu1 %vm937_vm1, %v839_v4  ;;  %v807_v26 = vld [vmem:[%s2498_s3 + $0x48] sm:$0xff]  ;;  %v808_v28 = vld [vmem:[%s2498_s3 + $0x50] sm:$0xff]  ;;  %v809_v30 = vld [vmem:[%s2498_s3 + $0x58] sm:$0xff] }
  0x14   : > { %1835 = vmatpush3.msk.msra.mxu0 %vm937_vm1, %v839_v4  ;;  %1897 = vmatpush3.msk.msra.mxu1 %vm937_vm1, %v839_v4  ;;  %v823_v27 = vld [vmem:[%s2498_s3 + $0xc8] sm:$0xff]  ;;  %v824_v29 = vld [vmem:[%s2498_s3 + $0xd0] sm:$0xff]  ;;  %v825_v31 = vld [vmem:[%s2498_s3 + $0xd8] sm:$0xff] }
  0x15   : > { %1836 = vmatprep.subr.mxu0 %v1765_v5  ;;  %1893 = vmatprep.subr.mxu1 %v1765_v5  ;;  %v810_v32 = vld [vmem:[%s2498_s3 + $0x60] sm:$0xff]  ;;  %v811_v34 = vld [vmem:[%s2498_s3 + $0x68] sm:$0xff]  ;;  %v812_v36 = vld [vmem:[%s2498_s3 + $0x70] sm:$0xff] }
  0x16   : > { %1837 = vmatpush3.msra.mxu0 %v1765_v5  ;;  %1898 = vmatpush3.msra.mxu1 %v1765_v5  ;;  %v826_v33 = vld [vmem:[%s2498_s3 + $0xe0] sm:$0xff]  ;;  %v827_v35 = vld [vmem:[%s2498_s3 + $0xe8] sm:$0xff]  ;;  %v828_v37 = vld [vmem:[%s2498_s3 + $0xf0] sm:$0xff] }
  0x17   : > { %1838 = vmatprep.subr.mxu0 %v1764_v7  ;;  %1894 = vmatprep.subr.mxu1 %v1764_v7  ;;  %v813_v38 = vld [vmem:[%s2498_s3 + $0x78] sm:$0xff]  ;;  %v1695_v40 = vld [vmem:[%s2159_s16] sm:$0xff]   ;;  %v2177_v50 = vld [vmem:[%s2164_s19 + $0x8] sm:$0xff]  }
  0x18   : > { %1839 = vmatpush3.msra.mxu0 %v1764_v7  ;;  %1899 = vmatpush3.msra.mxu1 %v1764_v7  ;;  %v829_v39 = vld [vmem:[%s2498_s3 + $0xf8] sm:$0xff]  ;;  %v2168_v41 = vld [vmem:[%s2164_s19] sm:$0xff]   ;;  %v1697_v42 = vunpack.c.h.bf16 %v1695_v40  ;;  %v1696_v45 = vunpack.c.l.bf16 %v1695_v40  ;;  %v1781_v52 = vld [vmem:[%s2159_s16 + $0x8] sm:$0xff]   ;;  %v1636_v54 = vunpack.c.l.bf16 %v2177_v50  ;;  %v1637_v57 = vunpack.c.h.bf16 %v2177_v50 }
  0x19   : > { %1840 = vmatprep.subr.mxu0 %v1761_v8  ;;  %1895 = vmatprep.subr.mxu1 %v1761_v8  ;;  %v1633_v43 = vunpack.c.h.bf16 %v2168_v41  ;;  %v1632_v44 = vunpack.c.l.bf16 %v2168_v41  ;;  %v1701_v53 = vunpack.c.h.bf16 %v1781_v52  ;;  %v1700_v58 = vunpack.c.l.bf16 %v1781_v52  ;;  %v2187_v0 = vld [vmem:[%s2164_s19 + $0x10] sm:$0xff]  }
  0x1a   : > { %1841 = vmatpush3.msra.mxu0 %v1761_v8  ;;  %1900 = vmatpush3.msra.mxu1 %v1761_v8  ;;  %v656_v46 = vmul.f32 %v1697_v42, %v1697_v42  ;;  %v655_v48 = vmul.f32 %v1696_v45, %v1696_v45  ;;  %v615_v51 = vadd.f32 %v1697_v42, %v1696_v45  ;;  %v1782_v1 = vld [vmem:[%s2159_s16 + $0x10] sm:$0xff]   ;;  %v1640_v3 = vunpack.c.l.bf16 %v2187_v0 }
  0x1b   : > { %1842 = vmatprep.subr.mxu0 %v1760_v9  ;;  %1896 = vmatprep.subr.mxu1 %v1760_v9  ;;  %v728_v47 = vmul.f32 %v1697_v42, %v1633_v43  ;;  %v727_v49 = vmul.f32 %v1696_v45, %v1632_v44  ;;  %v658_v59 = vmul.f32 %v1701_v53, %v1701_v53  ;;  %v1705_v2 = vunpack.c.h.bf16 %v1782_v1 }
  0x1c   : > { %1843 = vmatpush3.msra.mxu0 %v1760_v9  ;;  %1901 = vmatpush3.msra.mxu1 %v1760_v9  ;;  %v687_v55 = vadd.f32 %v656_v46, %v655_v48  ;;  %v730_v60 = vmul.f32 %v1701_v53, %v1637_v57  ;;  %v616_v61 = vadd.f32 %v1700_v58, %v615_v51  ;;  %v1704_v4 = vunpack.c.l.bf16 %v1782_v1 }
  0x1d   : > { %1845 = vmatmul.mubr.msk.f32.vlgmr.msra.gmra.mxu0 %vm840_vm0, %v799_v10  ;;  %1869 = vmatmul.mubr.msk.f32.vlgmr.msra.gmra.mxu1 %vm840_vm0, %v815_v11  ;;  %v759_v56 = vadd.f32 %v728_v47, %v727_v49  ;;  %v657_v62 = vmul.f32 %v1700_v58, %v1700_v58  ;;  %v729_v63 = vmul.f32 %v1700_v58, %v1636_v54  ;;  %v1641_v8 = vunpack.c.h.bf16 %v2187_v0  ;;  %v2213_v47 = vld [vmem:[%s2164_s19 + $0x28] sm:$0xff]  }
  0x1e   : > { %1847 = vmatprep.mubr.msk.f32.mxu0 %vm840_vm0, %v800_v12  ;;  %1871 = vmatprep.mubr.msk.f32.mxu1 %vm840_vm0, %v816_v13  ;;  %v617_v7 = vadd.f32 %v1701_v53, %v616_v61  ;;  %v659_v9 = vmul.f32 %v1704_v4, %v1704_v4  ;;  %v731_v10 = vmul.f32 %v1704_v4, %v1640_v3  ;;  %v1785_v53 = vld [vmem:[%s2159_s16 + $0x28] sm:$0xff]   ;;  %v1652_v58 = vunpack.c.l.bf16 %v2213_v47 }
  0x1f   : > { %v688_v5 = vadd.f32 %v687_v55, %v657_v62  ;;  %v760_v6 = vadd.f32 %v759_v56, %v729_v63  ;;  %v660_v11 = vmul.f32 %v1705_v2, %v1705_v2  ;;  %v1717_v56 = vunpack.c.h.bf16 %v1785_v53 }
  0x20   : > { %v618_v12 = vadd.f32 %v1704_v4, %v617_v7  ;;  %v1653_v61 = vunpack.c.h.bf16 %v2213_v47  ;;  %v2223_v4 = vld [vmem:[%s2164_s19 + $0x30] sm:$0xff]  }
  0x21   : > { %1848 = vmatmul.mubr.msk.f32.gmra.mxu0 %vm840_vm0, %v801_v14  ;;  %1872 = vmatmul.mubr.msk.f32.gmra.mxu1 %vm840_vm0, %v817_v15  ;;  %v689_v13 = vadd.f32 %v688_v5, %v658_v59  ;;  %v761_v14 = vadd.f32 %v760_v6, %v730_v60  ;;  %v2195_v15 = vld [vmem:[%s2164_s19 + $0x18] sm:$0xff]   ;;  %v1716_v59 = vunpack.c.l.bf16 %v1785_v53  ;;  %v666_v63 = vmul.f32 %v1717_v56, %v1717_v56  ;;  %v1788_v53 = vld [vmem:[%s2159_s16 + $0x40] sm:$0xff]  }
  0x22   : > { %1850 = vmatprep.mubr.msk.f32.mxu0 %vm840_vm0, %v802_v16  ;;  %1874 = vmatprep.mubr.msk.f32.mxu1 %vm840_vm0, %v818_v17  ;;  %v732_v16 = vmul.f32 %v1705_v2, %v1641_v8  ;;  %v1783_v17 = vld [vmem:[%s2159_s16 + $0x18] sm:$0xff]   ;;  %v738_v5 = vmul.f32 %v1717_v56, %v1653_v61 }
  0x23   : > { %v665_v1 = vmul.f32 %v1716_v59, %v1716_v59  ;;  %v737_v7 = vmul.f32 %v1716_v59, %v1652_v58 }
  0x25   : > { %1851 = vmatmul.mubr.msk.f32.gmra.mxu0 %vm840_vm0, %v803_v18  ;;  %1875 = vmatmul.mubr.msk.f32.gmra.mxu1 %vm840_vm0, %v819_v19  ;;  %v1644_v18 = vunpack.c.l.bf16 %v2195_v15  ;;  %v690_v19 = vadd.f32 %v689_v13, %v659_v9  ;;  %v1656_v13 = vunpack.c.l.bf16 %v2223_v4 }
  0x26   : > { %1853 = vmatprep.mubr.msk.f32.mxu0 %vm840_vm0, %v804_v20  ;;  %1877 = vmatprep.mubr.msk.f32.mxu1 %vm840_vm0, %v820_v21  ;;  %v762_v20 = vadd.f32 %v761_v14, %v731_v10  ;;  %v1709_v21 = vunpack.c.h.bf16 %v1783_v17  ;;  %v1786_v10 = vld [vmem:[%s2159_s16 + $0x30] sm:$0xff]  }
  0x27   : > { %v1720_v14 = vunpack.c.l.bf16 %v1786_v10 }
  0x29   : > { %1854 = vmatmul.mubr.msk.f32.gmra.mxu0 %vm840_vm0, %v805_v22  ;;  %1878 = vmatmul.mubr.msk.f32.gmra.mxu1 %vm840_vm0, %v821_v23  ;;  %v1708_v22 = vunpack.c.l.bf16 %v1783_v17  ;;  %v1645_v23 = vunpack.c.h.bf16 %v2195_v15  ;;  %v1657_v17 = vunpack.c.h.bf16 %v2223_v4 }
  0x2a   : > { %1856 = vmatprep.mubr.msk.f32.mxu0 %vm840_vm0, %v806_v24  ;;  %1880 = vmatprep.mubr.msk.f32.mxu1 %vm840_vm0, %v822_v25  ;;  %v619_v24 = vadd.f32 %v1705_v2, %v618_v12  ;;  %v662_v25 = vmul.f32 %v1709_v21, %v1709_v21  ;;  %v1721_v12 = vunpack.c.h.bf16 %v1786_v10 }
  0x2d   : > { %1857 = vmatmul.mubr.msk.f32.gmra.mxu0 %vm840_vm0, %v807_v26  ;;  %1881 = vmatmul.mubr.msk.f32.gmra.mxu1 %vm840_vm0, %v823_v27  ;;  %v661_v26 = vmul.f32 %v1708_v22, %v1708_v22  ;;  %v691_v27 = vadd.f32 %v690_v19, %v660_v11 }
  0x2e   : > { %1859 = vmatprep.mubr.msk.f32.mxu0 %vm840_vm0, %v808_v28  ;;  %1883 = vmatprep.mubr.msk.f32.mxu1 %vm840_vm0, %v824_v29  ;;  %v2203_v28 = vld [vmem:[%s2164_s19 + $0x20] sm:$0xff]   ;;  %v734_v29 = vmul.f32 %v1709_v21, %v1645_v23 }
  0x31   : > { %1860 = vmatmul.mubr.msk.f32.gmra.mxu0 %vm840_vm0, %v809_v30  ;;  %1884 = vmatmul.mubr.msk.f32.gmra.mxu1 %vm840_vm0, %v825_v31  ;;  %v620_v30 = vadd.f32 %v1708_v22, %v619_v24  ;;  %v733_v31 = vmul.f32 %v1708_v22, %v1644_v18  ;;  %v2233_v24 = vld [vmem:[%s2164_s19 + $0x38] sm:$0xff]  }
  0x32   : > { %1862 = vmatprep.mubr.msk.f32.mxu0 %vm840_vm0, %v810_v32  ;;  %1886 = vmatprep.mubr.msk.f32.mxu1 %vm840_vm0, %v826_v33  ;;  %v763_v32 = vadd.f32 %v762_v20, %v732_v16  ;;  %v1784_v33 = vld [vmem:[%s2159_s16 + $0x20] sm:$0xff]   ;;  %v668_v20 = vmul.f32 %v1721_v12, %v1721_v12 }
  0x33   : > { %v621_v40 = vadd.f32 %v1709_v21, %v620_v30  ;;  %v667_v21 = vmul.f32 %v1720_v14, %v1720_v14  ;;  %v1787_v30 = vld [vmem:[%s2159_s16 + $0x38] sm:$0xff]  }
  0x35   : > { %1863 = vmatmul.mubr.msk.f32.gmra.mxu0 %vm840_vm0, %v811_v34  ;;  %1887 = vmatmul.mubr.msk.f32.gmra.mxu1 %vm840_vm0, %v827_v35  ;;  %v692_v34 = vadd.f32 %v691_v27, %v661_v26  ;;  %v1713_v35 = vunpack.c.h.bf16 %v1784_v33  ;;  %v739_v27 = vmul.f32 %v1720_v14, %v1656_v13 }
  0x36   : > { %1865 = vmatprep.mubr.msk.f32.mxu0 %vm840_vm0, %v812_v36  ;;  %1889 = vmatprep.mubr.msk.f32.mxu1 %vm840_vm0, %v828_v37  ;;  %v1648_v36 = vunpack.c.l.bf16 %v2203_v28  ;;  %v1712_v37 = vunpack.c.l.bf16 %v1784_v33  ;;  %v1660_v33 = vunpack.c.l.bf16 %v2233_v24 }
  0x37   : > { %v664_v42 = vmul.f32 %v1713_v35, %v1713_v35  ;;  %v693_v46 = vadd.f32 %v692_v34, %v662_v25  ;;  %v740_v25 = vmul.f32 %v1721_v12, %v1657_v17  ;;  %v1724_v34 = vunpack.c.l.bf16 %v1787_v30 }
  0x38   : > { %v663_v45 = vmul.f32 %v1712_v37, %v1712_v37  ;;  %v622_v49 = vadd.f32 %v1712_v37, %v621_v40  ;;  %v735_v51 = vmul.f32 %v1712_v37, %v1648_v36  ;;  %v1661_v37 = vunpack.c.h.bf16 %v2233_v24  ;;  %v2243_v40 = vld [vmem:[%s2164_s19 + $0x40] sm:$0xff]  }
  0x39   : > { %1866 = vmatmul.mubr.msk.f32.gmra.mxu0 %vm840_vm0, %v813_v38  ;;  %1890 = vmatmul.mubr.msk.f32.gmra.mxu1 %vm840_vm0, %v829_v39  ;;  %v764_v38 = vadd.f32 %v763_v32, %v733_v31  ;;  %v1649_v39 = vunpack.c.h.bf16 %v2203_v28  ;;  %v1725_v32 = vunpack.c.h.bf16 %v1787_v30 }
  0x3a   : > { %v694_v55 = vadd.f32 %v693_v46, %v663_v45  ;;  %v623_v62 = vadd.f32 %v1713_v35, %v622_v49  ;;  %v669_v45 = vmul.f32 %v1724_v34, %v1724_v34 }
  0x3b   : > { %v736_v48 = vmul.f32 %v1713_v35, %v1649_v39  ;;  %v765_v52 = vadd.f32 %v764_v38, %v734_v29 }
  0x3c   : > { %v695_v2 = vadd.f32 %v694_v55, %v664_v42  ;;  %v624_v6 = vadd.f32 %v1716_v59, %v623_v62  ;;  %v670_v42 = vmul.f32 %v1725_v32, %v1725_v32  ;;  %v1728_v59 = vunpack.c.l.bf16 %v1788_v53 }
  0x3d   : > { %v766_v60 = vadd.f32 %v765_v52, %v735_v51  ;;  %v741_v51 = vmul.f32 %v1724_v34, %v1660_v33 }
  0x3e   : > { %v696_v11 = vadd.f32 %v695_v2, %v665_v1  ;;  %v625_v19 = vadd.f32 %v1717_v56, %v624_v6  ;;  %v1664_v56 = vunpack.c.l.bf16 %v2243_v40  ;;  %v1729_v1 = vunpack.c.h.bf16 %v1788_v53 }
  0x3f   : > { %v767_v9 = vadd.f32 %v766_v60, %v736_v48  ;;  %v742_v48 = vmul.f32 %v1725_v32, %v1661_v37 }
  0x40   : > { %v697_v22 = vadd.f32 %v696_v11, %v666_v63  ;;  %v626_v26 = vadd.f32 %v1720_v14, %v625_v19  ;;  %v1665_v63 = vunpack.c.h.bf16 %v2243_v40  ;;  %v743_v6 = vmul.f32 %v1728_v59, %v1664_v56  ;;  %v1789_v14 = vld [vmem:[%s2159_s16 + $0x48] sm:$0xff]  }
  0x41   : > { %v768_v16 = vadd.f32 %v767_v9, %v737_v7  ;;  %v2255_v7 = vld [vmem:[%s2164_s19 + $0x48] sm:$0xff]   ;;  %v672_v10 = vmul.f32 %v1729_v1, %v1729_v1  ;;  %v1733_v19 = vunpack.c.h.bf16 %v1789_v14 }
  0x42   : > { %v698_v31 = vadd.f32 %v697_v22, %v667_v21  ;;  %v627_v38 = vadd.f32 %v1721_v12, %v626_v26  ;;  %v744_v11 = vmul.f32 %v1729_v1, %v1665_v63  ;;  %v1669_v22 = vunpack.c.h.bf16 %v2255_v7 }
  0x43   : > { %v769_v29 = vadd.f32 %v768_v16, %v738_v5  ;;  %v671_v5 = vmul.f32 %v1728_v59, %v1728_v59 }
  0x44   : > { %v699_v46 = vadd.f32 %v698_v31, %v668_v20  ;;  %v628_v49 = vadd.f32 %v1724_v34, %v627_v38  ;;  %v1732_v20 = vunpack.c.l.bf16 %v1789_v14  ;;  %v2263_v31 = vld [vmem:[%s2164_s19 + $0x50] sm:$0xff]  }
  0x45   : > { %v770_v35 = vadd.f32 %v769_v29, %v739_v27  ;;  %v674_v27 = vmul.f32 %v1733_v19, %v1733_v19 }
  0x46   : > { %v700_v55 = vadd.f32 %v699_v46, %v669_v45  ;;  %v629_v60 = vadd.f32 %v1725_v32, %v628_v49  ;;  %v673_v29 = vmul.f32 %v1732_v20, %v1732_v20  ;;  %v746_v32 = vmul.f32 %v1733_v19, %v1669_v22 }
  0x47   : > { %v771_v52 = vadd.f32 %v770_v35, %v740_v25  ;;  %v1668_v25 = vunpack.c.l.bf16 %v2255_v7 }
  0x48   : > { %v701_v2 = vadd.f32 %v700_v55, %v670_v42  ;;  %v630_v12 = vadd.f32 %v1728_v59, %v629_v60  ;;  %v1790_v42 = vld [vmem:[%s2159_s16 + $0x50] sm:$0xff]  }
  0x49   : > { %v772_v62 = vadd.f32 %v771_v52, %v741_v51  ;;  %v745_v35 = vmul.f32 %v1732_v20, %v1668_v25  ;;  %v1737_v46 = vunpack.c.h.bf16 %v1790_v42  ;;  %v1673_v51 = vunpack.c.h.bf16 %v2263_v31 }
  0x4a   : > { %v702_v16 = vadd.f32 %v701_v2, %v671_v5  ;;  %v631_v26 = vadd.f32 %v1729_v1, %v630_v12  ;;  %v1672_v52 = vunpack.c.l.bf16 %v2263_v31 }
  0x4b   : > { %v773_v9 = vadd.f32 %v772_v62, %v742_v48  ;;  %v1736_v48 = vunpack.c.l.bf16 %v1790_v42  ;;  %v676_v55 = vmul.f32 %v1737_v46, %v1737_v46  ;;  %v2273_v62 = vld [vmem:[%s2164_s19 + $0x58] sm:$0xff]   ;;  %v748_v1 = vmul.f32 %v1737_v46, %v1673_v51 }
  0x4c   : > { %v703_v30 = vadd.f32 %v702_v16, %v672_v10  ;;  %v632_v34 = vadd.f32 %v1732_v20, %v631_v26  ;;  %v2511_v16 = vunpack.c.h.bf16 %v2273_v62 }
  0x4d   : > { %v774_v21 = vadd.f32 %v773_v9, %v743_v6  ;;  %v675_v59 = vmul.f32 %v1736_v48, %v1736_v48  ;;  %v747_v5 = vmul.f32 %v1736_v48, %v1672_v52  ;;  %v1791_v9 = vld [vmem:[%s2159_s16 + $0x58] sm:$0xff]  }
  0x4e   : > { %v704_v45 = vadd.f32 %v703_v30, %v673_v29  ;;  %v633_v53 = vadd.f32 %v1733_v19, %v632_v34  ;;  %v1740_v12 = vunpack.c.l.bf16 %v1791_v9  ;;  %v2513_v19 = vunpack.c.l.bf16 %v2273_v62  ;;  %v2283_v29 = vld [vmem:[%s2164_s19 + $0x60] sm:$0xff]  }
  0x4f   : > { %v775_v38 = vadd.f32 %v774_v21, %v744_v11  ;;  %v1741_v11 = vunpack.c.h.bf16 %v1791_v9 }
  0x50   : > { %v705_v60 = vadd.f32 %v704_v45, %v674_v27  ;;  %v634_v2 = vadd.f32 %v1736_v48, %v633_v53  ;;  %v677_v26 = vmul.f32 %v1740_v12, %v1740_v12  ;;  %v749_v34 = vmul.f32 %v1740_v12, %v2513_v19 }
  0x51   : > { %v776_v49 = vadd.f32 %v775_v38, %v745_v35  ;;  %v678_v21 = vmul.f32 %v1741_v11, %v1741_v11  ;;  %v750_v30 = vmul.f32 %v1741_v11, %v2511_v16  ;;  %v1792_v38 = vld [vmem:[%s2159_s16 + $0x60] sm:$0xff]   ;;  %v2510_v53 = vunpack.c.l.bf16 %v2283_v29 }
  0x52   : > { %v706_v10 = vadd.f32 %v705_v60, %v675_v59  ;;  %v635_v20 = vadd.f32 %v1737_v46, %v634_v2  ;;  %v1745_v45 = vunpack.c.h.bf16 %v1792_v38  ;;  %v1744_v48 = vunpack.c.l.bf16 %v1792_v38 }
  0x53   : > { %v777_v6 = vadd.f32 %v776_v49, %v746_v32  ;;  %v2509_v49 = vunpack.c.h.bf16 %v2283_v29 }
  0x54   : > { %v707_v27 = vadd.f32 %v706_v10, %v676_v55  ;;  %v636_v32 = vadd.f32 %v1740_v12, %v635_v20  ;;  %v680_v59 = vmul.f32 %v1745_v45, %v1745_v45  ;;  %v679_v60 = vmul.f32 %v1744_v48, %v1744_v48  ;;  %v1793_v12 = vld [vmem:[%s2159_s16 + $0x68] sm:$0xff]  }
  0x55   : > { %v778_v14 = vadd.f32 %v777_v6, %v747_v5  ;;  %v2293_v5 = vld [vmem:[%s2164_s19 + $0x68] sm:$0xff]   ;;  %v751_v9 = vmul.f32 %v1744_v48, %v2510_v53  ;;  %v1749_v20 = vunpack.c.h.bf16 %v1793_v12 }
  0x56   : > { %v708_v42 = vadd.f32 %v707_v27, %v677_v26  ;;  %v637_v55 = vadd.f32 %v1741_v11, %v636_v32  ;;  %v1748_v26 = vunpack.c.l.bf16 %v1793_v12  ;;  %v2507_v27 = vunpack.c.h.bf16 %v2293_v5 }
  0x57   : > { %v779_v35 = vadd.f32 %v778_v14, %v748_v1  ;;  %v752_v1 = vmul.f32 %v1745_v45, %v2509_v49 }
  0x58   : > { %v709_v2 = vadd.f32 %v708_v42, %v678_v21  ;;  %v638_v6 = vadd.f32 %v1744_v48, %v637_v55  ;;  %v2508_v21 = vunpack.c.l.bf16 %v2293_v5  ;;  %v2303_v42 = vld [vmem:[%s2164_s19 + $0x70] sm:$0xff]  }
  0x59   : > { %v780_v46 = vadd.f32 %v779_v35, %v749_v34  ;;  %v682_v34 = vmul.f32 %v1749_v20, %v1749_v20  ;;  %v681_v35 = vmul.f32 %v1748_v26, %v1748_v26 }
  0x5a   : > { %v710_v14 = vadd.f32 %v709_v2, %v679_v60  ;;  %v639_v32 = vadd.f32 %v1745_v45, %v638_v6  ;;  %v1794_v60 = vld [vmem:[%s2159_s16 + $0x70] sm:$0xff]  }
  0x5b   : > { %v781_v10 = vadd.f32 %v780_v46, %v750_v30  ;;  %v754_v30 = vmul.f32 %v1749_v20, %v2507_v27  ;;  %v753_v46 = vmul.f32 %v1748_v26, %v2508_v21  ;;  %v1752_v45 = vunpack.c.l.bf16 %v1794_v60 }
  0x5c   : > { %v711_v38 = vadd.f32 %v710_v14, %v680_v59  ;;  %v640_v48 = vadd.f32 %v1748_v26, %v639_v32  ;;  %v2505_v59 = vunpack.c.h.bf16 %v2303_v42  ;;  %v2313_v14 = vld [vmem:[%s2164_s19 + $0x78] sm:$0xff]  }
  0x5d   : > { %v782_v11 = vadd.f32 %v781_v10, %v751_v9  ;;  %v1753_v9 = vunpack.c.h.bf16 %v1794_v60  ;;  %v2506_v10 = vunpack.c.l.bf16 %v2303_v42  ;;  %v1952_v60 = vmov 0.0  }
  0x5e   : > { %v712_v2 = vadd.f32 %v711_v38, %v681_v35  ;;  %v641_v12 = vadd.f32 %v1749_v20, %v640_v48  ;;  %480 = vst [vmem:[%s2324_s22] sm:$0x1] %v1952_v60  ;;  %481 = vst [vmem:[%s2330_s25] sm:$0x1] %v1952_v60 }
  0x5f   : > { %v783_v55 = vadd.f32 %v782_v11, %v752_v1  ;;  %v684_v32 = vmul.f32 %v1753_v9, %v1753_v9  ;;  %v683_v1 = vmul.f32 %v1752_v45, %v1752_v45  ;;  %v756_v11 = vmul.f32 %v1753_v9, %v2505_v59  ;;  %482 = vst [vmem:[%s2337_s28] sm:$0x1] %v1952_v60 }
  0x60   : > { %v713_v26 = vadd.f32 %v712_v2, %v682_v34  ;;  %v642_v35 = vadd.f32 %v1752_v45, %v641_v12  ;;  %v755_v38 = vmul.f32 %v1752_v45, %v2506_v10  ;;  %v2512_v34 = vunpack.c.h.bf16 %v2313_v14  ;;  %483 = vst [vmem:[%s2343_s14] sm:$0x1] %v1952_v60  ;;  %484 = vst [vmem:[%s2349_s17] sm:$0x1] %v1952_v60 }
  0x61   : > { %v784_v6 = vadd.f32 %v783_v55, %v753_v46  ;;  %v1795_v55 = vld [vmem:[%s2159_s16 + $0x78] sm:$0xff]   ;;  %v1692_v2 = vunpack.c.l.bf16 %v2313_v14  ;;  %485 = vst [vmem:[%s2355_s20] sm:$0x1] %v1952_v60 }
  0x62   : > { %v714_v20 = vadd.f32 %v713_v26, %v683_v1  ;;  %v1757_v48 = vunpack.c.h.bf16 %v1795_v55  ;;  %v1756_v45 = vunpack.c.l.bf16 %v1795_v55 }
  0x63   : > { %v785_v46 = vadd.f32 %v784_v6, %v754_v30  ;;  %v643_v6 = vadd.f32 %v1753_v9, %v642_v35 }
  0x64   : > { %v686_v12 = vmul.f32 %v1757_v48, %v1757_v48  ;;  %v758_v1 = vmul.f32 %v1757_v48, %v2512_v34  ;;  %v715_v26 = vadd.f32 %v714_v20, %v684_v32  ;;  %v757_v59 = vmul.f32 %v1756_v45, %v1692_v2 }
  0x65   : > { %v786_v30 = vadd.f32 %v785_v46, %v755_v38  ;;  %v644_v38 = vadd.f32 %v1756_v45, %v643_v6  ;;  %v685_v46 = vmul.f32 %v1756_v45, %v1756_v45 }
  0x67   : > { %v787_v10 = vadd.f32 %v786_v30, %v756_v11  ;;  %v645_v27 = vadd.f32 %v1757_v48, %v644_v38  ;;  %v716_v21 = vadd.f32 %v715_v26, %v685_v46  ;;  %v614_v48 = vld [vmem:[%s2324_s22] sm:$0x1] }
  0x68   : > { %v726_v30 = vld [vmem:[%s2337_s28] sm:$0x1] }
  0x69   : > { %v788_v49 = vadd.f32 %v787_v10, %v757_v59  ;;  %v646_v53 = vrot.slane %v645_v27, 4  ;;  %v717_v55 = vadd.f32 %v716_v21, %v686_v12 }
  0x6b   : > { %v789_v9 = vadd.f32 %v788_v49, %v758_v1  ;;  %v647_v35 = vadd.f32 %v646_v53, %v645_v27  ;;  %v718_v16 = vrot.slane %v717_v55, 4  ;;  %v654_v27 = vld [vmem:[%s2330_s25] sm:$0x1] }
  0x6d   : > { %v790_v34 = vrot.slane %v789_v9, 4  ;;  %v648_v60 = vrot.slane %v647_v35, 2  ;;  %v719_v32 = vadd.f32 %v718_v16, %v717_v55 }
  0x6f   : > { %v791_v20 = vadd.f32 %v790_v34, %v789_v9  ;;  %v649_v6 = vadd.f32 %v648_v60, %v647_v35  ;;  %v720_v19 = vrot.slane %v719_v32, 2 }
  0x71   : > { %v792_v45 = vrot.slane %v791_v20, 2  ;;  %v650_v11 = vrot.slane %v649_v6, 1  ;;  %v721_v59 = vadd.f32 %v720_v19, %v719_v32 }
  0x73   : > { %v793_v10 = vadd.f32 %v792_v45, %v791_v20  ;;  %v651_v21 = vadd.f32 %v650_v11, %v649_v6  ;;  %v722_v49 = vrot.slane %v721_v59, 1 }
  0x75   : > { %v794_v53 = vrot.slane %v793_v10, 1  ;;  %v652_v12 = vadd.f32 %v651_v21, %v614_v48  ;;  %v723_v1 = vadd.f32 %v722_v49, %v721_v59 }
  0x77   : > { %v795_v26 = vadd.f32 %v794_v53, %v793_v10  ;;  %653 = vst [vmem:[%s2324_s22] sm:$0x1] %v652_v12  ;;  %v724_v16 = vadd.f32 %v723_v1, %v654_v27 }
  0x79   : > { %v796_v34 = vadd.f32 %v795_v26, %v726_v30  ;;  %725 = vst [vmem:[%s2330_s25] sm:$0x1] %v724_v16 }
  0x7b   : > { %797 = vst [vmem:[%s2337_s28] sm:$0x1] %v796_v34 }
  0xdd   : > { %v1846_v38 = vpop.f32.mrf.mxu0  ;;  %v2374_v46 = vpop.f32.mrf.mxu1 }
  0xde   : > { %v1208_v35 = vmul.f32 %v1846_v38, %v1846_v38  ;;  %v1280_v20 = vmul.f32 %v1846_v38, %v1633_v43  ;;  %v1296_v24 = vmul.f32 %v2374_v46, %v1665_v63 }
  0xdf   : > { %v1007_v55 = vpop.f32.mrf.mxu0  ;;  %v2378_v32 = vpop.f32.mrf.mxu1 }
  0xe0   : > { %v1207_v19 = vmul.f32 %v1007_v55, %v1007_v55  ;;  %v1279_v9 = vmul.f32 %v1632_v44, %v1007_v55  ;;  %v1167_v6 = vadd.f32 %v1846_v38, %v1007_v55 }
  0xe1   : > { %v1849_v60 = vpop.f32.mrf.mxu0  ;;  %v2384_v53 = vpop.f32.mrf.mxu1 }
  0xe2   : > { %v1239_v45 = vadd.f32 %v1208_v35, %v1207_v19  ;;  %v1311_v59 = vadd.f32 %v1280_v20, %v1279_v9  ;;  %v1210_v44 = vmul.f32 %v1849_v60, %v1849_v60  ;;  %v1282_v27 = vmul.f32 %v1849_v60, %v1637_v57 }
  0xe3   : > { %v1017_v11 = vpop.f32.mrf.mxu0  ;;  %v1226_v40 = vmul.f32 %v2384_v53, %v2384_v53  ;;  %v1298_v63 = vmul.f32 %v2384_v53, %v1669_v22 }
  0xe4   : > { %v1168_v10 = vadd.f32 %v1167_v6, %v1017_v11  ;;  %v1209_v48 = vmul.f32 %v1017_v11, %v1017_v11  ;;  %v1281_v21 = vmul.f32 %v1636_v54, %v1017_v11  ;;  %v2390_v54 = vpop.f32.mrf.mxu1 }
  0xe5   : > { %v1852_v49 = vpop.f32.mrf.mxu0 }
  0xe6   : > { %v1240_v30 = vadd.f32 %v1239_v45, %v1209_v48  ;;  %v1312_v12 = vadd.f32 %v1311_v59, %v1281_v21  ;;  %v1169_v43 = vadd.f32 %v1849_v60, %v1168_v10  ;;  %v1212_v19 = vmul.f32 %v1852_v49, %v1852_v49  ;;  %v2396_v10 = vpop.f32.mrf.mxu1 }
  0xe7   : > { %v1027_v41 = vpop.f32.mrf.mxu0  ;;  %v1284_v9 = vmul.f32 %v1852_v49, %v1641_v8  ;;  %v1228_v7 = vmul.f32 %v2396_v10, %v2396_v10  ;;  %v1300_v22 = vmul.f32 %v2396_v10, %v1673_v51 }
  0xe8   : > { %v1211_v1 = vmul.f32 %v1027_v41, %v1027_v41  ;;  %v1241_v26 = vadd.f32 %v1240_v30, %v1210_v44  ;;  %v1283_v16 = vmul.f32 %v1640_v3, %v1027_v41  ;;  %v1313_v34 = vadd.f32 %v1312_v12, %v1282_v27 }
  0xe9   : > { %v1170_v38 = vadd.f32 %v1169_v43, %v1027_v41  ;;  %v1855_v55 = vpop.f32.mrf.mxu0 }
  0xea   : > { %v1242_v50 = vadd.f32 %v1241_v26, %v1211_v1  ;;  %v1314_v57 = vadd.f32 %v1313_v34, %v1283_v16  ;;  %v1214_v48 = vmul.f32 %v1855_v55, %v1855_v55  ;;  %v1286_v21 = vmul.f32 %v1855_v55, %v1645_v23  ;;  %v2402_v1 = vpop.f32.mrf.mxu1 }
  0xeb   : > { %v1037_v35 = vpop.f32.mrf.mxu0  ;;  %v1171_v20 = vadd.f32 %v1852_v49, %v1170_v38 }
  0xec   : > { %v1213_v6 = vmul.f32 %v1037_v35, %v1037_v35  ;;  %v1243_v60 = vadd.f32 %v1242_v50, %v1212_v19  ;;  %v1285_v45 = vmul.f32 %v1644_v18, %v1037_v35  ;;  %v1315_v11 = vadd.f32 %v1314_v57, %v1284_v9 }
  0xed   : > { %v1172_v3 = vadd.f32 %v1171_v20, %v1037_v35  ;;  %v1858_v59 = vpop.f32.mrf.mxu0  ;;  %v2408_v35 = vpop.f32.mrf.mxu1 }
  0xee   : > { %v1244_v0 = vadd.f32 %v1243_v60, %v1213_v6  ;;  %v1316_v8 = vadd.f32 %v1315_v11, %v1285_v45  ;;  %v1216_v26 = vmul.f32 %v1858_v59, %v1858_v59  ;;  %v1288_v16 = vmul.f32 %v1858_v59, %v1649_v39 }
  0xef   : > { %v1047_v44 = vpop.f32.mrf.mxu0  ;;  %v1173_v27 = vadd.f32 %v1855_v55, %v1172_v3 }
  0xf0   : > { %v1215_v30 = vmul.f32 %v1047_v44, %v1047_v44  ;;  %v1245_v49 = vadd.f32 %v1244_v0, %v1214_v48  ;;  %v1287_v12 = vmul.f32 %v1648_v36, %v1047_v44  ;;  %v1317_v41 = vadd.f32 %v1316_v8, %v1286_v21  ;;  %v1117_v0 = vpop.f32.mrf.mxu1 }
  0xf1   : > { %v1174_v18 = vadd.f32 %v1173_v27, %v1047_v44  ;;  %v1861_v43 = vpop.f32.mrf.mxu0 }
  0xf2   : > { %v1246_v15 = vadd.f32 %v1245_v49, %v1215_v30  ;;  %v1318_v23 = vadd.f32 %v1317_v41, %v1287_v12  ;;  %v1218_v20 = vmul.f32 %v1861_v43, %v1861_v43  ;;  %v1290_v6 = vmul.f32 %v1861_v43, %v1653_v61 }
  0xf3   : > { %v1057_v34 = vpop.f32.mrf.mxu0  ;;  %v1175_v38 = vadd.f32 %v1858_v59, %v1174_v18 }
  0xf4   : > { %v1217_v19 = vmul.f32 %v1057_v34, %v1057_v34  ;;  %v1247_v55 = vadd.f32 %v1246_v15, %v1216_v26  ;;  %v1289_v9 = vmul.f32 %v1652_v58, %v1057_v34  ;;  %v1319_v50 = vadd.f32 %v1318_v23, %v1288_v16 }
  0xf5   : > { %v1176_v36 = vadd.f32 %v1175_v38, %v1057_v34  ;;  %v1864_v57 = vpop.f32.mrf.mxu0  ;;  %v1223_v38 = vmul.f32 %v2378_v32, %v2378_v32 }
  0xf6   : > { %v1248_v28 = vadd.f32 %v1247_v55, %v1217_v19  ;;  %v1320_v39 = vadd.f32 %v1319_v50, %v1289_v9  ;;  %v1220_v8 = vmul.f32 %v1864_v57, %v1864_v57  ;;  %v1292_v44 = vmul.f32 %v1864_v57, %v1657_v17 }
  0xf7   : > { %v1067_v60 = vpop.f32.mrf.mxu0  ;;  %v1177_v45 = vadd.f32 %v1861_v43, %v1176_v36  ;;  %v1295_v19 = vmul.f32 %v1664_v56, %v2378_v32  ;;  %v1224_v9 = vmul.f32 %v2374_v46, %v2374_v46  ;;  %v1297_v56 = vmul.f32 %v1668_v25, %v2390_v54 }
  0xf8   : > { %v1219_v11 = vmul.f32 %v1067_v60, %v1067_v60  ;;  %v1249_v3 = vadd.f32 %v1248_v28, %v1218_v20  ;;  %v1291_v59 = vmul.f32 %v1656_v13, %v1067_v60  ;;  %v1321_v48 = vadd.f32 %v1320_v39, %v1290_v6  ;;  %v1882_v13 = vpop.f32.mrf.mxu1 }
  0xf9   : > { %v1178_v58 = vadd.f32 %v1177_v45, %v1067_v60  ;;  %v1867_v21 = vpop.f32.mrf.mxu0  ;;  %v1227_v45 = vmul.f32 %v2402_v1, %v2402_v1  ;;  %v1299_v25 = vmul.f32 %v1672_v52, %v2402_v1 }
  0xfa   : > { %v1250_v27 = vadd.f32 %v1249_v3, %v1219_v11  ;;  %v1322_v47 = vadd.f32 %v1321_v48, %v1291_v59  ;;  %v1222_v26 = vmul.f32 %v1867_v21, %v1867_v21  ;;  %v1294_v16 = vmul.f32 %v1867_v21, %v1661_v37  ;;  %v1127_v55 = vpop.f32.mrf.mxu1 }
  0xfb   : > { %v1077_v61 = vpop.f32.mrf.mxu0  ;;  %v1179_v30 = vadd.f32 %v1864_v57, %v1178_v58  ;;  %v1225_v57 = vmul.f32 %v2390_v54, %v2390_v54 }
  0xfc   : > { %v1221_v49 = vmul.f32 %v1077_v61, %v1077_v61  ;;  %v1251_v12 = vadd.f32 %v1250_v27, %v1220_v8  ;;  %v1293_v41 = vmul.f32 %v1660_v33, %v1077_v61  ;;  %v1323_v18 = vadd.f32 %v1322_v47, %v1292_v44  ;;  %v1885_v28 = vpop.f32.mrf.mxu1 }
  0xfd   : > { %v1180_v43 = vadd.f32 %v1179_v30, %v1077_v61  ;;  %v2514_v44 = vunpack.c.l.bf16 %v2273_v62  ;;  %v1230_v61 = vmul.f32 %v2408_v35, %v2408_v35  ;;  %v2515_v30 = vunpack.c.h.bf16 %v2273_v62 }
  0xfe   : > { %v1252_v15 = vadd.f32 %v1251_v12, %v1221_v49  ;;  %v1324_v23 = vadd.f32 %v1323_v18, %v1293_v41  ;;  %v1137_v59 = vpop.f32.mrf.mxu1  ;;  %v2516_v18 = vunpack.c.l.bf16 %v2283_v29 }
  0xff   : > { %v1181_v4 = vadd.f32 %v1867_v21, %v1180_v43  ;;  %v1229_v21 = vmul.f32 %v1117_v0, %v1117_v0  ;;  %v1301_v52 = vmul.f32 %v2514_v44, %v1117_v0  ;;  %v1302_v31 = vmul.f32 %v2408_v35, %v2515_v30 }
 0x100   : > { %v1253_v17 = vadd.f32 %v1252_v15, %v1222_v26  ;;  %v1325_v34 = vadd.f32 %v1324_v23, %v1294_v16  ;;  %v1303_v43 = vmul.f32 %v2516_v18, %v1127_v55  ;;  %v1232_v15 = vmul.f32 %v1882_v13, %v1882_v13 }
 0x101   : > { %v1182_v33 = vadd.f32 %v1181_v4, %v2378_v32  ;;  %v2517_v23 = vunpack.c.h.bf16 %v2283_v29 }
 0x102   : > { %v1254_v37 = vadd.f32 %v1253_v17, %v1223_v38  ;;  %v1326_v50 = vadd.f32 %v1325_v34, %v1295_v19  ;;  %v1233_v38 = vmul.f32 %v1137_v59, %v1137_v59 }
 0x103   : > { %v1183_v36 = vadd.f32 %v2374_v46, %v1182_v33  ;;  %v1304_v4 = vmul.f32 %v1882_v13, %v2517_v23  ;;  %v2518_v33 = vunpack.c.l.bf16 %v2293_v5 }
 0x104   : > { %v1255_v20 = vadd.f32 %v1254_v37, %v1224_v9  ;;  %v1327_v32 = vadd.f32 %v1326_v50, %v1296_v24  ;;  %v1234_v50 = vmul.f32 %v1885_v28, %v1885_v28 }
 0x105   : > { %v1184_v6 = vadd.f32 %v1183_v36, %v2390_v54  ;;  %v2519_v36 = vunpack.c.h.bf16 %v2293_v5 }
 0x106   : > { %v1256_v46 = vadd.f32 %v1255_v20, %v1225_v57  ;;  %v1328_v39 = vadd.f32 %v1327_v32, %v1297_v56 }
 0x107   : > { %v1185_v60 = vadd.f32 %v2384_v53, %v1184_v6  ;;  %v2520_v6 = vunpack.c.l.bf16 %v2303_v42 }
 0x108   : > { %v1257_v11 = vadd.f32 %v1256_v46, %v1226_v40  ;;  %v1329_v54 = vadd.f32 %v1328_v39, %v1298_v63 }
 0x109   : > { %v1186_v3 = vadd.f32 %v1185_v60, %v2402_v1  ;;  %v1888_v1 = vpop.f32.mrf.mxu1  ;;  %v2521_v60 = vunpack.c.h.bf16 %v2303_v42 }
 0x10a   : > { %v1258_v53 = vadd.f32 %v1257_v11, %v1227_v45  ;;  %v1330_v48 = vadd.f32 %v1329_v54, %v1299_v25  ;;  %v1236_v39 = vmul.f32 %v1888_v1, %v1888_v1 }
 0x10b   : > { %v1187_v58 = vadd.f32 %v2396_v10, %v1186_v3  ;;  %v1231_v10 = vmul.f32 %v1127_v55, %v1127_v55  ;;  %v1308_v45 = vmul.f32 %v1888_v1, %v2521_v60 }
 0x10c   : > { %v1259_v8 = vadd.f32 %v1258_v53, %v1228_v7  ;;  %v1331_v27 = vadd.f32 %v1330_v48, %v1300_v22  ;;  %v2522_v53 = vunpack.c.h.bf16 %v2313_v14 }
 0x10d   : > { %v1188_v47 = vadd.f32 %v1187_v58, %v1117_v0  ;;  %v1147_v0 = vpop.f32.mrf.mxu1 }
 0x10e   : > { %v1260_v51 = vadd.f32 %v1259_v8, %v1229_v21  ;;  %v1332_v49 = vadd.f32 %v1331_v27, %v1301_v52  ;;  %v1235_v29 = vmul.f32 %v1147_v0, %v1147_v0 }
 0x10f   : > { %v1189_v12 = vadd.f32 %v2408_v35, %v1188_v47  ;;  %v1305_v35 = vmul.f32 %v2518_v33, %v1137_v59  ;;  %v1891_v37 = vpop.f32.mrf.mxu1 }
 0x110   : > { %v1261_v41 = vadd.f32 %v1260_v51, %v1230_v61  ;;  %v1333_v26 = vadd.f32 %v1332_v49, %v1302_v31  ;;  %v1238_v22 = vmul.f32 %v1891_v37, %v1891_v37  ;;  %v1310_v48 = vmul.f32 %v1891_v37, %v2522_v53 }
 0x111   : > { %v1190_v16 = vadd.f32 %v1189_v12, %v1127_v55  ;;  %v1306_v55 = vmul.f32 %v1885_v28, %v2519_v36  ;;  %v1157_v46 = vpop.f32.mrf.mxu1 }
 0x112   : > { %v1262_v17 = vadd.f32 %v1261_v41, %v1231_v10  ;;  %v1334_v62 = vadd.f32 %v1333_v26, %v1303_v43  ;;  %v1237_v5 = vmul.f32 %v1157_v46, %v1157_v46  ;;  %v1166_v41 = vld [vmem:[%s2343_s14] sm:$0x1] }
 0x113   : > { %v1191_v34 = vadd.f32 %v1882_v13, %v1190_v16  ;;  %v1307_v13 = vmul.f32 %v2520_v6, %v1147_v0  ;;  %v1206_v16 = vld [vmem:[%s2349_s17] sm:$0x1] }
 0x114   : > { %v1263_v19 = vadd.f32 %v1262_v17, %v1232_v15  ;;  %v1335_v9 = vadd.f32 %v1334_v62, %v1304_v4 }
 0x115   : > { %v1192_v24 = vadd.f32 %v1191_v34, %v1137_v59 }
 0x116   : > { %v1264_v57 = vadd.f32 %v1263_v19, %v1233_v38  ;;  %v1336_v20 = vadd.f32 %v1335_v9, %v1305_v35 }
 0x117   : > { %v1193_v56 = vadd.f32 %v1885_v28, %v1192_v24  ;;  %v1309_v28 = vmul.f32 %v1692_v2, %v1157_v46 }
 0x118   : > { %v1265_v32 = vadd.f32 %v1264_v57, %v1234_v50  ;;  %v1337_v40 = vadd.f32 %v1336_v20, %v1306_v55 }
 0x119   : > { %v1194_v63 = vadd.f32 %v1193_v56, %v1147_v0  ;;  %v1278_v0 = vld [vmem:[%s2355_s20] sm:$0x1] }
 0x11a   : > { %v1266_v11 = vadd.f32 %v1265_v32, %v1235_v29  ;;  %v1338_v25 = vadd.f32 %v1337_v40, %v1307_v13 }
 0x11b   : > { %v1195_v54 = vadd.f32 %v1888_v1, %v1194_v63 }
 0x11c   : > { %v1267_v3 = vadd.f32 %v1266_v11, %v1236_v39  ;;  %v1339_v59 = vadd.f32 %v1338_v25, %v1308_v45 }
 0x11d   : > { %v1196_v7 = vadd.f32 %v1195_v54, %v1157_v46 }
 0x11e   : > { %v1268_v58 = vadd.f32 %v1267_v3, %v1237_v5  ;;  %v1340_v21 = vadd.f32 %v1339_v59, %v1309_v28 }
 0x11f   : > { %v1197_v8 = vadd.f32 %v1891_v37, %v1196_v7 }
 0x120   : > { %v1269_v42 = vadd.f32 %v1268_v58, %v1238_v22  ;;  %v1341_v44 = vadd.f32 %v1340_v21, %v1310_v48 }
 0x121   : > { %v1198_v52 = vrot.slane %v1197_v8, 4 }
 0x122   : > { %v1270_v27 = vrot.slane %v1269_v42, 4  ;;  %v1342_v47 = vrot.slane %v1341_v44, 4 }
 0x123   : > { %v1199_v1 = vadd.f32 %v1198_v52, %v1197_v8 }
 0x124   : > { %v1271_v61 = vadd.f32 %v1270_v27, %v1269_v42  ;;  %v1343_v2 = vadd.f32 %v1342_v47, %v1341_v44 }
 0x125   : > { %v1200_v30 = vrot.slane %v1199_v1, 2 }
 0x126   : > { %v1272_v31 = vrot.slane %v1271_v61, 2  ;;  %v1344_v51 = vrot.slane %v1343_v2, 2 }
 0x127   : > { %v1201_v14 = vadd.f32 %v1200_v30, %v1199_v1 }
 0x128   : > { %v1273_v49 = vadd.f32 %v1272_v31, %v1271_v61  ;;  %v1345_v12 = vadd.f32 %v1344_v51, %v1343_v2 }
 0x129   : > { %v1202_v10 = vrot.slane %v1201_v14, 1 }
 0x12a   : > { %v1274_v18 = vrot.slane %v1273_v49, 1  ;;  %v1346_v43 = vrot.slane %v1345_v12, 1 }
 0x12b   : > { %v1203_v26 = vadd.f32 %v1202_v10, %v1201_v14 }
 0x12c   : > { %v1275_v15 = vadd.f32 %v1274_v18, %v1273_v49  ;;  %v1347_v23 = vadd.f32 %v1346_v43, %v1345_v12 }
 0x12d   : > { %v1204_v4 = vadd.f32 %v1203_v26, %v1166_v41 }
 0x12e   : > { %v1276_v17 = vadd.f32 %v1275_v15, %v1206_v16  ;;  %v1348_v62 = vadd.f32 %v1347_v23, %v1278_v0 }
 0x12f   : > { %1205 = vst [vmem:[%s2343_s14] sm:$0x1] %v1204_v4 }
 0x130   : > { %1277 = vst [vmem:[%s2349_s17] sm:$0x1] %v1276_v17  ;;  %1349 = vst [vmem:[%s2355_s20] sm:$0x1] %v1348_v62 }
 0x131 PF: > { %s20_s11 = sadd.s32 1, %s1950_s11   ;;  %s2523_s30 = smov %s1946_s10 }
 0x132   : > { %p17_p5 = scmp.ge.s32.totalorder %s20_s11, 4   ;;  %s2524_s10 = smov %s2526_s12 }
 0x134   :  { %19 = sbr.rel (!%p17_p5) target bundleno = 2 (0x2), region = 139 }

// kernel: _lambda_.11
= control target key start
LH: loop header
LB: loop body
LE: loop exit
PB: predicated region body
PF: predicated region fallthrough
CT: control target
= control target key end

     0   :  { %s3379_s30 = smov 0   ;;  %s3381_s10 = smov 0   ;;  %s4305_s0 = inlined_call_operand.vmem [shape: bf16[2,256,128], index: 0, kind: input, shape index: {}]   ;;  %s4306_s1 = inlined_call_operand.vmem [shape: f32[2,1,128], index: 1, kind: input, shape index: {}]   ;;  %s4307_s2 = inlined_call_operand.vmem [shape: bf16[2,256,128], index: 2, kind: input, shape index: {}]   ;;  %s4308_s3 = inlined_call_operand.vmem [shape: bf16[2,36,128], index: 3, kind: input, shape index: {}]   ;;  %s4309_s4 = inlined_call_operand.vmem [shape: f32[256,36], index: 4, kind: input, shape index: {}]   ;;  %s4310_s5 = inlined_call_operand.vmem [shape: f32[3,128], index: 5, kind: input, shape index: {}]   ;;  %s4311_s6 = inlined_call_operand.vmem [shape: f32[3,128], index: 6, kind: input, shape index: {}]   ;;  %s4312_s7 = inlined_call_operand.vmem [shape: bf16[3,128,128], index: 7, kind: input, shape index: {}]   ;;  %s4313_s8 = inlined_call_operand.vmem [shape: bf16[2,256,128], index: 8, kind: output, shape index: {0}]   ;;  %s4314_s9 = inlined_call_operand.vmem [shape: f32[2,1,128], index: 9, kind: output, shape index: {1}]  }
   0x1   :  { %s3383_s11 = smov 0  }
   0x2 LB: > { %s32_s12 = sadd.s32 1, %s3322_s10  ;;  %p2492_p0 = scmp.ge.s32.totalorder %s3326_s11, 1  ;;  %s3326_s11 = sphi %s3383_s11, %s20_s11   ;;  %s3322_s10 = sphi %s3381_s10, %s4338_s10   ;;  %s3318_s30 = sphi %s3379_s30, %s4337_s30  }
   0x3   : > { %p34_p1 = scmp.ge.s32.totalorder %s32_s12, 2  ;;  %p357_p2 = scmp.lt.s32.totalorder %s3326_s11, 3 }
   0x5   : > { %s4340_s12 = smov (%p34_p1, %s32_s12), 0  ;;  %p358_p3 = pnand %p2492_p0, %p357_p2 }
   0x7   : > { %361 = sbr.rel (%p358_p3) target bundleno = 574 (0x23e), region = 52 }
   0xc   : > { %p427_p4 = scmp.lt.s32.totalorder %s3318_s30, 1  ;;  %v777_v0 = vld [vmem:[%s4309_s4] sm:$0xff]  ;;  %vm819_vm0 = vcmask 293888   ;;  %vm916_vm1 = vcmask 1043456   ;;  %v3280_v9 = vld [vmem:[%s4312_s7 + $0x38] sm:$0xff]   ;;  %v778_v10 = vld [vmem:[%s4309_s4 + $0x8] sm:$0xff] }
   0xd   : > { %3046 = vmatprep.mubr.msk.f32.mxu0 %vm819_vm0, %v777_v0  ;;  %v779_v11 = vld [vmem:[%s4309_s4 + $0x10] sm:$0xff]  ;;  %v780_v13 = vld [vmem:[%s4309_s4 + $0x18] sm:$0xff]  ;;  %v781_v14 = vld [vmem:[%s4309_s4 + $0x20] sm:$0xff] }
   0xe   : > { %s4342_s30 = smov (!%p427_p4, %s3318_s30), 1  ;;  %v3281_v12 = vld [vmem:[%s4312_s7 + $0x30] sm:$0xff]   ;;  %v3282_v15 = vld [vmem:[%s4312_s7 + $0x28] sm:$0xff]   ;;  %v3288_v16 = vld [vmem:[%s4312_s7 + $0x78] sm:$0xff]  }
   0xf   : > { %s3254_s15 = smul.u32 20, %s4342_s30  ;;  %v782_v17 = vld [vmem:[%s4309_s4 + $0x28] sm:$0xff]  ;;  %v783_v18 = vld [vmem:[%s4309_s4 + $0x30] sm:$0xff]  ;;  %v3283_v19 = vld [vmem:[%s4312_s7 + $0x20] sm:$0xff]   ;;  %3094 = vmatprep.subr.bf16.mxu1 %v3288_v16  ;;  %s3499_s20 = sshll.u32 %s4342_s30, 7 }
  0x10   : > { %v3290_v20 = vld [vmem:[%s4312_s7 + $0x70] sm:$0xff]   ;;  %v784_v21 = vld [vmem:[%s4309_s4 + $0x38] sm:$0xff]  ;;  %3095 = vmatpush3.bf16.msra.mxu1 %v3288_v16  ;;  %v785_v22 = vld [vmem:[%s4309_s4 + $0x40] sm:$0xff]  ;;  %s3517_s29 = scalar_lea.vmem %s4305_s0, %s3499_s20  ;;  %s4186_s28 = scalar_lea.vmem %s4314_s9, %s4342_s30 }
  0x11   : > { %s453_s18 = scalar_lea.vmem %s4308_s3, %s3254_s15  ;;  %v3284_v23 = vld [vmem:[%s4312_s7 + $0x18] sm:$0xff]   ;;  %3096 = vmatprep.subr.bf16.mxu1 %v3290_v20  ;;  %v3292_v24 = vld [vmem:[%s4312_s7 + $0x68] sm:$0xff]   ;;  %v787_v26 = vld [vmem:[%s4309_s4 + $0x50] sm:$0xff]  ;;  %s3523_s15 = scalar_lea.vmem %s4307_s2, %s3499_s20 }
  0x12   : > { %v813_v1 = vld [vmem:[%s453_s18 + $0x10] sm:$0x3]  ;;  %v2911_v2 = vld [vmem:[%s453_s18 + $0x8] sm:$0xff]   ;;  %v2794_v5 = vld [vmem:[%s453_s18] sm:$0xff]   ;;  %s438_s18 = scalar_lea.vmem %s4306_s1, %s4342_s30  ;;  %s4197_s14 = scalar_lea.vmem %s4313_s8, %s3499_s20 }
  0x13   : > { %v818_v3 = vunpack.c.l.bf16 %v813_v1  ;;  %v2800_v4 = vunpack.c.h.bf16 %v2911_v2  ;;  %v2799_v6 = vunpack.c.l.bf16 %v2911_v2  ;;  %v2796_v7 = vunpack.c.h.bf16 %v2794_v5  ;;  %v786_v25 = vld [vmem:[%s4309_s4 + $0x48] sm:$0xff]  ;;  %v3285_v27 = vld [vmem:[%s4312_s7 + $0x10] sm:$0xff]   ;;  %v3294_v28 = vld [vmem:[%s4312_s7 + $0x60] sm:$0xff]  }
  0x14   : > { %v2795_v8 = vunpack.c.l.bf16 %v2794_v5  ;;  %3097 = vmatpush3.bf16.msra.mxu1 %v3290_v20  ;;  %v788_v29 = vld [vmem:[%s4309_s4 + $0x58] sm:$0xff]  ;;  %v789_v30 = vld [vmem:[%s4309_s4 + $0x60] sm:$0xff]  ;;  %v3286_v31 = vld [vmem:[%s4312_s7 + $0x8] sm:$0xff]  }
  0x15   : > { %3036 = vmatprep.subr.msk.mxu0 %vm916_vm1, %v818_v3  ;;  %3098 = vmatprep.subr.bf16.mxu1 %v3292_v24  ;;  %v790_v32 = vld [vmem:[%s4309_s4 + $0x68] sm:$0xff]  ;;  %v791_v33 = vld [vmem:[%s4309_s4 + $0x70] sm:$0xff]  ;;  %v3287_v34 = vld [vmem:[%s4312_s7] sm:$0xff]  }
  0x16   : > { %3037 = vmatpush3.msk.msra.mxu0 %vm916_vm1, %v818_v3  ;;  %v792_v35 = vld [vmem:[%s4309_s4 + $0x78] sm:$0xff]  ;;  %v793_v36 = vld [vmem:[%s4309_s4 + $0x80] sm:$0xff]  ;;  %v794_v38 = vld [vmem:[%s4309_s4 + $0x88] sm:$0xff] }
  0x17   : > { %3038 = vmatprep.subr.mxu0 %v2800_v4  ;;  %v3511_v37 = vld [vmem:[%s4312_s7 + $0xb8] sm:$0xff]   ;;  %v795_v39 = vld [vmem:[%s4309_s4 + $0x90] sm:$0xff]  ;;  %v2666_v40 = vld [vmem:[%s3517_s29] sm:$0xff]  }
  0x18   : > { %3039 = vmatpush3.msra.mxu0 %v2800_v4  ;;  %3099 = vmatpush3.bf16.msra.mxu1 %v3292_v24  ;;  %v2730_v41 = vld [vmem:[%s3523_s15] sm:$0xff]   ;;  %v2881_v42 = vld [vmem:[%s3517_s29 + $0x8] sm:$0xff]   ;;  %v796_v44 = vld [vmem:[%s4309_s4 + $0x98] sm:$0xff]  ;;  %v3546_v46 = vunpack.c.l.bf16 %v2666_v40  ;;  %v3548_v47 = vunpack.c.h.bf16 %v2666_v40 }
  0x19   : > { %3040 = vmatprep.subr.mxu0 %v2799_v6  ;;  %3100 = vmatprep.subr.bf16.mxu1 %v3294_v28  ;;  %v2896_v43 = vld [vmem:[%s3523_s15 + $0x8] sm:$0xff]   ;;  %v797_v45 = vld [vmem:[%s4309_s4 + $0xa0] sm:$0xff]  ;;  %v2731_v48 = vunpack.c.l.bf16 %v2730_v41  ;;  %v2732_v49 = vunpack.c.h.bf16 %v2730_v41  ;;  %v3550_v50 = vunpack.c.l.bf16 %v2881_v42  ;;  %v3552_v51 = vunpack.c.h.bf16 %v2881_v42  ;;  %v2882_v54 = vld [vmem:[%s3517_s29 + $0x10] sm:$0xff]  }
  0x1a   : > { %3041 = vmatpush3.msra.mxu0 %v2799_v6  ;;  %v2735_v52 = vunpack.c.l.bf16 %v2896_v43  ;;  %v2736_v53 = vunpack.c.h.bf16 %v2896_v43  ;;  %v2897_v55 = vld [vmem:[%s3523_s15 + $0x10] sm:$0xff]   ;;  %v798_v56 = vld [vmem:[%s4309_s4 + $0xa8] sm:$0xff]  ;;  %v3569_v60 = vld [vmem:[%s4310_s5] ss:$0 sm:$0xff]  ;;  %v3573_v63 = vunpack.c.l.bf16 %v2882_v54  ;;  %v3580_v2 = vunpack.c.h.bf16 %v2882_v54 }
  0x1b   : > { %3042 = vmatprep.subr.mxu0 %v2796_v7  ;;  %v799_v57 = vld [vmem:[%s4309_s4 + $0xb0] sm:$0xff]  ;;  %v607_v58 = vadd.f32 %v2731_v48, %v3546_v46  ;;  %v608_v59 = vadd.f32 %v2732_v49, %v3548_v47  ;;  %v2739_v0 = vunpack.c.l.bf16 %v2897_v55  ;;  %v800_v1 = vld [vmem:[%s4309_s4 + $0xb8] sm:$0xff]  ;;  %v2740_v3 = vunpack.c.h.bf16 %v2897_v55  ;;  %v801_v4 = vld [vmem:[%s4309_s4 + $0xc0] sm:$0xff] }
  0x1c   : > { %3043 = vmatpush3.msra.mxu0 %v2796_v7  ;;  %3101 = vmatpush3.bf16.msra.mxu1 %v3294_v28  ;;  %v609_v61 = vadd.f32 %v2735_v52, %v3550_v50  ;;  %v610_v62 = vadd.f32 %v2736_v53, %v3552_v51  ;;  %v2883_v7 = vld [vmem:[%s3517_s29 + $0x18] sm:$0xff]   ;;  %v806_v54 = vld [vmem:[%s4309_s4 + $0xe8] sm:$0xff] }
  0x1d   : > { %3044 = vmatprep.subr.mxu0 %v2795_v8  ;;  %v644_v5 = vmul.f32 %v3569_v60, %v607_v58  ;;  %v645_v6 = vmul.f32 %v3569_v60, %v608_v59  ;;  %v807_v59 = vld [vmem:[%s4309_s4 + $0xf0] sm:$0xff] }
  0x1e   : > { %3045 = vmatpush3.msra.mxu0 %v2795_v8  ;;  %v2898_v8 = vld [vmem:[%s3523_s15 + $0x18] sm:$0xff]  }
  0x1f   : > { %3047 = vmatmul.mubr.msk.f32.vlgmr.msra.gmra.mxu0 %vm819_vm0, %v778_v10  ;;  %3142 = vmatprep.subr.bf16.mxu0 %v3280_v9  ;;  %v646_v10 = vmul.f32 %v3569_v60, %v609_v61  ;;  %v2743_v16 = vunpack.c.l.bf16 %v2898_v8 }
  0x20   : > { %3049 = vmatprep.mubr.msk.f32.mxu0 %vm819_vm0, %v779_v11  ;;  %3143 = vmatpush3.bf16.msra.mxu0 %v3280_v9  ;;  %v3592_v9 = vld [vmem:[%s4311_s6] ss:$0 sm:$0xff]  ;;  %v647_v11 = vmul.f32 %v3569_v60, %v610_v62 }
  0x21   : > { %3144 = vmatprep.subr.bf16.mxu0 %v3281_v12  ;;  %v681_v20 = vadd.f32 %v3592_v9, %v644_v5 }
  0x22   : > { %v684_v24 = vadd.f32 %v3592_v9, %v647_v11 }
  0x23   : > { %3050 = vmatmul.mubr.msk.f32.gmra.mxu0 %vm819_vm0, %v780_v13  ;;  %v802_v13 = vld [vmem:[%s4309_s4 + $0xc8] sm:$0xff] }
  0x24   : > { %3052 = vmatprep.mubr.msk.f32.mxu0 %vm819_vm0, %v781_v14  ;;  %3145 = vmatpush3.bf16.msra.mxu0 %v3281_v12  ;;  %v611_v12 = vadd.f32 %v2739_v0, %v3573_v63  ;;  %v612_v14 = vadd.f32 %v2740_v3, %v3580_v2  ;;  %v716_v41 = vmax.f32 %v684_v24, 0.0 }
  0x25   : > { %3146 = vmatprep.subr.bf16.mxu0 %v3282_v15 }
  0x27   : > { %3053 = vmatmul.mubr.msk.f32.gmra.mxu0 %vm819_vm0, %v782_v17  ;;  %v2884_v17 = vld [vmem:[%s3517_s29 + $0x20] sm:$0xff]  }
  0x28   : > { %3055 = vmatprep.mubr.msk.f32.mxu0 %vm819_vm0, %v783_v18  ;;  %3147 = vmatpush3.bf16.msra.mxu0 %v3282_v15  ;;  %v3603_v15 = vunpack.c.l.bf16 %v2883_v7  ;;  %v2899_v18 = vld [vmem:[%s3523_s15 + $0x20] sm:$0xff]   ;;  %v3620_v28 = vunpack.c.h.bf16 %v2884_v17 }
  0x29   : > { %3148 = vmatprep.subr.bf16.mxu0 %v3283_v19 }
  0x2b   : > { %3056 = vmatmul.mubr.msk.f32.gmra.mxu0 %vm819_vm0, %v784_v21  ;;  %v682_v21 = vadd.f32 %v3592_v9, %v645_v6 }
  0x2c   : > { %3058 = vmatprep.mubr.msk.f32.mxu0 %vm819_vm0, %v785_v22  ;;  %3149 = vmatpush3.bf16.msra.mxu0 %v3283_v19  ;;  %v803_v19 = vld [vmem:[%s4309_s4 + $0xd0] sm:$0xff]  ;;  %v3612_v22 = vunpack.c.h.bf16 %v2883_v7  ;;  %v2887_v7 = vld [vmem:[%s3517_s29 + $0x38] sm:$0xff]  }
  0x2d   : > { %3150 = vmatprep.subr.bf16.mxu0 %v3284_v23 }
  0x2f   : > { %3059 = vmatmul.mubr.msk.f32.gmra.mxu0 %vm819_vm0, %v786_v25  ;;  %v648_v25 = vmul.f32 %v3569_v60, %v611_v12 }
  0x30   : > { %3061 = vmatprep.mubr.msk.f32.mxu0 %vm819_vm0, %v787_v26  ;;  %3151 = vmatpush3.bf16.msra.mxu0 %v3284_v23  ;;  %v683_v23 = vadd.f32 %v3592_v9, %v646_v10  ;;  %v2744_v26 = vunpack.c.h.bf16 %v2898_v8  ;;  %v2902_v8 = vld [vmem:[%s3523_s15 + $0x38] sm:$0xff]  }
  0x31   : > { %3152 = vmatprep.subr.bf16.mxu0 %v3285_v27  ;;  %v685_v42 = vadd.f32 %v3592_v9, %v648_v25  ;;  %v808_v10 = vld [vmem:[%s4309_s4 + $0xf8] sm:$0xff]  ;;  %v2760_v24 = vunpack.c.h.bf16 %v2902_v8 }
  0x32   : > { %v715_v40 = vmax.f32 %v683_v23, 0.0  ;;  %v614_v43 = vadd.f32 %v2744_v26, %v3612_v22  ;;  %v2759_v23 = vunpack.c.l.bf16 %v2902_v8 }
  0x33   : > { %3062 = vmatmul.mubr.msk.f32.gmra.mxu0 %vm819_vm0, %v788_v29  ;;  %v2747_v29 = vunpack.c.l.bf16 %v2899_v18 }
  0x34   : > { %3064 = vmatprep.mubr.msk.f32.mxu0 %vm819_vm0, %v789_v30  ;;  %3153 = vmatpush3.bf16.msra.mxu0 %v3285_v27  ;;  %v3618_v27 = vunpack.c.l.bf16 %v2884_v17  ;;  %v2748_v30 = vunpack.c.h.bf16 %v2899_v18  ;;  %v651_v3 = vmul.f32 %v3569_v60, %v614_v43  ;;  %v746_v12 = vpack.c.bf16 %v716_v41, %v715_v40 }
  0x35   : > { %3154 = vmatprep.subr.bf16.mxu0 %v3286_v31 }
  0x36   : > { %v615_v48 = vadd.f32 %v2747_v29, %v3618_v27  ;;  %v616_v49 = vadd.f32 %v2748_v30, %v3620_v28  ;;  %v688_v25 = vadd.f32 %v3592_v9, %v651_v3  ;;  %v3711_v3 = vld [vmem:[%s4312_s7 + $0xa8] sm:$0xff]  }
  0x37   : > { %3065 = vmatmul.mubr.msk.f32.gmra.mxu0 %vm819_vm0, %v790_v32  ;;  %v649_v32 = vmul.f32 %v3569_v60, %v612_v14 }
  0x38   : > { %3067 = vmatprep.mubr.msk.f32.mxu0 %vm819_vm0, %v791_v33  ;;  %3155 = vmatpush3.bf16.msra.mxu0 %v3286_v31  ;;  %v804_v31 = vld [vmem:[%s4309_s4 + $0xd8] sm:$0xff]  ;;  %v613_v33 = vadd.f32 %v2743_v16, %v3603_v15  ;;  %v653_v5 = vmul.f32 %v3569_v60, %v616_v49  ;;  %v720_v43 = vmax.f32 %v688_v25, 0.0 }
  0x39   : > { %3156 = vmatprep.subr.bf16.mxu0 %v3287_v34  ;;  %v686_v55 = vadd.f32 %v3592_v9, %v649_v32 }
  0x3a   : > { %v690_v29 = vadd.f32 %v3592_v9, %v653_v5 }
  0x3b   : > { %3068 = vmatmul.mubr.msk.f32.gmra.mxu0 %vm819_vm0, %v792_v35  ;;  %v2900_v35 = vld [vmem:[%s3523_s15 + $0x28] sm:$0xff]   ;;  %v718_v14 = vmax.f32 %v686_v55, 0.0 }
  0x3c   : > { %3070 = vmatprep.mubr.msk.f32.mxu0 %vm819_vm0, %v793_v36  ;;  %3157 = vmatpush3.bf16.msra.mxu0 %v3287_v34  ;;  %v2885_v34 = vld [vmem:[%s3517_s29 + $0x28] sm:$0xff]   ;;  %v805_v36 = vld [vmem:[%s4309_s4 + $0xe0] sm:$0xff]  ;;  %v2751_v53 = vunpack.c.l.bf16 %v2900_v35  ;;  %v2752_v58 = vunpack.c.h.bf16 %v2900_v35 }
  0x3d   : > { %3190 = vmatprep.subr.bf16.mxu0 %v3511_v37  ;;  %v3640_v52 = vunpack.c.l.bf16 %v2885_v34  ;;  %v2888_v35 = vld [vmem:[%s3517_s29 + $0x40] sm:$0xff]  }
  0x3e   : > { %v3697_v49 = vunpack.c.l.bf16 %v2888_v35 }
  0x3f   : > { %3071 = vmatmul.mubr.msk.f32.gmra.mxu0 %vm819_vm0, %v794_v38  ;;  %v713_v38 = vmax.f32 %v681_v20, 0.0  ;;  %v617_v6 = vadd.f32 %v2751_v53, %v3640_v52  ;;  %v3672_v20 = vunpack.c.l.bf16 %v2887_v7  ;;  %v3699_v53 = vunpack.c.h.bf16 %v2888_v35 }
  0x40   : > { %3073 = vmatprep.mubr.msk.f32.mxu0 %vm819_vm0, %v795_v39  ;;  %v714_v39 = vmax.f32 %v682_v21, 0.0  ;;  %v3674_v21 = vunpack.c.h.bf16 %v2887_v7 }
  0x41   : > { %v654_v30 = vmul.f32 %v3569_v60, %v617_v6  ;;  %v621_v40 = vadd.f32 %v2759_v23, %v3672_v20  ;;  %v3298_v6 = vld [vmem:[%s4312_s7 + $0x50] sm:$0xff]  }
  0x42   : > { %v745_v11 = vpack.c.bf16 %v714_v39, %v713_v38  ;;  %v3689_v38 = vld [vmem:[%s4312_s7 + $0xb0] sm:$0xff]   ;;  %v622_v41 = vadd.f32 %v2760_v24, %v3674_v21  ;;  %v3729_v24 = vld [vmem:[%s4312_s7 + $0xa0] sm:$0xff]  }
  0x43   : > { %3074 = vmatmul.mubr.msk.f32.gmra.mxu0 %vm819_vm0, %v796_v44  ;;  %v2886_v44 = vld [vmem:[%s3517_s29 + $0x30] sm:$0xff]  }
  0x44   : > { %3076 = vmatprep.mubr.msk.f32.mxu0 %vm819_vm0, %v797_v45  ;;  %v2901_v45 = vld [vmem:[%s3523_s15 + $0x30] sm:$0xff]   ;;  %v3653_v61 = vunpack.c.l.bf16 %v2886_v44  ;;  %v3655_v62 = vunpack.c.h.bf16 %v2886_v44  ;;  %v659_v5 = vmul.f32 %v3569_v60, %v622_v41  ;;  %v3750_v41 = vld [vmem:[%s4312_s7 + $0x98] sm:$0xff]  }
  0x45   : > { %v2755_v0 = vunpack.c.l.bf16 %v2901_v45 }
  0x47   : > { %3077 = vmatmul.mubr.msk.f32.gmra.mxu0 %vm819_vm0, %v798_v56  ;;  %v650_v56 = vmul.f32 %v3569_v60, %v613_v33  ;;  %v619_v18 = vadd.f32 %v2755_v0, %v3653_v61  ;;  %v2889_v0 = vld [vmem:[%s3517_s29 + $0x48] sm:$0xff]  }
  0x48   : > { %3079 = vmatprep.mubr.msk.f32.mxu0 %vm819_vm0, %v799_v57  ;;  %v3648_v57 = vunpack.c.h.bf16 %v2885_v34 }
  0x49   : > { %v687_v16 = vadd.f32 %v3592_v9, %v650_v56  ;;  %v656_v33 = vmul.f32 %v3569_v60, %v619_v18 }
  0x4a   : > { %v618_v17 = vadd.f32 %v2752_v58, %v3648_v57 }
  0x4b   : > { %3080 = vmatmul.mubr.msk.f32.gmra.mxu0 %vm819_vm0, %v800_v1  ;;  %v2756_v1 = vunpack.c.h.bf16 %v2901_v45  ;;  %v719_v39 = vmax.f32 %v687_v16, 0.0  ;;  %v722_v45 = vmax.f32 %v690_v29, 0.0  ;;  %v693_v58 = vadd.f32 %v3592_v9, %v656_v33  ;;  %v2905_v16 = vld [vmem:[%s3523_s15 + $0x50] sm:$0xff]  }
  0x4c   : > { %3082 = vmatprep.mubr.msk.f32.mxu0 %vm819_vm0, %v801_v4  ;;  %v652_v4 = vmul.f32 %v3569_v60, %v615_v48  ;;  %v655_v32 = vmul.f32 %v3569_v60, %v618_v17  ;;  %v691_v48 = vadd.f32 %v3592_v9, %v654_v30  ;;  %v3733_v29 = vunpack.c.h.bf16 %v2889_v0 }
  0x4d   : > { %v748_v7 = vpack.c.bf16 %v720_v43, %v719_v39  ;;  %v2772_v35 = vunpack.c.h.bf16 %v2905_v16 }
  0x4e   : > { %v689_v26 = vadd.f32 %v3592_v9, %v652_v4  ;;  %v692_v56 = vadd.f32 %v3592_v9, %v655_v32  ;;  %v658_v4 = vmul.f32 %v3569_v60, %v621_v40  ;;  %v723_v17 = vmax.f32 %v691_v48, 0.0  ;;  %v3302_v48 = vld [vmem:[%s4312_s7 + $0x40] sm:$0xff]  }
  0x4f   : > { %3083 = vmatmul.mubr.msk.f32.gmra.mxu0 %vm819_vm0, %v802_v13  ;;  %v717_v13 = vmax.f32 %v685_v42, 0.0  ;;  %v3296_v42 = vld [vmem:[%s4312_s7 + $0x58] sm:$0xff]  }
  0x50   : > { %3085 = vmatprep.mubr.msk.f32.mxu0 %vm819_vm0, %v803_v19  ;;  %v620_v19 = vadd.f32 %v2756_v1, %v3655_v62  ;;  %v721_v44 = vmax.f32 %v689_v26, 0.0  ;;  %v2904_v1 = vld [vmem:[%s3523_s15 + $0x48] sm:$0xff]   ;;  %3102 = vmatprep.subr.bf16.mxu1 %v3296_v42  ;;  %v724_v18 = vmax.f32 %v692_v56, 0.0  ;;  %v695_v25 = vadd.f32 %v3592_v9, %v658_v4 }
  0x51   : > { %3103 = vmatpush3.bf16.msra.mxu1 %v3296_v42  ;;  %v696_v26 = vadd.f32 %v3592_v9, %v659_v5  ;;  %v2768_v30 = vunpack.c.h.bf16 %v2904_v1 }
  0x52   : > { %v657_v34 = vmul.f32 %v3569_v60, %v620_v19  ;;  %v749_v8 = vpack.c.bf16 %v722_v45, %v721_v44  ;;  %3104 = vmatprep.subr.bf16.mxu1 %v3298_v6  ;;  %v725_v19 = vmax.f32 %v693_v58, 0.0  ;;  %v750_v42 = vpack.c.bf16 %v724_v18, %v723_v17  ;;  %v2891_v44 = vld [vmem:[%s3517_s29 + $0x58] sm:$0xff]  }
  0x53   : > { %3086 = vmatmul.mubr.msk.f32.gmra.mxu0 %vm819_vm0, %v804_v31  ;;  %v747_v31 = vpack.c.bf16 %v718_v14, %v717_v13  ;;  %v2767_v13 = vunpack.c.l.bf16 %v2904_v1  ;;  %v2890_v14 = vld [vmem:[%s3517_s29 + $0x50] sm:$0xff]   ;;  %v2906_v45 = vld [vmem:[%s3523_s15 + $0x58] sm:$0xff]   ;;  %v728_v1 = vmax.f32 %v696_v26, 0.0 }
  0x54   : > { %3088 = vmatprep.mubr.msk.f32.mxu0 %vm819_vm0, %v805_v36  ;;  %v2903_v36 = vld [vmem:[%s3523_s15 + $0x40] sm:$0xff]   ;;  %v3738_v32 = vunpack.c.l.bf16 %v2890_v14  ;;  %v3740_v33 = vunpack.c.h.bf16 %v2890_v14 }
  0x55   : > { %v2764_v55 = vunpack.c.h.bf16 %v2903_v36  ;;  %3105 = vmatpush3.bf16.msra.mxu1 %v3298_v6 }
  0x56   : > { %v628_v58 = vadd.f32 %v2772_v35, %v3740_v33  ;;  %v3791_v35 = vld [vmem:[%s4312_s7 + $0x88] sm:$0xff]  }
  0x57   : > { %3089 = vmatmul.mubr.msk.f32.gmra.mxu0 %vm819_vm0, %v806_v54  ;;  %v2763_v54 = vunpack.c.l.bf16 %v2903_v36 }
  0x58   : > { %3091 = vmatprep.mubr.msk.f32.mxu0 %vm819_vm0, %v807_v59  ;;  %v694_v59 = vadd.f32 %v3592_v9, %v657_v34  ;;  %v2771_v34 = vunpack.c.l.bf16 %v2905_v16 }
  0x5a   : > { %v726_v23 = vmax.f32 %v694_v59, 0.0  ;;  %v627_v56 = vadd.f32 %v2771_v34, %v3738_v32  ;;  %v2892_v59 = vld [vmem:[%s3517_s29 + $0x60] sm:$0xff]  }
  0x5b   : > { %3092 = vmatmul.mubr.msk.f32.gmra.mxu0 %vm819_vm0, %v808_v10  ;;  %v623_v10 = vadd.f32 %v2763_v54, %v3697_v49  ;;  %v727_v54 = vmax.f32 %v695_v25, 0.0  ;;  %v3776_v14 = vunpack.c.l.bf16 %v2892_v59  ;;  %v3778_v16 = vunpack.c.h.bf16 %v2892_v59 }
  0x5c   : > { %3158 = vmatprep.mubr.bf16.mxu0 %v745_v11  ;;  %v624_v11 = vadd.f32 %v2764_v55, %v3699_v53  ;;  %v751_v43 = vpack.c.bf16 %v726_v23, %v725_v19  ;;  %v626_v55 = vadd.f32 %v2768_v30, %v3733_v29  ;;  %v664_v23 = vmul.f32 %v3569_v60, %v627_v56 }
  0x5d   : > { %v660_v36 = vmul.f32 %v3569_v60, %v623_v10  ;;  %v2775_v10 = vunpack.c.l.bf16 %v2906_v45  ;;  %v665_v25 = vmul.f32 %v3569_v60, %v628_v58 }
  0x5e   : > { %v661_v39 = vmul.f32 %v3569_v60, %v624_v11  ;;  %v2776_v11 = vunpack.c.h.bf16 %v2906_v45  ;;  %v663_v19 = vmul.f32 %v3569_v60, %v626_v55  ;;  %v701_v45 = vadd.f32 %v3592_v9, %v664_v23  ;;  %v2908_v55 = vld [vmem:[%s3523_s15 + $0x68] sm:$0xff]  }
  0x5f   : > { %3159 = vmatmul.mubr.bf16.vlgmr.msra.gmra.mxu0 %v746_v12  ;;  %v3720_v12 = vunpack.c.l.bf16 %v2889_v0  ;;  %v2907_v0 = vld [vmem:[%s3523_s15 + $0x60] sm:$0xff]   ;;  %v697_v4 = vadd.f32 %v3592_v9, %v660_v36  ;;  %v752_v36 = vpack.c.bf16 %v728_v1, %v727_v54  ;;  %v2894_v1 = vld [vmem:[%s3517_s29 + $0x70] sm:$0xff]  }
  0x60   : > { %3162 = vmatprep.mubr.bf16.mxu0 %v747_v31  ;;  %3191 = vmatpush3.bf16.msra.mxu0 %v3511_v37  ;;  %v3300_v31 = vld [vmem:[%s4312_s7 + $0x48] sm:$0xff]   ;;  %v698_v5 = vadd.f32 %v3592_v9, %v661_v39  ;;  %v2779_v17 = vunpack.c.l.bf16 %v2907_v0  ;;  %v2780_v18 = vunpack.c.h.bf16 %v2907_v0  ;;  %v733_v23 = vmax.f32 %v701_v45, 0.0 }
  0x61   : > { %3192 = vmatprep.subr.bf16.mxu0 %v3689_v38  ;;  %v625_v40 = vadd.f32 %v2767_v13, %v3720_v12  ;;  %3106 = vmatprep.subr.bf16.mxu1 %v3300_v31  ;;  %v3774_v13 = vld [vmem:[%s4312_s7 + $0x90] sm:$0xff]   ;;  %v729_v26 = vmax.f32 %v697_v4, 0.0 }
  0x62   : > { %3107 = vmatpush3.bf16.msra.mxu1 %v3300_v31  ;;  %v730_v30 = vmax.f32 %v698_v5, 0.0  ;;  %v631_v39 = vadd.f32 %v2779_v17, %v3776_v14  ;;  %v2909_v4 = vld [vmem:[%s3523_s15 + $0x70] sm:$0xff]   ;;  %v3814_v5 = vld [vmem:[%s4312_s7 + $0x80] sm:$0xff]   ;;  %v2784_v17 = vunpack.c.h.bf16 %v2908_v55 }
  0x63   : > { %v662_v6 = vmul.f32 %v3569_v60, %v625_v40  ;;  %3108 = vmatprep.subr.bf16.mxu1 %v3302_v48  ;;  %v632_v40 = vadd.f32 %v2780_v18, %v3778_v16 }
  0x64   : > { %3193 = vmatpush3.bf16.msra.mxu0 %v3689_v38  ;;  %v753_v56 = vpack.c.bf16 %v730_v30, %v729_v26  ;;  %v3818_v26 = vunpack.c.l.bf16 %v2894_v1  ;;  %v3820_v30 = vunpack.c.h.bf16 %v2894_v1  ;;  %v2910_v1 = vld [vmem:[%s3523_s15 + $0x78] sm:$0xff]  }
  0x65   : > { %3194 = vmatprep.subr.bf16.mxu0 %v3711_v3 }
  0x66   : > { %3109 = vmatpush3.bf16.msra.mxu1 %v3302_v48  ;;  %v702_v48 = vadd.f32 %v3592_v9, %v665_v25 }
  0x67   : > { %3163 = vmatmul.mubr.bf16.gmra.mxu0 %v748_v7  ;;  %v3766_v7 = vunpack.c.l.bf16 %v2891_v44  ;;  %3238 = vmatprep.subr.bf16.mxu1 %v3511_v37 }
  0x68   : > { %3166 = vmatprep.mubr.bf16.mxu0 %v749_v8  ;;  %3195 = vmatpush3.bf16.msra.mxu0 %v3711_v3  ;;  %v3768_v8 = vunpack.c.h.bf16 %v2891_v44  ;;  %v700_v44 = vadd.f32 %v3592_v9, %v663_v19  ;;  %v734_v25 = vmax.f32 %v702_v48, 0.0 }
  0x69   : > { %3196 = vmatprep.subr.bf16.mxu0 %v3729_v24  ;;  %v629_v31 = vadd.f32 %v2775_v10, %v3766_v7  ;;  %v669_v10 = vmul.f32 %v3569_v60, %v632_v40 }
  0x6a   : > { %v630_v34 = vadd.f32 %v2776_v11, %v3768_v8  ;;  %v2783_v11 = vunpack.c.l.bf16 %v2908_v55  ;;  %v732_v19 = vmax.f32 %v700_v44, 0.0  ;;  %v755_v48 = vpack.c.bf16 %v734_v25, %v733_v23 }
  0x6b   : > { %v666_v54 = vmul.f32 %v3569_v60, %v629_v31  ;;  %v2787_v31 = vunpack.c.l.bf16 %v2909_v4  ;;  %v2791_v23 = vunpack.c.l.bf16 %v2910_v1  ;;  %v2792_v25 = vunpack.c.h.bf16 %v2910_v1  ;;  %v3862_v1 = vld [vmem:[%s4310_s5 + $0x2] ss:$0 sm:$0xff] }
  0x6c   : > { %3197 = vmatpush3.bf16.msra.mxu0 %v3729_v24  ;;  %v667_v58 = vmul.f32 %v3569_v60, %v630_v34  ;;  %v2788_v34 = vunpack.c.h.bf16 %v2909_v4 }
  0x6d   : > { %3198 = vmatprep.subr.bf16.mxu0 %v3750_v41  ;;  %v635_v55 = vadd.f32 %v2787_v31, %v3818_v26 }
  0x6f   : > { %3167 = vmatmul.mubr.bf16.gmra.mxu0 %v750_v42  ;;  %v2893_v42 = vld [vmem:[%s3517_s29 + $0x68] sm:$0xff]   ;;  %v672_v31 = vmul.f32 %v3569_v60, %v635_v55 }
  0x70   : > { %3170 = vmatprep.mubr.bf16.mxu0 %v751_v43  ;;  %3199 = vmatpush3.bf16.msra.mxu0 %v3750_v41  ;;  %v699_v43 = vadd.f32 %v3592_v9, %v662_v6  ;;  %v3804_v59 = vunpack.c.l.bf16 %v2893_v42  ;;  %v3806_v0 = vunpack.c.h.bf16 %v2893_v42  ;;  %v668_v6 = vmul.f32 %v3569_v60, %v631_v39 }
  0x71   : > { %3200 = vmatprep.subr.bf16.mxu0 %v3774_v13  ;;  %v703_v39 = vadd.f32 %v3592_v9, %v666_v54  ;;  %v706_v42 = vadd.f32 %v3592_v9, %v669_v10  ;;  %v2895_v54 = vld [vmem:[%s3517_s29 + $0x78] sm:$0xff]  }
  0x72   : > { %v731_v18 = vmax.f32 %v699_v43, 0.0  ;;  %v705_v40 = vadd.f32 %v3592_v9, %v668_v6  ;;  %v633_v43 = vadd.f32 %v2783_v11, %v3804_v59  ;;  %v634_v44 = vadd.f32 %v2784_v17, %v3806_v0 }
  0x73   : > { %v738_v10 = vmax.f32 %v706_v42, 0.0 }
  0x74   : > { %3201 = vmatpush3.bf16.msra.mxu0 %v3774_v13  ;;  %v754_v45 = vpack.c.bf16 %v732_v19, %v731_v18  ;;  %v737_v6 = vmax.f32 %v705_v40, 0.0  ;;  %v670_v11 = vmul.f32 %v3569_v60, %v633_v43  ;;  %v671_v17 = vmul.f32 %v3569_v60, %v634_v44 }
  0x75   : > { %3202 = vmatprep.subr.bf16.mxu0 %v3791_v35  ;;  %v3841_v18 = vunpack.c.l.bf16 %v2895_v54  ;;  %v3843_v19 = vunpack.c.h.bf16 %v2895_v54  ;;  %v709_v54 = vadd.f32 %v3592_v9, %v672_v31  ;;  %v3871_v31 = vld [vmem:[%s4311_s6 + $0x2] ss:$0 sm:$0xff] }
  0x76   : > { %v708_v40 = vadd.f32 %v3592_v9, %v671_v17  ;;  %v757_v43 = vpack.c.bf16 %v738_v10, %v737_v6 }
  0x77   : > { %3171 = vmatmul.mubr.bf16.gmra.mxu0 %v752_v36  ;;  %v704_v36 = vadd.f32 %v3592_v9, %v667_v58  ;;  %v735_v58 = vmax.f32 %v703_v39, 0.0  ;;  %v3847_v39 = vld [vmem:[%s438_s18] ss:$0 sm:$0xff]  ;;  %v637_v44 = vadd.f32 %v2791_v23, %v3841_v18 }
  0x78   : > { %3174 = vmatprep.mubr.bf16.mxu0 %v753_v56  ;;  %3203 = vmatpush3.bf16.msra.mxu0 %v3791_v35  ;;  %v636_v56 = vadd.f32 %v2788_v34, %v3820_v30  ;;  %v1709_v55 = vadd.f32 %v3546_v46, %v3847_v39 }
  0x79   : > { %3204 = vmatprep.subr.bf16.mxu0 %v3814_v5  ;;  %v736_v4 = vmax.f32 %v704_v36, 0.0  ;;  %v707_v36 = vadd.f32 %v3592_v9, %v670_v11  ;;  %v674_v6 = vmul.f32 %v3569_v60, %v637_v44  ;;  %v741_v11 = vmax.f32 %v709_v54, 0.0 }
  0x7a   : > { %v673_v34 = vmul.f32 %v3569_v60, %v636_v56  ;;  %v1710_v56 = vadd.f32 %v3548_v47, %v3847_v39  ;;  %v1746_v23 = vmul.f32 %v3862_v1, %v1709_v55 }
  0x7b   : > { %v756_v42 = vpack.c.bf16 %v736_v4, %v735_v58  ;;  %v739_v58 = vmax.f32 %v707_v36, 0.0  ;;  %v740_v4 = vmax.f32 %v708_v40, 0.0  ;;  %v711_v36 = vadd.f32 %v3592_v9, %v674_v6 }
  0x7c   : > { %3205 = vmatpush3.bf16.msra.mxu0 %v3814_v5  ;;  %v1783_v44 = vadd.f32 %v3871_v31, %v1746_v23 }
  0x7d   : > { %v743_v54 = vmax.f32 %v711_v36, 0.0  ;;  %v3888_v36 = vld [vmem:[%s4310_s5 + $0x1] ss:$0 sm:$0xff] }
  0x7f   : > { %3175 = vmatmul.mubr.bf16.gmra.mxu0 %v754_v45  ;;  %v638_v45 = vadd.f32 %v2792_v25, %v3843_v19  ;;  %v1747_v25 = vmul.f32 %v3862_v1, %v1710_v56 }
  0x80   : > { %3178 = vmatprep.mubr.bf16.mxu0 %v755_v48  ;;  %v710_v48 = vadd.f32 %v3592_v9, %v673_v34  ;;  %v758_v34 = vpack.c.bf16 %v740_v4, %v739_v58 }
  0x81   : > { %v675_v10 = vmul.f32 %v3569_v60, %v638_v45  ;;  %v1711_v60 = vadd.f32 %v3550_v50, %v3847_v39  ;;  %v1784_v45 = vadd.f32 %v3871_v31, %v1747_v25 }
  0x82   : > { %v742_v17 = vmax.f32 %v710_v48, 0.0 }
  0x83   : > { %v712_v40 = vadd.f32 %v3592_v9, %v675_v10  ;;  %v1748_v55 = vmul.f32 %v3862_v1, %v1711_v60  ;;  %v1815_v9 = vmax.f32 %v1783_v44, 0.0  ;;  %v1816_v58 = vmax.f32 %v1784_v45, 0.0  ;;  %v3896_v44 = vld [vmem:[%s4311_s6 + $0x1] ss:$0 sm:$0xff] }
  0x85   : > { %v744_v48 = vmax.f32 %v712_v40, 0.0  ;;  %v1785_v6 = vadd.f32 %v3871_v31, %v1748_v55 }
  0x87   : > { %3179 = vmatmul.mubr.bf16.gmra.mxu0 %v756_v42  ;;  %v1712_v42 = vadd.f32 %v3552_v51, %v3847_v39  ;;  %v760_v4 = vpack.c.bf16 %v744_v48, %v743_v54 }
  0x88   : > { %3182 = vmatprep.mubr.bf16.mxu0 %v757_v43  ;;  %v759_v43 = vpack.c.bf16 %v742_v17, %v741_v11  ;;  %v1847_v11 = vpack.c.bf16 %v1816_v58, %v1815_v9  ;;  %v1817_v17 = vmax.f32 %v1785_v6, 0.0 }
  0x89   : > { %v1749_v56 = vmul.f32 %v3862_v1, %v1712_v42 }
  0x8b   : > { %v1786_v10 = vadd.f32 %v3871_v31, %v1749_v56 }
  0x8d   : > { %v1818_v23 = vmax.f32 %v1786_v10, 0.0 }
  0x8f   : > { %3183 = vmatmul.mubr.bf16.gmra.mxu0 %v758_v34  ;;  %v1848_v25 = vpack.c.bf16 %v1818_v23, %v1817_v17 }
  0x90   : > { %3186 = vmatprep.mubr.bf16.mxu0 %v759_v43 }
  0x97   : > { %3187 = vmatmul.mubr.bf16.gmra.mxu0 %v760_v4 }
  0x98   : > { %3206 = vmatprep.mubr.bf16.mxu0 %v1847_v11 }
  0x9f   : > { %3207 = vmatmul.mubr.bf16.vlgmr.msra.gmra.mxu0 %v1848_v25 }
  0xdf   : > { %v3048_v34 = vpop.f32.mrf.mxu0 }
  0xe0   : > { %v992_v40 = vadd.f32 %v3048_v34, %v3548_v47 }
  0xe1   : > { %v986_v60 = vpop.f32.mrf.mxu0 }
  0xe2   : > { %v1151_v42 = vmul.f32 %v3888_v36, %v992_v40  ;;  %v987_v43 = vadd.f32 %v3546_v46, %v986_v60 }
  0xe3   : > { %v3051_v45 = vpop.f32.mrf.mxu0 }
  0xe4   : > { %v1150_v54 = vmul.f32 %v3888_v36, %v987_v43  ;;  %v1002_v48 = vadd.f32 %v3051_v45, %v3552_v51  ;;  %v1188_v56 = vadd.f32 %v3896_v44, %v1151_v42 }
  0xe5   : > { %v996_v55 = vpop.f32.mrf.mxu0 }
  0xe6   : > { %v1153_v47 = vmul.f32 %v3888_v36, %v1002_v48  ;;  %v997_v9 = vadd.f32 %v3550_v50, %v996_v55  ;;  %v1187_v58 = vadd.f32 %v3896_v44, %v1150_v54  ;;  %v1220_v23 = vmax.f32 %v1188_v56, 0.0 }
  0xe7   : > { %v3054_v46 = vpop.f32.mrf.mxu0 }
  0xe8   : > { %v1152_v4 = vmul.f32 %v3888_v36, %v997_v9  ;;  %v1012_v6 = vadd.f32 %v3054_v46, %v3580_v2  ;;  %v1219_v10 = vmax.f32 %v1187_v58, 0.0  ;;  %v1190_v11 = vadd.f32 %v3896_v44, %v1153_v47 }
  0xe9   : > { %v1006_v17 = vpop.f32.mrf.mxu0 }
  0xea   : > { %v1189_v51 = vadd.f32 %v3896_v44, %v1152_v4  ;;  %v1155_v25 = vmul.f32 %v3888_v36, %v1012_v6  ;;  %v1007_v34 = vadd.f32 %v3573_v63, %v1006_v17  ;;  %v1251_v50 = vpack.c.bf16 %v1220_v23, %v1219_v10 }
  0xeb   : > { %v3057_v40 = vpop.f32.mrf.mxu0  ;;  %v1222_v45 = vmax.f32 %v1190_v11, 0.0 }
  0xec   : > { %v1221_v60 = vmax.f32 %v1189_v51, 0.0  ;;  %v1154_v42 = vmul.f32 %v3888_v36, %v1007_v34  ;;  %v1022_v43 = vadd.f32 %v3057_v40, %v3612_v22  ;;  %v1192_v54 = vadd.f32 %v3896_v44, %v1155_v25  ;;  %3110 = vmatprep.mubr.bf16.mxu1 %v1251_v50 }
  0xed   : > { %v1016_v48 = vpop.f32.mrf.mxu0 }
  0xee   : > { %v1191_v55 = vadd.f32 %v3896_v44, %v1154_v42  ;;  %v1157_v56 = vmul.f32 %v3888_v36, %v1022_v43  ;;  %v1017_v47 = vadd.f32 %v3603_v15, %v1016_v48  ;;  %v1252_v58 = vpack.c.bf16 %v1222_v45, %v1221_v60 }
  0xef   : > { %v3060_v9 = vpop.f32.mrf.mxu0  ;;  %v1224_v10 = vmax.f32 %v1192_v54, 0.0 }
  0xf0   : > { %v1223_v46 = vmax.f32 %v1191_v55, 0.0  ;;  %v1156_v4 = vmul.f32 %v3888_v36, %v1017_v47  ;;  %v1032_v6 = vadd.f32 %v3060_v9, %v3620_v28  ;;  %v1194_v11 = vadd.f32 %v3896_v44, %v1157_v56  ;;  %3111 = vmatmul.mubr.bf16.vlgmr.msra.gmra.mxu1 %v1252_v58 }
  0xf1   : > { %v1026_v17 = vpop.f32.mrf.mxu0  ;;  %3246 = vmatpush3.bf16.msra.mxu1 %v3511_v37 }
  0xf2   : > { %v1193_v23 = vadd.f32 %v3896_v44, %v1156_v4  ;;  %v1159_v51 = vmul.f32 %v3888_v36, %v1032_v6  ;;  %v1027_v25 = vadd.f32 %v3618_v27, %v1026_v17  ;;  %v1253_v40 = vpack.c.bf16 %v1224_v10, %v1223_v46  ;;  %3239 = vmatprep.subr.bf16.mxu1 %v3689_v38 }
  0xf3   : > { %v3063_v34 = vpop.f32.mrf.mxu0  ;;  %v1226_v43 = vmax.f32 %v1194_v11, 0.0 }
  0xf4   : > { %v1225_v50 = vmax.f32 %v1193_v23, 0.0  ;;  %v1158_v60 = vmul.f32 %v3888_v36, %v1027_v25  ;;  %v1042_v42 = vadd.f32 %v3063_v34, %v3648_v57  ;;  %v1196_v45 = vadd.f32 %v3896_v44, %v1159_v51  ;;  %3114 = vmatprep.mubr.bf16.mxu1 %v1253_v40 }
  0xf5   : > { %v1036_v54 = vpop.f32.mrf.mxu0  ;;  %3247 = vmatpush3.bf16.msra.mxu1 %v3689_v38 }
  0xf6   : > { %v1195_v48 = vadd.f32 %v3896_v44, %v1158_v60  ;;  %v1161_v37 = vmul.f32 %v3888_v36, %v1042_v42  ;;  %v1037_v55 = vadd.f32 %v3640_v52, %v1036_v54  ;;  %v1254_v47 = vpack.c.bf16 %v1226_v43, %v1225_v50  ;;  %3240 = vmatprep.subr.bf16.mxu1 %v3711_v3 }
  0xf7   : > { %v3066_v56 = vpop.f32.mrf.mxu0  ;;  %v1228_v4 = vmax.f32 %v1196_v45, 0.0 }
  0xf8   : > { %v1227_v9 = vmax.f32 %v1195_v48, 0.0  ;;  %v1160_v58 = vmul.f32 %v3888_v36, %v1037_v55  ;;  %v1052_v46 = vadd.f32 %v3066_v56, %v3655_v62  ;;  %v1198_v6 = vadd.f32 %v3896_v44, %v1161_v37  ;;  %3115 = vmatmul.mubr.bf16.gmra.mxu1 %v1254_v47 }
  0xf9   : > { %v1046_v10 = vpop.f32.mrf.mxu0  ;;  %3248 = vmatpush3.bf16.msra.mxu1 %v3711_v3 }
  0xfa   : > { %v1197_v11 = vadd.f32 %v3896_v44, %v1160_v58  ;;  %v1163_v17 = vmul.f32 %v3888_v36, %v1052_v46  ;;  %v1047_v38 = vadd.f32 %v3653_v61, %v1046_v10  ;;  %v1255_v51 = vpack.c.bf16 %v1228_v4, %v1227_v9  ;;  %3241 = vmatprep.subr.bf16.mxu1 %v3729_v24 }
  0xfb   : > { %v3069_v23 = vpop.f32.mrf.mxu0  ;;  %v1230_v50 = vmax.f32 %v1198_v6, 0.0 }
  0xfc   : > { %v1229_v25 = vmax.f32 %v1197_v11, 0.0  ;;  %v1162_v34 = vmul.f32 %v3888_v36, %v1047_v38  ;;  %v1062_v40 = vadd.f32 %v3069_v23, %v3674_v21  ;;  %v1200_v60 = vadd.f32 %v3896_v44, %v1163_v17  ;;  %3118 = vmatprep.mubr.bf16.mxu1 %v1255_v51 }
  0xfd   : > { %v1056_v42 = vpop.f32.mrf.mxu0  ;;  %3249 = vmatpush3.bf16.msra.mxu1 %v3729_v24 }
  0xfe   : > { %v1199_v43 = vadd.f32 %v3896_v44, %v1162_v34  ;;  %v1165_v45 = vmul.f32 %v3888_v36, %v1062_v40  ;;  %v1057_v3 = vadd.f32 %v3672_v20, %v1056_v42  ;;  %v1256_v48 = vpack.c.bf16 %v1230_v50, %v1229_v25  ;;  %3242 = vmatprep.subr.bf16.mxu1 %v3750_v41 }
  0xff   : > { %v3072_v54 = vpop.f32.mrf.mxu0  ;;  %v1232_v47 = vmax.f32 %v1200_v60, 0.0 }
 0x100   : > { %v1231_v37 = vmax.f32 %v1199_v43, 0.0  ;;  %v1164_v55 = vmul.f32 %v3888_v36, %v1057_v3  ;;  %v1072_v56 = vadd.f32 %v3072_v54, %v3699_v53  ;;  %v1202_v9 = vadd.f32 %v3896_v44, %v1165_v45  ;;  %3119 = vmatmul.mubr.bf16.gmra.mxu1 %v1256_v48 }
 0x101   : > { %v1066_v58 = vpop.f32.mrf.mxu0  ;;  %3250 = vmatpush3.bf16.msra.mxu1 %v3750_v41 }
 0x102   : > { %v1201_v46 = vadd.f32 %v3896_v44, %v1164_v55  ;;  %v1167_v4 = vmul.f32 %v3888_v36, %v1072_v56  ;;  %v1067_v24 = vadd.f32 %v3697_v49, %v1066_v58  ;;  %v1257_v10 = vpack.c.bf16 %v1232_v47, %v1231_v37  ;;  %3243 = vmatprep.subr.bf16.mxu1 %v3774_v13 }
 0x103   : > { %v3075_v6 = vpop.f32.mrf.mxu0  ;;  %v1234_v23 = vmax.f32 %v1202_v9, 0.0 }
 0x104   : > { %v1233_v11 = vmax.f32 %v1201_v46, 0.0  ;;  %v1166_v17 = vmul.f32 %v3888_v36, %v1067_v24  ;;  %v1082_v38 = vadd.f32 %v3075_v6, %v3733_v29  ;;  %v1204_v51 = vadd.f32 %v3896_v44, %v1167_v4  ;;  %3122 = vmatprep.mubr.bf16.mxu1 %v1257_v10 }
 0x105   : > { %v1076_v25 = vpop.f32.mrf.mxu0  ;;  %3251 = vmatpush3.bf16.msra.mxu1 %v3774_v13 }
 0x106   : > { %v1203_v34 = vadd.f32 %v3896_v44, %v1166_v17  ;;  %v1169_v40 = vmul.f32 %v3888_v36, %v1082_v38  ;;  %v1077_v41 = vadd.f32 %v3720_v12, %v1076_v25  ;;  %v1258_v60 = vpack.c.bf16 %v1234_v23, %v1233_v11  ;;  %3244 = vmatprep.subr.bf16.mxu1 %v3791_v35 }
 0x107   : > { %v3078_v50 = vpop.f32.mrf.mxu0  ;;  %v1236_v3 = vmax.f32 %v1204_v51, 0.0 }
 0x108   : > { %v1235_v42 = vmax.f32 %v1203_v34, 0.0  ;;  %v1168_v43 = vmul.f32 %v3888_v36, %v1077_v41  ;;  %v1092_v45 = vadd.f32 %v3078_v50, %v3740_v33  ;;  %v1206_v54 = vadd.f32 %v3896_v44, %v1169_v40  ;;  %3123 = vmatmul.mubr.bf16.gmra.mxu1 %v1258_v60 }
 0x109   : > { %v1086_v48 = vpop.f32.mrf.mxu0  ;;  %3252 = vmatpush3.bf16.msra.mxu1 %v3791_v35 }
 0x10a   : > { %v1205_v37 = vadd.f32 %v3896_v44, %v1168_v43  ;;  %v1171_v55 = vmul.f32 %v3888_v36, %v1092_v45  ;;  %v1087_v13 = vadd.f32 %v3738_v32, %v1086_v48  ;;  %v1259_v47 = vpack.c.bf16 %v1236_v3, %v1235_v42  ;;  %3245 = vmatprep.subr.bf16.mxu1 %v3814_v5 }
 0x10b   : > { %v3081_v56 = vpop.f32.mrf.mxu0  ;;  %v1238_v4 = vmax.f32 %v1206_v54, 0.0 }
 0x10c   : > { %v1237_v9 = vmax.f32 %v1205_v37, 0.0  ;;  %v1170_v58 = vmul.f32 %v3888_v36, %v1087_v13  ;;  %v1102_v46 = vadd.f32 %v3081_v56, %v3768_v8  ;;  %v1208_v24 = vadd.f32 %v3896_v44, %v1171_v55  ;;  %3126 = vmatprep.mubr.bf16.mxu1 %v1259_v47 }
 0x10d   : > { %v1096_v6 = vpop.f32.mrf.mxu0  ;;  %3253 = vmatpush3.bf16.msra.mxu1 %v3814_v5  ;;  %v1713_v13 = vadd.f32 %v3573_v63, %v3847_v39 }
 0x10e   : > { %v1207_v10 = vadd.f32 %v3896_v44, %v1170_v58  ;;  %v1173_v11 = vmul.f32 %v3888_v36, %v1102_v46  ;;  %v1097_v35 = vadd.f32 %v3766_v7, %v1096_v6  ;;  %v1260_v38 = vpack.c.bf16 %v1238_v4, %v1237_v9 }
 0x10f   : > { %v3084_v17 = vpop.f32.mrf.mxu0  ;;  %v1240_v34 = vmax.f32 %v1208_v24, 0.0  ;;  %v1714_v58 = vadd.f32 %v3580_v2, %v3847_v39 }
 0x110   : > { %v1239_v23 = vmax.f32 %v1207_v10, 0.0  ;;  %v1172_v51 = vmul.f32 %v3888_v36, %v1097_v35  ;;  %v1112_v25 = vadd.f32 %v3084_v17, %v3778_v16  ;;  %v1210_v40 = vadd.f32 %v3896_v44, %v1173_v11  ;;  %3127 = vmatmul.mubr.bf16.gmra.mxu1 %v1260_v38 }
 0x111   : > { %v1106_v41 = vpop.f32.mrf.mxu0  ;;  %v1750_v17 = vmul.f32 %v3862_v1, %v1713_v13 }
 0x112   : > { %v1209_v50 = vadd.f32 %v3896_v44, %v1172_v51  ;;  %v1175_v60 = vmul.f32 %v3888_v36, %v1112_v25  ;;  %v1107_v42 = vadd.f32 %v3776_v14, %v1106_v41  ;;  %v1261_v5 = vpack.c.bf16 %v1240_v34, %v1239_v23 }
 0x113   : > { %v3087_v43 = vpop.f32.mrf.mxu0  ;;  %v1242_v48 = vmax.f32 %v1210_v40, 0.0  ;;  %v1751_v51 = vmul.f32 %v3862_v1, %v1714_v58  ;;  %v1715_v40 = vadd.f32 %v3603_v15, %v3847_v39  ;;  %v1716_v41 = vadd.f32 %v3612_v22, %v3847_v39 }
 0x114   : > { %v1241_v45 = vmax.f32 %v1209_v50, 0.0  ;;  %v1174_v3 = vmul.f32 %v3888_v36, %v1107_v42  ;;  %v1122_v54 = vadd.f32 %v3087_v43, %v3806_v0  ;;  %v1212_v37 = vadd.f32 %v3896_v44, %v1175_v60  ;;  %3130 = vmatprep.mubr.bf16.mxu1 %v1261_v5 }
 0x115   : > { %v1116_v55 = vpop.f32.mrf.mxu0  ;;  %v1718_v15 = vadd.f32 %v3620_v28, %v3847_v39  ;;  %v1753_v28 = vmul.f32 %v3862_v1, %v1716_v41 }
 0x116   : > { %v1211_v56 = vadd.f32 %v3896_v44, %v1174_v3  ;;  %v1177_v47 = vmul.f32 %v3888_v36, %v1122_v54  ;;  %v1117_v9 = vadd.f32 %v3804_v59, %v1116_v55  ;;  %v1262_v4 = vpack.c.bf16 %v1242_v48, %v1241_v45 }
 0x117   : > { %v3090_v46 = vpop.f32.mrf.mxu0  ;;  %v1244_v11 = vmax.f32 %v1212_v37, 0.0  ;;  %v1787_v3 = vadd.f32 %v3871_v31, %v1750_v17  ;;  %v1717_v54 = vadd.f32 %v3618_v27, %v3847_v39  ;;  %v1788_v55 = vadd.f32 %v3871_v31, %v1751_v51 }
 0x118   : > { %v1243_v24 = vmax.f32 %v1211_v56, 0.0  ;;  %v1176_v6 = vmul.f32 %v3888_v36, %v1117_v9  ;;  %v1132_v10 = vadd.f32 %v3090_v46, %v3820_v30  ;;  %v1214_v35 = vadd.f32 %v3896_v44, %v1177_v47  ;;  %3131 = vmatmul.mubr.bf16.gmra.mxu1 %v1262_v4 }
 0x119   : > { %v1126_v63 = vpop.f32.mrf.mxu0  ;;  %v1752_v27 = vmul.f32 %v3862_v1, %v1715_v40  ;;  %v1754_v46 = vmul.f32 %v3862_v1, %v1717_v54  ;;  %v1755_v4 = vmul.f32 %v3862_v1, %v1718_v15  ;;  %v1720_v17 = vadd.f32 %v3648_v57, %v3847_v39 }
 0x11a   : > { %v1213_v38 = vadd.f32 %v3896_v44, %v1176_v6  ;;  %v1179_v23 = vmul.f32 %v3888_v36, %v1132_v10  ;;  %v1127_v2 = vadd.f32 %v3818_v26, %v1126_v63  ;;  %v1263_v34 = vpack.c.bf16 %v1244_v11, %v1243_v24 }
 0x11b   : > { %v3093_v25 = vpop.f32.mrf.mxu0  ;;  %v1246_v5 = vmax.f32 %v1214_v35, 0.0  ;;  %v1819_v10 = vmax.f32 %v1787_v3, 0.0  ;;  %v1820_v11 = vmax.f32 %v1788_v55, 0.0  ;;  %v1722_v40 = vadd.f32 %v3655_v62, %v3847_v39 }
 0x11c   : > { %v1245_v50 = vmax.f32 %v1213_v38, 0.0  ;;  %v1216_v60 = vadd.f32 %v3896_v44, %v1179_v23  ;;  %v1178_v42 = vmul.f32 %v3888_v36, %v1127_v2  ;;  %v1142_v43 = vadd.f32 %v3093_v25, %v3843_v19  ;;  %3134 = vmatprep.mubr.bf16.mxu1 %v1263_v34 }
 0x11d   : > { %v1136_v45 = vpop.f32.mrf.mxu0  ;;  %v1789_v38 = vadd.f32 %v3871_v31, %v1752_v27  ;;  %v1790_v23 = vadd.f32 %v3871_v31, %v1753_v28  ;;  %v1791_v2 = vadd.f32 %v3871_v31, %v1754_v46  ;;  %v1849_v25 = vpack.c.bf16 %v1820_v11, %v1819_v10 }
 0x11e   : > { %v1215_v22 = vadd.f32 %v3896_v44, %v1178_v42  ;;  %v1181_v48 = vmul.f32 %v3888_v36, %v1142_v43  ;;  %v1137_v37 = vadd.f32 %v3841_v18, %v1136_v45  ;;  %v1264_v13 = vpack.c.bf16 %v1246_v5, %v1245_v50 }
 0x11f   : > { %v1248_v56 = vmax.f32 %v1216_v60, 0.0  ;;  %v1721_v34 = vadd.f32 %v3653_v61, %v3847_v39  ;;  %v1757_v57 = vmul.f32 %v3862_v1, %v1720_v17  ;;  %v1821_v41 = vmax.f32 %v1789_v38, 0.0  ;;  %v4042_v45 = vpop.f32.mrf.mxu0 }
 0x120   : > { %v1247_v47 = vmax.f32 %v1215_v22, 0.0  ;;  %v1218_v9 = vadd.f32 %v3896_v44, %v1181_v48  ;;  %v1180_v58 = vmul.f32 %v3888_v36, %v1137_v37  ;;  %3135 = vmatmul.mubr.bf16.gmra.mxu1 %v1264_v13  ;;  %v1719_v36 = vadd.f32 %v3640_v52, %v3847_v39 }
 0x121   : > { %v1822_v50 = vmax.f32 %v1790_v23, 0.0  ;;  %v1823_v60 = vmax.f32 %v1791_v2, 0.0  ;;  %v1758_v43 = vmul.f32 %v3862_v1, %v1721_v34  ;;  %v1759_v5 = vmul.f32 %v3862_v1, %v1722_v40 }
 0x122   : > { %v1217_v24 = vadd.f32 %v3896_v44, %v1180_v58  ;;  %v1265_v6 = vpack.c.bf16 %v1248_v56, %v1247_v47  ;;  %v1250_v35 = vmax.f32 %v1218_v9, 0.0  ;;  %v1792_v44 = vadd.f32 %v3871_v31, %v1755_v4  ;;  %v4056_v56 = vpop.f32.mrf.mxu0 }
 0x123   : > { %v1756_v52 = vmul.f32 %v3862_v1, %v1719_v36  ;;  %v1794_v62 = vadd.f32 %v3871_v31, %v1757_v57  ;;  %v1723_v3 = vadd.f32 %v3672_v20, %v3847_v39  ;;  %v1724_v54 = vadd.f32 %v3674_v21, %v3847_v39 }
 0x124   : > { %v1249_v63 = vmax.f32 %v1217_v24, 0.0  ;;  %3138 = vmatprep.mubr.bf16.mxu1 %v1265_v6  ;;  %v1824_v42 = vmax.f32 %v1792_v44, 0.0  ;;  %v1850_v15 = vpack.c.bf16 %v1822_v50, %v1821_v41  ;;  %v1795_v48 = vadd.f32 %v3871_v31, %v1758_v43 }
 0x125   : > { %v1793_v61 = vadd.f32 %v3871_v31, %v1756_v52  ;;  %v1796_v37 = vadd.f32 %v3871_v31, %v1759_v5  ;;  %v1725_v55 = vadd.f32 %v3697_v49, %v3847_v39  ;;  %v1726_v13 = vadd.f32 %v3699_v53, %v3847_v39  ;;  %v4062_v49 = vpop.f32.mrf.mxu0 }
 0x126   : > { %v1266_v51 = vpack.c.bf16 %v1250_v35, %v1249_v63  ;;  %v1851_v22 = vpack.c.bf16 %v1824_v42, %v1823_v60  ;;  %v1826_v9 = vmax.f32 %v1794_v62, 0.0  ;;  %v1760_v20 = vmul.f32 %v3862_v1, %v1723_v3 }
 0x127   : > { %v1825_v47 = vmax.f32 %v1793_v61, 0.0  ;;  %v1761_v21 = vmul.f32 %v3862_v1, %v1724_v54  ;;  %v1827_v58 = vmax.f32 %v1795_v48, 0.0  ;;  %v1828_v27 = vmax.f32 %v1796_v37, 0.0  ;;  %v4076_v38 = vpop.f32.mrf.mxu0 }
 0x128   : > { %3139 = vmatmul.mubr.bf16.gmra.mxu1 %v1266_v51  ;;  %v1762_v28 = vmul.f32 %v3862_v1, %v1725_v55  ;;  %v1763_v46 = vmul.f32 %v3862_v1, %v1726_v13  ;;  %v1797_v53 = vadd.f32 %v3871_v31, %v1760_v20  ;;  %v1727_v6 = vadd.f32 %v3720_v12, %v3847_v39 }
 0x129   : > { %3210 = vmatprep.mubr.bf16.mxu1 %v1849_v25  ;;  %v1852_v4 = vpack.c.bf16 %v1826_v9, %v1825_v47  ;;  %v1798_v24 = vadd.f32 %v3871_v31, %v1761_v21  ;;  %v1728_v10 = vadd.f32 %v3733_v29, %v3847_v39  ;;  %v1729_v11 = vadd.f32 %v3738_v32, %v3847_v39  ;;  %v4082_v25 = vpop.f32.mrf.mxu0 }
 0x12a   : > { %v1730_v35 = vadd.f32 %v3740_v33, %v3847_v39  ;;  %v1853_v63 = vpack.c.bf16 %v1828_v27, %v1827_v58  ;;  %v1799_v36 = vadd.f32 %v3871_v31, %v1762_v28  ;;  %v1800_v17 = vadd.f32 %v3871_v31, %v1763_v46 }
 0x12b   : > { %v1829_v23 = vmax.f32 %v1797_v53, 0.0  ;;  %v1830_v2 = vmax.f32 %v1798_v24, 0.0  ;;  %v1764_v12 = vmul.f32 %v3862_v1, %v1727_v6  ;;  %v1765_v29 = vmul.f32 %v3862_v1, %v1728_v10  ;;  %v4096_v61 = vpop.f32.mrf.mxu0 }
 0x12c   : > { %v1766_v44 = vmul.f32 %v3862_v1, %v1729_v11  ;;  %v1767_v32 = vmul.f32 %v3862_v1, %v1730_v35  ;;  %v1831_v33 = vmax.f32 %v1799_v36, 0.0  ;;  %v1832_v51 = vmax.f32 %v1800_v17, 0.0 }
 0x12d   : > { %v1854_v34 = vpack.c.bf16 %v1830_v2, %v1829_v23  ;;  %v1731_v40 = vadd.f32 %v3766_v7, %v3847_v39  ;;  %v1732_v52 = vadd.f32 %v3768_v8, %v3847_v39  ;;  %v1801_v57 = vadd.f32 %v3871_v31, %v1764_v12 }
 0x12e   : > { %v1802_v41 = vadd.f32 %v3871_v31, %v1765_v29  ;;  %v1803_v50 = vadd.f32 %v3871_v31, %v1766_v44  ;;  %v1804_v60 = vadd.f32 %v3871_v31, %v1767_v32  ;;  %v1855_v42 = vpack.c.bf16 %v1832_v51, %v1831_v33 }
 0x12f   : > { %v1733_v43 = vadd.f32 %v3776_v14, %v3847_v39  ;;  %v1734_v5 = vadd.f32 %v3778_v16, %v3847_v39  ;;  %v1768_v7 = vmul.f32 %v3862_v1, %v1731_v40  ;;  %v1769_v8 = vmul.f32 %v3862_v1, %v1732_v52  ;;  %v4102_v14 = vpop.f32.mrf.mxu0 }
 0x130   : > { %3211 = vmatmul.mubr.bf16.vlgmr.msra.gmra.mxu1 %v1850_v15  ;;  %v1833_v62 = vmax.f32 %v1801_v57, 0.0  ;;  %v1834_v3 = vmax.f32 %v1802_v41, 0.0  ;;  %v1835_v54 = vmax.f32 %v1803_v50, 0.0  ;;  %v1836_v15 = vmax.f32 %v1804_v60, 0.0 }
 0x131   : > { %3214 = vmatprep.mubr.bf16.mxu1 %v1851_v22  ;;  %v1770_v22 = vmul.f32 %v3862_v1, %v1733_v43  ;;  %v1771_v48 = vmul.f32 %v3862_v1, %v1734_v5  ;;  %v1805_v16 = vadd.f32 %v3871_v31, %v1768_v7  ;;  %v1806_v37 = vadd.f32 %v3871_v31, %v1769_v8  ;;  %v4116_v28 = vpop.f32.mrf.mxu0 }
 0x132   : > { %v1856_v55 = vpack.c.bf16 %v1834_v3, %v1833_v62  ;;  %v1857_v13 = vpack.c.bf16 %v1836_v15, %v1835_v54  ;;  %v1735_v47 = vadd.f32 %v3804_v59, %v3847_v39  ;;  %v1736_v9 = vadd.f32 %v3806_v0, %v3847_v39 }
 0x133   : > { %v1807_v20 = vadd.f32 %v3871_v31, %v1770_v22  ;;  %v1808_v21 = vadd.f32 %v3871_v31, %v1771_v48  ;;  %v1737_v58 = vadd.f32 %v3818_v26, %v3847_v39  ;;  %v1738_v27 = vadd.f32 %v3820_v30, %v3847_v39  ;;  %v4122_v26 = vpop.f32.mrf.mxu0 }
 0x134   : > { %v1837_v46 = vmax.f32 %v1805_v16, 0.0  ;;  %v1772_v59 = vmul.f32 %v3862_v1, %v1735_v47  ;;  %v1773_v53 = vmul.f32 %v3862_v1, %v1736_v9  ;;  %v1740_v36 = vadd.f32 %v3843_v19, %v3847_v39 }
 0x135   : > { %v1839_v0 = vmax.f32 %v1807_v20, 0.0  ;;  %v1840_v24 = vmax.f32 %v1808_v21, 0.0  ;;  %v1774_v6 = vmul.f32 %v3862_v1, %v1737_v58  ;;  %v1775_v10 = vmul.f32 %v3862_v1, %v1738_v27  ;;  %v4132_v12 = vpop.f32.mrf.mxu0 }
 0x136   : > { %v1809_v30 = vadd.f32 %v3871_v31, %v1772_v59  ;;  %v1810_v35 = vadd.f32 %v3871_v31, %v1773_v53  ;;  %v1777_v33 = vmul.f32 %v3862_v1, %v1740_v36  ;;  %v3328_v58 = vmov 0.0  }
 0x137   : > { %v1859_v17 = vpack.c.bf16 %v1840_v24, %v1839_v0  ;;  %v1811_v23 = vadd.f32 %v3871_v31, %v1774_v6  ;;  %v1812_v2 = vadd.f32 %v3871_v31, %v1775_v10  ;;  %478 = vst [vmem:[%s4186_s28] sm:$0x1] %v3328_v58 }
 0x138   : > { %3215 = vmatmul.mubr.bf16.gmra.mxu1 %v1852_v4  ;;  %v1838_v4 = vmax.f32 %v1806_v37, 0.0  ;;  %v1841_v29 = vmax.f32 %v1809_v30, 0.0  ;;  %v1842_v44 = vmax.f32 %v1810_v35, 0.0  ;;  %v1814_v40 = vadd.f32 %v3871_v31, %v1777_v33 }
 0x139   : > { %3218 = vmatprep.mubr.bf16.mxu1 %v1853_v63  ;;  %v1739_v63 = vadd.f32 %v3841_v18, %v3847_v39  ;;  %v1843_v51 = vmax.f32 %v1811_v23, 0.0  ;;  %v1844_v18 = vmax.f32 %v1812_v2, 0.0 }
 0x13a   : > { %v1858_v11 = vpack.c.bf16 %v1838_v4, %v1837_v46  ;;  %v1860_v19 = vpack.c.bf16 %v1842_v44, %v1841_v29  ;;  %v1846_v50 = vmax.f32 %v1814_v40, 0.0 }
 0x13b   : > { %v1776_v32 = vmul.f32 %v3862_v1, %v1739_v63  ;;  %v1861_v52 = vpack.c.bf16 %v1844_v18, %v1843_v51 }
 0x13d   : > { %v1813_v39 = vadd.f32 %v3871_v31, %v1776_v32 }
 0x13f   : > { %v1845_v41 = vmax.f32 %v1813_v39, 0.0 }
 0x140   : > { %3219 = vmatmul.mubr.bf16.gmra.mxu1 %v1854_v34  ;;  %v4136_v34 = vpop.f32.mrf.mxu0 }
 0x141   : > { %3222 = vmatprep.mubr.bf16.mxu1 %v1855_v42  ;;  %v1862_v1 = vpack.c.bf16 %v1846_v50, %v1845_v41 }
 0x142   : > { %v4140_v57 = vpop.f32.mrf.mxu0 }
 0x144   : > { %v4142_v60 = vpop.f32.mrf.mxu0 }
 0x146   : > { %v4144_v42 = vpop.f32.mrf.mxu0 }
 0x148   : > { %3223 = vmatmul.mubr.bf16.gmra.mxu1 %v1856_v55  ;;  %v4146_v43 = vpop.f32.mrf.mxu0 }
 0x149   : > { %3226 = vmatprep.mubr.bf16.mxu1 %v1857_v13 }
 0x14a   : > { %v4148_v5 = vpop.f32.mrf.mxu0 }
 0x14c   : > { %v4150_v7 = vpop.f32.mrf.mxu0 }
 0x14e   : > { %v4152_v31 = vpop.f32.mrf.mxu0 }
 0x150   : > { %3227 = vmatmul.mubr.bf16.gmra.mxu1 %v1858_v11  ;;  %v4154_v8 = vpop.f32.mrf.mxu0 }
 0x151   : > { %3230 = vmatprep.mubr.bf16.mxu1 %v1859_v17 }
 0x152   : > { %v4156_v62 = vpop.f32.mrf.mxu0 }
 0x154   : > { %v4158_v3 = vpop.f32.mrf.mxu0 }
 0x156   : > { %v4160_v54 = vpop.f32.mrf.mxu0 }
 0x158   : > { %3231 = vmatmul.mubr.bf16.gmra.mxu1 %v1860_v19  ;;  %v4162_v15 = vpop.f32.mrf.mxu0 }
 0x159   : > { %3234 = vmatprep.mubr.bf16.mxu1 %v1861_v52 }
 0x15a   : > { %v4164_v22 = vpop.f32.mrf.mxu0 }
 0x15c   : > { %v4166_v48 = vpop.f32.mrf.mxu0 }
 0x15e   : > { %v4168_v16 = vpop.f32.mrf.mxu0 }
 0x160   : > { %3235 = vmatmul.mubr.bf16.gmra.mxu1 %v1862_v1  ;;  %v4170_v37 = vpop.f32.mrf.mxu0 }
 0x161   : > { %4315 = vst [vmem:[#allocation2_spill] sm:$0xff] %v4170_v37 }
 0x162   : > { %v4172_v55 = vpop.f32.mrf.mxu0 }
 0x163   : > { %4316 = vst [vmem:[#allocation3_spill] sm:$0xff] %v4172_v55 }
 0x164   : > { %v4174_v13 = vpop.f32.mrf.mxu0 }
 0x165   : > { %4317 = vst [vmem:[#allocation4_spill] sm:$0xff] %v4174_v13 }
 0x166   : > { %v4176_v47 = vpop.f32.mrf.mxu0 }
 0x167   : > { %4318 = vst [vmem:[#allocation5_spill] sm:$0xff] %v4176_v47 }
 0x168   : > { %v4178_v9 = vpop.f32.mrf.mxu0 }
 0x169   : > { %4319 = vst [vmem:[#allocation6_spill] sm:$0xff] %v4178_v9 }
 0x16a   : > { %v4180_v20 = vpop.f32.mrf.mxu0 }
 0x16b   : > { %4320 = vst [vmem:[#allocation7_spill] sm:$0xff] %v4180_v20 }
 0x16c   : > { %v3208_v21 = vpop.f32.mrf.mxu0 }
 0x16e   : > { %v1962_v27 = vpop.f32.mrf.mxu0 }
 0x170   : > { %v3209_v59 = vpop.f32.mrf.mxu0 }
 0x172   : > { %v1965_v11 = vpop.f32.mrf.mxu0 }
 0x1b0   : > { %v3112_v46 = vpop.f32.mrf.mxu1 }
 0x1b1   : > { %v1584_v53 = vadd.f32 %v4042_v45, %v3112_v46 }
 0x1b2   : > { %v1366_v4 = vpop.f32.mrf.mxu1 }
 0x1b3   : > { %v1576_v24 = vadd.f32 %v4056_v56, %v1366_v4  ;;  %v2091_v30 = vadd.f32 %v3208_v21, %v1584_v53 }
 0x1b4   : > { %v3113_v0 = vpop.f32.mrf.mxu1 }
 0x1b5   : > { %v1587_v6 = vadd.f32 %v4062_v49, %v3113_v0  ;;  %v2089_v45 = vadd.f32 %v1962_v27, %v1576_v24 }
 0x1b6   : > { %v1369_v10 = vpop.f32.mrf.mxu1 }
 0x1b7   : > { %v1579_v35 = vadd.f32 %v4076_v38, %v1369_v10  ;;  %v2092_v63 = vadd.f32 %v3209_v59, %v1587_v6 }
 0x1b8   : > { %v3116_v36 = vpop.f32.mrf.mxu1 }
 0x1b9   : > { %v2809_v17 = vpack.c.bf16 %v2092_v63, %v2091_v30  ;;  %v2090_v23 = vadd.f32 %v1965_v11, %v1579_v35  ;;  %v1600_v9 = vadd.f32 %v4082_v25, %v3116_v36 }
 0x1ba   : > { %v1382_v56 = vpop.f32.mrf.mxu1 }
 0x1bb   : > { %2912 = vst [vmem:[%s4197_s14 + $0x8] sm:$0xff] %v2809_v17   ;;  %v2804_v49 = vpack.c.bf16 %v2090_v23, %v2089_v45  ;;  %v2282_v10 = vadd.f32 %v2090_v23, %v2089_v45 }
 0x1bc   : > { %v3117_v2 = vpop.f32.mrf.mxu1 }
 0x1bd   : > { %2805 = vst [vmem:[%s4197_s14] sm:$0xff] %v2804_v49   ;;  %v2283_v17 = vadd.f32 %v2282_v10, %v2091_v30  ;;  %v1592_v49 = vadd.f32 %v4096_v61, %v1382_v56  ;;  %v1603_v47 = vadd.f32 %v4102_v14, %v3117_v2 }
 0x1be   : > { %v1385_v29 = vpop.f32.mrf.mxu1 }
 0x1c0   : > { %v3120_v44 = vpop.f32.mrf.mxu1 }
 0x1c1   : > { %v1616_v25 = vadd.f32 %v4122_v26, %v3120_v44 }
 0x1c2   : > { %v1398_v38 = vpop.f32.mrf.mxu1 }
 0x1c3   : > { %v1608_v14 = vadd.f32 %v4132_v12, %v1398_v38 }
 0x1c4   : > { %v3121_v32 = vpop.f32.mrf.mxu1 }
 0x1c6   : > { %v1401_v33 = vpop.f32.mrf.mxu1 }
 0x1c8   : > { %v3124_v51 = vpop.f32.mrf.mxu1 }
 0x1ca   : > { %v1414_v18 = vpop.f32.mrf.mxu1 }
 0x1cc   : > { %v3125_v19 = vpop.f32.mrf.mxu1 }
 0x1ce   : > { %v4201_v39 = vpop.f32.mrf.mxu1 }
 0x1d0   : > { %v4203_v40 = vpop.f32.mrf.mxu1 }
 0x1d2   : > { %v4205_v52 = vpop.f32.mrf.mxu1 }
 0x1d4   : > { %v4207_v41 = vpop.f32.mrf.mxu1 }
 0x1d6   : > { %v4209_v50 = vpop.f32.mrf.mxu1 }
 0x1d8   : > { %v4211_v1 = vpop.f32.mrf.mxu1 }
 0x1da   : > { %v4213_v21 = vpop.f32.mrf.mxu1 }
 0x1dc   : > { %v4215_v58 = vpop.f32.mrf.mxu1 }
 0x1de   : > { %v4217_v27 = vpop.f32.mrf.mxu1 }
 0x1e0   : > { %v4219_v46 = vpop.f32.mrf.mxu1 }
 0x1e2   : > { %v4221_v4 = vpop.f32.mrf.mxu1 }
 0x1e4   : > { %v4223_v59 = vpop.f32.mrf.mxu1 }
 0x1e6   : > { %v4225_v53 = vpop.f32.mrf.mxu1 }
 0x1e7   : > { %4321 = vst [vmem:[#allocation8_spill] sm:$0xff] %v4225_v53 }
 0x1e8   : > { %v4227_v0 = vpop.f32.mrf.mxu1 }
 0x1e9   : > { %4322 = vst [vmem:[#allocation9_spill] sm:$0xff] %v4227_v0  ;;  %v1595_v0 = vadd.f32 %v4116_v28, %v1385_v29  ;;  %v1619_v28 = vadd.f32 %v4136_v34, %v3121_v32  ;;  %v1632_v34 = vadd.f32 %v4142_v60, %v3124_v51  ;;  %v1635_v32 = vadd.f32 %v4146_v43, %v3125_v19 }
 0x1ea   : > { %v4229_v24 = vpop.f32.mrf.mxu1  ;;  %v1648_v19 = vadd.f32 %v4150_v7, %v4203_v40 }
 0x1eb   : > { %4323 = vst [vmem:[#allocation10_spill] sm:$0xff] %v4229_v24 }
 0x1ec   : > { %v4231_v6 = vpop.f32.mrf.mxu1 }
 0x1ed   : > { %4324 = vst [vmem:[#allocation11_spill] sm:$0xff] %v4231_v6  ;;  %v2284_v6 = vadd.f32 %v2283_v17, %v2092_v63 }
 0x1ee   : > { %v4233_v11 = vpop.f32.mrf.mxu1 }
 0x1ef   : > { %4325 = vst [vmem:[#allocation12_spill] sm:$0xff] %v4233_v11 }
 0x1f0   : > { %v3212_v35 = vpop.f32.mrf.mxu1 }
 0x1f1   : > { %v2095_v24 = vadd.f32 %v3212_v35, %v1600_v9 }
 0x1f2   : > { %v1978_v20 = vpop.f32.mrf.mxu1 }
 0x1f3   : > { %v2093_v13 = vadd.f32 %v1978_v20, %v1592_v49 }
 0x1f4   : > { %v3213_v55 = vpop.f32.mrf.mxu1 }
 0x1f5   : > { %v2096_v45 = vadd.f32 %v3213_v55, %v1603_v47  ;;  %v2285_v11 = vadd.f32 %v2284_v6, %v2093_v13  ;;  %v1611_v55 = vadd.f32 %v4140_v57, %v1401_v33  ;;  %v1624_v57 = vadd.f32 %v4144_v42, %v1414_v18 }
 0x1f6   : > { %v1981_v23 = vpop.f32.mrf.mxu1  ;;  %v1627_v33 = vadd.f32 %v4148_v5, %v4201_v39  ;;  %v1640_v5 = vadd.f32 %v4152_v31, %v4205_v52  ;;  %v1651_v39 = vadd.f32 %v4154_v8, %v4207_v41  ;;  %v1664_v41 = vadd.f32 %v4158_v3, %v4211_v1 }
 0x1f7   : > { %v2819_v53 = vpack.c.bf16 %v2096_v45, %v2095_v24  ;;  %v2094_v30 = vadd.f32 %v1981_v23, %v1595_v0 }
 0x1f8   : > { %v3216_v10 = vpop.f32.mrf.mxu1 }
 0x1f9   : > { %2914 = vst [vmem:[%s4197_s14 + $0x18] sm:$0xff] %v2819_v53   ;;  %v2814_v61 = vpack.c.bf16 %v2094_v30, %v2093_v13  ;;  %v2286_v56 = vadd.f32 %v2285_v11, %v2094_v30  ;;  %v2099_v20 = vadd.f32 %v3216_v10, %v1616_v25  ;;  %v1643_v10 = vadd.f32 %v4156_v62, %v4209_v50 }
 0x1fa   : > { %v1994_v37 = vpop.f32.mrf.mxu1  ;;  %v1656_v62 = vadd.f32 %v4160_v54, %v4213_v21  ;;  %v1667_v50 = vadd.f32 %v4162_v15, %v4215_v58  ;;  %v1680_v58 = vadd.f32 %v4166_v48, %v4219_v46 }
 0x1fb   : > { %2913 = vst [vmem:[%s4197_s14 + $0x10] sm:$0xff] %v2814_v61   ;;  %v2287_v9 = vadd.f32 %v2286_v56, %v2095_v24  ;;  %v2097_v63 = vadd.f32 %v1994_v37, %v1608_v14 }
 0x1fc   : > { %v3217_v47 = vpop.f32.mrf.mxu1 }
 0x1fd   : > { %v2288_v36 = vadd.f32 %v2287_v9, %v2096_v45  ;;  %v2100_v2 = vadd.f32 %v3217_v47, %v1619_v28 }
 0x1fe   : > { %v1997_v13 = vpop.f32.mrf.mxu1 }
 0x1ff   : > { %v2289_v29 = vadd.f32 %v2288_v36, %v2097_v63  ;;  %v2829_v53 = vpack.c.bf16 %v2100_v2, %v2099_v20  ;;  %v2098_v0 = vadd.f32 %v1997_v13, %v1611_v55 }
 0x200   : > { %v3220_v26 = vpop.f32.mrf.mxu1 }
 0x201   : > { %2916 = vst [vmem:[%s4197_s14 + $0x28] sm:$0xff] %v2829_v53   ;;  %v2824_v44 = vpack.c.bf16 %v2098_v0, %v2097_v63  ;;  %v2290_v12 = vadd.f32 %v2289_v29, %v2098_v0  ;;  %v2103_v6 = vadd.f32 %v3220_v26, %v1632_v34  ;;  %v1659_v63 = vadd.f32 %v4164_v22, %v4217_v27  ;;  %v4326_v27 = vld [vmem:[#allocation2_spill] sm:$0xff]  ;;  %v4327_v34 = vld [vmem:[#allocation8_spill] sm:$0xff] }
 0x202   : > { %v2010_v38 = vpop.f32.mrf.mxu1  ;;  %v1672_v22 = vadd.f32 %v4168_v16, %v4221_v4 }
 0x203   : > { %2915 = vst [vmem:[%s4197_s14 + $0x20] sm:$0xff] %v2824_v44   ;;  %v2291_v37 = vadd.f32 %v2290_v12, %v2099_v20  ;;  %v2101_v11 = vadd.f32 %v2010_v38, %v1624_v57  ;;  %v1683_v12 = vadd.f32 %v4326_v27, %v4223_v59  ;;  %v4328_v57 = vld [vmem:[#allocation3_spill] sm:$0xff] }
 0x204   : > { %v3221_v24 = vpop.f32.mrf.mxu1 }
 0x205   : > { %v2292_v35 = vadd.f32 %v2291_v37, %v2100_v2  ;;  %v2104_v17 = vadd.f32 %v3221_v24, %v1635_v32  ;;  %v1675_v32 = vadd.f32 %v4328_v57, %v4327_v34 }
 0x206   : > { %v2013_v49 = vpop.f32.mrf.mxu1 }
 0x207   : > { %v2293_v45 = vadd.f32 %v2292_v35, %v2101_v11  ;;  %v2839_v23 = vpack.c.bf16 %v2104_v17, %v2103_v6  ;;  %v2102_v60 = vadd.f32 %v2013_v49, %v1627_v33 }
 0x208   : > { %v3224_v51 = vpop.f32.mrf.mxu1 }
 0x209   : > { %2918 = vst [vmem:[%s4197_s14 + $0x38] sm:$0xff] %v2839_v23   ;;  %v2834_v42 = vpack.c.bf16 %v2102_v60, %v2101_v11  ;;  %v2294_v18 = vadd.f32 %v2293_v45, %v2102_v60  ;;  %v2107_v56 = vadd.f32 %v3224_v51, %v1648_v19  ;;  %v4329_v45 = vld [vmem:[#allocation9_spill] sm:$0xff]  ;;  %v4330_v23 = vld [vmem:[#allocation4_spill] sm:$0xff]  ;;  %v4331_v51 = vld [vmem:[#allocation10_spill] sm:$0xff] }
 0x20a   : > { %v2026_v43 = vpop.f32.mrf.mxu1  ;;  %v1696_v60 = vadd.f32 %v4330_v23, %v4329_v45  ;;  %v4334_v19 = vld [vmem:[#allocation6_spill] sm:$0xff] }
 0x20b   : > { %2917 = vst [vmem:[%s4197_s14 + $0x30] sm:$0xff] %v2834_v42   ;;  %v2295_v30 = vadd.f32 %v2294_v18, %v2103_v6  ;;  %v2105_v25 = vadd.f32 %v2026_v43, %v1640_v5  ;;  %v4332_v42 = vld [vmem:[#allocation5_spill] sm:$0xff]  ;;  %v4333_v43 = vld [vmem:[#allocation11_spill] sm:$0xff] }
 0x20c   : > { %v3225_v61 = vpop.f32.mrf.mxu1  ;;  %v1688_v18 = vadd.f32 %v4332_v42, %v4331_v51  ;;  %v1699_v5 = vadd.f32 %v4334_v19, %v4333_v43 }
 0x20d   : > { %v2296_v14 = vadd.f32 %v2295_v30, %v2104_v17  ;;  %v2108_v28 = vadd.f32 %v3225_v61, %v1651_v39  ;;  %v4335_v30 = vld [vmem:[#allocation12_spill] sm:$0xff] }
 0x20e   : > { %v2029_v9 = vpop.f32.mrf.mxu1 }
 0x20f   : > { %v2297_v7 = vadd.f32 %v2296_v14, %v2105_v25  ;;  %v2849_v40 = vpack.c.bf16 %v2108_v28, %v2107_v56  ;;  %v2106_v55 = vadd.f32 %v2029_v9, %v1643_v10  ;;  %v4336_v10 = vld [vmem:[#allocation7_spill] sm:$0xff] }
 0x210   : > { %v3228_v47 = vpop.f32.mrf.mxu1  ;;  %v1691_v61 = vadd.f32 %v4336_v10, %v4335_v30 }
 0x211   : > { %2920 = vst [vmem:[%s4197_s14 + $0x48] sm:$0xff] %v2849_v40   ;;  %v2844_v31 = vpack.c.bf16 %v2106_v55, %v2105_v25  ;;  %v2298_v52 = vadd.f32 %v2297_v7, %v2106_v55  ;;  %v2111_v2 = vadd.f32 %v3228_v47, %v1664_v41 }
 0x212   : > { %v2042_v8 = vpop.f32.mrf.mxu1 }
 0x213   : > { %2919 = vst [vmem:[%s4197_s14 + $0x40] sm:$0xff] %v2844_v31   ;;  %v2299_v20 = vadd.f32 %v2298_v52, %v2107_v56  ;;  %v2109_v13 = vadd.f32 %v2042_v8, %v1656_v62 }
 0x214   : > { %v3229_v36 = vpop.f32.mrf.mxu1 }
 0x215   : > { %v2300_v29 = vadd.f32 %v2299_v20, %v2108_v28  ;;  %v2112_v53 = vadd.f32 %v3229_v36, %v1667_v50 }
 0x216   : > { %v2045_v0 = vpop.f32.mrf.mxu1 }
 0x217   : > { %v2301_v3 = vadd.f32 %v2300_v29, %v2109_v13  ;;  %v2859_v1 = vpack.c.bf16 %v2112_v53, %v2111_v2  ;;  %v2110_v26 = vadd.f32 %v2045_v0, %v1659_v63 }
 0x218   : > { %v3232_v44 = vpop.f32.mrf.mxu1 }
 0x219   : > { %2922 = vst [vmem:[%s4197_s14 + $0x58] sm:$0xff] %v2859_v1   ;;  %v2854_v54 = vpack.c.bf16 %v2110_v26, %v2109_v13  ;;  %v2302_v21 = vadd.f32 %v2301_v3, %v2110_v26  ;;  %v2115_v33 = vadd.f32 %v3232_v44, %v1680_v58 }
 0x21a   : > { %v2058_v15 = vpop.f32.mrf.mxu1 }
 0x21b   : > { %2921 = vst [vmem:[%s4197_s14 + $0x50] sm:$0xff] %v2854_v54   ;;  %v2303_v38 = vadd.f32 %v2302_v21, %v2111_v2  ;;  %v2113_v24 = vadd.f32 %v2058_v15, %v1672_v22  ;;  %v2281_v2 = vld [vmem:[%s4186_s28] sm:$0x1] }
 0x21c   : > { %v3233_v37 = vpop.f32.mrf.mxu1 }
 0x21d   : > { %v2304_v6 = vadd.f32 %v2303_v38, %v2112_v53  ;;  %v2116_v11 = vadd.f32 %v3233_v37, %v1683_v12 }
 0x21e   : > { %v2061_v35 = vpop.f32.mrf.mxu1 }
 0x21f   : > { %v2305_v48 = vadd.f32 %v2304_v6, %v2113_v24  ;;  %v2869_v46 = vpack.c.bf16 %v2116_v11, %v2115_v33  ;;  %v2114_v17 = vadd.f32 %v2061_v35, %v1675_v32 }
 0x220   : > { %v3236_v49 = vpop.f32.mrf.mxu1 }
 0x221   : > { %2924 = vst [vmem:[%s4197_s14 + $0x68] sm:$0xff] %v2869_v46   ;;  %v2864_v16 = vpack.c.bf16 %v2114_v17, %v2113_v24  ;;  %v2306_v4 = vadd.f32 %v2305_v48, %v2114_v17  ;;  %v2119_v25 = vadd.f32 %v3236_v49, %v1696_v60 }
 0x222   : > { %v2074_v59 = vpop.f32.mrf.mxu1 }
 0x223   : > { %2923 = vst [vmem:[%s4197_s14 + $0x60] sm:$0xff] %v2864_v16   ;;  %v2307_v39 = vadd.f32 %v2306_v4, %v2115_v33  ;;  %v2117_v14 = vadd.f32 %v2074_v59, %v1688_v18 }
 0x224   : > { %v3237_v56 = vpop.f32.mrf.mxu1 }
 0x225   : > { %v2308_v28 = vadd.f32 %v2307_v39, %v2116_v11  ;;  %v2120_v9 = vadd.f32 %v3237_v56, %v1699_v5 }
 0x226   : > { %v2077_v7 = vpop.f32.mrf.mxu1 }
 0x227   : > { %v2309_v40 = vadd.f32 %v2308_v28, %v2117_v14  ;;  %v2879_v55 = vpack.c.bf16 %v2120_v9, %v2119_v25  ;;  %v2118_v47 = vadd.f32 %v2077_v7, %v1691_v61 }
 0x229   : > { %2926 = vst [vmem:[%s4197_s14 + $0x78] sm:$0xff] %v2879_v55   ;;  %v2874_v31 = vpack.c.bf16 %v2118_v47, %v2117_v14  ;;  %v2310_v52 = vadd.f32 %v2309_v40, %v2118_v47 }
 0x22b   : > { %2925 = vst [vmem:[%s4197_s14 + $0x70] sm:$0xff] %v2874_v31   ;;  %v2311_v8 = vadd.f32 %v2310_v52, %v2119_v25 }
 0x22d   : > { %v2312_v41 = vadd.f32 %v2311_v8, %v2120_v9 }
 0x22f   : > { %v2313_v62 = vrot.slane %v2312_v41, 4 }
 0x231   : > { %v2314_v50 = vadd.f32 %v2313_v62, %v2312_v41 }
 0x233   : > { %v2315_v20 = vrot.slane %v2314_v50, 2 }
 0x235   : > { %v2316_v63 = vadd.f32 %v2315_v20, %v2314_v50 }
 0x237   : > { %v2317_v36 = vrot.slane %v2316_v63, 1 }
 0x239   : > { %v2318_v13 = vadd.f32 %v2317_v36, %v2316_v63 }
 0x23b   : > { %v2319_v29 = vadd.f32 %v2318_v13, %v2281_v2 }
 0x23d   : > { %2320 = vst [vmem:[%s4186_s28] sm:$0x1] %v2319_v29 }
 0x23e PF: > { %s20_s11 = sadd.s32 1, %s3326_s11   ;;  %s4337_s30 = smov %s3322_s10 }
 0x23f   : > { %p17_p5 = scmp.ge.s32.totalorder %s20_s11, 4   ;;  %s4338_s10 = smov %s4340_s12 }
 0x241   :  { %19 = sbr.rel (!%p17_p5) target bundleno = 2 (0x2), region = 112 }

// kernel: _lambda_.12
= control target key start
LH: loop header
LB: loop body
LE: loop exit
PB: predicated region body
PF: predicated region fallthrough
CT: control target
= control target key end

     0   :  { %s3256_s30 = smov 0   ;;  %s4151_s0 = inlined_call_operand.vmem [shape: bf16[2,256,128], index: 0, kind: input, shape index: {}]   ;;  %s4152_s1 = inlined_call_operand.vmem [shape: f32[256,256], index: 1, kind: input, shape index: {}]   ;;  %s4153_s2 = inlined_call_operand.vmem [shape: f32[2,1,128], index: 2, kind: input, shape index: {}]   ;;  %s4154_s3 = inlined_call_operand.vmem [shape: bf16[128,128], index: 3, kind: input, shape index: {}]   ;;  %s4155_s4 = inlined_call_operand.vmem [shape: bf16[128,128], index: 4, kind: input, shape index: {}]   ;;  %s4156_s5 = inlined_call_operand.vmem [shape: bf16[128,128], index: 5, kind: input, shape index: {}]   ;;  %s4157_s6 = inlined_call_operand.vmem [shape: bf16[128,128], index: 6, kind: input, shape index: {}]   ;;  %s4158_s7 = inlined_call_operand.vmem [shape: bf16[2,256,128], index: 7, kind: output, shape index: {0}]   ;;  %s4159_s8 = inlined_call_operand.vmem [shape: f32[2,1,128], index: 8, kind: output, shape index: {1}]   ;;  %s4160_s9 = inlined_call_operand.vmem [shape: f32[2,1,128], index: 9, kind: output, shape index: {2}]  }
   0x1 LB: > { %s2471_s10 = sadd.s32 4294967295, %s3203_s30   ;;  %p2475_p0 = scmp.ge.s32.totalorder %s3203_s30, 1  ;;  %s3203_s30 = sphi %s3256_s30, %s20_s30  }
   0x2   : > { %p300_p1 = scmp.lt.s32.totalorder %s3203_s30, 3 }
   0x4   : > { %p301_p2 = pnand %p2475_p0, %p300_p1 }
   0x5   : > { %p345_p3 = scmp.lt.s32.totalorder (!%p301_p2), %s2471_s10, 1 }
   0x6   : > { %304 = sbr.rel (%p301_p2) target bundleno = 931 (0x3a3), region = 48 }
   0xb   : > { %v783_v0 = vld [vmem:[%s4152_s1 + $0x8] sm:$0xff]  ;;  %v3205_v1 = vmov 0.0   ;;  %s4208_s10 = smov (!%p345_p3, %s2471_s10), 1  ;;  %v3006_v39 = vld [vmem:[%s4154_s3 + $0x38] sm:$0xff]   ;;  %v3007_v43 = vld [vmem:[%s4154_s3 + $0x30] sm:$0xff]  }
   0xc   : > { %878 = vmatprep.subr.mxu1 %v3205_v1  ;;  %942 = vmatprep.mubr.f32.mxu1 %v783_v0  ;;  %s2563_s13 = sshll.u32 %s4208_s10, 7  ;;  %v3008_v47 = vld [vmem:[%s4154_s3 + $0x28] sm:$0xff]   ;;  %v3009_v51 = vld [vmem:[%s4154_s3 + $0x20] sm:$0xff]   ;;  %v3010_v54 = vld [vmem:[%s4154_s3 + $0x18] sm:$0xff]   ;;  %s352_s29 = scalar_lea.vmem %s4153_s2, %s4208_s10 }
   0xd   : > { %s3276_s16 = scalar_lea.vmem %s4151_s0, %s2563_s13  ;;  %2788 = vmatprep.subr.bf16.mxu0 %v3006_v39  ;;  %v3011_v55 = vld [vmem:[%s4154_s3 + $0x10] sm:$0xff]   ;;  %v782_v56 = vld [vmem:[%s4152_s1] sm:$0xff]  ;;  %v785_v57 = vld [vmem:[%s4152_s1 + $0x18] sm:$0xff]  ;;  %s3894_s14 = scalar_lea.vmem %s4158_s7, %s2563_s13 }
   0xe   : > { %v3279_v2 = vld [vmem:[%s3276_s16 + $0x38] sm:$0xff]   ;;  %v3282_v3 = vld [vmem:[%s3276_s16 + $0x30] sm:$0xff]   ;;  %v3291_v7 = vld [vmem:[%s3276_s16 + $0x28] sm:$0xff]   ;;  %2789 = vmatpush3.bf16.msra.mxu0 %v3006_v39  ;;  %s363_s19 = scalar_lea.vmem %s4160_s9, %s4208_s10 }
   0xf   : > { %v861_v4 = vunpack.c.h.bf16 %v3279_v2  ;;  %v860_v5 = vunpack.c.l.bf16 %v3279_v2  ;;  %v859_v6 = vunpack.c.h.bf16 %v3282_v3  ;;  %v858_v8 = vunpack.c.l.bf16 %v3282_v3  ;;  %v3302_v10 = vld [vmem:[%s3276_s16 + $0x20] sm:$0xff]   ;;  %v3313_v13 = vld [vmem:[%s3276_s16 + $0x18] sm:$0xff]   ;;  %v3323_v16 = vld [vmem:[%s3276_s16 + $0x10] sm:$0xff]   ;;  %2790 = vmatprep.subr.bf16.mxu0 %v3007_v43 }
  0x10   : > { %v857_v9 = vunpack.c.h.bf16 %v3291_v7  ;;  %v856_v11 = vunpack.c.l.bf16 %v3291_v7  ;;  %v855_v12 = vunpack.c.h.bf16 %v3302_v10  ;;  %v854_v14 = vunpack.c.l.bf16 %v3302_v10  ;;  %v3334_v19 = vld [vmem:[%s3276_s16 + $0x8] sm:$0xff]   ;;  %v3345_v22 = vld [vmem:[%s3276_s16] sm:$0xff]   ;;  %v3356_v25 = vld [vmem:[%s3276_s16 + $0x78] sm:$0xff]  }
  0x11   : > { %879 = vmatpush1.msra.mxu1 %v861_v4  ;;  %v4162_v15 = vunpack.c.h.bf16 %v3313_v13  ;;  %v4163_v17 = vunpack.c.l.bf16 %v3313_v13  ;;  %v4161_v18 = vunpack.c.h.bf16 %v3323_v16  ;;  %v4164_v20 = vunpack.c.l.bf16 %v3323_v16  ;;  %v3367_v28 = vld [vmem:[%s3276_s16 + $0x70] sm:$0xff]   ;;  %v3378_v31 = vld [vmem:[%s3276_s16 + $0x68] sm:$0xff]   ;;  %v3390_v34 = vld [vmem:[%s3276_s16 + $0x60] sm:$0xff]   ;;  %2804 = vmatprep.mubr.bf16.mxu0 %v3345_v22 }
  0x12   : > { %880 = vmatprep.subr.mxu1 %v3205_v1  ;;  %v4166_v21 = vunpack.c.h.bf16 %v3334_v19  ;;  %v4167_v23 = vunpack.c.l.bf16 %v3334_v19  ;;  %v4165_v24 = vunpack.c.h.bf16 %v3345_v22  ;;  %v4168_v26 = vunpack.c.l.bf16 %v3345_v22  ;;  %v3401_v37 = vld [vmem:[%s3276_s16 + $0x58] sm:$0xff]   ;;  %v3415_v41 = vld [vmem:[%s3276_s16 + $0x50] sm:$0xff]   ;;  %v3429_v45 = vld [vmem:[%s3276_s16 + $0x48] sm:$0xff]   ;;  %2791 = vmatpush3.bf16.msra.mxu0 %v3007_v43 }
  0x13   : > { %881 = vmatpush1.msra.mxu1 %v860_v5  ;;  %v4171_v27 = vunpack.c.h.bf16 %v3356_v25  ;;  %v4172_v29 = vunpack.c.l.bf16 %v3356_v25  ;;  %v4169_v30 = vunpack.c.h.bf16 %v3367_v28  ;;  %v4170_v32 = vunpack.c.l.bf16 %v3367_v28  ;;  %v3443_v49 = vld [vmem:[%s3276_s16 + $0x40] sm:$0xff]   ;;  %2792 = vmatprep.subr.bf16.mxu0 %v3008_v47  ;;  %v3012_v58 = vld [vmem:[%s4154_s3 + $0x8] sm:$0xff]   ;;  %v784_v59 = vld [vmem:[%s4152_s1 + $0x10] sm:$0xff]  ;;  %s360_s16 = scalar_lea.vmem %s4159_s8, %s4208_s10 }
  0x14   : > { %882 = vmatprep.subr.mxu1 %v3205_v1  ;;  %v4175_v33 = vunpack.c.h.bf16 %v3378_v31  ;;  %v4176_v35 = vunpack.c.l.bf16 %v3378_v31  ;;  %v4173_v36 = vunpack.c.h.bf16 %v3390_v34  ;;  %v4174_v38 = vunpack.c.l.bf16 %v3390_v34  ;;  %v787_v60 = vld [vmem:[%s4152_s1 + $0x28] sm:$0xff]  ;;  %v3013_v61 = vld [vmem:[%s4154_s3] sm:$0xff]   ;;  %v789_v63 = vld [vmem:[%s4152_s1 + $0x38] sm:$0xff] }
  0x15   : > { %883 = vmatpush1.msra.mxu1 %v859_v6  ;;  %v4179_v40 = vunpack.c.h.bf16 %v3401_v37  ;;  %v4180_v42 = vunpack.c.l.bf16 %v3401_v37  ;;  %v4177_v44 = vunpack.c.h.bf16 %v3415_v41  ;;  %v4178_v46 = vunpack.c.l.bf16 %v3415_v41  ;;  %v786_v62 = vld [vmem:[%s4152_s1 + $0x20] sm:$0xff]  ;;  %v3023_v0 = vld [vmem:[%s4156_s5 + $0x38] sm:$0xff]   ;;  %v791_v39 = vld [vmem:[%s4152_s1 + $0x48] sm:$0xff] }
  0x16   : > { %884 = vmatprep.subr.mxu1 %v3205_v1  ;;  %v4183_v48 = vunpack.c.h.bf16 %v3429_v45  ;;  %v864_v50 = vunpack.c.l.bf16 %v3429_v45  ;;  %2793 = vmatpush3.bf16.msra.mxu0 %v3008_v47  ;;  %v4181_v52 = vunpack.c.h.bf16 %v3443_v49  ;;  %v4182_v53 = vunpack.c.l.bf16 %v3443_v49  ;;  %v3024_v43 = vld [vmem:[%s4156_s5 + $0x30] sm:$0xff]   ;;  %v790_v47 = vld [vmem:[%s4152_s1 + $0x40] sm:$0xff] }
  0x17   : > { %885 = vmatpush1.msra.mxu1 %v858_v8  ;;  %2794 = vmatprep.subr.bf16.mxu0 %v3009_v51 }
  0x18   : > { %886 = vmatprep.subr.mxu1 %v3205_v1 }
  0x19   : > { %887 = vmatpush1.msra.mxu1 %v857_v9 }
  0x1a   : > { %888 = vmatprep.subr.mxu1 %v3205_v1  ;;  %2795 = vmatpush3.bf16.msra.mxu0 %v3009_v51  ;;  %v793_v51 = vld [vmem:[%s4152_s1 + $0x58] sm:$0xff] }
  0x1b   : > { %889 = vmatpush1.msra.mxu1 %v856_v11  ;;  %2796 = vmatprep.subr.bf16.mxu0 %v3010_v54 }
  0x1c   : > { %890 = vmatprep.subr.mxu1 %v3205_v1 }
  0x1d   : > { %891 = vmatpush1.msra.mxu1 %v855_v12 }
  0x1e   : > { %892 = vmatprep.subr.mxu1 %v3205_v1  ;;  %2797 = vmatpush3.bf16.msra.mxu0 %v3010_v54  ;;  %v3027_v54 = vld [vmem:[%s4156_s5 + $0x28] sm:$0xff]  }
  0x1f   : > { %893 = vmatpush1.msra.mxu1 %v854_v14  ;;  %2798 = vmatprep.subr.bf16.mxu0 %v3011_v55 }
  0x20   : > { %894 = vmatprep.subr.mxu1 %v3205_v1 }
  0x21   : > { %895 = vmatpush1.msra.mxu1 %v4162_v15  ;;  %v3759_v15 = vld [vmem:[%s4155_s4 + $0x8] sm:$0xff]  }
  0x22   : > { %896 = vmatprep.subr.mxu1 %v3205_v1  ;;  %2799 = vmatpush3.bf16.msra.mxu0 %v3011_v55  ;;  %v792_v55 = vld [vmem:[%s4152_s1 + $0x50] sm:$0xff] }
  0x23   : > { %897 = vmatpush1.msra.mxu1 %v4163_v17  ;;  %2800 = vmatprep.subr.bf16.mxu0 %v3012_v58 }
  0x24   : > { %898 = vmatprep.subr.mxu1 %v3205_v1 }
  0x25   : > { %899 = vmatpush1.msra.mxu1 %v4161_v18 }
  0x26   : > { %900 = vmatprep.subr.mxu1 %v3205_v1  ;;  %2801 = vmatpush3.bf16.msra.mxu0 %v3012_v58  ;;  %v794_v58 = vld [vmem:[%s4152_s1 + $0x60] sm:$0xff] }
  0x27   : > { %901 = vmatpush1.msra.mxu1 %v4164_v20  ;;  %2802 = vmatprep.subr.bf16.mxu0 %v3013_v61 }
  0x28   : > { %902 = vmatprep.subr.mxu1 %v3205_v1 }
  0x29   : > { %903 = vmatpush1.msra.mxu1 %v4166_v21 }
  0x2a   : > { %904 = vmatprep.subr.mxu1 %v3205_v1  ;;  %2803 = vmatpush3.bf16.msra.mxu0 %v3013_v61  ;;  %v796_v61 = vld [vmem:[%s4152_s1 + $0x70] sm:$0xff] }
  0x2b   : > { %905 = vmatpush1.msra.mxu1 %v4167_v23  ;;  %2836 = vmatprep.subr.bf16.mxu0 %v3023_v0 }
  0x2c   : > { %906 = vmatprep.subr.mxu1 %v3205_v1 }
  0x2d   : > { %907 = vmatpush1.msra.mxu1 %v4165_v24  ;;  %2805 = vmatmul.mubr.bf16.vlgmr.msra.gmra.mxu0 %v3334_v19 }
  0x2e   : > { %908 = vmatprep.subr.mxu1 %v3205_v1  ;;  %2808 = vmatprep.mubr.bf16.mxu0 %v3323_v16 }
  0x2f   : > { %909 = vmatpush1.msra.mxu1 %v4168_v26  ;;  %2837 = vmatpush3.bf16.msra.mxu0 %v3023_v0  ;;  %v801_v0 = vld [vmem:[%s4152_s1 + $0x98] sm:$0xff] }
  0x30   : > { %910 = vmatprep.subr.mxu1 %v3205_v1  ;;  %2838 = vmatprep.subr.bf16.mxu0 %v3024_v43 }
  0x31   : > { %911 = vmatpush2.msra.mxu1 %v4171_v27 }
  0x32   : > { %912 = vmatprep.subr.mxu1 %v3205_v1 }
  0x33   : > { %913 = vmatpush2.msra.mxu1 %v4172_v29  ;;  %2839 = vmatpush3.bf16.msra.mxu0 %v3024_v43  ;;  %v802_v43 = vld [vmem:[%s4152_s1 + $0xa0] sm:$0xff] }
  0x34   : > { %914 = vmatprep.subr.mxu1 %v3205_v1  ;;  %2840 = vmatprep.subr.bf16.mxu0 %v3027_v54 }
  0x35   : > { %915 = vmatpush2.msra.mxu1 %v4169_v30  ;;  %2809 = vmatmul.mubr.bf16.gmra.mxu0 %v3313_v13 }
  0x36   : > { %916 = vmatprep.subr.mxu1 %v3205_v1  ;;  %2812 = vmatprep.mubr.bf16.mxu0 %v3302_v10 }
  0x37   : > { %917 = vmatpush2.msra.mxu1 %v4170_v32  ;;  %2841 = vmatpush3.bf16.msra.mxu0 %v3027_v54  ;;  %v807_v54 = vld [vmem:[%s4152_s1 + $0xc8] sm:$0xff] }
  0x38   : > { %918 = vmatprep.subr.mxu1 %v3205_v1 }
  0x39   : > { %919 = vmatpush2.msra.mxu1 %v4175_v33 }
  0x3a   : > { %920 = vmatprep.subr.mxu1 %v3205_v1 }
  0x3b   : > { %921 = vmatpush2.msra.mxu1 %v4176_v35 }
  0x3c   : > { %922 = vmatprep.subr.mxu1 %v3205_v1 }
  0x3d   : > { %923 = vmatpush2.msra.mxu1 %v4173_v36  ;;  %2813 = vmatmul.mubr.bf16.gmra.mxu0 %v3291_v7 }
  0x3e   : > { %924 = vmatprep.subr.mxu1 %v3205_v1  ;;  %2816 = vmatprep.mubr.bf16.mxu0 %v3282_v3 }
  0x3f   : > { %925 = vmatpush2.msra.mxu1 %v4174_v38 }
  0x40   : > { %926 = vmatprep.subr.mxu1 %v3205_v1 }
  0x41   : > { %927 = vmatpush2.msra.mxu1 %v4179_v40 }
  0x42   : > { %928 = vmatprep.subr.mxu1 %v3205_v1 }
  0x43   : > { %929 = vmatpush2.msra.mxu1 %v4180_v42 }
  0x44   : > { %930 = vmatprep.subr.mxu1 %v3205_v1 }
  0x45   : > { %931 = vmatpush2.msra.mxu1 %v4177_v44  ;;  %2817 = vmatmul.mubr.bf16.gmra.mxu0 %v3279_v2 }
  0x46   : > { %932 = vmatprep.subr.mxu1 %v3205_v1  ;;  %2820 = vmatprep.mubr.bf16.mxu0 %v3443_v49 }
  0x47   : > { %933 = vmatpush2.msra.mxu1 %v4178_v46 }
  0x48   : > { %934 = vmatprep.subr.mxu1 %v3205_v1 }
  0x49   : > { %935 = vmatpush2.msra.mxu1 %v4183_v48 }
  0x4a   : > { %936 = vmatprep.subr.mxu1 %v3205_v1 }
  0x4b   : > { %937 = vmatpush2.msra.mxu1 %v864_v50 }
  0x4c   : > { %938 = vmatprep.subr.mxu1 %v3205_v1 }
  0x4d   : > { %939 = vmatpush2.msra.mxu1 %v4181_v52  ;;  %2821 = vmatmul.mubr.bf16.gmra.mxu0 %v3429_v45 }
  0x4e   : > { %940 = vmatprep.subr.mxu1 %v3205_v1  ;;  %v788_v1 = vld [vmem:[%s4152_s1 + $0x30] sm:$0xff]  ;;  %2824 = vmatprep.mubr.bf16.mxu0 %v3415_v41 }
  0x4f   : > { %941 = vmatpush2.msra.mxu1 %v4182_v53 }
  0x50   : > { %943 = vmatmul.mubr.f32.vlgmr.msra.gmra.mxu1 %v782_v56  ;;  %v795_v56 = vld [vmem:[%s4152_s1 + $0x68] sm:$0xff] }
  0x51   : > { %947 = vmatprep.mubr.f32.mxu1 %v785_v57  ;;  %v3028_v57 = vld [vmem:[%s4156_s5 + $0x20] sm:$0xff]  }
  0x52   : > { %2842 = vmatprep.subr.bf16.mxu0 %v3028_v57 }
  0x53   : > { %2843 = vmatpush3.bf16.msra.mxu0 %v3028_v57  ;;  %v808_v57 = vld [vmem:[%s4152_s1 + $0xd0] sm:$0xff] }
  0x54   : > { %948 = vmatmul.mubr.f32.gmra.mxu1 %v784_v59  ;;  %v797_v59 = vld [vmem:[%s4152_s1 + $0x78] sm:$0xff] }
  0x55   : > { %952 = vmatprep.mubr.f32.mxu1 %v787_v60  ;;  %v3031_v60 = vld [vmem:[%s4156_s5 + $0x18] sm:$0xff]   ;;  %2825 = vmatmul.mubr.bf16.gmra.mxu0 %v3401_v37 }
  0x56   : > { %2844 = vmatprep.subr.bf16.mxu0 %v3031_v60  ;;  %2828 = vmatprep.mubr.bf16.mxu0 %v3390_v34 }
  0x57   : > { %2845 = vmatpush3.bf16.msra.mxu0 %v3031_v60  ;;  %v813_v60 = vld [vmem:[%s4152_s1 + $0xf8] sm:$0xff] }
  0x58   : > { %953 = vmatmul.mubr.f32.gmra.mxu1 %v786_v62  ;;  %v799_v62 = vld [vmem:[%s4152_s1 + $0x88] sm:$0xff] }
  0x59   : > { %957 = vmatprep.mubr.f32.mxu1 %v789_v63  ;;  %v798_v63 = vld [vmem:[%s4152_s1 + $0x80] sm:$0xff] }
  0x5c   : > { %958 = vmatmul.mubr.f32.gmra.mxu1 %v788_v1  ;;  %v800_v1 = vld [vmem:[%s4152_s1 + $0x90] sm:$0xff] }
  0x5d   : > { %962 = vmatprep.mubr.f32.mxu1 %v791_v39  ;;  %v803_v39 = vld [vmem:[%s4152_s1 + $0xa8] sm:$0xff]  ;;  %2829 = vmatmul.mubr.bf16.gmra.mxu0 %v3378_v31 }
  0x5e   : > { %2832 = vmatprep.mubr.bf16.mxu0 %v3367_v28 }
  0x60   : > { %963 = vmatmul.mubr.f32.gmra.mxu1 %v790_v47  ;;  %v805_v47 = vld [vmem:[%s4152_s1 + $0xb8] sm:$0xff] }
  0x61   : > { %967 = vmatprep.mubr.f32.mxu1 %v793_v51  ;;  %v804_v51 = vld [vmem:[%s4152_s1 + $0xb0] sm:$0xff] }
  0x64   : > { %968 = vmatmul.mubr.f32.gmra.mxu1 %v792_v55  ;;  %v806_v55 = vld [vmem:[%s4152_s1 + $0xc0] sm:$0xff] }
  0x65   : > { %972 = vmatprep.mubr.f32.mxu1 %v795_v56  ;;  %v809_v56 = vld [vmem:[%s4152_s1 + $0xd8] sm:$0xff]  ;;  %2833 = vmatmul.mubr.bf16.gmra.mxu0 %v3356_v25 }
  0x68   : > { %973 = vmatmul.mubr.f32.gmra.mxu1 %v794_v58  ;;  %v811_v58 = vld [vmem:[%s4152_s1 + $0xe8] sm:$0xff] }
  0x69   : > { %977 = vmatprep.mubr.f32.mxu1 %v797_v59  ;;  %v810_v59 = vld [vmem:[%s4152_s1 + $0xe0] sm:$0xff] }
  0x6c   : > { %978 = vmatmul.mubr.f32.gmra.mxu1 %v796_v61  ;;  %v812_v61 = vld [vmem:[%s4152_s1 + $0xf0] sm:$0xff] }
  0x6d   : > { %982 = vmatprep.mubr.f32.mxu1 %v799_v62  ;;  %v815_v62 = vld [vmem:[%s4152_s1 + $0x108] sm:$0xff] }
  0x70   : > { %983 = vmatmul.mubr.f32.gmra.mxu1 %v798_v63  ;;  %v814_v63 = vld [vmem:[%s4152_s1 + $0x100] sm:$0xff] }
  0x71   : > { %987 = vmatprep.mubr.f32.mxu1 %v801_v0  ;;  %v817_v0 = vld [vmem:[%s4152_s1 + $0x118] sm:$0xff] }
  0x74   : > { %988 = vmatmul.mubr.f32.gmra.mxu1 %v800_v1  ;;  %v816_v1 = vld [vmem:[%s4152_s1 + $0x110] sm:$0xff] }
  0x75   : > { %992 = vmatprep.mubr.f32.mxu1 %v803_v39  ;;  %v3032_v39 = vld [vmem:[%s4156_s5 + $0x10] sm:$0xff]  }
  0x76   : > { %2846 = vmatprep.subr.bf16.mxu0 %v3032_v39 }
  0x77   : > { %2847 = vmatpush3.bf16.msra.mxu0 %v3032_v39  ;;  %v830_v39 = vld [vmem:[%s4152_s1 + $0x180] sm:$0xff] }
  0x78   : > { %993 = vmatmul.mubr.f32.gmra.mxu1 %v802_v43  ;;  %v819_v43 = vld [vmem:[%s4152_s1 + $0x128] sm:$0xff] }
  0x79   : > { %997 = vmatprep.mubr.f32.mxu1 %v805_v47  ;;  %v818_v47 = vld [vmem:[%s4152_s1 + $0x120] sm:$0xff] }
  0x7c   : > { %998 = vmatmul.mubr.f32.gmra.mxu1 %v804_v51  ;;  %v3035_v51 = vld [vmem:[%s4156_s5 + $0x8] sm:$0xff]  }
  0x7d   : > { %1002 = vmatprep.mubr.f32.mxu1 %v807_v54  ;;  %v821_v54 = vld [vmem:[%s4152_s1 + $0x138] sm:$0xff]  ;;  %2848 = vmatprep.subr.bf16.mxu0 %v3035_v51 }
  0x7e   : > { %2849 = vmatpush3.bf16.msra.mxu0 %v3035_v51  ;;  %v835_v51 = vld [vmem:[%s4152_s1 + $0x1a8] sm:$0xff] }
  0x80   : > { %1003 = vmatmul.mubr.f32.gmra.mxu1 %v806_v55  ;;  %v820_v55 = vld [vmem:[%s4152_s1 + $0x130] sm:$0xff] }
  0x81   : > { %1007 = vmatprep.mubr.f32.mxu1 %v809_v56  ;;  %v3036_v56 = vld [vmem:[%s4156_s5] sm:$0xff]  }
  0x82   : > { %2850 = vmatprep.subr.bf16.mxu0 %v3036_v56 }
  0x83   : > { %2851 = vmatpush3.bf16.msra.mxu0 %v3036_v56  ;;  %v836_v56 = vld [vmem:[%s4152_s1 + $0x1b0] sm:$0xff] }
  0x84   : > { %1008 = vmatmul.mubr.f32.gmra.mxu1 %v808_v57  ;;  %v823_v57 = vld [vmem:[%s4152_s1 + $0x148] sm:$0xff] }
  0x85   : > { %1012 = vmatprep.mubr.f32.mxu1 %v811_v58  ;;  %v822_v58 = vld [vmem:[%s4152_s1 + $0x140] sm:$0xff] }
  0x88   : > { %1013 = vmatmul.mubr.f32.gmra.mxu1 %v810_v59  ;;  %v825_v59 = vld [vmem:[%s4152_s1 + $0x158] sm:$0xff] }
  0x89   : > { %1017 = vmatprep.mubr.f32.mxu1 %v813_v60  ;;  %v824_v60 = vld [vmem:[%s4152_s1 + $0x150] sm:$0xff] }
  0x8c   : > { %1018 = vmatmul.mubr.f32.gmra.mxu1 %v812_v61  ;;  %v827_v61 = vld [vmem:[%s4152_s1 + $0x168] sm:$0xff] }
  0x8d   : > { %1022 = vmatprep.mubr.f32.mxu1 %v815_v62  ;;  %v826_v62 = vld [vmem:[%s4152_s1 + $0x160] sm:$0xff] }
  0x90   : > { %1023 = vmatmul.mubr.f32.gmra.mxu1 %v814_v63  ;;  %v829_v63 = vld [vmem:[%s4152_s1 + $0x178] sm:$0xff] }
  0x91   : > { %1027 = vmatprep.mubr.f32.mxu1 %v817_v0  ;;  %v828_v0 = vld [vmem:[%s4152_s1 + $0x170] sm:$0xff] }
  0x94   : > { %1028 = vmatmul.mubr.f32.gmra.mxu1 %v816_v1  ;;  %v831_v1 = vld [vmem:[%s4152_s1 + $0x188] sm:$0xff] }
  0x95   : > { %1032 = vmatprep.mubr.f32.mxu1 %v819_v43  ;;  %v833_v43 = vld [vmem:[%s4152_s1 + $0x198] sm:$0xff] }
  0x98   : > { %1033 = vmatmul.mubr.f32.gmra.mxu1 %v818_v47  ;;  %v832_v47 = vld [vmem:[%s4152_s1 + $0x190] sm:$0xff] }
  0x99   : > { %1037 = vmatprep.mubr.f32.mxu1 %v821_v54  ;;  %v834_v54 = vld [vmem:[%s4152_s1 + $0x1a0] sm:$0xff] }
  0x9c   : > { %1038 = vmatmul.mubr.f32.gmra.mxu1 %v820_v55  ;;  %v837_v55 = vld [vmem:[%s4152_s1 + $0x1b8] sm:$0xff] }
  0x9d   : > { %1042 = vmatprep.mubr.f32.mxu1 %v823_v57  ;;  %v839_v57 = vld [vmem:[%s4152_s1 + $0x1c8] sm:$0xff] }
  0xa0   : > { %1043 = vmatmul.mubr.f32.gmra.mxu1 %v822_v58  ;;  %v838_v58 = vld [vmem:[%s4152_s1 + $0x1c0] sm:$0xff] }
  0xa1   : > { %1047 = vmatprep.mubr.f32.mxu1 %v825_v59  ;;  %v841_v59 = vld [vmem:[%s4152_s1 + $0x1d8] sm:$0xff] }
  0xa4   : > { %1048 = vmatmul.mubr.f32.gmra.mxu1 %v824_v60  ;;  %v840_v60 = vld [vmem:[%s4152_s1 + $0x1d0] sm:$0xff] }
  0xa5   : > { %1052 = vmatprep.mubr.f32.mxu1 %v827_v61  ;;  %v843_v61 = vld [vmem:[%s4152_s1 + $0x1e8] sm:$0xff] }
  0xa8   : > { %1053 = vmatmul.mubr.f32.gmra.mxu1 %v826_v62  ;;  %v842_v62 = vld [vmem:[%s4152_s1 + $0x1e0] sm:$0xff] }
  0xa9   : > { %1057 = vmatprep.mubr.f32.mxu1 %v829_v63  ;;  %v845_v63 = vld [vmem:[%s4152_s1 + $0x1f8] sm:$0xff] }
  0xac   : > { %1058 = vmatmul.mubr.f32.gmra.mxu1 %v828_v0  ;;  %v844_v0 = vld [vmem:[%s4152_s1 + $0x1f0] sm:$0xff] }
  0xad   : > { %1062 = vmatprep.mubr.f32.mxu1 %v831_v1  ;;  %v3709_v1 = vld [vmem:[%s4155_s4 + $0x38] sm:$0xff]  }
  0xae   : > { %2980 = vmatprep.subr.bf16.mxu1 %v3709_v1 }
  0xaf   : > { %2988 = vmatpush3.bf16.msra.mxu1 %v3709_v1 }
  0xb0   : > { %1063 = vmatmul.mubr.f32.gmra.mxu1 %v830_v39  ;;  %v3714_v39 = vld [vmem:[%s4155_s4 + $0x30] sm:$0xff]  }
  0xb1   : > { %1067 = vmatprep.mubr.f32.mxu1 %v833_v43  ;;  %v3039_v43 = vld [vmem:[%s4157_s6 + $0x38] sm:$0xff]   ;;  %2981 = vmatprep.subr.bf16.mxu1 %v3714_v39 }
  0xb2   : > { %2884 = vmatprep.subr.bf16.mxu0 %v3039_v43 }
  0xb3   : > { %2989 = vmatpush3.bf16.msra.mxu1 %v3714_v39 }
  0xb4   : > { %1068 = vmatmul.mubr.f32.gmra.mxu1 %v832_v47 }
  0xb5   : > { %1072 = vmatprep.mubr.f32.mxu1 %v835_v51 }
  0xb8   : > { %1073 = vmatmul.mubr.f32.gmra.mxu1 %v834_v54  ;;  %v3725_v54 = vld [vmem:[%s4155_s4 + $0x28] sm:$0xff]  }
  0xb9   : > { %1077 = vmatprep.mubr.f32.mxu1 %v837_v55  ;;  %2982 = vmatprep.subr.bf16.mxu1 %v3725_v54 }
  0xba   : > { %2990 = vmatpush3.bf16.msra.mxu1 %v3725_v54 }
  0xbc   : > { %1078 = vmatmul.mubr.f32.gmra.mxu1 %v836_v56 }
  0xbd   : > { %1082 = vmatprep.mubr.f32.mxu1 %v839_v57 }
  0xc0   : > { %1083 = vmatmul.mubr.f32.gmra.mxu1 %v838_v58  ;;  %v3732_v58 = vld [vmem:[%s4155_s4 + $0x20] sm:$0xff]  }
  0xc1   : > { %1087 = vmatprep.mubr.f32.mxu1 %v841_v59  ;;  %2983 = vmatprep.subr.bf16.mxu1 %v3732_v58 }
  0xc2   : > { %2991 = vmatpush3.bf16.msra.mxu1 %v3732_v58 }
  0xc4   : > { %1088 = vmatmul.mubr.f32.gmra.mxu1 %v840_v60 }
  0xc5   : > { %1092 = vmatprep.mubr.f32.mxu1 %v843_v61  ;;  %v3739_v61 = vld [vmem:[%s4155_s4 + $0x18] sm:$0xff]  }
  0xc6   : > { %2984 = vmatprep.subr.bf16.mxu1 %v3739_v61 }
  0xc7   : > { %2992 = vmatpush3.bf16.msra.mxu1 %v3739_v61 }
  0xc8   : > { %1093 = vmatmul.mubr.f32.gmra.mxu1 %v842_v62 }
  0xc9   : > { %1097 = vmatprep.mubr.f32.mxu1 %v845_v63 }
  0xcc   : > { %1098 = vmatmul.mubr.f32.gmra.mxu1 %v844_v0  ;;  %v3041_v0 = vld [vmem:[%s4157_s6 + $0x30] sm:$0xff]  }
 0x110   : > { %v944_v47 = vpop.f32.mrf.mxu1 }
 0x112   : > { %v946_v51 = vpop.f32.mrf.mxu1 }
 0x113   : > { %v2806_v51 = vpop.f32.mrf.mxu0 }
 0x114   : > { %v949_v55 = vpop.f32.mrf.mxu1 }
 0x115   : > { %v1103_v56 = vpack.c.bf16 %v949_v55, %v944_v47  ;;  %v3749_v55 = vld [vmem:[%s4155_s4 + $0x10] sm:$0xff]  }
 0x116   : > { %v951_v57 = vpop.f32.mrf.mxu1  ;;  %2985 = vmatprep.subr.bf16.mxu1 %v3749_v55 }
 0x117   : > { %2852 = vmatprep.mubr.bf16.mxu0 %v1103_v56  ;;  %v591_v57 = vpop.f32.mrf.mxu0  ;;  %2993 = vmatpush3.bf16.msra.mxu1 %v3749_v55 }
 0x118   : > { %v954_v59 = vpop.f32.mrf.mxu1  ;;  %2986 = vmatprep.subr.bf16.mxu1 %v3759_v15 }
 0x11a   : > { %v956_v60 = vpop.f32.mrf.mxu1 }
 0x11b   : > { %v3043_v60 = vld [vmem:[%s4157_s6 + $0x28] sm:$0xff]   ;;  %2994 = vmatpush3.bf16.msra.mxu1 %v3759_v15 }
 0x11c   : > { %v959_v62 = vpop.f32.mrf.mxu1 }
 0x11d   : > { %v1104_v63 = vpack.c.bf16 %v959_v62, %v954_v59  ;;  %v720_v59 = vmax.f32 %v2806_v51, 0.0 }
 0x11e   : > { %v961_v47 = vpop.f32.mrf.mxu1 }
 0x11f   : > { %2853 = vmatmul.mubr.bf16.vlgmr.msra.gmra.mxu0 %v1104_v63  ;;  %v2807_v47 = vpop.f32.mrf.mxu0  ;;  %v718_v63 = vmax.f32 %v591_v57, 0.0  ;;  %v3045_v57 = vld [vmem:[%s4157_s6 + $0x20] sm:$0xff]  }
 0x120   : > { %v964_v56 = vpop.f32.mrf.mxu1  ;;  %2885 = vmatpush3.bf16.msra.mxu0 %v3039_v43  ;;  %v721_v18 = vmax.f32 %v2807_v47, 0.0 }
 0x121   : > { %2886 = vmatprep.subr.bf16.mxu0 %v3041_v0  ;;  %v594_v51 = vpop.f32.mrf.mxu0 }
 0x122   : > { %v966_v62 = vpop.f32.mrf.mxu1  ;;  %v3761_v20 = vpack.c.bf16 %v721_v18, %v720_v59  ;;  %v719_v24 = vmax.f32 %v594_v51, 0.0 }
 0x123   : > { %v2810_v47 = vpop.f32.mrf.mxu0 }
 0x124   : > { %v969_v43 = vpop.f32.mrf.mxu1  ;;  %2887 = vmatpush3.bf16.msra.mxu0 %v3041_v0  ;;  %v3767_v21 = vpack.c.bf16 %v719_v24, %v718_v63  ;;  %v724_v18 = vmax.f32 %v2810_v47, 0.0 }
 0x125   : > { %v1105_v17 = vpack.c.bf16 %v969_v43, %v964_v56  ;;  %2888 = vmatprep.subr.bf16.mxu0 %v3043_v60  ;;  %v607_v0 = vpop.f32.mrf.mxu0  ;;  %v3047_v56 = vld [vmem:[%s4157_s6 + $0x18] sm:$0xff]  }
 0x126   : > { %v971_v62 = vpop.f32.mrf.mxu1  ;;  %v722_v51 = vmax.f32 %v607_v0, 0.0 }
 0x127   : > { %2856 = vmatprep.mubr.bf16.mxu0 %v1105_v17  ;;  %v2811_v43 = vpop.f32.mrf.mxu0 }
 0x128   : > { %v974_v23 = vpop.f32.mrf.mxu1  ;;  %2889 = vmatpush3.bf16.msra.mxu0 %v3043_v60  ;;  %v725_v62 = vmax.f32 %v2811_v43, 0.0 }
 0x129   : > { %2890 = vmatprep.subr.bf16.mxu0 %v3045_v57  ;;  %v610_v24 = vpop.f32.mrf.mxu0 }
 0x12a   : > { %v976_v59 = vpop.f32.mrf.mxu1  ;;  %v3774_v26 = vpack.c.bf16 %v725_v62, %v724_v18  ;;  %v723_v30 = vmax.f32 %v610_v24, 0.0 }
 0x12b   : > { %v3776_v47 = vpop.f32.mrf.mxu0 }
 0x12c   : > { %v979_v17 = vpop.f32.mrf.mxu1  ;;  %2891 = vmatpush3.bf16.msra.mxu0 %v3045_v57  ;;  %v3778_v32 = vpack.c.bf16 %v723_v30, %v722_v51 }
 0x12d   : > { %v1106_v63 = vpack.c.bf16 %v979_v17, %v974_v23  ;;  %2892 = vmatprep.subr.bf16.mxu0 %v3047_v56  ;;  %v623_v27 = vpop.f32.mrf.mxu0 }
 0x12e   : > { %v981_v60 = vpop.f32.mrf.mxu1  ;;  %v726_v43 = vmax.f32 %v623_v27, 0.0 }
 0x12f   : > { %2857 = vmatmul.mubr.bf16.gmra.mxu0 %v1106_v63  ;;  %v3780_v0 = vpop.f32.mrf.mxu0 }
 0x130   : > { %v984_v59 = vpop.f32.mrf.mxu1  ;;  %2893 = vmatpush3.bf16.msra.mxu0 %v3047_v56 }
 0x131   : > { %v626_v57 = vpop.f32.mrf.mxu0 }
 0x132   : > { %v986_v29 = vpop.f32.mrf.mxu1  ;;  %v727_v18 = vmax.f32 %v626_v57, 0.0 }
 0x133   : > { %v3782_v17 = vpop.f32.mrf.mxu0 }
 0x134   : > { %v989_v36 = vpop.f32.mrf.mxu1  ;;  %v754_v24 = vpack.c.bf16 %v727_v18, %v726_v43 }
 0x135   : > { %v1107_v23 = vpack.c.bf16 %v989_v36, %v984_v59  ;;  %v639_v63 = vpop.f32.mrf.mxu0 }
 0x136   : > { %v991_v62 = vpop.f32.mrf.mxu1  ;;  %2956 = vmatprep.mubr.bf16.mxu1 %v754_v24 }
 0x137   : > { %2860 = vmatprep.mubr.bf16.mxu0 %v1107_v23  ;;  %v3784_v51 = vpop.f32.mrf.mxu0 }
 0x138   : > { %v994_v60 = vpop.f32.mrf.mxu1 }
 0x139   : > { %v642_v33 = vpop.f32.mrf.mxu0 }
 0x13a   : > { %v996_v30 = vpop.f32.mrf.mxu1 }
 0x13b   : > { %v3786_v36 = vpop.f32.mrf.mxu0 }
 0x13c   : > { %v999_v56 = vpop.f32.mrf.mxu1 }
 0x13d   : > { %v1108_v29 = vpack.c.bf16 %v999_v56, %v994_v60  ;;  %v3788_v23 = vpop.f32.mrf.mxu0 }
 0x13e   : > { %v1001_v38 = vpop.f32.mrf.mxu1 }
 0x13f   : > { %2861 = vmatmul.mubr.bf16.gmra.mxu0 %v1108_v29  ;;  %v3790_v24 = vpop.f32.mrf.mxu0 }
 0x140   : > { %v1004_v27 = vpop.f32.mrf.mxu1 }
 0x141   : > { %v658_v38 = vpop.f32.mrf.mxu0 }
 0x142   : > { %v1006_v35 = vpop.f32.mrf.mxu1  ;;  %v735_v53 = vmax.f32 %v658_v38, 0.0 }
 0x143   : > { %v3792_v35 = vpop.f32.mrf.mxu0 }
 0x144   : > { %v1009_v59 = vpop.f32.mrf.mxu1 }
 0x145   : > { %v1109_v57 = vpack.c.bf16 %v1009_v59, %v1004_v27  ;;  %v3794_v59 = vpop.f32.mrf.mxu0 }
 0x146   : > { %v1011_v62 = vpop.f32.mrf.mxu1 }
 0x147   : > { %2864 = vmatprep.mubr.bf16.mxu0 %v1109_v57 }
 0x148   : > { %v1014_v43 = vpop.f32.mrf.mxu1 }
 0x14a   : > { %v1016_v18 = vpop.f32.mrf.mxu1 }
 0x14b   : > { %v3796_v18 = vpop.f32.mrf.mxu0 }
 0x14c   : > { %v1019_v30 = vpop.f32.mrf.mxu1 }
 0x14d   : > { %v1110_v44 = vpack.c.bf16 %v1019_v30, %v1014_v43  ;;  %v728_v30 = vmax.f32 %v3776_v47, 0.0 }
 0x14e   : > { %v1021_v60 = vpop.f32.mrf.mxu1 }
 0x14f   : > { %2865 = vmatmul.mubr.bf16.gmra.mxu0 %v1110_v44  ;;  %v3049_v44 = vld [vmem:[%s4157_s6 + $0x10] sm:$0xff]   ;;  %v729_v60 = vmax.f32 %v3780_v0, 0.0 }
 0x150   : > { %v1024_v56 = vpop.f32.mrf.mxu1  ;;  %2894 = vmatprep.subr.bf16.mxu0 %v3049_v44 }
 0x151   : > { %2895 = vmatpush3.bf16.msra.mxu0 %v3049_v44  ;;  %v755_v47 = vpack.c.bf16 %v729_v60, %v728_v30  ;;  %v733_v30 = vmax.f32 %v3784_v51, 0.0  ;;  %v736_v51 = vmax.f32 %v3786_v36, 0.0  ;;  %v741_v36 = vmax.f32 %v3796_v18, 0.0 }
 0x152   : > { %v1026_v29 = vpop.f32.mrf.mxu1 }
 0x153   : > { %v731_v29 = vmax.f32 %v642_v33, 0.0 }
 0x154   : > { %v1029_v46 = vpop.f32.mrf.mxu1 }
 0x155   : > { %v1111_v40 = vpack.c.bf16 %v1029_v46, %v1024_v56  ;;  %v674_v46 = vpop.f32.mrf.mxu0 }
 0x156   : > { %v1031_v27 = vpop.f32.mrf.mxu1  ;;  %v739_v38 = vmax.f32 %v674_v46, 0.0 }
 0x157   : > { %2868 = vmatprep.mubr.bf16.mxu0 %v1111_v40  ;;  %v730_v40 = vmax.f32 %v639_v63, 0.0  ;;  %v3051_v27 = vld [vmem:[%s4157_s6 + $0x8] sm:$0xff]   ;;  %v3052_v63 = vld [vmem:[%s4157_s6] sm:$0xff]  }
 0x158   : > { %v1034_v57 = vpop.f32.mrf.mxu1  ;;  %2896 = vmatprep.subr.bf16.mxu0 %v3051_v27 }
 0x159   : > { %2897 = vmatpush3.bf16.msra.mxu0 %v3051_v27 }
 0x15a   : > { %v1036_v62 = vpop.f32.mrf.mxu1  ;;  %2898 = vmatprep.subr.bf16.mxu0 %v3052_v63 }
 0x15b   : > { %v3811_v62 = vpop.f32.mrf.mxu0 }
 0x15c   : > { %v1039_v42 = vpop.f32.mrf.mxu1 }
 0x15d   : > { %v1112_v52 = vpack.c.bf16 %v1039_v42, %v1034_v57  ;;  %v3806_v42 = vld [vmem:[%s4155_s4] sm:$0xff]   ;;  %v687_v60 = vpop.f32.mrf.mxu0  ;;  %2899 = vmatpush3.bf16.msra.mxu0 %v3052_v63 }
 0x15e   : > { %v1041_v43 = vpop.f32.mrf.mxu1  ;;  %2987 = vmatprep.subr.bf16.mxu1 %v3806_v42  ;;  %2932 = vmatprep.subr.bf16.mxu0 %v3709_v1 }
 0x15f   : > { %2869 = vmatmul.mubr.bf16.gmra.mxu0 %v1112_v52  ;;  %2995 = vmatpush3.bf16.msra.mxu1 %v3806_v42  ;;  %v756_v52 = vpack.c.bf16 %v731_v29, %v730_v40  ;;  %v732_v43 = vmax.f32 %v3782_v17, 0.0  ;;  %v2831_v29 = vpop.f32.mrf.mxu0 }
 0x160   : > { %v1044_v56 = vpop.f32.mrf.mxu1 }
 0x161   : > { %v757_v40 = vpack.c.bf16 %v733_v30, %v732_v43 }
 0x162   : > { %v1046_v57 = vpop.f32.mrf.mxu1  ;;  %2957 = vmatmul.mubr.bf16.vlgmr.msra.gmra.mxu1 %v755_v47  ;;  %v737_v47 = vmax.f32 %v3790_v24, 0.0 }
 0x163   : > { %v734_v57 = vmax.f32 %v3788_v23, 0.0  ;;  %2960 = vmatprep.mubr.bf16.mxu1 %v756_v52  ;;  %v738_v23 = vmax.f32 %v3794_v59, 0.0 }
 0x164   : > { %v1049_v33 = vpop.f32.mrf.mxu1 }
 0x165   : > { %v1113_v0 = vpack.c.bf16 %v1049_v33, %v1044_v56  ;;  %v758_v27 = vpack.c.bf16 %v735_v53, %v734_v57  ;;  %v760_v30 = vpack.c.bf16 %v739_v38, %v738_v23 }
 0x166   : > { %v1051_v44 = vpop.f32.mrf.mxu1 }
 0x167   : > { %2872 = vmatprep.mubr.bf16.mxu0 %v1113_v0  ;;  %v690_v0 = vpop.f32.mrf.mxu0 }
 0x168   : > { %v1054_v48 = vpop.f32.mrf.mxu1 }
 0x169   : > { %v2834_v43 = vpop.f32.mrf.mxu0 }
 0x16a   : > { %v1056_v56 = vpop.f32.mrf.mxu1  ;;  %2961 = vmatmul.mubr.bf16.gmra.mxu1 %v757_v40  ;;  %v742_v40 = vmax.f32 %v687_v60, 0.0 }
 0x16b   : > { %2964 = vmatprep.mubr.bf16.mxu1 %v758_v27  ;;  %v759_v56 = vpack.c.bf16 %v737_v47, %v736_v51  ;;  %v703_v24 = vpop.f32.mrf.mxu0 }
 0x16c   : > { %v1059_v33 = vpop.f32.mrf.mxu1  ;;  %v746_v18 = vmax.f32 %v703_v24, 0.0 }
 0x16d   : > { %v1114_v17 = vpack.c.bf16 %v1059_v33, %v1054_v48  ;;  %v740_v33 = vmax.f32 %v3792_v35, 0.0 }
 0x16e   : > { %v1061_v44 = vpop.f32.mrf.mxu1 }
 0x16f   : > { %2873 = vmatmul.mubr.bf16.gmra.mxu0 %v1114_v17  ;;  %v743_v17 = vmax.f32 %v690_v0, 0.0  ;;  %v761_v27 = vpack.c.bf16 %v741_v36, %v740_v33  ;;  %v2835_v44 = vpop.f32.mrf.mxu0  ;;  %v748_v36 = vmax.f32 %v2834_v43, 0.0 }
 0x170   : > { %v1064_v52 = vpop.f32.mrf.mxu1 }
 0x171   : > { %v762_v51 = vpack.c.bf16 %v743_v17, %v742_v40  ;;  %v706_v35 = vpop.f32.mrf.mxu0  ;;  %v749_v40 = vmax.f32 %v2835_v44, 0.0 }
 0x172   : > { %v1066_v63 = vpop.f32.mrf.mxu1  ;;  %2965 = vmatmul.mubr.bf16.gmra.mxu1 %v759_v56  ;;  %v747_v56 = vmax.f32 %v706_v35, 0.0 }
 0x173   : > { %2968 = vmatprep.mubr.bf16.mxu1 %v760_v30  ;;  %v745_v63 = vmax.f32 %v2831_v29, 0.0  ;;  %v765_v17 = vpack.c.bf16 %v749_v40, %v748_v36 }
 0x174   : > { %v1069_v53 = vpop.f32.mrf.mxu1 }
 0x175   : > { %v1115_v57 = vpack.c.bf16 %v1069_v53, %v1064_v52  ;;  %v744_v52 = vmax.f32 %v3811_v62, 0.0  ;;  %v764_v53 = vpack.c.bf16 %v747_v56, %v746_v18 }
 0x176   : > { %v1071_v48 = vpop.f32.mrf.mxu1 }
 0x177   : > { %2876 = vmatprep.mubr.bf16.mxu0 %v1115_v57  ;;  %v763_v30 = vpack.c.bf16 %v745_v63, %v744_v52 }
 0x178   : > { %v1074_v59 = vpop.f32.mrf.mxu1 }
 0x17a   : > { %v1076_v46 = vpop.f32.mrf.mxu1  ;;  %2969 = vmatmul.mubr.bf16.gmra.mxu1 %v761_v27 }
 0x17b   : > { %2972 = vmatprep.mubr.bf16.mxu1 %v762_v51 }
 0x17c   : > { %v1079_v47 = vpop.f32.mrf.mxu1 }
 0x17d   : > { %v1116_v23 = vpack.c.bf16 %v1079_v47, %v1074_v59 }
 0x17e   : > { %v1081_v38 = vpop.f32.mrf.mxu1 }
 0x17f   : > { %2877 = vmatmul.mubr.bf16.gmra.mxu0 %v1116_v23 }
 0x180   : > { %v1084_v60 = vpop.f32.mrf.mxu1 }
 0x182   : > { %v1086_v0 = vpop.f32.mrf.mxu1  ;;  %2973 = vmatmul.mubr.bf16.gmra.mxu1 %v763_v30 }
 0x183   : > { %2976 = vmatprep.mubr.bf16.mxu1 %v764_v53 }
 0x184   : > { %v1089_v57 = vpop.f32.mrf.mxu1 }
 0x185   : > { %v1117_v48 = vpack.c.bf16 %v1089_v57, %v1084_v60 }
 0x186   : > { %v1091_v33 = vpop.f32.mrf.mxu1 }
 0x187   : > { %2880 = vmatprep.mubr.bf16.mxu0 %v1117_v48 }
 0x188   : > { %v1094_v62 = vpop.f32.mrf.mxu1 }
 0x18a   : > { %v1096_v29 = vpop.f32.mrf.mxu1  ;;  %2977 = vmatmul.mubr.bf16.gmra.mxu1 %v765_v17 }
 0x18c   : > { %v1099_v59 = vpop.f32.mrf.mxu1 }
 0x18d   : > { %v1118_v46 = vpack.c.bf16 %v1099_v59, %v1094_v62 }
 0x18e   : > { %v1101_v24 = vpop.f32.mrf.mxu1 }
 0x18f   : > { %2881 = vmatmul.mubr.bf16.gmra.mxu0 %v1118_v46 }
 0x1df   : > { %v2854_v27 = vpop.f32.mrf.mxu0 }
 0x1e0   : > { %v1346_v43 = vmax.f32 %v2854_v27, 0.0 }
 0x1e1   : > { %v1217_v51 = vpop.f32.mrf.mxu0 }
 0x1e2   : > { %v1344_v52 = vmax.f32 %v1217_v51, 0.0 }
 0x1e3   : > { %v2855_v47 = vpop.f32.mrf.mxu0 }
 0x1e4   : > { %v1347_v23 = vmax.f32 %v2855_v47, 0.0 }
 0x1e5   : > { %v1220_v38 = vpop.f32.mrf.mxu0 }
 0x1e6   : > { %v1345_v63 = vmax.f32 %v1220_v38, 0.0  ;;  %v1377_v35 = vpack.c.bf16 %v1347_v23, %v1346_v43 }
 0x1e8   : > { %v1376_v44 = vpack.c.bf16 %v1345_v63, %v1344_v52 }
 0x1ea   : > { %2900 = vmatprep.mubr.bf16.mxu0 %v1376_v44 }
 0x1eb   : > { %2901 = vmatmul.mubr.bf16.vlgmr.msra.gmra.mxu0 %v1377_v35 }
 0x1ec   : > { %2933 = vmatpush3.bf16.msra.mxu0 %v3709_v1 }
 0x1ed   : > { %2934 = vmatprep.subr.bf16.mxu0 %v3714_v39 }
 0x1ef   : > { %v2858_v18 = vpop.f32.mrf.mxu0 }
 0x1f0   : > { %2935 = vmatpush3.bf16.msra.mxu0 %v3714_v39  ;;  %v1350_v48 = vmax.f32 %v2858_v18, 0.0 }
 0x1f1   : > { %v1233_v56 = vpop.f32.mrf.mxu0  ;;  %2936 = vmatprep.subr.bf16.mxu0 %v3725_v54 }
 0x1f2   : > { %v1348_v53 = vmax.f32 %v1233_v56, 0.0 }
 0x1f3   : > { %v2859_v60 = vpop.f32.mrf.mxu0 }
 0x1f4   : > { %2937 = vmatpush3.bf16.msra.mxu0 %v3725_v54  ;;  %v1351_v0 = vmax.f32 %v2859_v60, 0.0 }
 0x1f5   : > { %v1236_v30 = vpop.f32.mrf.mxu0  ;;  %2938 = vmatprep.subr.bf16.mxu0 %v3732_v58 }
 0x1f6   : > { %v1349_v57 = vmax.f32 %v1236_v30, 0.0  ;;  %v1379_v1 = vpack.c.bf16 %v1351_v0, %v1350_v48 }
 0x1f8   : > { %v1378_v33 = vpack.c.bf16 %v1349_v57, %v1348_v53  ;;  %2939 = vmatpush3.bf16.msra.mxu0 %v3732_v58 }
 0x1f9   : > { %2940 = vmatprep.subr.bf16.mxu0 %v3739_v61 }
 0x1fa   : > { %2904 = vmatprep.mubr.bf16.mxu0 %v1378_v33 }
 0x1fb   : > { %2905 = vmatmul.mubr.bf16.gmra.mxu0 %v1379_v1 }
 0x1fc   : > { %2941 = vmatpush3.bf16.msra.mxu0 %v3739_v61 }
 0x1fd   : > { %2942 = vmatprep.subr.bf16.mxu0 %v3749_v55 }
 0x1ff   : > { %v2862_v39 = vpop.f32.mrf.mxu0 }
 0x200   : > { %2943 = vmatpush3.bf16.msra.mxu0 %v3749_v55  ;;  %v1354_v17 = vmax.f32 %v2862_v39, 0.0 }
 0x201   : > { %v1249_v54 = vpop.f32.mrf.mxu0  ;;  %2944 = vmatprep.subr.bf16.mxu0 %v3759_v15 }
 0x202   : > { %v1352_v62 = vmax.f32 %v1249_v54, 0.0 }
 0x203   : > { %v2863_v36 = vpop.f32.mrf.mxu0 }
 0x204   : > { %2945 = vmatpush3.bf16.msra.mxu0 %v3759_v15  ;;  %v1355_v40 = vmax.f32 %v2863_v36, 0.0 }
 0x205   : > { %v1252_v58 = vpop.f32.mrf.mxu0  ;;  %2946 = vmatprep.subr.bf16.mxu0 %v3806_v42 }
 0x206   : > { %v1353_v29 = vmax.f32 %v1252_v58, 0.0  ;;  %v1381_v61 = vpack.c.bf16 %v1355_v40, %v1354_v17 }
 0x208   : > { %v1380_v59 = vpack.c.bf16 %v1353_v29, %v1352_v62  ;;  %2947 = vmatpush3.bf16.msra.mxu0 %v3806_v42 }
 0x20a   : > { %2908 = vmatprep.mubr.bf16.mxu0 %v1380_v59 }
 0x20b   : > { %2909 = vmatmul.mubr.bf16.gmra.mxu0 %v1381_v61 }
 0x20f   : > { %v2866_v55 = vpop.f32.mrf.mxu0 }
 0x210   : > { %v1358_v23 = vmax.f32 %v2866_v55, 0.0 }
 0x211   : > { %v1265_v46 = vpop.f32.mrf.mxu0 }
 0x212   : > { %v1356_v47 = vmax.f32 %v1265_v46, 0.0 }
 0x213   : > { %v2867_v24 = vpop.f32.mrf.mxu0 }
 0x214   : > { %v1359_v27 = vmax.f32 %v2867_v24, 0.0 }
 0x215   : > { %v1268_v51 = vpop.f32.mrf.mxu0 }
 0x216   : > { %v1357_v15 = vmax.f32 %v1268_v51, 0.0  ;;  %v1383_v52 = vpack.c.bf16 %v1359_v27, %v1358_v23 }
 0x218   : > { %v1382_v38 = vpack.c.bf16 %v1357_v15, %v1356_v47 }
 0x21a   : > { %2912 = vmatprep.mubr.bf16.mxu0 %v1382_v38 }
 0x21b   : > { %2913 = vmatmul.mubr.bf16.gmra.mxu0 %v1383_v52 }
 0x21f   : > { %v2870_v63 = vpop.f32.mrf.mxu0 }
 0x220   : > { %v1362_v60 = vmax.f32 %v2870_v63, 0.0 }
 0x221   : > { %v1281_v43 = vpop.f32.mrf.mxu0 }
 0x222   : > { %v1360_v18 = vmax.f32 %v1281_v43, 0.0 }
 0x223   : > { %v2871_v44 = vpop.f32.mrf.mxu0 }
 0x224   : > { %v1363_v35 = vmax.f32 %v2871_v44, 0.0 }
 0x225   : > { %v1284_v42 = vpop.f32.mrf.mxu0 }
 0x226   : > { %v1361_v56 = vmax.f32 %v1284_v42, 0.0  ;;  %v1385_v30 = vpack.c.bf16 %v1363_v35, %v1362_v60 }
 0x228   : > { %v1384_v0 = vpack.c.bf16 %v1361_v56, %v1360_v18 }
 0x22a   : > { %2916 = vmatprep.mubr.bf16.mxu0 %v1384_v0 }
 0x22b   : > { %2917 = vmatmul.mubr.bf16.gmra.mxu0 %v1385_v30 }
 0x22f   : > { %v2874_v53 = vpop.f32.mrf.mxu0 }
 0x230   : > { %v1366_v36 = vmax.f32 %v2874_v53, 0.0 }
 0x231   : > { %v1297_v57 = vpop.f32.mrf.mxu0 }
 0x232   : > { %v1364_v39 = vmax.f32 %v1297_v57, 0.0  ;;  %v2958_v57 = vpop.f32.mrf.mxu1 }
 0x233   : > { %v2875_v48 = vpop.f32.mrf.mxu0 }
 0x234   : > { %v1367_v33 = vmax.f32 %v2875_v48, 0.0  ;;  %v3867_v48 = vld [vmem:[%s352_s29] ss:$0 sm:$0xff] }
 0x235   : > { %v1300_v1 = vpop.f32.mrf.mxu0 }
 0x236   : > { %v1365_v54 = vmax.f32 %v1300_v1, 0.0  ;;  %v1387_v58 = vpack.c.bf16 %v1367_v33, %v1366_v36 }
 0x238   : > { %v1386_v40 = vpack.c.bf16 %v1365_v54, %v1364_v39 }
 0x23a   : > { %2920 = vmatprep.mubr.bf16.mxu0 %v1386_v40 }
 0x23b   : > { %2921 = vmatmul.mubr.bf16.gmra.mxu0 %v1387_v58 }
 0x23f   : > { %v2878_v62 = vpop.f32.mrf.mxu0 }
 0x240   : > { %v1370_v24 = vmax.f32 %v2878_v62, 0.0 }
 0x241   : > { %v1313_v29 = vpop.f32.mrf.mxu0 }
 0x242   : > { %v1368_v55 = vmax.f32 %v1313_v29, 0.0 }
 0x243   : > { %v2879_v17 = vpop.f32.mrf.mxu0 }
 0x244   : > { %v1371_v59 = vmax.f32 %v2879_v17, 0.0 }
 0x245   : > { %v1316_v61 = vpop.f32.mrf.mxu0 }
 0x246   : > { %v1369_v46 = vmax.f32 %v1316_v61, 0.0  ;;  %v1389_v51 = vpack.c.bf16 %v1371_v59, %v1370_v24 }
 0x248   : > { %v1388_v27 = vpack.c.bf16 %v1369_v46, %v1368_v55 }
 0x24a   : > { %2924 = vmatprep.mubr.bf16.mxu0 %v1388_v27 }
 0x24b   : > { %2925 = vmatmul.mubr.bf16.gmra.mxu0 %v1389_v51 }
 0x24f   : > { %v2882_v47 = vpop.f32.mrf.mxu0 }
 0x250   : > { %v1374_v44 = vmax.f32 %v2882_v47, 0.0 }
 0x251   : > { %v1329_v15 = vpop.f32.mrf.mxu0 }
 0x252   : > { %v1372_v63 = vmax.f32 %v1329_v15, 0.0 }
 0x253   : > { %v2883_v23 = vpop.f32.mrf.mxu0 }
 0x254   : > { %v1375_v38 = vmax.f32 %v2883_v23, 0.0 }
 0x255   : > { %v1332_v52 = vpop.f32.mrf.mxu0 }
 0x256   : > { %v1373_v43 = vmax.f32 %v1332_v52, 0.0  ;;  %v1391_v42 = vpack.c.bf16 %v1375_v38, %v1374_v44 }
 0x258   : > { %v1390_v35 = vpack.c.bf16 %v1373_v43, %v1372_v63 }
 0x25a   : > { %2928 = vmatprep.mubr.bf16.mxu0 %v1390_v35 }
 0x25b   : > { %2929 = vmatmul.mubr.bf16.gmra.mxu0 %v1391_v42 }
 0x25c   : > { %2948 = vmatprep.mubr.bf16.mxu0 %v3767_v21 }
 0x263   : > { %2949 = vmatmul.mubr.bf16.vlgmr.msra.gmra.mxu0 %v3761_v20  ;;  %v1731_v20 = vpop.f32.mrf.mxu1 }
 0x264   : > { %2952 = vmatprep.mubr.bf16.mxu0 %v3778_v32 }
 0x265   : > { %v2959_v1 = vpop.f32.mrf.mxu1 }
 0x267   : > { %v1734_v17 = vpop.f32.mrf.mxu1 }
 0x269   : > { %v2962_v15 = vpop.f32.mrf.mxu1 }
 0x26b   : > { %2953 = vmatmul.mubr.bf16.gmra.mxu0 %v3774_v26  ;;  %v1747_v63 = vpop.f32.mrf.mxu1 }
 0x26d   : > { %v2963_v42 = vpop.f32.mrf.mxu1 }
 0x2ab   : > { %v3847_v18 = vpop.f32.mrf.mxu0 }
 0x2ad   : > { %v3849_v56 = vpop.f32.mrf.mxu0 }
 0x2af   : > { %v3851_v60 = vpop.f32.mrf.mxu0 }
 0x2b1   : > { %v3853_v0 = vpop.f32.mrf.mxu0 }
 0x2bb   : > { %v3855_v30 = vpop.f32.mrf.mxu0 }
 0x2bd   : > { %v3857_v53 = vpop.f32.mrf.mxu0 }
 0x2bf   : > { %v3859_v21 = vpop.f32.mrf.mxu0 }
 0x2c1   : > { %v3865_v26 = vpop.f32.mrf.mxu0 }
 0x2cb   : > { %v2910_v32 = vpop.f32.mrf.mxu0 }
 0x2cc   : > { %v1740_v33 = vadd.f32 %v2958_v57, %v2910_v32 }
 0x2cd   : > { %v1522_v39 = vpop.f32.mrf.mxu0 }
 0x2ce   : > { %v1843_v54 = vadd.f32 %v3867_v48, %v1740_v33  ;;  %v1732_v36 = vadd.f32 %v1731_v20, %v1522_v39 }
 0x2cf   : > { %v2911_v40 = vpop.f32.mrf.mxu0 }
 0x2d0   : > { %v1875_v58 = vsub.f32 0.0, %v1843_v54  ;;  %v1841_v62 = vadd.f32 %v3867_v48, %v1732_v36  ;;  %v1743_v29 = vadd.f32 %v2959_v1, %v2911_v40  ;;  %v1750_v40 = vpop.f32.mrf.mxu1 }
 0x2d1   : > { %v1525_v59 = vpop.f32.mrf.mxu0 }
 0x2d2   : > { %v1917_v61 = vmul.f32 1.442695, %v1875_v58  ;;  %v1873_v55 = vsub.f32 0.0, %v1841_v62  ;;  %v1844_v46 = vadd.f32 %v3867_v48, %v1743_v29  ;;  %v1735_v24 = vadd.f32 %v1734_v17, %v1525_v59 }
 0x2d4   : > { %3069 = vpow2.f32 %v1917_v61  ;;  %v1913_v27 = vmul.f32 1.442695, %v1873_v55  ;;  %v1876_v51 = vsub.f32 0.0, %v1844_v46  ;;  %v1842_v47 = vadd.f32 %v3867_v48, %v1735_v24 }
 0x2d6   : > { %3071 = vpow2.f32 %v1913_v27  ;;  %v1919_v23 = vmul.f32 1.442695, %v1876_v51  ;;  %v1874_v38 = vsub.f32 0.0, %v1842_v47  ;;  %v2966_v47 = vpop.f32.mrf.mxu1 }
 0x2d8   : > { %3073 = vpow2.f32 %v1919_v23  ;;  %v1915_v52 = vmul.f32 1.442695, %v1874_v38 }
 0x2da   : > { %3075 = vpow2.f32 %v1915_v52 }
 0x2db   : > { %v2914_v43 = vpop.f32.mrf.mxu0 }
 0x2dc   : > { %v1756_v44 = vadd.f32 %v2962_v15, %v2914_v43 }
 0x2dd   : > { %v1538_v35 = vpop.f32.mrf.mxu0 }
 0x2de   : > { %v1847_v57 = vadd.f32 %v3867_v48, %v1756_v44  ;;  %v1748_v20 = vadd.f32 %v1747_v63, %v1538_v35  ;;  %v1763_v44 = vpop.f32.mrf.mxu1 }
 0x2df   : > { %v2915_v32 = vpop.f32.mrf.mxu0 }
 0x2e0   : > { %v1879_v33 = vsub.f32 0.0, %v1847_v57  ;;  %v1845_v1 = vadd.f32 %v3867_v48, %v1748_v20  ;;  %v1759_v39 = vadd.f32 %v2963_v42, %v2915_v32  ;;  %v2967_v20 = vpop.f32.mrf.mxu1 }
 0x2e1   : > { %v3070_v54 = vpop.eup %3069  ;;  %v1541_v36 = vpop.f32.mrf.mxu0 }
 0x2e2   : > { %v1971_v58 = vadd.f32 1.0, %v3070_v54  ;;  %v1925_v62 = vmul.f32 1.442695, %v1879_v33  ;;  %v1877_v29 = vsub.f32 0.0, %v1845_v1  ;;  %v1848_v17 = vadd.f32 %v3867_v48, %v1759_v39 }
 0x2e3   : > { %v3072_v59 = vpop.eup %3071  ;;  %v1751_v61 = vadd.f32 %v1750_v40, %v1541_v36 }
 0x2e4   : > { %3077 = vrcp.f32 %v1971_v58  ;;  %v1969_v55 = vadd.f32 1.0, %v3072_v59  ;;  %v1921_v46 = vmul.f32 1.442695, %v1877_v29  ;;  %v1880_v24 = vsub.f32 0.0, %v1848_v17  ;;  %v1766_v29 = vpop.f32.mrf.mxu1 }
 0x2e5   : > { %v3074_v27 = vpop.eup %3073  ;;  %3079 = vpow2.f32 %v1925_v62  ;;  %v1846_v51 = vadd.f32 %v3867_v48, %v1751_v61 }
 0x2e6   : > { %3081 = vrcp.f32 %v1969_v55  ;;  %v1972_v15 = vadd.f32 1.0, %v3074_v27  ;;  %v1927_v23 = vmul.f32 1.442695, %v1880_v24 }
 0x2e7   : > { %v3076_v38 = vpop.eup %3075  ;;  %3083 = vpow2.f32 %v1921_v46  ;;  %v1878_v52 = vsub.f32 0.0, %v1846_v51 }
 0x2e8   : > { %3085 = vrcp.f32 %v1972_v15  ;;  %v1970_v63 = vadd.f32 1.0, %v3076_v38 }
 0x2e9   : > { %3087 = vpow2.f32 %v1927_v23  ;;  %v1923_v43 = vmul.f32 1.442695, %v1878_v52 }
 0x2ea   : > { %3089 = vrcp.f32 %v1970_v63 }
 0x2eb   : > { %3091 = vpow2.f32 %v1923_v43  ;;  %v2918_v35 = vpop.f32.mrf.mxu0  ;;  %v2970_v43 = vpop.f32.mrf.mxu1 }
 0x2ec   : > { %v1772_v42 = vadd.f32 %v2966_v47, %v2918_v35 }
 0x2ed   : > { %v1554_v57 = vpop.f32.mrf.mxu0 }
 0x2ee   : > { %v1851_v32 = vadd.f32 %v3867_v48, %v1772_v42  ;;  %v1764_v33 = vadd.f32 %v1763_v44, %v1554_v57 }
 0x2ef   : > { %v2919_v1 = vpop.f32.mrf.mxu0 }
 0x2f0   : > { %v1883_v39 = vsub.f32 0.0, %v1851_v32  ;;  %v1849_v54 = vadd.f32 %v3867_v48, %v1764_v33  ;;  %v1775_v36 = vadd.f32 %v2967_v20, %v2919_v1 }
 0x2f1   : > { %v3078_v40 = vpop.eup %3077  ;;  %v1557_v58 = vpop.f32.mrf.mxu0 }
 0x2f2   : > { %v3080_v62 = vpop.eup %3079  ;;  %v1933_v17 = vmul.f32 1.442695, %v1883_v39  ;;  %v1881_v59 = vsub.f32 0.0, %v1849_v54  ;;  %v1852_v61 = vadd.f32 %v3867_v48, %v1775_v36  ;;  %v1767_v24 = vadd.f32 %v1766_v29, %v1557_v58  ;;  %v1779_v58 = vpop.f32.mrf.mxu1 }
 0x2f3   : > { %v3082_v55 = vpop.eup %3081  ;;  %v1975_v46 = vadd.f32 1.0, %v3080_v62  ;;  %v2035_v51 = vadd.f32 1.0, %v3078_v40 }
 0x2f4   : > { %v3084_v27 = vpop.eup %3083  ;;  %3093 = vpow2.f32 %v1933_v17  ;;  %v1929_v47 = vmul.f32 1.442695, %v1881_v59  ;;  %v1884_v38 = vsub.f32 0.0, %v1852_v61  ;;  %v1850_v52 = vadd.f32 %v3867_v48, %v1767_v24  ;;  %v2971_v61 = vpop.f32.mrf.mxu1 }
 0x2f5   : > { %v3086_v15 = vpop.eup %3085  ;;  %3095 = vrcp.f32 %v1975_v46  ;;  %v1973_v23 = vadd.f32 1.0, %v3084_v27  ;;  %v2033_v44 = vadd.f32 1.0, %v3082_v55  ;;  %v3883_v1 = vmul.f32 %v2035_v51, %v856_v11 }
 0x2f6   : > { %v3088_v63 = vpop.eup %3087  ;;  %v2036_v35 = vadd.f32 1.0, %v3086_v15  ;;  %3097 = vpow2.f32 %v1929_v47  ;;  %v1935_v20 = vmul.f32 1.442695, %v1884_v38  ;;  %v1882_v32 = vsub.f32 0.0, %v1850_v52  ;;  %v1782_v15 = vpop.f32.mrf.mxu1 }
 0x2f7   : > { %v3090_v42 = vpop.eup %3089  ;;  %3099 = vrcp.f32 %v1973_v23  ;;  %v1976_v57 = vadd.f32 1.0, %v3088_v63  ;;  %v3898_v11 = vmul.f32 %v2033_v44, %v854_v14 }
 0x2f8   : > { %v3092_v33 = vpop.eup %3091  ;;  %v3887_v39 = vmul.f32 %v2036_v35, %v857_v9  ;;  %v2034_v54 = vadd.f32 1.0, %v3090_v42  ;;  %v1931_v40 = vmul.f32 1.442695, %v1882_v32 }
 0x2f9   : > { %3101 = vrcp.f32 %v1976_v57  ;;  %v1974_v36 = vadd.f32 1.0, %v3092_v33 }
 0x2fa   : > { %v2625_v7 = vpack.c.bf16 %v3887_v39, %v3883_v1  ;;  %v3904_v9 = vmul.f32 %v2034_v54, %v855_v12  ;;  %3103 = vpow2.f32 %v1935_v20 }
 0x2fb   : > { %3105 = vrcp.f32 %v1974_v36  ;;  %v2922_v62 = vpop.f32.mrf.mxu0  ;;  %v2974_v36 = vpop.f32.mrf.mxu1 }
 0x2fc   : > { %2681 = vst [vmem:[%s3894_s14 + $0x28] sm:$0xff] %v2625_v7   ;;  %v2620_v29 = vpack.c.bf16 %v3904_v9, %v3898_v11  ;;  %3107 = vpow2.f32 %v1931_v40  ;;  %v1788_v17 = vadd.f32 %v2970_v43, %v2922_v62 }
 0x2fd   : > { %v1570_v59 = vpop.f32.mrf.mxu0 }
 0x2fe   : > { %2680 = vst [vmem:[%s3894_s14 + $0x20] sm:$0xff] %v2620_v29   ;;  %v1855_v14 = vadd.f32 %v3867_v48, %v1788_v17  ;;  %v1780_v55 = vadd.f32 %v1779_v58, %v1570_v59 }
 0x2ff   : > { %v2923_v46 = vpop.f32.mrf.mxu0 }
 0x300   : > { %v1887_v24 = vsub.f32 0.0, %v1855_v14  ;;  %v1853_v10 = vadd.f32 %v3867_v48, %v1780_v55  ;;  %v1791_v12 = vadd.f32 %v2971_v61, %v2923_v46 }
 0x301   : > { %v3094_v27 = vpop.eup %3093  ;;  %v1573_v51 = vpop.f32.mrf.mxu0 }
 0x302   : > { %v3096_v47 = vpop.eup %3095  ;;  %v1979_v23 = vadd.f32 1.0, %v3094_v27  ;;  %v1941_v38 = vmul.f32 1.442695, %v1887_v24  ;;  %v1885_v52 = vsub.f32 0.0, %v1853_v10  ;;  %v1856_v63 = vadd.f32 %v3867_v48, %v1791_v12  ;;  %v1795_v24 = vpop.f32.mrf.mxu1 }
 0x303   : > { %v3098_v43 = vpop.eup %3097  ;;  %v1783_v44 = vadd.f32 %v1782_v15, %v1573_v51  ;;  %v2039_v32 = vadd.f32 1.0, %v3096_v47 }
 0x304   : > { %v3100_v35 = vpop.eup %3099  ;;  %3109 = vrcp.f32 %v1979_v23  ;;  %v1977_v42 = vadd.f32 1.0, %v3098_v43  ;;  %v1937_v57 = vmul.f32 1.442695, %v1885_v52  ;;  %v1888_v20 = vsub.f32 0.0, %v1856_v63  ;;  %v2975_v23 = vpop.f32.mrf.mxu1 }
 0x305   : > { %3111 = vpow2.f32 %v1941_v38  ;;  %v1854_v33 = vadd.f32 %v3867_v48, %v1783_v44  ;;  %v2037_v7 = vadd.f32 1.0, %v3100_v35  ;;  %v3916_v14 = vmul.f32 %v2039_v32, %v860_v5 }
 0x306   : > { %v3102_v54 = vpop.eup %3101  ;;  %3113 = vrcp.f32 %v1977_v42  ;;  %v1943_v40 = vmul.f32 1.442695, %v1888_v20  ;;  %v1798_v42 = vpop.f32.mrf.mxu1 }
 0x307   : > { %v3104_v58 = vpop.eup %3103  ;;  %v2040_v62 = vadd.f32 1.0, %v3102_v54  ;;  %3115 = vpow2.f32 %v1937_v57  ;;  %v1886_v59 = vsub.f32 0.0, %v1854_v33  ;;  %v3924_v27 = vmul.f32 %v2037_v7, %v858_v8 }
 0x308   : > { %v3106_v29 = vpop.eup %3105  ;;  %v1980_v17 = vadd.f32 1.0, %v3104_v58  ;;  %3117 = vpow2.f32 %v1943_v40 }
 0x309   : > { %v3108_v61 = vpop.eup %3107  ;;  %v3920_v55 = vmul.f32 %v2040_v62, %v861_v4  ;;  %v2038_v46 = vadd.f32 1.0, %v3106_v29  ;;  %v1939_v12 = vmul.f32 1.442695, %v1886_v59  ;;  %v2978_v59 = vpop.f32.mrf.mxu1 }
 0x30a   : > { %3119 = vrcp.f32 %v1980_v17  ;;  %v1978_v10 = vadd.f32 1.0, %v3108_v61 }
 0x30b   : > { %v2635_v51 = vpack.c.bf16 %v3920_v55, %v3916_v14  ;;  %v3930_v5 = vmul.f32 %v2038_v46, %v859_v6  ;;  %v2926_v2 = vpop.f32.mrf.mxu0 }
 0x30c   : > { %3121 = vrcp.f32 %v1978_v10  ;;  %v1804_v4 = vadd.f32 %v2974_v36, %v2926_v2 }
 0x30d   : > { %2683 = vst [vmem:[%s3894_s14 + $0x38] sm:$0xff] %v2635_v51   ;;  %v2630_v47 = vpack.c.bf16 %v3930_v5, %v3924_v27  ;;  %3123 = vpow2.f32 %v1939_v12  ;;  %v1586_v15 = vpop.f32.mrf.mxu0 }
 0x30e   : > { %v1859_v8 = vadd.f32 %v3867_v48, %v1804_v4  ;;  %v1796_v38 = vadd.f32 %v1795_v24, %v1586_v15 }
 0x30f   : > { %2682 = vst [vmem:[%s3894_s14 + $0x30] sm:$0xff] %v2630_v47   ;;  %v2927_v52 = vpop.f32.mrf.mxu0 }
 0x310   : > { %v1891_v63 = vsub.f32 0.0, %v1859_v8  ;;  %v1857_v3 = vadd.f32 %v3867_v48, %v1796_v38  ;;  %v1807_v6 = vadd.f32 %v2975_v23, %v2927_v52  ;;  %v1811_v23 = vpop.f32.mrf.mxu1  ;;  %v4184_v38 = vunpack.c.h.bf16 %v3429_v45 }
 0x311   : > { %v3110_v43 = vpop.eup %3109  ;;  %v1589_v44 = vpop.f32.mrf.mxu0 }
 0x312   : > { %v3112_v35 = vpop.eup %3111  ;;  %v1949_v57 = vmul.f32 1.442695, %v1891_v63  ;;  %v1889_v20 = vsub.f32 0.0, %v1857_v3  ;;  %v1860_v32 = vadd.f32 %v3867_v48, %v1807_v6  ;;  %v1799_v36 = vadd.f32 %v1798_v42, %v1589_v44 }
 0x313   : > { %v3114_v33 = vpop.eup %3113  ;;  %v1983_v54 = vadd.f32 1.0, %v3112_v35  ;;  %v2043_v61 = vadd.f32 1.0, %v3110_v43  ;;  %v4185_v43 = vunpack.c.l.bf16 %v3443_v49  ;;  %v4186_v42 = vunpack.c.h.bf16 %v3443_v49 }
 0x314   : > { %v3116_v40 = vpop.eup %3115  ;;  %3125 = vpow2.f32 %v1949_v57  ;;  %v1945_v58 = vmul.f32 1.442695, %v1889_v20  ;;  %v1892_v29 = vsub.f32 0.0, %v1860_v32  ;;  %v1858_v17 = vadd.f32 %v3867_v48, %v1799_v36  ;;  %v2979_v20 = vpop.f32.mrf.mxu1 }
 0x315   : > { %v3118_v7 = vpop.eup %3117  ;;  %3127 = vrcp.f32 %v1983_v54  ;;  %v1981_v62 = vadd.f32 1.0, %v3116_v40  ;;  %v2041_v51 = vadd.f32 1.0, %v3114_v33  ;;  %v3942_v8 = vmul.f32 %v2043_v61, %v864_v50 }
 0x316   : > { %v1984_v46 = vadd.f32 1.0, %v3118_v7  ;;  %3129 = vpow2.f32 %v1945_v58  ;;  %v1951_v10 = vmul.f32 1.442695, %v1892_v29  ;;  %v1890_v12 = vsub.f32 0.0, %v1858_v17  ;;  %v1814_v17 = vpop.f32.mrf.mxu1 }
 0x317   : > { %v3120_v24 = vpop.eup %3119  ;;  %3131 = vrcp.f32 %v1981_v62  ;;  %v3950_v44 = vmul.f32 %v2041_v51, %v4185_v43 }
 0x318   : > { %v2044_v2 = vadd.f32 1.0, %v3120_v24  ;;  %3133 = vrcp.f32 %v1984_v46  ;;  %v1947_v47 = vmul.f32 1.442695, %v1890_v12 }
 0x319   : > { %v3122_v4 = vpop.eup %3121  ;;  %3135 = vpow2.f32 %v1951_v10 }
 0x31a   : > { %v3124_v15 = vpop.eup %3123  ;;  %v3946_v52 = vmul.f32 %v2044_v2, %v4184_v38  ;;  %v2042_v63 = vadd.f32 1.0, %v3122_v4  ;;  %3137 = vpow2.f32 %v1947_v47 }
 0x31b   : > { %v1982_v3 = vadd.f32 1.0, %v3124_v15  ;;  %v2930_v6 = vpop.f32.mrf.mxu0 }
 0x31c   : > { %v2645_v35 = vpack.c.bf16 %v3946_v52, %v3942_v8  ;;  %v3956_v50 = vmul.f32 %v2042_v63, %v4186_v42  ;;  %v1820_v57 = vadd.f32 %v2978_v59, %v2930_v6 }
 0x31d   : > { %3139 = vrcp.f32 %v1982_v3  ;;  %v1602_v45 = vpop.f32.mrf.mxu0 }
 0x31e   : > { %2685 = vst [vmem:[%s3894_s14 + $0x48] sm:$0xff] %v2645_v35   ;;  %v2640_v32 = vpack.c.bf16 %v3956_v50, %v3950_v44  ;;  %v1863_v33 = vadd.f32 %v3867_v48, %v1820_v57  ;;  %v1812_v54 = vadd.f32 %v1811_v23, %v1602_v45  ;;  %v4187_v57 = vunpack.c.l.bf16 %v3401_v37 }
 0x31f   : > { %v2931_v36 = vpop.f32.mrf.mxu0 }
 0x320   : > { %2684 = vst [vmem:[%s3894_s14 + $0x40] sm:$0xff] %v2640_v32   ;;  %v1895_v40 = vsub.f32 0.0, %v1863_v33  ;;  %v1861_v58 = vadd.f32 %v3867_v48, %v1812_v54  ;;  %v1823_v7 = vadd.f32 %v2979_v20, %v2931_v36  ;;  %v4188_v54 = vunpack.c.h.bf16 %v3401_v37 }
 0x321   : > { %v3126_v49 = vpop.eup %3125  ;;  %v1605_v62 = vpop.f32.mrf.mxu0 }
 0x322   : > { %v3128_v29 = vpop.eup %3127  ;;  %v1987_v59 = vadd.f32 1.0, %v3126_v49  ;;  %v1957_v61 = vmul.f32 1.442695, %v1895_v40  ;;  %v1893_v46 = vsub.f32 0.0, %v1861_v58  ;;  %v1864_v24 = vadd.f32 %v3867_v48, %v1823_v7 }
 0x323   : > { %v3130_v10 = vpop.eup %3129  ;;  %v2047_v12 = vadd.f32 1.0, %v3128_v29  ;;  %v1815_v51 = vadd.f32 %v1814_v17, %v1605_v62  ;;  %v2950_v2 = vpop.f32.mrf.mxu0 }
 0x324   : > { %v3132_v4 = vpop.eup %3131  ;;  %3141 = vrcp.f32 %v1987_v59  ;;  %v1985_v47 = vadd.f32 1.0, %v3130_v10  ;;  %v1953_v15 = vmul.f32 1.442695, %v1893_v46  ;;  %v1896_v23 = vsub.f32 0.0, %v1864_v24 }
 0x325   : > { %v3134_v38 = vpop.eup %3133  ;;  %3143 = vpow2.f32 %v1957_v61  ;;  %v1862_v63 = vadd.f32 %v3867_v48, %v1815_v51  ;;  %v1699_v3 = vpop.f32.mrf.mxu0  ;;  %v1708_v42 = vadd.f32 %v2950_v2, %v3847_v18  ;;  %v3969_v45 = vmul.f32 %v2047_v12, %v4187_v57 }
 0x326   : > { %v3136_v6 = vpop.eup %3135  ;;  %v2048_v43 = vadd.f32 1.0, %v3134_v38  ;;  %3145 = vrcp.f32 %v1985_v47  ;;  %v1959_v35 = vmul.f32 1.442695, %v1896_v23  ;;  %v2045_v7 = vadd.f32 1.0, %v3132_v4 }
 0x327   : > { %v1988_v20 = vadd.f32 1.0, %v3136_v6  ;;  %3147 = vpow2.f32 %v1953_v15  ;;  %v2951_v32 = vpop.f32.mrf.mxu0  ;;  %v3138_v33 = vpop.eup %3137  ;;  %v1894_v40 = vsub.f32 0.0, %v1862_v63  ;;  %v1835_v58 = vadd.f32 %v3867_v48, %v1708_v42 }
 0x328   : > { %v3973_v36 = vmul.f32 %v2048_v43, %v4188_v54  ;;  %3149 = vpow2.f32 %v1959_v35  ;;  %v1986_v18 = vadd.f32 1.0, %v3138_v33  ;;  %v1700_v49 = vadd.f32 %v1699_v3, %v3849_v56 }
 0x329   : > { %3151 = vrcp.f32 %v1988_v20  ;;  %v1702_v62 = vpop.f32.mrf.mxu0  ;;  %v1955_v59 = vmul.f32 1.442695, %v1894_v40  ;;  %v1867_v61 = vsub.f32 0.0, %v1835_v58  ;;  %v1711_v24 = vadd.f32 %v2951_v32, %v3851_v60 }
 0x32a   : > { %v3140_v29 = vpop.eup %3139  ;;  %v2655_v17 = vpack.c.bf16 %v3973_v36, %v3969_v45  ;;  %3153 = vrcp.f32 %v1986_v18  ;;  %v1833_v46 = vadd.f32 %v3867_v48, %v1700_v49  ;;  %v1703_v51 = vadd.f32 %v1702_v62, %v3853_v0 }
 0x32b   : > { %v2046_v37 = vadd.f32 1.0, %v3140_v29  ;;  %v2954_v10 = vpop.f32.mrf.mxu0  ;;  %3155 = vpow2.f32 %v1955_v59  ;;  %v1901_v12 = vmul.f32 1.442695, %v1867_v61  ;;  %v4189_v2 = vunpack.c.l.bf16 %v3415_v41 }
 0x32c   : > { %2687 = vst [vmem:[%s3894_s14 + $0x58] sm:$0xff] %v2655_v17   ;;  %v1724_v56 = vadd.f32 %v2954_v10, %v3855_v30  ;;  %v4190_v47 = vunpack.c.h.bf16 %v3415_v41  ;;  %v1865_v23 = vsub.f32 0.0, %v1833_v46  ;;  %v1836_v60 = vadd.f32 %v3867_v48, %v1711_v24 }
 0x32d   : > { %v3986_v4 = vmul.f32 %v2045_v7, %v4189_v2  ;;  %v1715_v38 = vpop.f32.mrf.mxu0  ;;  %3157 = vpow2.f32 %v1901_v12  ;;  %v1834_v63 = vadd.f32 %v3867_v48, %v1703_v51 }
 0x32e   : > { %v3990_v15 = vmul.f32 %v2046_v37, %v4190_v47  ;;  %v1839_v0 = vadd.f32 %v3867_v48, %v1724_v56  ;;  %v1716_v30 = vadd.f32 %v1715_v38, %v3857_v53  ;;  %v1897_v6 = vmul.f32 1.442695, %v1865_v23 }
 0x32f   : > { %v1868_v43 = vsub.f32 0.0, %v1836_v60  ;;  %v2955_v41 = vpop.f32.mrf.mxu0  ;;  %v1866_v35 = vsub.f32 0.0, %v1834_v63  ;;  %v4192_v63 = vunpack.c.h.bf16 %v3378_v31 }
 0x330   : > { %v2650_v3 = vpack.c.bf16 %v3990_v15, %v3986_v4  ;;  %v1871_v42 = vsub.f32 0.0, %v1839_v0  ;;  %v1837_v57 = vadd.f32 %v3867_v48, %v1716_v30  ;;  %v1727_v20 = vadd.f32 %v2955_v41, %v3859_v21 }
 0x331   : > { %v3142_v32 = vpop.eup %3141  ;;  %3159 = vpow2.f32 %v1897_v6  ;;  %v1903_v33 = vmul.f32 1.442695, %v1868_v43  ;;  %v1718_v54 = vpop.f32.mrf.mxu0  ;;  %v1899_v58 = vmul.f32 1.442695, %v1866_v35  ;;  %v4193_v43 = vunpack.c.l.bf16 %v3390_v34 }
 0x332   : > { %2686 = vst [vmem:[%s3894_s14 + $0x50] sm:$0xff] %v2650_v3   ;;  %v3144_v40 = vpop.eup %3143  ;;  %v1909_v53 = vmul.f32 1.442695, %v1871_v42  ;;  %v1869_v7 = vsub.f32 0.0, %v1837_v57  ;;  %v1840_v62 = vadd.f32 %v3867_v48, %v1727_v20  ;;  %v1719_v29 = vadd.f32 %v1718_v54, %v3865_v26 }
 0x333   : > { %v3146_v18 = vpop.eup %3145  ;;  %v1991_v49 = vadd.f32 1.0, %v3144_v40  ;;  %3161 = vpow2.f32 %v1903_v33  ;;  %v2051_v59 = vadd.f32 1.0, %v3142_v32  ;;  %v4191_v26 = vunpack.c.l.bf16 %v3378_v31 }
 0x334   : > { %v3148_v17 = vpop.eup %3147  ;;  %3163 = vpow2.f32 %v1899_v58  ;;  %v1905_v21 = vmul.f32 1.442695, %v1869_v7  ;;  %v1872_v46 = vsub.f32 0.0, %v1840_v62  ;;  %v1838_v24 = vadd.f32 %v3867_v48, %v1719_v29 }
 0x335   : > { %v3150_v61 = vpop.eup %3149  ;;  %3165 = vrcp.f32 %v1991_v49  ;;  %v1989_v37 = vadd.f32 1.0, %v3148_v17  ;;  %v2049_v12 = vadd.f32 1.0, %v3146_v18  ;;  %v4006_v60 = vmul.f32 %v2051_v59, %v4191_v26 }
 0x336   : > { %v3152_v10 = vpop.eup %3151  ;;  %v1992_v51 = vadd.f32 1.0, %v3150_v61  ;;  %3167 = vpow2.f32 %v1909_v53  ;;  %v1911_v2 = vmul.f32 1.442695, %v1872_v46  ;;  %v1870_v47 = vsub.f32 0.0, %v1838_v24 }
 0x337   : > { %v2052_v56 = vadd.f32 1.0, %v3152_v10  ;;  %3169 = vrcp.f32 %v1989_v37  ;;  %v3154_v23 = vpop.eup %3153  ;;  %v4014_v41 = vmul.f32 %v2049_v12, %v4193_v43  ;;  %v4194_v42 = vunpack.c.h.bf16 %v3390_v34 }
 0x338   : > { %3171 = vrcp.f32 %v1992_v51  ;;  %v3156_v38 = vpop.eup %3155  ;;  %v2050_v48 = vadd.f32 1.0, %v3154_v23  ;;  %v1907_v30 = vmul.f32 1.442695, %v1870_v47  ;;  %v4195_v46 = vunpack.c.l.bf16 %v3356_v25 }
 0x339   : > { %v4010_v0 = vmul.f32 %v2052_v56, %v4192_v63  ;;  %3173 = vpow2.f32 %v1905_v21  ;;  %v1990_v3 = vadd.f32 1.0, %v3156_v38  ;;  %v4196_v12 = vunpack.c.h.bf16 %v3356_v25 }
 0x33a   : > { %3175 = vpow2.f32 %v1911_v2  ;;  %v3158_v6 = vpop.eup %3157  ;;  %v4020_v57 = vmul.f32 %v2050_v48, %v4194_v42  ;;  %v4197_v63 = vunpack.c.l.bf16 %v3367_v28  ;;  %v4198_v25 = vunpack.c.h.bf16 %v3367_v28 }
 0x33b   : > { %v2665_v35 = vpack.c.bf16 %v4010_v0, %v4006_v60  ;;  %3177 = vpow2.f32 %v1907_v30  ;;  %v1963_v31 = vadd.f32 1.0, %v3158_v6  ;;  %v4200_v28 = vunpack.c.l.bf16 %v3334_v19 }
 0x33c   : > { %3179 = vrcp.f32 %v1990_v3  ;;  %v2660_v20 = vpack.c.bf16 %v4020_v57, %v4014_v41 }
 0x33d   : > { %2689 = vst [vmem:[%s3894_s14 + $0x68] sm:$0xff] %v2665_v35   ;;  %3181 = vrcp.f32 %v1963_v31 }
 0x33e   : > { %v3160_v32 = vpop.eup %3159  ;;  %2688 = vst [vmem:[%s3894_s14 + $0x60] sm:$0xff] %v2660_v20   ;;  %v4199_v20 = vunpack.c.l.bf16 %v3345_v22 }
 0x33f   : > { %v1961_v33 = vadd.f32 1.0, %v3160_v32 }
 0x340   : > { %v3162_v54 = vpop.eup %3161 }
 0x341   : > { %v3164_v40 = vpop.eup %3163  ;;  %3183 = vrcp.f32 %v1961_v33  ;;  %v1964_v58 = vadd.f32 1.0, %v3162_v54 }
 0x342   : > { %v3166_v53 = vpop.eup %3165  ;;  %v1962_v7 = vadd.f32 1.0, %v3164_v40 }
 0x343   : > { %v3168_v34 = vpop.eup %3167  ;;  %3185 = vrcp.f32 %v1964_v58  ;;  %v2055_v49 = vadd.f32 1.0, %v3166_v53  ;;  %v4201_v53 = vunpack.c.h.bf16 %v3334_v19 }
 0x344   : > { %v3170_v18 = vpop.eup %3169  ;;  %3187 = vrcp.f32 %v1962_v7  ;;  %v1967_v62 = vadd.f32 1.0, %v3168_v34  ;;  %v4202_v34 = vunpack.c.h.bf16 %v3345_v22  ;;  %v4203_v22 = vunpack.c.l.bf16 %v3323_v16 }
 0x345   : > { %v3172_v29 = vpop.eup %3171  ;;  %v4028_v24 = vmul.f32 %v2055_v49, %v4195_v46  ;;  %v2053_v10 = vadd.f32 1.0, %v3170_v18 }
 0x346   : > { %v3174_v17 = vpop.eup %3173  ;;  %v2056_v59 = vadd.f32 1.0, %v3172_v29  ;;  %3189 = vrcp.f32 %v1967_v62 }
 0x347   : > { %v3176_v21 = vpop.eup %3175  ;;  %v1965_v61 = vadd.f32 1.0, %v3174_v17  ;;  %v4038_v48 = vmul.f32 %v2053_v10, %v4197_v63  ;;  %v4204_v63 = vunpack.c.l.bf16 %v3313_v13 }
 0x348   : > { %v3178_v37 = vpop.eup %3177  ;;  %v4032_v51 = vmul.f32 %v2056_v59, %v4196_v12  ;;  %v1968_v56 = vadd.f32 1.0, %v3176_v21 }
 0x349   : > { %v3180_v2 = vpop.eup %3179  ;;  %3191 = vrcp.f32 %v1965_v61  ;;  %v1966_v47 = vadd.f32 1.0, %v3178_v37 }
 0x34a   : > { %v2675_v23 = vpack.c.bf16 %v4032_v51, %v4028_v24  ;;  %v2054_v26 = vadd.f32 1.0, %v3180_v2  ;;  %3193 = vrcp.f32 %v1968_v56  ;;  %v3182_v38 = vpop.eup %3181 }
 0x34b   : > { %3195 = vrcp.f32 %v1966_v47  ;;  %v2027_v43 = vadd.f32 1.0, %v3182_v38 }
 0x34c   : > { %2691 = vst [vmem:[%s3894_s14 + $0x78] sm:$0xff] %v2675_v23   ;;  %v4043_v30 = vmul.f32 %v2054_v26, %v4198_v25 }
 0x34d   : > { %v2059_v58 = vmul.f32 %v2027_v43, %v4200_v28 }
 0x34e   : > { %v3184_v3 = vpop.eup %3183  ;;  %v2670_v6 = vpack.c.bf16 %v4043_v30, %v4038_v48 }
 0x34f   : > { %v2025_v35 = vadd.f32 1.0, %v3184_v3  ;;  %v2289_v12 = vmul.f32 %v2059_v58, %v2059_v58 }
 0x350   : > { %v3186_v42 = vpop.eup %3185  ;;  %2690 = vst [vmem:[%s3894_s14 + $0x70] sm:$0xff] %v2670_v6   ;;  %v4205_v6 = vunpack.c.h.bf16 %v3313_v13 }
 0x351   : > { %v3188_v31 = vpop.eup %3187  ;;  %v2057_v32 = vmul.f32 %v2025_v35, %v4199_v20  ;;  %v2028_v33 = vadd.f32 1.0, %v3186_v42  ;;  %v4206_v35 = vunpack.c.h.bf16 %v3323_v16  ;;  %v2295_v16 = vmul.f32 %v3898_v11, %v3898_v11 }
 0x352   : > { %v2026_v54 = vadd.f32 1.0, %v3188_v31 }
 0x353   : > { %v3190_v40 = vpop.eup %3189  ;;  %v2060_v7 = vmul.f32 %v2028_v33, %v4201_v53  ;;  %v2287_v49 = vmul.f32 %v2057_v32, %v2057_v32 }
 0x354   : > { %v2058_v18 = vmul.f32 %v2026_v54, %v4202_v34  ;;  %v2031_v61 = vadd.f32 1.0, %v3190_v40 }
 0x355   : > { %v2605_v62 = vpack.c.bf16 %v2060_v7, %v2059_v58  ;;  %v2290_v47 = vmul.f32 %v2060_v7, %v2060_v7 }
 0x356   : > { %v3192_v29 = vpop.eup %3191  ;;  %v2600_v17 = vpack.c.bf16 %v2058_v18, %v2057_v32  ;;  %v2249_v59 = vadd.f32 %v2058_v18, %v2057_v32  ;;  %v2288_v21 = vmul.f32 %v2058_v18, %v2058_v18  ;;  %v2063_v25 = vmul.f32 %v2031_v61, %v4204_v63 }
 0x357   : > { %v3194_v37 = vpop.eup %3193  ;;  %2677 = vst [vmem:[%s3894_s14 + $0x8] sm:$0xff] %v2605_v62   ;;  %v2029_v46 = vadd.f32 1.0, %v3192_v29  ;;  %v2297_v61 = vmul.f32 %v3883_v1, %v3883_v1 }
 0x358   : > { %v3196_v10 = vpop.eup %3195  ;;  %2601 = vst [vmem:[%s3894_s14] sm:$0xff] %v2600_v17   ;;  %v2250_v56 = vadd.f32 %v2249_v59, %v2059_v58  ;;  %v2319_v2 = vadd.f32 %v2288_v21, %v2287_v49  ;;  %v2032_v19 = vadd.f32 1.0, %v3194_v37  ;;  %v2293_v53 = vmul.f32 %v2063_v25, %v2063_v25 }
 0x359   : > { %v2061_v23 = vmul.f32 %v2029_v46, %v4203_v22  ;;  %v2030_v26 = vadd.f32 1.0, %v3196_v10  ;;  %v2296_v17 = vmul.f32 %v3904_v9, %v3904_v9  ;;  %v2298_v10 = vmul.f32 %v3887_v39, %v3887_v39 }
 0x35a   : > { %v2320_v38 = vadd.f32 %v2319_v2, %v2289_v12  ;;  %v2251_v3 = vadd.f32 %v2250_v56, %v2060_v7  ;;  %v2064_v43 = vmul.f32 %v2032_v19, %v4205_v6 }
 0x35b   : > { %v2062_v42 = vmul.f32 %v2030_v26, %v4206_v35  ;;  %v2291_v20 = vmul.f32 %v2061_v23, %v2061_v23 }
 0x35c   : > { %v2252_v31 = vadd.f32 %v2251_v3, %v2061_v23  ;;  %v2321_v32 = vadd.f32 %v2320_v38, %v2290_v47  ;;  %v2615_v33 = vpack.c.bf16 %v2064_v43, %v2063_v25  ;;  %v2294_v7 = vmul.f32 %v2064_v43, %v2064_v43 }
 0x35d   : > { %v2610_v54 = vpack.c.bf16 %v2062_v42, %v2061_v23  ;;  %v2292_v40 = vmul.f32 %v2062_v42, %v2062_v42 }
 0x35e   : > { %v2322_v28 = vadd.f32 %v2321_v32, %v2291_v20  ;;  %2679 = vst [vmem:[%s3894_s14 + $0x18] sm:$0xff] %v2615_v33   ;;  %v2253_v58 = vadd.f32 %v2252_v31, %v2062_v42 }
 0x35f   : > { %2678 = vst [vmem:[%s3894_s14 + $0x10] sm:$0xff] %v2610_v54  }
 0x360   : > { %v2254_v34 = vadd.f32 %v2253_v58, %v2063_v25  ;;  %v2323_v18 = vadd.f32 %v2322_v28, %v2292_v40 }
 0x362   : > { %v2255_v49 = vadd.f32 %v2254_v34, %v2064_v43  ;;  %v2324_v13 = vadd.f32 %v2323_v18, %v2293_v53 }
 0x364   : > { %v2256_v62 = vadd.f32 %v2255_v49, %v3898_v11  ;;  %v2325_v29 = vadd.f32 %v2324_v13, %v2294_v7  ;;  %v2299_v11 = vmul.f32 %v3924_v27, %v3924_v27 }
 0x366   : > { %v2257_v59 = vadd.f32 %v2256_v62, %v3904_v9  ;;  %v2326_v21 = vadd.f32 %v2325_v29, %v2295_v16  ;;  %v2300_v9 = vmul.f32 %v3930_v5, %v3930_v5 }
 0x368   : > { %v2258_v37 = vadd.f32 %v2257_v59, %v3883_v1  ;;  %v2327_v46 = vadd.f32 %v2326_v21, %v2296_v17  ;;  %v2301_v1 = vmul.f32 %v3916_v14, %v3916_v14 }
 0x36a   : > { %v2259_v12 = vadd.f32 %v2258_v37, %v3887_v39  ;;  %v2328_v56 = vadd.f32 %v2327_v46, %v2297_v61  ;;  %v2302_v39 = vmul.f32 %v3920_v55, %v3920_v55 }
 0x36c   : > { %v2260_v2 = vadd.f32 %v2259_v12, %v3924_v27  ;;  %v2329_v19 = vadd.f32 %v2328_v56, %v2298_v10  ;;  %v2303_v27 = vmul.f32 %v3950_v44, %v3950_v44  ;;  %v2318_v10 = vmul.f32 %v4032_v51, %v4032_v51 }
 0x36e   : > { %v2261_v47 = vadd.f32 %v2260_v2, %v3930_v5  ;;  %v2330_v22 = vadd.f32 %v2329_v19, %v2299_v11  ;;  %v2304_v5 = vmul.f32 %v3956_v50, %v3956_v50 }
 0x370   : > { %v2262_v23 = vadd.f32 %v2261_v47, %v3916_v14  ;;  %v2331_v26 = vadd.f32 %v2330_v22, %v2300_v9  ;;  %v2305_v14 = vmul.f32 %v3942_v8, %v3942_v8 }
 0x372   : > { %v2263_v38 = vadd.f32 %v2262_v23, %v3920_v55  ;;  %v2332_v63 = vadd.f32 %v2331_v26, %v2301_v1  ;;  %v2306_v55 = vmul.f32 %v3946_v52, %v3946_v52 }
 0x374   : > { %v2264_v25 = vadd.f32 %v2263_v38, %v3950_v44  ;;  %v2333_v3 = vadd.f32 %v2332_v63, %v2302_v39  ;;  %v2307_v44 = vmul.f32 %v3986_v4, %v3986_v4 }
 0x376   : > { %v2265_v6 = vadd.f32 %v2264_v25, %v3956_v50  ;;  %v2334_v43 = vadd.f32 %v2333_v3, %v2303_v27  ;;  %v2308_v50 = vmul.f32 %v3990_v15, %v3990_v15 }
 0x378   : > { %v2266_v35 = vadd.f32 %v2265_v6, %v3942_v8  ;;  %v2335_v42 = vadd.f32 %v2334_v43, %v2304_v5  ;;  %v2309_v8 = vmul.f32 %v3969_v45, %v3969_v45 }
 0x37a   : > { %v2267_v31 = vadd.f32 %v2266_v35, %v3946_v52  ;;  %v2336_v20 = vadd.f32 %v2335_v42, %v2305_v14  ;;  %v2310_v52 = vmul.f32 %v3973_v36, %v3973_v36 }
 0x37c   : > { %v2268_v32 = vadd.f32 %v2267_v31, %v3986_v4  ;;  %v2337_v33 = vadd.f32 %v2336_v20, %v2306_v55  ;;  %v2311_v4 = vmul.f32 %v4014_v41, %v4014_v41 }
 0x37e   : > { %v2269_v54 = vadd.f32 %v2268_v32, %v3990_v15  ;;  %v2338_v40 = vadd.f32 %v2337_v33, %v2307_v44  ;;  %v2312_v15 = vmul.f32 %v4020_v57, %v4020_v57 }
 0x380   : > { %v2270_v28 = vadd.f32 %v2269_v54, %v3969_v45  ;;  %v2339_v58 = vadd.f32 %v2338_v40, %v2308_v50  ;;  %v2313_v45 = vmul.f32 %v4006_v60, %v4006_v60 }
 0x382   : > { %v2271_v53 = vadd.f32 %v2270_v28, %v3973_v36  ;;  %v2340_v34 = vadd.f32 %v2339_v58, %v2309_v8  ;;  %v2314_v36 = vmul.f32 %v4010_v0, %v4010_v0 }
 0x384   : > { %v2272_v18 = vadd.f32 %v2271_v53, %v4014_v41  ;;  %v2341_v7 = vadd.f32 %v2340_v34, %v2310_v52  ;;  %v2315_v41 = vmul.f32 %v4038_v48, %v4038_v48 }
 0x386   : > { %v2273_v49 = vadd.f32 %v2272_v18, %v4020_v57  ;;  %v2342_v13 = vadd.f32 %v2341_v7, %v2311_v4  ;;  %v2316_v57 = vmul.f32 %v4043_v30, %v4043_v30 }
 0x388   : > { %v2274_v16 = vadd.f32 %v2273_v49, %v4006_v60  ;;  %v2343_v62 = vadd.f32 %v2342_v13, %v2312_v15  ;;  %v2317_v60 = vmul.f32 %v4028_v24, %v4028_v24 }
 0x38a   : > { %v2275_v29 = vadd.f32 %v2274_v16, %v4010_v0  ;;  %v2344_v17 = vadd.f32 %v2343_v62, %v2313_v45 }
 0x38c   : > { %v2276_v59 = vadd.f32 %v2275_v29, %v4038_v48  ;;  %v2345_v21 = vadd.f32 %v2344_v17, %v2314_v36 }
 0x38e   : > { %v2277_v61 = vadd.f32 %v2276_v59, %v4043_v30  ;;  %v2346_v37 = vadd.f32 %v2345_v21, %v2315_v41 }
 0x390   : > { %v2278_v46 = vadd.f32 %v2277_v61, %v4028_v24  ;;  %v2347_v0 = vadd.f32 %v2346_v37, %v2316_v57 }
 0x392   : > { %v2279_v48 = vadd.f32 %v2278_v46, %v4032_v51  ;;  %v2348_v12 = vadd.f32 %v2347_v0, %v2317_v60 }
 0x394   : > { %v2280_v56 = vrot.slane %v2279_v48, 4  ;;  %v2349_v11 = vadd.f32 %v2348_v12, %v2318_v10 }
 0x396   : > { %v2281_v2 = vadd.f32 %v2280_v56, %v2279_v48  ;;  %v2350_v19 = vrot.slane %v2349_v11, 4 }
 0x398   : > { %v2282_v30 = vrot.slane %v2281_v2, 2  ;;  %v2351_v9 = vadd.f32 %v2350_v19, %v2349_v11 }
 0x39a   : > { %v2283_v47 = vadd.f32 %v2282_v30, %v2281_v2  ;;  %v2352_v22 = vrot.slane %v2351_v9, 2 }
 0x39c   : > { %v2284_v1 = vrot.slane %v2283_v47, 1  ;;  %v2353_v23 = vadd.f32 %v2352_v22, %v2351_v9 }
 0x39e   : > { %v2285_v24 = vadd.f32 %v2284_v1, %v2283_v47  ;;  %v2354_v26 = vrot.slane %v2353_v23, 1 }
 0x3a0   : > { %2286 = vst [vmem:[%s360_s16] sm:$0x1] %v2285_v24  ;;  %v2355_v51 = vadd.f32 %v2354_v26, %v2353_v23 }
 0x3a2   : > { %2356 = vst [vmem:[%s363_s19] sm:$0x1] %v2355_v51 }
 0x3a3 PF: > { %s20_s30 = sadd.s32 1, %s3203_s30  }
 0x3a4   : > { %p17_p4 = scmp.ge.s32.totalorder %s20_s30, 4  }
 0x3a6   :  { %19 = sbr.rel (!%p17_p4) target bundleno = 1 (0x1), region = 105 }

// kernel: _lambda_.13
= control target key start
LH: loop header
LB: loop body
LE: loop exit
PB: predicated region body
PF: predicated region fallthrough
CT: control target
= control target key end

     0   :  { %s2677_s21 = smov 0   ;;  %s2679_s22 = smov 0   ;;  %s3230_s0 = inlined_call_operand.vmem [shape: bf16[2,256,128], index: 0, kind: input, shape index: {}]   ;;  %s3231_s1 = inlined_call_operand.vmem [shape: bf16[2,256,128], index: 1, kind: input, shape index: {}]   ;;  %s3232_s2 = inlined_call_operand.vmem [shape: bf16[2,256,128], index: 2, kind: input, shape index: {}]   ;;  %s3233_s3 = inlined_call_operand.vmem [shape: f32[1,1,128], index: 3, kind: input, shape index: {}]   ;;  %s3234_s4 = inlined_call_operand.vmem [shape: f32[1,1,128], index: 4, kind: input, shape index: {}]   ;;  %s3235_s5 = inlined_call_operand.vmem [shape: f32[1,1,128], index: 5, kind: input, shape index: {}]   ;;  %s3236_s6 = inlined_call_operand.vmem [shape: f32[1,1,128], index: 6, kind: input, shape index: {}]   ;;  %s3237_s7 = inlined_call_operand.vmem [shape: f32[1,1,128], index: 7, kind: input, shape index: {}]   ;;  %s3238_s8 = inlined_call_operand.vmem [shape: f32[1,1,128], index: 8, kind: input, shape index: {}]   ;;  %s3239_s9 = inlined_call_operand.vmem [shape: bf16[128,128], index: 9, kind: input, shape index: {}]   ;;  %s3240_s10 = inlined_call_operand.vmem [shape: bf16[128,128], index: 10, kind: input, shape index: {}]   ;;  %s3241_s11 = inlined_call_operand.vmem [shape: bf16[128,128], index: 11, kind: input, shape index: {}]   ;;  %s3242_s12 = inlined_call_operand.vmem [shape: f32[2,128,256], index: 12, kind: output, shape index: {}]  }
   0x1   :  { %s2681_s23 = smov 0  }
   0x2 LB: > { %s34_s24 = sadd.s32 1, %s2606_s22  ;;  %p2026_p0 = scmp.ge.s32.totalorder %s2610_s23, 1  ;;  %s2610_s23 = sphi %s2681_s23, %s22_s23   ;;  %s2606_s22 = sphi %s2679_s22, %s3244_s22   ;;  %s2602_s21 = sphi %s2677_s21, %s3243_s21  }
   0x3   : > { %p36_p1 = scmp.ge.s32.totalorder %s34_s24, 2  ;;  %p417_p2 = scmp.lt.s32.totalorder %s2610_s23, 3 }
   0x5   : > { %s3246_s24 = smov (%p36_p1, %s34_s24), 0  ;;  %p418_p3 = pnand %p2026_p0, %p417_p2 }
   0x6   : > { %p486_p4 = scmp.lt.s32.totalorder (!%p418_p3), %s2602_s21, 1 }
   0x7   : > { %421 = sbr.rel (%p418_p3) target bundleno = 494 (0x1ee), region = 68 }
   0xc   : > { %v2564_v0 = vld [vmem:[%s3240_s10 + $0x38] sm:$0xff]   ;;  %v2565_v1 = vld [vmem:[%s3240_s10 + $0x30] sm:$0xff]   ;;  %s3248_s21 = smov (!%p486_p4, %s2602_s21), 1  ;;  %v2566_v2 = vld [vmem:[%s3240_s10 + $0x28] sm:$0xff]  }
   0xd   : > { %2380 = vmatprep.subr.bf16.mxu0 %v2564_v0  ;;  %2524 = vmatprep.subr.bf16.mxu1 %v2564_v0  ;;  %s2707_s13 = sshll.u32 %s3248_s21, 7  ;;  %v2567_v3 = vld [vmem:[%s3240_s10 + $0x20] sm:$0xff]   ;;  %v2568_v20 = vld [vmem:[%s3240_s10 + $0x18] sm:$0xff]   ;;  %v2569_v33 = vld [vmem:[%s3240_s10 + $0x10] sm:$0xff]  }
   0xe   : > { %2381 = vmatpush3.bf16.msra.mxu0 %v2564_v0  ;;  %2532 = vmatpush3.bf16.msra.mxu1 %v2564_v0  ;;  %s2713_s16 = scalar_lea.vmem %s3231_s1, %s2707_s13  ;;  %v2722_v5 = vld [vmem:[%s3235_s5] ss:$0 sm:$0xff]  ;;  %v2570_v57 = vld [vmem:[%s3240_s10 + $0x8] sm:$0xff]   ;;  %s2843_s25 = scalar_lea.vmem %s3230_s0, %s2707_s13 }
   0xf   : > { %2382 = vmatprep.subr.bf16.mxu0 %v2565_v1  ;;  %2525 = vmatprep.subr.bf16.mxu1 %v2565_v1  ;;  %v2136_v4 = vld [vmem:[%s2713_s16] sm:$0xff]   ;;  %v2278_v9 = vld [vmem:[%s2713_s16 + $0x8] sm:$0xff]   ;;  %v2279_v32 = vld [vmem:[%s2713_s16 + $0x10] sm:$0xff]   ;;  %s2859_s27 = scalar_lea.vmem %s3232_s2, %s2707_s13 }
  0x10   : > { %v2137_v6 = vunpack.c.l.bf16 %v2136_v4  ;;  %v2138_v7 = vunpack.c.h.bf16 %v2136_v4  ;;  %v2285_v8 = vld [vmem:[%s2713_s16 + $0x40] sm:$0xff]   ;;  %v2286_v10 = vld [vmem:[%s2713_s16 + $0x48] sm:$0xff]   ;;  %v2141_v14 = vunpack.c.l.bf16 %v2278_v9  ;;  %v2142_v15 = vunpack.c.h.bf16 %v2278_v9  ;;  %v2287_v38 = vld [vmem:[%s2713_s16 + $0x50] sm:$0xff]  }
  0x11   : > { %v2730_v11 = vld [vmem:[%s3236_s6] ss:$0 sm:$0xff]  ;;  %v2169_v12 = vunpack.c.l.bf16 %v2285_v8  ;;  %v2170_v13 = vunpack.c.h.bf16 %v2285_v8  ;;  %v2173_v18 = vunpack.c.l.bf16 %v2286_v10  ;;  %v2174_v19 = vunpack.c.h.bf16 %v2286_v10  ;;  %v2280_v43 = vld [vmem:[%s2713_s16 + $0x18] sm:$0xff]  }
  0x12   : > { %2383 = vmatpush3.bf16.msra.mxu0 %v2565_v1  ;;  %2533 = vmatpush3.bf16.msra.mxu1 %v2565_v1  ;;  %v803_v16 = vmul.f32 %v2137_v6, %v2722_v5  ;;  %v804_v17 = vmul.f32 %v2138_v7, %v2722_v5  ;;  %v805_v23 = vmul.f32 %v2141_v14, %v2722_v5  ;;  %v2145_v47 = vunpack.c.l.bf16 %v2279_v32  ;;  %v2288_v52 = vld [vmem:[%s2713_s16 + $0x58] sm:$0xff]   ;;  %v2281_v7 = vld [vmem:[%s2713_s16 + $0x20] sm:$0xff]  }
  0x13   : > { %2384 = vmatprep.subr.bf16.mxu0 %v2566_v2  ;;  %2526 = vmatprep.subr.bf16.mxu1 %v2566_v2  ;;  %v819_v21 = vmul.f32 %v2169_v12, %v2722_v5  ;;  %v820_v22 = vmul.f32 %v2170_v13, %v2722_v5  ;;  %v806_v26 = vmul.f32 %v2142_v15, %v2722_v5  ;;  %v2146_v50 = vunpack.c.h.bf16 %v2279_v32  ;;  %v2571_v13 = vld [vmem:[%s3240_s10] sm:$0xff]  }
  0x14   : > { %v842_v24 = vadd.f32 %v2730_v11, %v803_v16  ;;  %v843_v25 = vadd.f32 %v2730_v11, %v804_v17  ;;  %v821_v27 = vmul.f32 %v2173_v18, %v2722_v5  ;;  %v844_v30 = vadd.f32 %v2730_v11, %v805_v23  ;;  %v2289_v18 = vld [vmem:[%s2713_s16 + $0x60] sm:$0xff]   ;;  %v2572_v23 = vld [vmem:[%s3239_s9 + $0x38] sm:$0xff]  }
  0x15   : > { %v858_v28 = vadd.f32 %v2730_v11, %v819_v21  ;;  %v859_v29 = vadd.f32 %v2730_v11, %v820_v22  ;;  %v822_v31 = vmul.f32 %v2174_v19, %v2722_v5  ;;  %v845_v36 = vadd.f32 %v2730_v11, %v806_v26 }
  0x16   : > { %2385 = vmatpush3.bf16.msra.mxu0 %v2566_v2  ;;  %2534 = vmatpush3.bf16.msra.mxu1 %v2566_v2  ;;  %v874_v34 = vmax.f32 %v842_v24, 0.0  ;;  %v875_v35 = vmax.f32 %v843_v25, 0.0  ;;  %v860_v37 = vadd.f32 %v2730_v11, %v821_v27  ;;  %v876_v41 = vmax.f32 %v844_v30, 0.0 }
  0x17   : > { %2386 = vmatprep.subr.bf16.mxu0 %v2567_v3  ;;  %2527 = vmatprep.subr.bf16.mxu1 %v2567_v3  ;;  %v890_v39 = vmax.f32 %v858_v28, 0.0  ;;  %v891_v40 = vmax.f32 %v859_v29, 0.0  ;;  %v861_v42 = vadd.f32 %v2730_v11, %v822_v31  ;;  %v877_v45 = vmax.f32 %v845_v36, 0.0  ;;  %v2282_v28 = vld [vmem:[%s2713_s16 + $0x28] sm:$0xff]  }
  0x18   : > { %v906_v44 = vpack.c.bf16 %v875_v35, %v874_v34  ;;  %v892_v46 = vmax.f32 %v860_v37, 0.0  ;;  %v2177_v51 = vunpack.c.l.bf16 %v2287_v38  ;;  %v807_v54 = vmul.f32 %v2145_v47, %v2722_v5  ;;  %v2573_v34 = vld [vmem:[%s3241_s11 + $0x38] sm:$0xff]   ;;  %v2283_v47 = vld [vmem:[%s2713_s16 + $0x30] sm:$0xff]  }
  0x19   : > { %v914_v48 = vpack.c.bf16 %v891_v40, %v890_v39  ;;  %v893_v49 = vmax.f32 %v861_v42, 0.0  ;;  %v2758_v53 = vpack.c.bf16 %v877_v45, %v876_v41  ;;  %v2178_v55 = vunpack.c.h.bf16 %v2287_v38 }
  0x1a   : > { %2387 = vmatpush3.bf16.msra.mxu0 %v2567_v3  ;;  %2535 = vmatpush3.bf16.msra.mxu1 %v2567_v3  ;;  %v2149_v56 = vunpack.c.l.bf16 %v2280_v43  ;;  %v808_v59 = vmul.f32 %v2146_v50, %v2722_v5  ;;  %v823_v60 = vmul.f32 %v2177_v51, %v2722_v5  ;;  %v2150_v61 = vunpack.c.h.bf16 %v2280_v43 }
  0x1b   : > { %2388 = vmatprep.subr.bf16.mxu0 %v2568_v20  ;;  %2528 = vmatprep.subr.bf16.mxu1 %v2568_v20  ;;  %v2764_v58 = vpack.c.bf16 %v893_v49, %v892_v46  ;;  %v846_v62 = vadd.f32 %v2730_v11, %v807_v54  ;;  %v824_v63 = vmul.f32 %v2178_v55, %v2722_v5  ;;  %v2181_v1 = vunpack.c.l.bf16 %v2288_v52  ;;  %v2575_v54 = vld [vmem:[%s3241_s11 + $0x30] sm:$0xff]  }
  0x1c   : > { %2396 = vmatprep.mubr.bf16.mxu0 %v906_v44  ;;  %2412 = vmatprep.mubr.bf16.mxu1 %v914_v48  ;;  %v809_v0 = vmul.f32 %v2149_v56, %v2722_v5  ;;  %v847_v2 = vadd.f32 %v2730_v11, %v808_v59  ;;  %v862_v3 = vadd.f32 %v2730_v11, %v823_v60  ;;  %v2182_v6 = vunpack.c.h.bf16 %v2288_v52  ;;  %v2574_v52 = vld [vmem:[%s3239_s9 + $0x30] sm:$0xff]  }
  0x1d   : > { %v810_v4 = vmul.f32 %v2150_v61, %v2722_v5  ;;  %v878_v8 = vmax.f32 %v846_v62, 0.0  ;;  %v863_v9 = vadd.f32 %v2730_v11, %v824_v63  ;;  %v825_v12 = vmul.f32 %v2181_v1, %v2722_v5 }
  0x1e   : > { %2389 = vmatpush3.bf16.msra.mxu0 %v2568_v20  ;;  %2536 = vmatpush3.bf16.msra.mxu1 %v2568_v20  ;;  %v848_v10 = vadd.f32 %v2730_v11, %v809_v0  ;;  %v879_v14 = vmax.f32 %v847_v2, 0.0  ;;  %v894_v15 = vmax.f32 %v862_v3, 0.0  ;;  %v826_v17 = vmul.f32 %v2182_v6, %v2722_v5  ;;  %v2291_v0 = vld [vmem:[%s2713_s16 + $0x70] sm:$0xff]  }
  0x1f   : > { %2390 = vmatprep.subr.bf16.mxu0 %v2569_v33  ;;  %2529 = vmatprep.subr.bf16.mxu1 %v2569_v33  ;;  %v849_v16 = vadd.f32 %v2730_v11, %v810_v4  ;;  %v895_v19 = vmax.f32 %v863_v9, 0.0  ;;  %v864_v21 = vadd.f32 %v2730_v11, %v825_v12  ;;  %v2153_v22 = vunpack.c.l.bf16 %v2281_v7 }
  0x20   : > { %v880_v20 = vmax.f32 %v848_v10, 0.0  ;;  %v2788_v24 = vpack.c.bf16 %v879_v14, %v878_v8  ;;  %v865_v26 = vadd.f32 %v2730_v11, %v826_v17  ;;  %v2154_v27 = vunpack.c.h.bf16 %v2281_v7  ;;  %v2284_v10 = vld [vmem:[%s2713_s16 + $0x38] sm:$0xff]  }
  0x21   : > { %v881_v25 = vmax.f32 %v849_v16, 0.0  ;;  %v2792_v29 = vpack.c.bf16 %v895_v19, %v894_v15  ;;  %v896_v30 = vmax.f32 %v864_v21, 0.0  ;;  %v811_v31 = vmul.f32 %v2153_v22, %v2722_v5  ;;  %v2292_v16 = vld [vmem:[%s2713_s16 + $0x78] sm:$0xff]  }
  0x22   : > { %2391 = vmatpush3.bf16.msra.mxu0 %v2569_v33  ;;  %2537 = vmatpush3.bf16.msra.mxu1 %v2569_v33  ;;  %v2185_v32 = vunpack.c.l.bf16 %v2289_v18  ;;  %v2290_v33 = vld [vmem:[%s2713_s16 + $0x68] sm:$0xff]   ;;  %v897_v36 = vmax.f32 %v865_v26, 0.0  ;;  %v812_v37 = vmul.f32 %v2154_v27, %v2722_v5  ;;  %v2186_v38 = vunpack.c.h.bf16 %v2289_v18 }
  0x23   : > { %2392 = vmatprep.subr.bf16.mxu0 %v2570_v57  ;;  %2530 = vmatprep.subr.bf16.mxu1 %v2570_v57  ;;  %v2799_v35 = vpack.c.bf16 %v881_v25, %v880_v20  ;;  %v850_v39 = vadd.f32 %v2730_v11, %v811_v31  ;;  %v2157_v41 = vunpack.c.l.bf16 %v2282_v28  ;;  %v2158_v42 = vunpack.c.h.bf16 %v2282_v28  ;;  %v2579_v31 = vld [vmem:[%s3241_s11 + $0x20] sm:$0xff]  }
  0x24   : > { %v827_v40 = vmul.f32 %v2185_v32, %v2722_v5  ;;  %v2804_v43 = vpack.c.bf16 %v897_v36, %v896_v30  ;;  %v851_v44 = vadd.f32 %v2730_v11, %v812_v37  ;;  %v828_v45 = vmul.f32 %v2186_v38, %v2722_v5  ;;  %v2578_v30 = vld [vmem:[%s3239_s9 + $0x20] sm:$0xff]  }
  0x25   : > { %v2189_v46 = vunpack.c.l.bf16 %v2290_v33  ;;  %v882_v48 = vmax.f32 %v850_v39, 0.0  ;;  %v813_v50 = vmul.f32 %v2157_v41, %v2722_v5  ;;  %v814_v51 = vmul.f32 %v2158_v42, %v2722_v5  ;;  %v2877_v41 = vld [vmem:[%s3233_s3] ss:$0 sm:$0xff] }
  0x26   : > { %2393 = vmatpush3.bf16.msra.mxu0 %v2570_v57  ;;  %2538 = vmatpush3.bf16.msra.mxu1 %v2570_v57  ;;  %v866_v49 = vadd.f32 %v2730_v11, %v827_v40  ;;  %v883_v55 = vmax.f32 %v851_v44, 0.0  ;;  %v867_v56 = vadd.f32 %v2730_v11, %v828_v45  ;;  %v2190_v57 = vunpack.c.h.bf16 %v2290_v33 }
  0x27   : > { %2394 = vmatprep.subr.bf16.mxu0 %v2571_v13  ;;  %2531 = vmatprep.subr.bf16.mxu1 %v2571_v13  ;;  %v829_v59 = vmul.f32 %v2189_v46, %v2722_v5  ;;  %v852_v61 = vadd.f32 %v2730_v11, %v813_v50  ;;  %v853_v62 = vadd.f32 %v2730_v11, %v814_v51  ;;  %v2161_v63 = vunpack.c.l.bf16 %v2283_v47  ;;  %v2581_v51 = vld [vmem:[%s3241_s11 + $0x18] sm:$0xff]  }
  0x28   : > { %v898_v60 = vmax.f32 %v866_v49, 0.0  ;;  %v2825_v1 = vpack.c.bf16 %v883_v55, %v882_v48  ;;  %v899_v2 = vmax.f32 %v867_v56, 0.0  ;;  %v830_v3 = vmul.f32 %v2190_v57, %v2722_v5  ;;  %v2580_v48 = vld [vmem:[%s3239_s9 + $0x18] sm:$0xff]   ;;  %v2904_v57 = vld [vmem:[%s3237_s7] ss:$0 sm:$0xff] }
  0x29   : > { %v868_v4 = vadd.f32 %v2730_v11, %v829_v59  ;;  %v884_v6 = vmax.f32 %v852_v61, 0.0  ;;  %v885_v7 = vmax.f32 %v853_v62, 0.0  ;;  %v2162_v8 = vunpack.c.h.bf16 %v2283_v47  ;;  %v2200_v47 = vld [vmem:[%s2859_s27] sm:$0xff]   ;;  %v2263_v59 = vld [vmem:[%s2843_s25 + $0x8] sm:$0xff]  }
  0x2a   : > { %2395 = vmatpush3.bf16.msra.mxu0 %v2571_v13  ;;  %2539 = vmatpush3.bf16.msra.mxu1 %v2571_v13  ;;  %v815_v9 = vmul.f32 %v2161_v63, %v2722_v5  ;;  %v918_v12 = vpack.c.bf16 %v899_v2, %v898_v60  ;;  %v869_v13 = vadd.f32 %v2730_v11, %v830_v3  ;;  %v2193_v15 = vunpack.c.l.bf16 %v2291_v0 }
  0x2b   : > { %2428 = vmatprep.subr.bf16.mxu1 %v2572_v23  ;;  %2476 = vmatprep.subr.bf16.mxu0 %v2573_v34  ;;  %v900_v14 = vmax.f32 %v868_v4, 0.0  ;;  %v2847_v17 = vpack.c.bf16 %v885_v7, %v884_v6  ;;  %v816_v18 = vmul.f32 %v2162_v8, %v2722_v5  ;;  %v2194_v20 = vunpack.c.h.bf16 %v2291_v0  ;;  %v2913_v4 = vld [vmem:[%s3238_s8] ss:$0 sm:$0xff]  ;;  %v2293_v6 = vld [vmem:[%s2859_s27 + $0x8] sm:$0xff]  }
  0x2c   : > { %v854_v19 = vadd.f32 %v2730_v11, %v815_v9  ;;  %v901_v21 = vmax.f32 %v869_v13, 0.0  ;;  %v831_v22 = vmul.f32 %v2193_v15, %v2722_v5  ;;  %v2166_v25 = vunpack.c.h.bf16 %v2284_v10 }
  0x2d   : > { %2397 = vmatmul.mubr.bf16.vlgmr.msra.gmra.mxu0 %v2758_v53  ;;  %2413 = vmatmul.mubr.bf16.vlgmr.msra.gmra.mxu1 %v2764_v58  ;;  %v2576_v53 = vld [vmem:[%s3239_s9 + $0x28] sm:$0xff]   ;;  %v832_v27 = vmul.f32 %v2194_v20, %v2722_v5  ;;  %v2197_v28 = vunpack.c.l.bf16 %v2292_v16  ;;  %v2198_v36 = vunpack.c.h.bf16 %v2292_v16  ;;  %v2201_v63 = vunpack.c.l.bf16 %v2200_v47 }
  0x2e   : > { %2429 = vmatpush3.bf16.msra.mxu1 %v2572_v23  ;;  %2477 = vmatpush3.bf16.msra.mxu0 %v2573_v34  ;;  %v2577_v58 = vld [vmem:[%s3241_s11 + $0x28] sm:$0xff]   ;;  %v2165_v23 = vunpack.c.l.bf16 %v2284_v10  ;;  %v886_v26 = vmax.f32 %v854_v19, 0.0  ;;  %v2867_v32 = vpack.c.bf16 %v901_v21, %v900_v14  ;;  %v870_v33 = vadd.f32 %v2730_v11, %v831_v22  ;;  %v2264_v10 = vld [vmem:[%s2843_s25 + $0x10] sm:$0xff]  }
  0x2f   : > { %2430 = vmatprep.subr.bf16.mxu1 %v2574_v52  ;;  %2478 = vmatprep.subr.bf16.mxu0 %v2575_v54  ;;  %v871_v38 = vadd.f32 %v2730_v11, %v832_v27  ;;  %v818_v39 = vmul.f32 %v2166_v25, %v2722_v5  ;;  %v833_v40 = vmul.f32 %v2197_v28, %v2722_v5  ;;  %v2202_v3 = vunpack.c.h.bf16 %v2200_v47  ;;  %v2295_v47 = vld [vmem:[%s2859_s27 + $0x18] sm:$0xff]  }
  0x30   : > { %2400 = vmatprep.mubr.bf16.mxu0 %v2788_v24  ;;  %2416 = vmatprep.mubr.bf16.mxu1 %v2792_v29  ;;  %v855_v24 = vadd.f32 %v2730_v11, %v816_v18  ;;  %v2072_v29 = vld [vmem:[%s2843_s25] sm:$0xff]   ;;  %v817_v34 = vmul.f32 %v2165_v23, %v2722_v5  ;;  %v902_v42 = vmax.f32 %v870_v33, 0.0  ;;  %v834_v45 = vmul.f32 %v2198_v36, %v2722_v5 }
  0x31   : > { %v2073_v46 = vunpack.c.l.bf16 %v2072_v29  ;;  %v903_v50 = vmax.f32 %v871_v38, 0.0  ;;  %v2894_v5 = vld [vmem:[%s3234_s4] ss:$0 sm:$0xff]  ;;  %v2074_v55 = vunpack.c.h.bf16 %v2072_v29  ;;  %v1427_v7 = vmul.f32 %v2201_v63, %v2904_v57  ;;  %v2294_v29 = vld [vmem:[%s2859_s27 + $0x10] sm:$0xff]  }
  0x32   : > { %2431 = vmatpush3.bf16.msra.mxu1 %v2574_v52  ;;  %2479 = vmatpush3.bf16.msra.mxu0 %v2575_v54  ;;  %v887_v37 = vmax.f32 %v855_v24, 0.0  ;;  %v856_v44 = vadd.f32 %v2730_v11, %v817_v34  ;;  %v873_v54 = vadd.f32 %v2730_v11, %v834_v45  ;;  %v2077_v8 = vunpack.c.l.bf16 %v2263_v59  ;;  %v2266_v63 = vld [vmem:[%s2843_s25 + $0x20] sm:$0xff]  }
  0x33   : > { %2432 = vmatprep.subr.bf16.mxu1 %v2576_v53  ;;  %2480 = vmatprep.subr.bf16.mxu0 %v2577_v58  ;;  %v597_v56 = vmul.f32 %v2073_v46, %v2877_v41  ;;  %v920_v60 = vpack.c.bf16 %v903_v50, %v902_v42  ;;  %v2078_v9 = vunpack.c.h.bf16 %v2263_v59  ;;  %v1428_v15 = vmul.f32 %v2202_v3, %v2904_v57 }
  0x34   : > { %v2887_v49 = vpack.c.bf16 %v887_v37, %v886_v26  ;;  %v888_v52 = vmax.f32 %v856_v44, 0.0  ;;  %v905_v0 = vmax.f32 %v873_v54, 0.0  ;;  %v1466_v16 = vadd.f32 %v2913_v4, %v1427_v7 }
  0x35   : > { %2401 = vmatmul.mubr.bf16.gmra.mxu0 %v2799_v35  ;;  %2417 = vmatmul.mubr.bf16.gmra.mxu1 %v2804_v43  ;;  %v857_v35 = vadd.f32 %v2730_v11, %v818_v39  ;;  %v872_v43 = vadd.f32 %v2730_v11, %v833_v40  ;;  %v598_v11 = vmul.f32 %v2074_v55, %v2877_v41  ;;  %v2205_v20 = vunpack.c.l.bf16 %v2293_v6  ;;  %v2265_v40 = vld [vmem:[%s2843_s25 + $0x18] sm:$0xff]  }
  0x36   : > { %2433 = vmatpush3.bf16.msra.mxu1 %v2576_v53  ;;  %2481 = vmatpush3.bf16.msra.mxu0 %v2577_v58  ;;  %v636_v2 = vadd.f32 %v2894_v5, %v597_v56  ;;  %v2582_v53 = vld [vmem:[%s3239_s9 + $0x10] sm:$0xff]   ;;  %v599_v18 = vmul.f32 %v2077_v8, %v2877_v41  ;;  %v600_v19 = vmul.f32 %v2078_v9, %v2877_v41  ;;  %v2206_v23 = vunpack.c.h.bf16 %v2293_v6 }
  0x37   : > { %2434 = vmatprep.subr.bf16.mxu1 %v2578_v30  ;;  %2482 = vmatprep.subr.bf16.mxu0 %v2579_v31  ;;  %v889_v61 = vmax.f32 %v857_v35, 0.0  ;;  %v904_v62 = vmax.f32 %v872_v43, 0.0  ;;  %v2583_v58 = vld [vmem:[%s3241_s11 + $0x10] sm:$0xff]   ;;  %v637_v13 = vadd.f32 %v2894_v5, %v598_v11  ;;  %v1467_v22 = vadd.f32 %v2913_v4, %v1428_v15  ;;  %v2586_v43 = vld [vmem:[%s3239_s9] sm:$0xff]  }
  0x38   : > { %2404 = vmatprep.mubr.bf16.mxu0 %v2825_v1  ;;  %2420 = vmatprep.mubr.bf16.mxu1 %v918_v12  ;;  %v668_v14 = vmax.f32 %v636_v2, 0.0  ;;  %v2081_v25 = vunpack.c.l.bf16 %v2264_v10  ;;  %v1498_v24 = vmax.f32 %v1466_v16, 0.0  ;;  %v638_v26 = vadd.f32 %v2894_v5, %v599_v18 }
  0x39   : > { %v2916_v1 = vpack.c.bf16 %v889_v61, %v888_v52  ;;  %v921_v12 = vpack.c.bf16 %v905_v0, %v904_v62  ;;  %v669_v21 = vmax.f32 %v637_v13, 0.0  ;;  %v639_v27 = vadd.f32 %v2894_v5, %v600_v19 }
  0x3a   : > { %2435 = vmatpush3.bf16.msra.mxu1 %v2578_v30  ;;  %2483 = vmatpush3.bf16.msra.mxu0 %v2579_v31  ;;  %v1429_v28 = vmul.f32 %v2205_v20, %v2904_v57  ;;  %v2585_v30 = vld [vmem:[%s3241_s11 + $0x8] sm:$0xff]   ;;  %v1430_v33 = vmul.f32 %v2206_v23, %v2904_v57  ;;  %v2082_v34 = vunpack.c.h.bf16 %v2264_v10  ;;  %v670_v36 = vmax.f32 %v638_v26, 0.0  ;;  %v2296_v10 = vld [vmem:[%s2859_s27 + $0x20] sm:$0xff]  }
  0x3b   : > { %2436 = vmatprep.subr.bf16.mxu1 %v2580_v48  ;;  %2484 = vmatprep.subr.bf16.mxu0 %v2581_v51  ;;  %v700_v31 = vpack.c.bf16 %v669_v21, %v668_v14  ;;  %v671_v37 = vmax.f32 %v639_v27, 0.0  ;;  %v601_v39 = vmul.f32 %v2081_v25, %v2877_v41  ;;  %v2209_v46 = vunpack.c.l.bf16 %v2294_v29 }
  0x3c   : > { %v1468_v38 = vadd.f32 %v2913_v4, %v1429_v28  ;;  %v1469_v44 = vadd.f32 %v2913_v4, %v1430_v33  ;;  %v602_v45 = vmul.f32 %v2082_v34, %v2877_v41  ;;  %v2210_v35 = vunpack.c.h.bf16 %v2294_v29 }
  0x3d   : > { %2405 = vmatmul.mubr.bf16.gmra.mxu0 %v2847_v17  ;;  %2421 = vmatmul.mubr.bf16.gmra.mxu1 %v2867_v32  ;;  %v2584_v17 = vld [vmem:[%s3239_s9 + $0x8] sm:$0xff]   ;;  %v1499_v32 = vmax.f32 %v1467_v22, 0.0  ;;  %v640_v50 = vadd.f32 %v2894_v5, %v601_v39  ;;  %v1431_v55 = vmul.f32 %v2209_v46, %v2904_v57  ;;  %v2085_v56 = vunpack.c.l.bf16 %v2265_v40 }
  0x3e   : > { %2437 = vmatpush3.bf16.msra.mxu1 %v2580_v48  ;;  %2485 = vmatpush3.bf16.msra.mxu0 %v2581_v51  ;;  %v701_v48 = vpack.c.bf16 %v671_v37, %v670_v36  ;;  %v2587_v51 = vld [vmem:[%s3241_s11] sm:$0xff]   ;;  %v1501_v52 = vmax.f32 %v1469_v44, 0.0  ;;  %v641_v54 = vadd.f32 %v2894_v5, %v602_v45  ;;  %v2086_v61 = vunpack.c.h.bf16 %v2265_v40  ;;  %v2267_v22 = vld [vmem:[%s2843_s25 + $0x28] sm:$0xff]   ;;  %v2268_v40 = vld [vmem:[%s2843_s25 + $0x30] sm:$0xff]  }
  0x3f   : > { %2438 = vmatprep.subr.bf16.mxu1 %v2582_v53  ;;  %2486 = vmatprep.subr.bf16.mxu0 %v2583_v58  ;;  %v1530_v42 = vpack.c.bf16 %v1499_v32, %v1498_v24  ;;  %v672_v59 = vmax.f32 %v640_v50, 0.0  ;;  %v2213_v62 = vunpack.c.l.bf16 %v2295_v47  ;;  %v1470_v2 = vadd.f32 %v2913_v4, %v1431_v55 }
  0x40   : > { %2408 = vmatprep.mubr.bf16.mxu0 %v2887_v49  ;;  %2424 = vmatprep.mubr.bf16.mxu1 %v920_v60  ;;  %v1500_v49 = vmax.f32 %v1468_v38, 0.0  ;;  %v1432_v60 = vmul.f32 %v2210_v35, %v2904_v57  ;;  %v673_v11 = vmax.f32 %v641_v54, 0.0  ;;  %v603_v3 = vmul.f32 %v2085_v56, %v2877_v41  ;;  %v2298_v54 = vld [vmem:[%s2859_s27 + $0x30] sm:$0xff]  }
  0x41   : > { %v604_v7 = vmul.f32 %v2086_v61, %v2877_v41  ;;  %v2214_v8 = vunpack.c.h.bf16 %v2295_v47  ;;  %v1433_v9 = vmul.f32 %v2213_v62, %v2904_v57  ;;  %v2090_v19 = vunpack.c.h.bf16 %v2266_v63 }
  0x42   : > { %2439 = vmatpush3.bf16.msra.mxu1 %v2582_v53  ;;  %2487 = vmatpush3.bf16.msra.mxu0 %v2583_v58  ;;  %v1531_v0 = vpack.c.bf16 %v1501_v52, %v1500_v49  ;;  %v1471_v6 = vadd.f32 %v2913_v4, %v1432_v60  ;;  %v1502_v53 = vmax.f32 %v1470_v2, 0.0  ;;  %v642_v58 = vadd.f32 %v2894_v5, %v603_v3 }
  0x43   : > { %2440 = vmatprep.subr.bf16.mxu1 %v2584_v17  ;;  %2488 = vmatprep.subr.bf16.mxu0 %v2585_v30  ;;  %v643_v14 = vadd.f32 %v2894_v5, %v604_v7  ;;  %v1434_v15 = vmul.f32 %v2214_v8, %v2904_v57  ;;  %v1472_v16 = vadd.f32 %v2913_v4, %v1433_v9  ;;  %v2217_v21 = vunpack.c.l.bf16 %v2296_v10  ;;  %v2299_v8 = vld [vmem:[%s2859_s27 + $0x38] sm:$0xff]  }
  0x44   : > { %v1503_v13 = vmax.f32 %v1471_v6, 0.0  ;;  %v674_v18 = vmax.f32 %v642_v58, 0.0  ;;  %v606_v27 = vmul.f32 %v2090_v19, %v2877_v41  ;;  %v2218_v29 = vunpack.c.h.bf16 %v2296_v10 }
  0x45   : > { %2409 = vmatmul.mubr.bf16.gmra.mxu0 %v2916_v1  ;;  %2425 = vmatmul.mubr.bf16.gmra.mxu1 %v921_v12  ;;  %v702_v1 = vpack.c.bf16 %v673_v11, %v672_v59  ;;  %v2089_v12 = vunpack.c.l.bf16 %v2266_v63  ;;  %v675_v25 = vmax.f32 %v643_v14, 0.0  ;;  %v1473_v24 = vadd.f32 %v2913_v4, %v1434_v15  ;;  %v2269_v11 = vld [vmem:[%s2843_s25 + $0x38] sm:$0xff]  }
  0x46   : > { %2441 = vmatpush3.bf16.msra.mxu1 %v2584_v17  ;;  %2489 = vmatpush3.bf16.msra.mxu0 %v2585_v30  ;;  %v1532_v23 = vpack.c.bf16 %v1503_v13, %v1502_v53  ;;  %v1504_v26 = vmax.f32 %v1472_v16, 0.0  ;;  %v1435_v17 = vmul.f32 %v2217_v21, %v2904_v57  ;;  %v2297_v30 = vld [vmem:[%s2859_s27 + $0x28] sm:$0xff]   ;;  %v2093_v33 = vunpack.c.l.bf16 %v2267_v22 }
  0x47   : > { %2442 = vmatprep.subr.bf16.mxu1 %v2586_v43  ;;  %2490 = vmatprep.subr.bf16.mxu0 %v2587_v51  ;;  %v605_v20 = vmul.f32 %v2089_v12, %v2877_v41  ;;  %v1505_v32 = vmax.f32 %v1473_v24, 0.0  ;;  %v2094_v34 = vunpack.c.h.bf16 %v2267_v22  ;;  %v645_v36 = vadd.f32 %v2894_v5, %v606_v27 }
  0x48   : > { %2444 = vmatprep.mubr.bf16.mxu1 %v700_v31  ;;  %2492 = vmatprep.mubr.bf16.mxu0 %v1530_v42  ;;  %v703_v31 = vpack.c.bf16 %v675_v25, %v674_v18  ;;  %v1436_v38 = vmul.f32 %v2218_v29, %v2904_v57  ;;  %v1474_v39 = vadd.f32 %v2913_v4, %v1435_v17  ;;  %v2221_v46 = vunpack.c.l.bf16 %v2297_v30  ;;  %v2300_v29 = vld [vmem:[%s2859_s27 + $0x40] sm:$0xff]  }
  0x49   : > { %v644_v28 = vadd.f32 %v2894_v5, %v605_v20  ;;  %v1533_v42 = vpack.c.bf16 %v1505_v32, %v1504_v26  ;;  %v607_v44 = vmul.f32 %v2093_v33, %v2877_v41  ;;  %v608_v45 = vmul.f32 %v2094_v34, %v2877_v41  ;;  %v2270_v20 = vld [vmem:[%s2843_s25 + $0x40] sm:$0xff]  }
  0x4a   : > { %2443 = vmatpush3.bf16.msra.mxu1 %v2586_v43  ;;  %2491 = vmatpush3.bf16.msra.mxu0 %v2587_v51  ;;  %v677_v47 = vmax.f32 %v645_v36, 0.0  ;;  %v1506_v49 = vmax.f32 %v1474_v39, 0.0  ;;  %v2222_v50 = vunpack.c.h.bf16 %v2297_v30  ;;  %v1437_v51 = vmul.f32 %v2221_v46, %v2904_v57 }
  0x4b   : > { %v676_v37 = vmax.f32 %v644_v28, 0.0  ;;  %v646_v35 = vadd.f32 %v2894_v5, %v607_v44  ;;  %v647_v43 = vadd.f32 %v2894_v5, %v608_v45  ;;  %v2097_v52 = vunpack.c.l.bf16 %v2268_v40  ;;  %v2271_v44 = vld [vmem:[%s2843_s25 + $0x48] sm:$0xff]  }
  0x4c   : > { %v1438_v59 = vmul.f32 %v2222_v50, %v2904_v57  ;;  %v2098_v60 = vunpack.c.h.bf16 %v2268_v40  ;;  %v1476_v63 = vadd.f32 %v2913_v4, %v1437_v51  ;;  %v2225_v7 = vunpack.c.l.bf16 %v2298_v54  ;;  %v2301_v51 = vld [vmem:[%s2859_s27 + $0x48] sm:$0xff]  }
  0x4d   : > { %2445 = vmatmul.mubr.bf16.vlgmr.msra.gmra.mxu1 %v701_v48  ;;  %2493 = vmatmul.mubr.bf16.vlgmr.msra.gmra.mxu0 %v1531_v0  ;;  %v1475_v48 = vadd.f32 %v2913_v4, %v1436_v38  ;;  %v704_v55 = vpack.c.bf16 %v677_v47, %v676_v37  ;;  %v678_v61 = vmax.f32 %v646_v35, 0.0  ;;  %v679_v62 = vmax.f32 %v647_v43, 0.0 }
  0x4e   : > { %2448 = vmatprep.mubr.bf16.mxu1 %v702_v1  ;;  %2496 = vmatprep.mubr.bf16.mxu0 %v1532_v23  ;;  %v609_v0 = vmul.f32 %v2097_v52, %v2877_v41  ;;  %v1477_v3 = vadd.f32 %v2913_v4, %v1438_v59  ;;  %v610_v6 = vmul.f32 %v2098_v60, %v2877_v41  ;;  %v1508_v10 = vmax.f32 %v1476_v63, 0.0  ;;  %v2272_v63 = vld [vmem:[%s2843_s25 + $0x50] sm:$0xff]  }
  0x4f   : > { %v1507_v56 = vmax.f32 %v1475_v48, 0.0  ;;  %v705_v9 = vpack.c.bf16 %v679_v62, %v678_v61  ;;  %v2226_v53 = vunpack.c.h.bf16 %v2298_v54  ;;  %v1439_v13 = vmul.f32 %v2225_v7, %v2904_v57 }
  0x50   : > { %v648_v1 = vadd.f32 %v2894_v5, %v609_v0  ;;  %v1509_v58 = vmax.f32 %v1477_v3, 0.0  ;;  %v649_v12 = vadd.f32 %v2894_v5, %v610_v6  ;;  %v2101_v14 = vunpack.c.l.bf16 %v2269_v11 }
  0x51   : > { %v1534_v2 = vpack.c.bf16 %v1507_v56, %v1506_v49  ;;  %v1440_v16 = vmul.f32 %v2226_v53, %v2904_v57  ;;  %v2102_v18 = vunpack.c.h.bf16 %v2269_v11  ;;  %v2229_v19 = vunpack.c.l.bf16 %v2299_v8 }
  0x52   : > { %v680_v15 = vmax.f32 %v648_v1, 0.0  ;;  %v1535_v21 = vpack.c.bf16 %v1509_v58, %v1508_v10  ;;  %v681_v22 = vmax.f32 %v649_v12, 0.0  ;;  %v1478_v23 = vadd.f32 %v2913_v4, %v1439_v13  ;;  %v2273_v12 = vld [vmem:[%s2843_s25 + $0x58] sm:$0xff]  }
  0x53   : > { %v611_v25 = vmul.f32 %v2101_v14, %v2877_v41  ;;  %v1479_v24 = vadd.f32 %v2913_v4, %v1440_v16  ;;  %v612_v26 = vmul.f32 %v2102_v18, %v2877_v41  ;;  %v2230_v27 = vunpack.c.h.bf16 %v2299_v8 }
  0x54   : > { %v1441_v28 = vmul.f32 %v2229_v19, %v2904_v57  ;;  %v706_v17 = vpack.c.bf16 %v681_v22, %v680_v15  ;;  %v1510_v30 = vmax.f32 %v1478_v23, 0.0  ;;  %v2105_v32 = vunpack.c.l.bf16 %v2270_v20  ;;  %v2302_v22 = vld [vmem:[%s2859_s27 + $0x50] sm:$0xff]  }
  0x55   : > { %2449 = vmatmul.mubr.bf16.gmra.mxu1 %v703_v31  ;;  %2497 = vmatmul.mubr.bf16.gmra.mxu0 %v1533_v42  ;;  %v650_v31 = vadd.f32 %v2894_v5, %v611_v25  ;;  %v1511_v33 = vmax.f32 %v1479_v24, 0.0  ;;  %v651_v34 = vadd.f32 %v2894_v5, %v612_v26  ;;  %v1442_v36 = vmul.f32 %v2230_v27, %v2904_v57  ;;  %v2303_v27 = vld [vmem:[%s2859_s27 + $0x58] sm:$0xff]  }
  0x56   : > { %2452 = vmatprep.mubr.bf16.mxu1 %v704_v55  ;;  %2500 = vmatprep.mubr.bf16.mxu0 %v1534_v2  ;;  %v1480_v37 = vadd.f32 %v2913_v4, %v1441_v28  ;;  %v2106_v39 = vunpack.c.h.bf16 %v2270_v20  ;;  %v613_v40 = vmul.f32 %v2105_v32, %v2877_v41  ;;  %v2233_v42 = vunpack.c.l.bf16 %v2300_v29 }
  0x57   : > { %v682_v38 = vmax.f32 %v650_v31, 0.0  ;;  %v1536_v45 = vpack.c.bf16 %v1511_v33, %v1510_v30  ;;  %v683_v46 = vmax.f32 %v651_v34, 0.0  ;;  %v1481_v47 = vadd.f32 %v2913_v4, %v1442_v36 }
  0x58   : > { %v1512_v48 = vmax.f32 %v1480_v37, 0.0  ;;  %v614_v49 = vmul.f32 %v2106_v39, %v2877_v41  ;;  %v652_v50 = vadd.f32 %v2894_v5, %v613_v40  ;;  %v2234_v35 = vunpack.c.h.bf16 %v2300_v29  ;;  %v2274_v40 = vld [vmem:[%s2843_s25 + $0x60] sm:$0xff]  }
  0x59   : > { %v1443_v43 = vmul.f32 %v2233_v42, %v2904_v57  ;;  %v707_v52 = vpack.c.bf16 %v683_v46, %v682_v38  ;;  %v1513_v54 = vmax.f32 %v1481_v47, 0.0  ;;  %v2109_v55 = vunpack.c.l.bf16 %v2271_v44 }
  0x5a   : > { %v2110_v56 = vunpack.c.h.bf16 %v2271_v44  ;;  %v653_v59 = vadd.f32 %v2894_v5, %v614_v49  ;;  %v684_v60 = vmax.f32 %v652_v50, 0.0  ;;  %v1444_v61 = vmul.f32 %v2234_v35, %v2904_v57  ;;  %v2275_v35 = vld [vmem:[%s2843_s25 + $0x68] sm:$0xff]  }
  0x5b   : > { %v1482_v62 = vadd.f32 %v2913_v4, %v1443_v43  ;;  %v1537_v0 = vpack.c.bf16 %v1513_v54, %v1512_v48  ;;  %v615_v11 = vmul.f32 %v2109_v55, %v2877_v41  ;;  %v2237_v3 = vunpack.c.l.bf16 %v2301_v51 }
  0x5c   : > { %v616_v2 = vmul.f32 %v2110_v56, %v2877_v41  ;;  %v685_v6 = vmax.f32 %v653_v59, 0.0  ;;  %v1483_v7 = vadd.f32 %v2913_v4, %v1444_v61  ;;  %v2113_v58 = vunpack.c.l.bf16 %v2272_v63 }
  0x5d   : > { %2453 = vmatmul.mubr.bf16.gmra.mxu1 %v705_v9  ;;  %2501 = vmatmul.mubr.bf16.gmra.mxu0 %v1535_v21  ;;  %v1514_v8 = vmax.f32 %v1482_v62, 0.0  ;;  %v2238_v9 = vunpack.c.h.bf16 %v2301_v51  ;;  %v654_v10 = vadd.f32 %v2894_v5, %v615_v11  ;;  %v1445_v53 = vmul.f32 %v2237_v3, %v2904_v57  ;;  %v2304_v11 = vld [vmem:[%s2859_s27 + $0x60] sm:$0xff]  }
  0x5e   : > { %2456 = vmatprep.mubr.bf16.mxu1 %v706_v17  ;;  %2504 = vmatprep.mubr.bf16.mxu0 %v1536_v45  ;;  %v655_v1 = vadd.f32 %v2894_v5, %v616_v2  ;;  %v708_v13 = vpack.c.bf16 %v685_v6, %v684_v60  ;;  %v1515_v14 = vmax.f32 %v1483_v7, 0.0  ;;  %v2114_v16 = vunpack.c.h.bf16 %v2272_v63 }
  0x5f   : > { %v1446_v15 = vmul.f32 %v2238_v9, %v2904_v57  ;;  %v686_v18 = vmax.f32 %v654_v10, 0.0  ;;  %v1484_v20 = vadd.f32 %v2913_v4, %v1445_v53  ;;  %v617_v21 = vmul.f32 %v2113_v58, %v2877_v41  ;;  %v2305_v53 = vld [vmem:[%s2859_s27 + $0x68] sm:$0xff]  }
  0x60   : > { %v687_v19 = vmax.f32 %v655_v1, 0.0  ;;  %v1538_v23 = vpack.c.bf16 %v1515_v14, %v1514_v8  ;;  %v618_v24 = vmul.f32 %v2114_v16, %v2877_v41  ;;  %v2117_v26 = vunpack.c.l.bf16 %v2273_v12 }
  0x61   : > { %v1485_v25 = vadd.f32 %v2913_v4, %v1446_v15  ;;  %v1516_v29 = vmax.f32 %v1484_v20, 0.0  ;;  %v656_v17 = vadd.f32 %v2894_v5, %v617_v21  ;;  %v2118_v30 = vunpack.c.h.bf16 %v2273_v12  ;;  %v2276_v20 = vld [vmem:[%s2843_s25 + $0x70] sm:$0xff]  }
  0x62   : > { %v709_v28 = vpack.c.bf16 %v687_v19, %v686_v18  ;;  %v657_v32 = vadd.f32 %v2894_v5, %v618_v24  ;;  %v619_v33 = vmul.f32 %v2117_v26, %v2877_v41  ;;  %v2241_v34 = vunpack.c.l.bf16 %v2302_v22 }
  0x63   : > { %v1517_v31 = vmax.f32 %v1485_v25, 0.0  ;;  %v688_v36 = vmax.f32 %v656_v17, 0.0  ;;  %v620_v37 = vmul.f32 %v2118_v30, %v2877_v41  ;;  %v2242_v38 = vunpack.c.h.bf16 %v2302_v22 }
  0x64   : > { %v2245_v39 = vunpack.c.l.bf16 %v2303_v27  ;;  %v689_v44 = vmax.f32 %v657_v32, 0.0  ;;  %v658_v45 = vadd.f32 %v2894_v5, %v619_v33  ;;  %v1447_v46 = vmul.f32 %v2241_v34, %v2904_v57  ;;  %v2277_v32 = vld [vmem:[%s2843_s25 + $0x78] sm:$0xff]   ;;  %s2070_s25 = sshll.u32 %s3248_s21, 8 }
  0x65   : > { %2457 = vmatmul.mubr.bf16.gmra.mxu1 %v707_v52  ;;  %2505 = vmatmul.mubr.bf16.gmra.mxu0 %v1537_v0  ;;  %v1539_v42 = vpack.c.bf16 %v1517_v31, %v1516_v29  ;;  %v659_v47 = vadd.f32 %v2894_v5, %v620_v37  ;;  %v1448_v48 = vmul.f32 %v2242_v38, %v2904_v57  ;;  %v2246_v49 = vunpack.c.h.bf16 %v2303_v27  ;;  %s3187_s15 = scalar_lea.vmem %s3242_s12, %s2070_s25 }
  0x66   : > { %2460 = vmatprep.mubr.bf16.mxu1 %v708_v13  ;;  %2508 = vmatprep.mubr.bf16.mxu0 %v1538_v23  ;;  %v1449_v50 = vmul.f32 %v2245_v39, %v2904_v57  ;;  %v710_v43 = vpack.c.bf16 %v689_v44, %v688_v36  ;;  %v690_v51 = vmax.f32 %v658_v45, 0.0  ;;  %v1486_v52 = vadd.f32 %v2913_v4, %v1447_v46  ;;  %v2306_v44 = vld [vmem:[%s2859_s27 + $0x70] sm:$0xff]  }
  0x67   : > { %v2121_v54 = vunpack.c.l.bf16 %v2274_v40  ;;  %v691_v55 = vmax.f32 %v659_v47, 0.0  ;;  %v1487_v56 = vadd.f32 %v2913_v4, %v1448_v48  ;;  %v1450_v59 = vmul.f32 %v2246_v49, %v2904_v57  ;;  %v2307_v49 = vld [vmem:[%s2859_s27 + $0x78] sm:$0xff]  }
  0x68   : > { %v1488_v60 = vadd.f32 %v2913_v4, %v1449_v50  ;;  %v1518_v61 = vmax.f32 %v1486_v52, 0.0  ;;  %v2122_v62 = vunpack.c.h.bf16 %v2274_v40  ;;  %v2125_v0 = vunpack.c.l.bf16 %v2275_v35 }
  0x69   : > { %v621_v63 = vmul.f32 %v2121_v54, %v2877_v41  ;;  %v711_v2 = vpack.c.bf16 %v691_v55, %v690_v51  ;;  %v1519_v3 = vmax.f32 %v1487_v56, 0.0  ;;  %v1489_v6 = vadd.f32 %v2913_v4, %v1450_v59 }
  0x6a   : > { %v1520_v7 = vmax.f32 %v1488_v60, 0.0  ;;  %v622_v8 = vmul.f32 %v2122_v62, %v2877_v41  ;;  %v2126_v10 = vunpack.c.h.bf16 %v2275_v35  ;;  %v623_v1 = vmul.f32 %v2125_v0, %v2877_v41 }
  0x6b   : > { %v660_v9 = vadd.f32 %v2894_v5, %v621_v63  ;;  %v1540_v58 = vpack.c.bf16 %v1519_v3, %v1518_v61  ;;  %v1521_v12 = vmax.f32 %v1489_v6, 0.0  ;;  %v2249_v13 = vunpack.c.l.bf16 %v2304_v11 }
  0x6c   : > { %v2250_v14 = vunpack.c.h.bf16 %v2304_v11  ;;  %v661_v15 = vadd.f32 %v2894_v5, %v622_v8  ;;  %v624_v18 = vmul.f32 %v2126_v10, %v2877_v41  ;;  %v662_v19 = vadd.f32 %v2894_v5, %v623_v1 }
  0x6d   : > { %2461 = vmatmul.mubr.bf16.gmra.mxu1 %v709_v28  ;;  %2509 = vmatmul.mubr.bf16.gmra.mxu0 %v1539_v42  ;;  %v692_v16 = vmax.f32 %v660_v9, 0.0  ;;  %v1541_v21 = vpack.c.bf16 %v1521_v12, %v1520_v7  ;;  %v1451_v22 = vmul.f32 %v2249_v13, %v2904_v57  ;;  %v2253_v25 = vunpack.c.l.bf16 %v2305_v53 }
  0x6e   : > { %2464 = vmatprep.mubr.bf16.mxu1 %v710_v43  ;;  %2512 = vmatprep.mubr.bf16.mxu0 %v1540_v58  ;;  %v1452_v23 = vmul.f32 %v2250_v14, %v2904_v57  ;;  %v693_v24 = vmax.f32 %v661_v15, 0.0  ;;  %v663_v26 = vadd.f32 %v2894_v5, %v624_v18  ;;  %v694_v27 = vmax.f32 %v662_v19, 0.0 }
  0x6f   : > { %v2254_v28 = vunpack.c.h.bf16 %v2305_v53  ;;  %v1490_v29 = vadd.f32 %v2913_v4, %v1451_v22  ;;  %v1453_v30 = vmul.f32 %v2253_v25, %v2904_v57  ;;  %v2129_v31 = vunpack.c.l.bf16 %v2276_v20 }
  0x70   : > { %v1491_v17 = vadd.f32 %v2913_v4, %v1452_v23  ;;  %v712_v33 = vpack.c.bf16 %v693_v24, %v692_v16  ;;  %v695_v34 = vmax.f32 %v663_v26, 0.0  ;;  %v2130_v37 = vunpack.c.h.bf16 %v2276_v20 }
  0x71   : > { %v1454_v36 = vmul.f32 %v2254_v28, %v2904_v57  ;;  %v1522_v38 = vmax.f32 %v1490_v29, 0.0  ;;  %v1492_v40 = vadd.f32 %v2913_v4, %v1453_v30  ;;  %v625_v42 = vmul.f32 %v2129_v31, %v2877_v41 }
  0x72   : > { %v1523_v39 = vmax.f32 %v1491_v17, 0.0  ;;  %v713_v45 = vpack.c.bf16 %v695_v34, %v694_v27  ;;  %v626_v47 = vmul.f32 %v2130_v37, %v2877_v41  ;;  %v2133_v48 = vunpack.c.l.bf16 %v2277_v32 }
  0x73   : > { %v1493_v46 = vadd.f32 %v2913_v4, %v1454_v36  ;;  %v1524_v35 = vmax.f32 %v1492_v40, 0.0  ;;  %v664_v43 = vadd.f32 %v2894_v5, %v625_v42  ;;  %v2134_v51 = vunpack.c.h.bf16 %v2277_v32 }
  0x74   : > { %v1542_v50 = vpack.c.bf16 %v1523_v39, %v1522_v38  ;;  %v665_v54 = vadd.f32 %v2894_v5, %v626_v47  ;;  %v627_v55 = vmul.f32 %v2133_v48, %v2877_v41  ;;  %v2257_v56 = vunpack.c.l.bf16 %v2306_v44 }
  0x75   : > { %2465 = vmatmul.mubr.bf16.gmra.mxu1 %v711_v2  ;;  %2513 = vmatmul.mubr.bf16.gmra.mxu0 %v1541_v21  ;;  %v1525_v52 = vmax.f32 %v1493_v46, 0.0  ;;  %v696_v59 = vmax.f32 %v664_v43, 0.0  ;;  %v628_v60 = vmul.f32 %v2134_v51, %v2877_v41  ;;  %v2258_v61 = vunpack.c.h.bf16 %v2306_v44 }
  0x76   : > { %2468 = vmatprep.mubr.bf16.mxu1 %v712_v33  ;;  %2516 = vmatprep.mubr.bf16.mxu0 %v1542_v50  ;;  %v2261_v62 = vunpack.c.l.bf16 %v2307_v49  ;;  %v697_v0 = vmax.f32 %v665_v54, 0.0  ;;  %v666_v11 = vadd.f32 %v2894_v5, %v627_v55  ;;  %v1455_v2 = vmul.f32 %v2257_v56, %v2904_v57 }
  0x77   : > { %v1543_v63 = vpack.c.bf16 %v1525_v52, %v1524_v35  ;;  %v667_v3 = vadd.f32 %v2894_v5, %v628_v60  ;;  %v1456_v6 = vmul.f32 %v2258_v61, %v2904_v57  ;;  %v2262_v7 = vunpack.c.h.bf16 %v2307_v49 }
  0x78   : > { %v1457_v8 = vmul.f32 %v2261_v62, %v2904_v57  ;;  %v714_v9 = vpack.c.bf16 %v697_v0, %v696_v59  ;;  %v698_v10 = vmax.f32 %v666_v11, 0.0  ;;  %v1494_v41 = vadd.f32 %v2913_v4, %v1455_v2 }
  0x79   : > { %v699_v1 = vmax.f32 %v667_v3, 0.0  ;;  %v1495_v53 = vadd.f32 %v2913_v4, %v1456_v6  ;;  %v1458_v58 = vmul.f32 %v2262_v7, %v2904_v57 }
  0x7a   : > { %v1496_v12 = vadd.f32 %v2913_v4, %v1457_v8  ;;  %v1526_v5 = vmax.f32 %v1494_v41, 0.0 }
  0x7b   : > { %v1527_v13 = vmax.f32 %v1495_v53, 0.0  ;;  %v1497_v14 = vadd.f32 %v2913_v4, %v1458_v58  ;;  %v715_v16 = vpack.c.bf16 %v699_v1, %v698_v10 }
  0x7c   : > { %v1528_v15 = vmax.f32 %v1496_v12, 0.0 }
  0x7d   : > { %2469 = vmatmul.mubr.bf16.gmra.mxu1 %v713_v45  ;;  %2517 = vmatmul.mubr.bf16.gmra.mxu0 %v1543_v63  ;;  %v1544_v18 = vpack.c.bf16 %v1527_v13, %v1526_v5  ;;  %v1529_v19 = vmax.f32 %v1497_v14, 0.0 }
  0x7e   : > { %2472 = vmatprep.mubr.bf16.mxu1 %v714_v9 }
  0x7f   : > { %2520 = vmatprep.mubr.bf16.mxu0 %v1544_v18  ;;  %v1545_v20 = vpack.c.bf16 %v1529_v19, %v1528_v15 }
  0x85   : > { %2473 = vmatmul.mubr.bf16.gmra.mxu1 %v715_v16  ;;  %2521 = vmatmul.mubr.bf16.gmra.mxu0 %v1545_v20 }
  0xed   : > { %v2398_v21 = vpop.f32.mrf.mxu0  ;;  %v3093_v22 = vpop.f32.mrf.mxu1 }
  0xef   : > { %v1020_v23 = vpop.f32.mrf.mxu0  ;;  %v3095_v57 = vpop.f32.mrf.mxu1 }
  0xf1   : > { %v2399_v25 = vpop.f32.mrf.mxu0  ;;  %v3097_v24 = vpop.f32.mrf.mxu1 }
  0xf3   : > { %v1023_v26 = vpop.f32.mrf.mxu0  ;;  %v3099_v27 = vpop.f32.mrf.mxu1 }
  0xf5   : > { %v3101_v4 = vpop.f32.mrf.mxu0  ;;  %v3103_v28 = vpop.f32.mrf.mxu1 }
  0xf7   : > { %v1036_v29 = vpop.f32.mrf.mxu0  ;;  %v3105_v17 = vpop.f32.mrf.mxu1 }
  0xf9   : > { %v3107_v30 = vpop.f32.mrf.mxu0  ;;  %v3109_v31 = vpop.f32.mrf.mxu1 }
  0xfb   : > { %v1039_v32 = vpop.f32.mrf.mxu0  ;;  %v3111_v33 = vpop.f32.mrf.mxu1 }
  0xfd   : > { %v3113_v34 = vpop.f32.mrf.mxu0  ;;  %v3115_v36 = vpop.f32.mrf.mxu1 }
  0xff   : > { %v3117_v37 = vpop.f32.mrf.mxu0  ;;  %v3119_v38 = vpop.f32.mrf.mxu1 }
 0x101   : > { %v3121_v39 = vpop.f32.mrf.mxu0  ;;  %v3123_v40 = vpop.f32.mrf.mxu1 }
 0x103   : > { %v3125_v42 = vpop.f32.mrf.mxu0  ;;  %v3127_v44 = vpop.f32.mrf.mxu1 }
 0x105   : > { %v3129_v45 = vpop.f32.mrf.mxu0  ;;  %v3131_v46 = vpop.f32.mrf.mxu1 }
 0x107   : > { %v3133_v47 = vpop.f32.mrf.mxu0  ;;  %v3135_v48 = vpop.f32.mrf.mxu1 }
 0x109   : > { %v3137_v49 = vpop.f32.mrf.mxu0  ;;  %v3139_v50 = vpop.f32.mrf.mxu1 }
 0x10b   : > { %v3141_v35 = vpop.f32.mrf.mxu0  ;;  %v3143_v43 = vpop.f32.mrf.mxu1 }
 0x10d   : > { %v2446_v51 = vpop.f32.mrf.mxu1  ;;  %v2494_v52 = vpop.f32.mrf.mxu0 }
 0x10e   : > { %v1238_v3 = vadd.f32 %v2446_v51, %v2398_v21 }
 0x10f   : > { %v1229_v54 = vpop.f32.mrf.mxu1  ;;  %v1644_v55 = vpop.f32.mrf.mxu0 }
 0x110   : > { %v1230_v56 = vadd.f32 %v1229_v54, %v1020_v23  ;;  %v1773_v41 = vadd.f32 %v2494_v52, %v1238_v3 }
 0x111   : > { %v2447_v59 = vpop.f32.mrf.mxu1  ;;  %v2495_v60 = vpop.f32.mrf.mxu0 }
 0x112   : > { %v1771_v61 = vadd.f32 %v1644_v55, %v1230_v56  ;;  %v1241_v1 = vadd.f32 %v2447_v59, %v2399_v25 }
 0x113   : > { %v1232_v62 = vpop.f32.mrf.mxu1  ;;  %v1647_v63 = vpop.f32.mrf.mxu0 }
 0x114   : > { %v1233_v0 = vadd.f32 %v1232_v62, %v1023_v26  ;;  %1803 = vxpose.xlu0.b32.start [1/16] %v1771_v61, 128  ;;  %v1774_v13 = vadd.f32 %v2495_v60, %v1241_v1 }
 0x115   : > { %v2450_v11 = vpop.f32.mrf.mxu1  ;;  %v2498_v2 = vpop.f32.mrf.mxu0 }
 0x116   : > { %v1772_v6 = vadd.f32 %v1647_v63, %v1233_v0  ;;  %v1254_v52 = vadd.f32 %v2450_v11, %v3101_v4 }
 0x117   : > { %v1245_v7 = vpop.f32.mrf.mxu1  ;;  %v1660_v8 = vpop.f32.mrf.mxu0 }
 0x118   : > { %1804 = vxpose.xlu0.b32.cont [2/16] %v1772_v6, 128  ;;  %v1246_v14 = vadd.f32 %v1245_v7, %v1036_v29  ;;  %v1777_v60 = vadd.f32 %v2498_v2, %v1254_v52 }
 0x119   : > { %v2451_v9 = vpop.f32.mrf.mxu1  ;;  %v2499_v10 = vpop.f32.mrf.mxu0 }
 0x11a   : > { %v1775_v20 = vadd.f32 %v1660_v8, %v1246_v14 }
 0x11b   : > { %v1248_v53 = vpop.f32.mrf.mxu1  ;;  %v1663_v58 = vpop.f32.mrf.mxu0 }
 0x11c   : > { %1805 = vxpose.xlu0.b32.cont [3/16] %v1773_v41, 128  ;;  %v1249_v21 = vadd.f32 %v1248_v53, %v1039_v32  ;;  %v1257_v32 = vadd.f32 %v2451_v9, %v3107_v30 }
 0x11d   : > { %v2454_v12 = vpop.f32.mrf.mxu1  ;;  %v2502_v5 = vpop.f32.mrf.mxu0 }
 0x11e   : > { %v1776_v54 = vadd.f32 %v1663_v58, %v1249_v21  ;;  %v1778_v3 = vadd.f32 %v2499_v10, %v1257_v32 }
 0x11f   : > { %v1261_v15 = vpop.f32.mrf.mxu1  ;;  %v1676_v16 = vpop.f32.mrf.mxu0 }
 0x120   : > { %1806 = vxpose.xlu0.b32.cont [4/16] %v1774_v13, 128  ;;  %v1262_v6 = vadd.f32 %v1261_v15, %v3117_v37  ;;  %v1270_v37 = vadd.f32 %v2454_v12, %v3113_v34 }
 0x121   : > { %v2455_v18 = vpop.f32.mrf.mxu1  ;;  %v2503_v19 = vpop.f32.mrf.mxu0 }
 0x122   : > { %v1779_v1 = vadd.f32 %v1676_v16, %v1262_v6  ;;  %v1781_v16 = vadd.f32 %v2502_v5, %v1270_v37 }
 0x123   : > { %v1264_v23 = vpop.f32.mrf.mxu1  ;;  %v1679_v26 = vpop.f32.mrf.mxu0 }
 0x124   : > { %1807 = vxpose.xlu0.b32.cont [5/16] %v1775_v20, 128  ;;  %v1265_v2 = vadd.f32 %v1264_v23, %v3125_v42  ;;  %v1273_v42 = vadd.f32 %v2455_v18, %v3121_v39 }
 0x125   : > { %v3145_v51 = vpop.f32.mrf.mxu1  ;;  %v3147_v25 = vpop.f32.mrf.mxu0 }
 0x126   : > { %v1780_v13 = vadd.f32 %v1679_v26, %v1265_v2 }
 0x127   : > { %v1277_v55 = vpop.f32.mrf.mxu1  ;;  %v1692_v56 = vpop.f32.mrf.mxu0 }
 0x128   : > { %1808 = vxpose.xlu0.b32.cont [6/16] %v1776_v54, 128  ;;  %v1782_v54 = vadd.f32 %v2503_v19, %v1273_v42  ;;  %v1278_v34 = vadd.f32 %v1277_v55, %v3133_v47  ;;  %v1286_v47 = vadd.f32 %v3145_v51, %v3129_v45 }
 0x129   : > { %v3150_v29 = vpop.f32.mrf.mxu1  ;;  %v3152_v59 = vpop.f32.mrf.mxu0 }
 0x12a   : > { %v1783_v5 = vadd.f32 %v1692_v56, %v1278_v34 }
 0x12b   : > { %v1280_v61 = vpop.f32.mrf.mxu1  ;;  %v1695_v62 = vpop.f32.mrf.mxu0 }
 0x12c   : > { %1809 = vxpose.xlu0.b32.cont [7/16] %v1777_v60, 128  ;;  %v1281_v39 = vadd.f32 %v1280_v61, %v3141_v35  ;;  %v1785_v35 = vadd.f32 %v3147_v25, %v1286_v47 }
 0x12d   : > { %v2462_v63 = vpop.f32.mrf.mxu1  ;;  %v2510_v0 = vpop.f32.mrf.mxu0 }
 0x12e   : > { %v1302_v14 = vadd.f32 %v2462_v63, %v3093_v22  ;;  %v1784_v19 = vadd.f32 %v1695_v62, %v1281_v39 }
 0x12f   : > { %v1293_v4 = vpop.f32.mrf.mxu1  ;;  %v1708_v11 = vpop.f32.mrf.mxu0 }
 0x130   : > { %v1294_v7 = vadd.f32 %v1293_v4, %v3095_v57  ;;  %1810 = vxpose.xlu0.b32.cont [8/16] %v1778_v3, 128  ;;  %v1789_v21 = vadd.f32 %v2510_v0, %v1302_v14 }
 0x131   : > { %v2463_v8 = vpop.f32.mrf.mxu1  ;;  %v2511_v41 = vpop.f32.mrf.mxu0 }
 0x132   : > { %v1787_v53 = vadd.f32 %v1708_v11, %v1294_v7 }
 0x133   : > { %v1296_v30 = vpop.f32.mrf.mxu1  ;;  %v1711_v58 = vpop.f32.mrf.mxu0 }
 0x134   : > { %v1297_v9 = vadd.f32 %v1296_v30, %v3099_v27  ;;  %1835 = vxpose.xlu1.b32.start [1/16] %v1787_v53, 128  ;;  %1811 = vxpose.xlu0.b32.cont [9/16] %v1779_v1, 128  ;;  %v1305_v27 = vadd.f32 %v2463_v8, %v3097_v24 }
 0x135   : > { %v2466_v10 = vpop.f32.mrf.mxu1  ;;  %v2514_v20 = vpop.f32.mrf.mxu0 }
 0x136   : > { %v1788_v57 = vadd.f32 %v1711_v58, %v1297_v9  ;;  %v1790_v12 = vadd.f32 %v2511_v41, %v1305_v27 }
 0x137   : > { %v1309_v15 = vpop.f32.mrf.mxu1  ;;  %v1724_v52 = vpop.f32.mrf.mxu0 }
 0x138   : > { %1836 = vxpose.xlu1.b32.cont [2/16] %v1788_v57, 128  ;;  %1812 = vxpose.xlu0.b32.cont [10/16] %v1780_v13, 128  ;;  %v1310_v22 = vadd.f32 %v1309_v15, %v3105_v17  ;;  %v1318_v17 = vadd.f32 %v2466_v10, %v3103_v28 }
 0x139   : > { %v2467_v23 = vpop.f32.mrf.mxu1  ;;  %v2515_v60 = vpop.f32.mrf.mxu0 }
 0x13a   : > { %v1791_v18 = vadd.f32 %v1724_v52, %v1310_v22  ;;  %v1793_v56 = vadd.f32 %v2514_v20, %v1318_v17  ;;  %v1321_v61 = vadd.f32 %v2467_v23, %v3109_v31 }
 0x13b   : > { %v1312_v26 = vpop.f32.mrf.mxu1  ;;  %v1727_v63 = vpop.f32.mrf.mxu0 }
 0x13c   : > { %1837 = vxpose.xlu1.b32.cont [3/16] %v1789_v21, 128  ;;  %1813 = vxpose.xlu0.b32.cont [11/16] %v1781_v16, 128  ;;  %v1313_v24 = vadd.f32 %v1312_v26, %v3111_v33  ;;  %v1289_v33 = vadd.f32 %v3150_v29, %v3137_v49  ;;  %v1794_v28 = vadd.f32 %v2515_v60, %v1321_v61 }
 0x13d   : > { %v2470_v32 = vpop.f32.mrf.mxu1  ;;  %v2518_v3 = vpop.f32.mrf.mxu0 }
 0x13e   : > { %v1792_v55 = vadd.f32 %v1727_v63, %v1313_v24  ;;  %v1786_v45 = vadd.f32 %v3152_v59, %v1289_v33  ;;  %v1334_v31 = vadd.f32 %v2470_v32, %v3115_v36 }
 0x13f   : > { %v1325_v0 = vpop.f32.mrf.mxu1  ;;  %v1740_v4 = vpop.f32.mrf.mxu0 }
 0x140   : > { %1838 = vxpose.xlu1.b32.cont [4/16] %v1790_v12, 128  ;;  %1814 = vxpose.xlu0.b32.cont [12/16] %v1782_v54, 128  ;;  %v1326_v51 = vadd.f32 %v1325_v0, %v3119_v38  ;;  %v1797_v59 = vadd.f32 %v2518_v3, %v1334_v31 }
 0x141   : > { %v2471_v6 = vpop.f32.mrf.mxu1  ;;  %v2519_v11 = vpop.f32.mrf.mxu0 }
 0x142   : > { %v1795_v25 = vadd.f32 %v1740_v4, %v1326_v51  ;;  %v1337_v2 = vadd.f32 %v2471_v6, %v3123_v40 }
 0x143   : > { %v1328_v62 = vpop.f32.mrf.mxu1  ;;  %v1743_v29 = vpop.f32.mrf.mxu0 }
 0x144   : > { %1839 = vxpose.xlu1.b32.cont [5/16] %v1791_v18, 128  ;;  %1815 = vxpose.xlu0.b32.cont [13/16] %v1783_v5, 128  ;;  %v1329_v7 = vadd.f32 %v1328_v62, %v3127_v44  ;;  %v1798_v30 = vadd.f32 %v2519_v11, %v1337_v2 }
 0x145   : > { %v2474_v49 = vpop.f32.mrf.mxu1  ;;  %v2522_v1 = vpop.f32.mrf.mxu0 }
 0x146   : > { %v1796_v8 = vadd.f32 %v1743_v29, %v1329_v7  ;;  %v1350_v13 = vadd.f32 %v2474_v49, %v3131_v46 }
 0x147   : > { %v1341_v41 = vpop.f32.mrf.mxu1  ;;  %v1756_v53 = vpop.f32.mrf.mxu0 }
 0x148   : > { %1840 = vxpose.xlu1.b32.cont [6/16] %v1792_v55, 128  ;;  %1816 = vxpose.xlu0.b32.cont [14/16] %v1784_v19, 128  ;;  %v1342_v9 = vadd.f32 %v1341_v41, %v3135_v48  ;;  %v1801_v40 = vadd.f32 %v2522_v1, %v1350_v13 }
 0x149   : > { %v2475_v38 = vpop.f32.mrf.mxu1  ;;  %v2523_v58 = vpop.f32.mrf.mxu0 }
 0x14a   : > { %v1799_v10 = vadd.f32 %v1756_v53, %v1342_v9  ;;  %v1353_v57 = vadd.f32 %v2475_v38, %v3139_v50 }
 0x14b   : > { %v1344_v44 = vpop.f32.mrf.mxu1  ;;  %v1759_v37 = vpop.f32.mrf.mxu0 }
 0x14c   : > { %1841 = vxpose.xlu1.b32.cont [7/16] %v1793_v56, 128  ;;  %1817 = vxpose.xlu0.b32.cont [15/16] %v1785_v35, 128  ;;  %v1345_v36 = vadd.f32 %v1344_v44, %v3143_v43  ;;  %v1802_v15 = vadd.f32 %v2523_v58, %v1353_v57 }
 0x14e   : > { %v1800_v14 = vadd.f32 %v1759_v37, %v1345_v36 }
 0x150   : > { %1842 = vxpose.xlu1.b32.cont [8/16] %v1794_v28, 128  ;;  %1818 = vxpose.xlu0.b32.end [16/16] %v1786_v45, 128 }
 0x154   : > { %1843 = vxpose.xlu1.b32.cont [9/16] %v1795_v25, 128 }
 0x158   : > { %1844 = vxpose.xlu1.b32.cont [10/16] %v1796_v8, 128 }
 0x15c   : > { %1845 = vxpose.xlu1.b32.cont [11/16] %v1797_v59, 128 }
 0x160   : > { %1846 = vxpose.xlu1.b32.cont [12/16] %v1798_v30, 128 }
 0x164   : > { %1847 = vxpose.xlu1.b32.cont [13/16] %v1799_v10, 128 }
 0x168   : > { %1848 = vxpose.xlu1.b32.cont [14/16] %v1800_v14, 128 }
 0x16c   : > { %1849 = vxpose.xlu1.b32.cont [15/16] %v1801_v40, 128 }
 0x170   : > { %1850 = vxpose.xlu1.b32.end [16/16] %v1802_v15, 128 }
 0x190   : > { %v1819_v46 = vpop.trf.xlu0 }
 0x191   : > { %1867 = vst [vmem:[%s3187_s15] sm:$0xff] %v1819_v46 }
 0x194   : > { %v1820_v48 = vpop.trf.xlu0 }
 0x195   : > { %1869 = vst [vmem:[%s3187_s15 + $0x10] sm:$0xff] %v1820_v48 }
 0x198   : > { %v1821_v50 = vpop.trf.xlu0 }
 0x199   : > { %1871 = vst [vmem:[%s3187_s15 + $0x20] sm:$0xff] %v1821_v50 }
 0x19c   : > { %v1822_v43 = vpop.trf.xlu0 }
 0x19d   : > { %1873 = vst [vmem:[%s3187_s15 + $0x30] sm:$0xff] %v1822_v43 }
 0x1a0   : > { %v1823_v20 = vpop.trf.xlu0 }
 0x1a1   : > { %1875 = vst [vmem:[%s3187_s15 + $0x40] sm:$0xff] %v1823_v20 }
 0x1a4   : > { %v1824_v16 = vpop.trf.xlu0 }
 0x1a5   : > { %1877 = vst [vmem:[%s3187_s15 + $0x50] sm:$0xff] %v1824_v16 }
 0x1a8   : > { %v1825_v42 = vpop.trf.xlu0 }
 0x1a9   : > { %1879 = vst [vmem:[%s3187_s15 + $0x60] sm:$0xff] %v1825_v42 }
 0x1ac   : > { %v1826_v21 = vpop.trf.xlu0 }
 0x1ad   : > { %1881 = vst [vmem:[%s3187_s15 + $0x70] sm:$0xff] %v1826_v21 }
 0x1b0   : > { %v1851_v27 = vpop.trf.xlu1  ;;  %v1827_v23 = vpop.trf.xlu0 }
 0x1b1   : > { %1868 = vst [vmem:[%s3187_s15 + $0x8] sm:$0xff] %v1851_v27  ;;  %1883 = vst [vmem:[%s3187_s15 + $0x80] sm:$0xff] %v1827_v23 }
 0x1b4   : > { %v1852_v52 = vpop.trf.xlu1  ;;  %v1828_v54 = vpop.trf.xlu0 }
 0x1b5   : > { %1870 = vst [vmem:[%s3187_s15 + $0x18] sm:$0xff] %v1852_v52  ;;  %1885 = vst [vmem:[%s3187_s15 + $0x90] sm:$0xff] %v1828_v54 }
 0x1b8   : > { %v1853_v34 = vpop.trf.xlu1  ;;  %v1829_v12 = vpop.trf.xlu0 }
 0x1b9   : > { %1872 = vst [vmem:[%s3187_s15 + $0x28] sm:$0xff] %v1853_v34  ;;  %1887 = vst [vmem:[%s3187_s15 + $0xa0] sm:$0xff] %v1829_v12 }
 0x1bc   : > { %v1854_v22 = vpop.trf.xlu1  ;;  %v1830_v26 = vpop.trf.xlu0 }
 0x1bd   : > { %1874 = vst [vmem:[%s3187_s15 + $0x38] sm:$0xff] %v1854_v22  ;;  %1889 = vst [vmem:[%s3187_s15 + $0xb0] sm:$0xff] %v1830_v26 }
 0x1c0   : > { %v1855_v60 = vpop.trf.xlu1  ;;  %v1831_v5 = vpop.trf.xlu0 }
 0x1c1   : > { %1876 = vst [vmem:[%s3187_s15 + $0x48] sm:$0xff] %v1855_v60  ;;  %1891 = vst [vmem:[%s3187_s15 + $0xc0] sm:$0xff] %v1831_v5 }
 0x1c4   : > { %v1856_v39 = vpop.trf.xlu1  ;;  %v1832_v18 = vpop.trf.xlu0 }
 0x1c5   : > { %1878 = vst [vmem:[%s3187_s15 + $0x58] sm:$0xff] %v1856_v39  ;;  %1893 = vst [vmem:[%s3187_s15 + $0xd0] sm:$0xff] %v1832_v18 }
 0x1c8   : > { %v1857_v24 = vpop.trf.xlu1  ;;  %v1833_v32 = vpop.trf.xlu0 }
 0x1c9   : > { %1880 = vst [vmem:[%s3187_s15 + $0x68] sm:$0xff] %v1857_v24  ;;  %1895 = vst [vmem:[%s3187_s15 + $0xe0] sm:$0xff] %v1833_v32 }
 0x1cc   : > { %v1858_v63 = vpop.trf.xlu1  ;;  %v1834_v47 = vpop.trf.xlu0 }
 0x1cd   : > { %1882 = vst [vmem:[%s3187_s15 + $0x78] sm:$0xff] %v1858_v63  ;;  %1897 = vst [vmem:[%s3187_s15 + $0xf0] sm:$0xff] %v1834_v47 }
 0x1d0   : > { %v1859_v19 = vpop.trf.xlu1 }
 0x1d1   : > { %1884 = vst [vmem:[%s3187_s15 + $0x88] sm:$0xff] %v1859_v19 }
 0x1d4   : > { %v1860_v17 = vpop.trf.xlu1 }
 0x1d5   : > { %1886 = vst [vmem:[%s3187_s15 + $0x98] sm:$0xff] %v1860_v17 }
 0x1d8   : > { %v1861_v55 = vpop.trf.xlu1 }
 0x1d9   : > { %1888 = vst [vmem:[%s3187_s15 + $0xa8] sm:$0xff] %v1861_v55 }
 0x1dc   : > { %v1862_v0 = vpop.trf.xlu1 }
 0x1dd   : > { %1890 = vst [vmem:[%s3187_s15 + $0xb8] sm:$0xff] %v1862_v0 }
 0x1e0   : > { %v1863_v3 = vpop.trf.xlu1 }
 0x1e1   : > { %1892 = vst [vmem:[%s3187_s15 + $0xc8] sm:$0xff] %v1863_v3 }
 0x1e4   : > { %v1864_v35 = vpop.trf.xlu1 }
 0x1e5   : > { %1894 = vst [vmem:[%s3187_s15 + $0xd8] sm:$0xff] %v1864_v35 }
 0x1e8   : > { %v1865_v33 = vpop.trf.xlu1 }
 0x1e9   : > { %1896 = vst [vmem:[%s3187_s15 + $0xe8] sm:$0xff] %v1865_v33 }
 0x1ec   : > { %v1866_v56 = vpop.trf.xlu1 }
 0x1ed   : > { %1898 = vst [vmem:[%s3187_s15 + $0xf8] sm:$0xff] %v1866_v56 }
 0x1ee PF: > { %s22_s23 = sadd.s32 1, %s2610_s23   ;;  %s3243_s21 = smov %s2606_s22 }
 0x1ef   : > { %p19_p5 = scmp.ge.s32.totalorder %s22_s23, 4   ;;  %s3244_s22 = smov %s3246_s24 }
 0x1f1   :  { %21 = sbr.rel (!%p19_p5) target bundleno = 2 (0x2), region = 104 }

</bundles_post_ra>
